<compile_context>
chip_gen: v7x
topology: tpu7x:2x2x1
jax: 0.10.0
libtpu: 0.0.40
codegen_flags: <defaults>
</compile_context>

<pallas_src>
import functools

import jax
import jax.numpy as jnp
from jax.experimental import pallas as pl
from jax.experimental.pallas import tpu as pltpu

CPAD = 128                       # lane-dense channel width carried through convs
VMEM_LIMIT = 48 * 1024 * 1024    # explicit scoped-VMEM cap (v5e default is 16 MiB)


def _round_up(x, m):
    return (x + m - 1) // m * m


def _pick_tm(M):
    for t in (256, 128, 64, 32, 16, 8):
        if M % t == 0:
            return t
    return None


# --------------------------- LayerNorm kernel ---------------------------

def _ln_kernel(x_ref, g_ref, b_ref, o_ref, *, eps):
    x = x_ref[...].astype(jnp.float32)
    mu = jnp.mean(x, axis=-1, keepdims=True)
    var = jnp.mean((x - mu) ** 2, axis=-1, keepdims=True)
    xn = (x - mu) * jax.lax.rsqrt(var + eps)
    o_ref[...] = (xn * g_ref[...] + b_ref[...]).astype(o_ref.dtype)


def layernorm(x, gamma, beta, eps=1e-5):
    """x: [M, D] row-wise LayerNorm, tiled over rows, bf16 in / bf16 out."""
    M, D = x.shape
    tm = _pick_tm(M)
    if tm is None:                               # safety fallback (unused here)
        Mp = _round_up(M, 8)
        x = jnp.pad(x, ((0, Mp - M), (0, 0)))
        tm = 8
    else:
        Mp = M
    out = pl.pallas_call(
        functools.partial(_ln_kernel, eps=eps),
        out_shape=jax.ShapeDtypeStruct((Mp, D), x.dtype),
        grid=(Mp // tm,),
        in_specs=[pl.BlockSpec((tm, D), lambda i: (i, 0)),
                  pl.BlockSpec((1, D), lambda i: (0, 0)),
                  pl.BlockSpec((1, D), lambda i: (0, 0))],
        out_specs=pl.BlockSpec((tm, D), lambda i: (i, 0)),
        compiler_params=pltpu.CompilerParams(
            dimension_semantics=("parallel",),
            vmem_limit_bytes=VMEM_LIMIT),
    )(x, gamma.reshape(1, D).astype(jnp.float32),
      beta.reshape(1, D).astype(jnp.float32))
    return out[:M] if Mp != M else out


# --------------------- tiled GEMM + fused epilogue ---------------------

def _mm_kernel(*refs, act, nk, has_bias, has_ln, has_res, eps):
    it = iter(refs)
    a_ref = next(it)
    b_ref = next(it)
    bias_ref = next(it) if has_bias else None
    if has_ln:
        g_ref = next(it)
        be_ref = next(it)
    res_ref = next(it) if has_res else None
    o_ref = next(it)
    acc_ref = next(it)

    @pl.when(pl.program_id(2) == 0)
    def _():
        acc_ref[...] = jnp.zeros_like(acc_ref)

    a = a_ref[...]                               # bf16
    if has_ln:
        # Pre-op LayerNorm on the A tile (only used when one K tile == full row).
        af = a.astype(jnp.float32)
        mu = jnp.mean(af, axis=-1, keepdims=True)
        var = jnp.mean((af - mu) ** 2, axis=-1, keepdims=True)
        af = (af - mu) * jax.lax.rsqrt(var + eps) * g_ref[...] + be_ref[...]
        a = af.astype(a_ref.dtype)               # back to bf16 for the MXU

    acc_ref[...] += jnp.dot(a, b_ref[...], preferred_element_type=jnp.float32)

    @pl.when(pl.program_id(2) == nk - 1)
    def _():
        out = acc_ref[...]
        if has_bias:
            out = out + bias_ref[...]
        if act == "relu":
            out = jnp.maximum(out, 0.0)
        elif act == "gelu":
            # TODO(synk): PyTorch nn.GELU default is exact (erf); tanh approx is
            # used here to guarantee Mosaic lowering.
            out = jax.nn.gelu(out, approximate=True)
        elif act == "sigmoid":
            out = jax.nn.sigmoid(out)
        if has_res:
            out = out + res_ref[...].astype(jnp.float32)
        o_ref[...] = out.astype(o_ref.dtype)


def matmul_bias_act(a, w, bias=None, *, act="none", residual=None, ln=None,
                    eps=1e-5, out_dtype=jnp.bfloat16):
    """out = act(a @ w + bias) [+ residual], optional fused pre-LayerNorm on `a`
    (ln = (gamma, beta)).  a: [M, K] bf16, w: [K, Np] bf16 (pre-packed / padded),
    bias: [Np] f32, residual: [M, Np] bf16.  No per-call activation padding."""
    M, K = a.shape
    K2, Np = w.shape
    assert K == K2

    # ---------------- tile selection (no ragged padding in practice) ---------
    tm = _pick_tm(M)
    pad_m = tm is None
    if pad_m:                                    # safety fallback (unused here)
        Mp = _round_up(M, 8)
        tm = 8
        a = jnp.pad(a, ((0, Mp - M), (0, 0)))
        if residual is not None:
            residual = jnp.pad(residual, ((0, Mp - M), (0, 0)))
    else:
        Mp = M

    tn = Np
    if Np > 512:
        for t in (512, 256, 128):
            if Np % t == 0:
                tn = t
                break

    tk = K
    if K > 2048:
        for t in (1024, 512, 256, 128):
            if K % t == 0:
                tk = t
                break
    gm, gn, gk = Mp // tm, Np // tn, K // tk

    if ln is not None and gk != 1:
        # LN fusion only valid when the whole feature row sits in one K tile.
        a = layernorm(a, ln[0], ln[1], eps=eps)
        ln = None

    # Keep both v7x TensorCores busy when the parallel grid collapses to 1 tile.
    if gm == 1 and gn == 1 and tm >= 16:
        tm //= 2
        gm = Mp // tm

    in_arrays = [a, w]
    in_specs = [pl.BlockSpec((tm, tk), lambda i, j, k: (i, k)),
                pl.BlockSpec((tk, tn), lambda i, j, k: (k, j))]
    has_bias = bias is not None
    if has_bias:
        in_arrays.append(bias.reshape(1, Np).astype(jnp.float32))
        in_specs.append(pl.BlockSpec((1, tn), lambda i, j, k: (0, j)))
    if ln is not None:
        in_arrays += [ln[0].reshape(1, K).astype(jnp.float32),
                      ln[1].reshape(1, K).astype(jnp.float32)]
        in_specs += [pl.BlockSpec((1, tk), lambda i, j, k: (0, k)),
                     pl.BlockSpec((1, tk), lambda i, j, k: (0, k))]
    if residual is not None:
        in_arrays.append(residual)
        in_specs.append(pl.BlockSpec((tm, tn), lambda i, j, k: (i, j)))

    kernel = functools.partial(_mm_kernel, act=act, nk=gk, has_bias=has_bias,
                               has_ln=ln is not None,
                               has_res=residual is not None, eps=eps)
    out = pl.pallas_call(
        kernel,
        out_shape=jax.ShapeDtypeStruct((Mp, Np), out_dtype),
        grid=(gm, gn, gk),
        in_specs=in_specs,
        out_specs=pl.BlockSpec((tm, tn), lambda i, j, k: (i, j)),
        scratch_shapes=[pltpu.VMEM((tm, tn), jnp.float32)],
        compiler_params=pltpu.CompilerParams(
            dimension_semantics=("parallel", "parallel", "arbitrary"),
            vmem_limit_bytes=VMEM_LIMIT),
    )(*in_arrays)
    return out[:M] if pad_m else out


# --------------------------- attention kernel ---------------------------

def _attn_kernel(qkv_ref, o_ref, *, heads, dh, scale):
    x = qkv_ref[0]                               # [N, 3*heads*dh] bf16
    inner = heads * dh
    outs = []
    for h in range(heads):                       # static per-head loop
        q = x[:, h * dh:(h + 1) * dh]
        k = x[:, inner + h * dh: inner + (h + 1) * dh]
        v = x[:, 2 * inner + h * dh: 2 * inner + (h + 1) * dh]
        # contract dh without materializing k.T; bf16 operands, f32 accumulate
        s = jax.lax.dot_general(q, k, (((1,), (1,)), ((), ())),
                                preferred_element_type=jnp.float32) * scale
        m = jnp.max(s, axis=-1, keepdims=True)
        p = jnp.exp(s - m)
        p = p / jnp.sum(p, axis=-1, keepdims=True)          # exact divide
        o = jnp.dot(p.astype(v.dtype), v, preferred_element_type=jnp.float32)
        outs.append(o)
    o_ref[0] = jnp.concatenate(outs, axis=-1).astype(o_ref.dtype)


def attention(qkv, heads, dh):
    """qkv: [B, N, 3*heads*dh] directly from the QKV GEMM (q|k|v lane segments,
    head-major inside each) -> [B, N, heads*dh] in the exact layout the
    out-projection GEMM consumes.  No XLA transposes around the kernel."""
    B, N, three_inner = qkv.shape
    inner = heads * dh
    assert three_inner == 3 * inner
    scale = dh ** -0.5
    # TODO(synk): full (N, N) score per head in VMEM; flash-style KV tiling is
    # required for long sequences / the 512x512 default config.
    return pl.pallas_call(
        functools.partial(_attn_kernel, heads=heads, dh=dh, scale=scale),
        out_shape=jax.ShapeDtypeStruct((B, N, inner), qkv.dtype),
        grid=(B,),
        in_specs=[pl.BlockSpec((1, N, three_inner), lambda b: (b, 0, 0))],
        out_specs=pl.BlockSpec((1, N, inner), lambda b: (b, 0, 0)),
        compiler_params=pltpu.CompilerParams(
            dimension_semantics=("parallel",),
            vmem_limit_bytes=VMEM_LIMIT),
    )(qkv)


# --------------------------- conv / block helpers ---------------------------

def conv2d_nhwc(x, w_packed, b, ksize, act="none", residual=None):
    """x: NHWC [B,H,W,Cin] bf16 (Cin = carried width, lane-padded for all but
    the raw image); w_packed: [ksize*ksize*Cin, Cout_pad] bf16; 'same' padding.
    Optional residual [B,H,W,Cout_pad] fused into the GEMM epilogue."""
    B, H, W, Cin = x.shape
    KK, Cout = w_packed.shape
    assert KK == ksize * ksize * Cin
    p = ksize // 2
    xp = jnp.pad(x, ((0, 0), (p, p), (p, p), (0, 0)))
    # channels-last im2col: concat shifted views on the lane axis (no transpose)
    cols = [xp[:, i:i + H, j:j + W, :]
            for i in range(ksize) for j in range(ksize)]
    col = jnp.concatenate(cols, axis=-1).reshape(B * H * W, KK)
    res2d = residual.reshape(B * H * W, Cout) if residual is not None else None
    # TODO(synk): im2col is still materialized (in bf16) once per conv; fully
    # fusing the kh*kw tap loop into the GEMM needs element-offset BlockSpecs.
    out = matmul_bias_act(col, w_packed, b, act=act, residual=res2d)
    return out.reshape(B, H, W, Cout)


def res_block(x, p, ksize):
    y = conv2d_nhwc(x, p["w1"], p["b1"], ksize, act="relu")
    # second conv with the skip connection fused into the GEMM epilogue
    return conv2d_nhwc(y, p["w2"], p["b2"], ksize, act="none", residual=x)


# -------------------------------- ViT encoder --------------------------------

def vit_forward(x_img, p):
    """x_img: NHWC [B, H, W, CPAD] -> (tokens [B,N,D], cls, weights_list, l_aux)."""
    B, H, W, Cc = x_img.shape
    ps = p["patch_size"]
    h, w = H // ps, W // ps
    N = h * w
    D = p["dim"]
    heads, dh = p["heads"], p["dim_head"]
    inner = heads * dh

    # b (h p1) (w p2) c -> (b h w) (p1 p2 c)   (c already lane-padded)
    patches = (x_img.reshape(B, h, ps, w, ps, Cc)
               .transpose(0, 1, 3, 2, 4, 5)
               .reshape(B * N, ps * ps * Cc))
    pos = jnp.broadcast_to(p["pos_emb"], (B, N, D)).reshape(B * N, D)
    # patch embedding with the positional embedding fused as the residual
    x2 = matmul_bias_act(patches, p["patch_w"], p["patch_b"], residual=pos)

    for layer in p["layers"]:
        # --- attention sub-block (LN fused into QKV GEMM, no bias on QKV) ---
        qkv = matmul_bias_act(x2, layer["w_qkv"], None,
                              ln=(layer["ln1_g"], layer["ln1_b"]))
        o = attention(qkv.reshape(B, N, 3 * inner), heads, dh)
        # out projection with the residual fused into the epilogue
        x2 = matmul_bias_act(o.reshape(B * N, inner), layer["w_o"],
                             layer["b_o"], residual=x2)
        # --- MLP sub-block (LN fused into MLP1, residual fused into MLP2) ---
        h1 = matmul_bias_act(x2, layer["w_mlp1"], layer["b_mlp1"], act="gelu",
                             ln=(layer["ln2_g"], layer["ln2_b"]))
        x2 = matmul_bias_act(h1, layer["w_mlp2"], layer["b_mlp2"], residual=x2)

    x2 = layernorm(x2, p["ln_f_g"], p["ln_f_b"])
    x = x2.reshape(B, N, D)
    cls_output = jnp.mean(x.astype(jnp.float32), axis=1)
    return x, cls_output, [], jnp.float32(0.0)


# -------------------------------- MoWE forward --------------------------------

def mowe_forward(img_lq, params):
    cfg = params["cfg"]
    ks = cfg["kernel_size"]
    # NCHW (PyTorch) -> NHWC once; all internal compute is channels-last bf16.
    x_nhwc = jnp.transpose(img_lq, (0, 2, 3, 1)).astype(jnp.bfloat16)
    in_ch = x_nhwc.shape[-1]

    # head: conv + 2 ResBlocks (carried at CPAD channels after the first conv)
    x = conv2d_nhwc(x_nhwc, params["head_conv_w"], params["head_conv_b"], ks)
    x = res_block(x, params["head_res1"], ks)
    x = res_block(x, params["head_res2"], ks)

    # ViT encoder
    dec, cls_output, weights_list, l_aux = vit_forward(x, params["vit"])

    # patch_embed_to_img_feature: Linear (channel group pre-padded to CPAD)
    B, N, D = dec.shape
    y = matmul_bias_act(dec.reshape(B * N, D), params["p2i_w"], params["p2i_b"])
    ps, h, w = cfg["patch_size"], cfg["h"], cfg["w"]
    # b (h w) (p1 p2 c) -> b (h p1) (w p2) c   (c already CPAD)
    y = (y.reshape(B, h, w, ps, ps, CPAD)
         .transpose(0, 1, 3, 2, 4, 5)
         .reshape(B, h * ps, w * ps, CPAD))

    # tail: Upsampler(scale=1) == identity; ResBlock, conv, ResBlock, conv+Sigmoid
    t = params["tail"]
    y = res_block(y, t["res1"], ks)
    y = conv2d_nhwc(y, t["conv1_w"], t["conv1_b"], ks)
    y = res_block(y, t["res2"], ks)
    # final conv + sigmoid with the (channel-padded) image residual fused
    img_res = jnp.pad(x_nhwc, ((0, 0), (0, 0), (0, 0), (0, CPAD - in_ch)))
    y = conv2d_nhwc(y, t["conv2_w"], t["conv2_b"], ks, act="sigmoid",
                    residual=img_res)

    # slice the true 3 output channels only now; back to NCHW f32 for the caller
    img_hq = jnp.transpose(y[..., :3], (0, 3, 1, 2)).astype(jnp.float32)
    return img_hq, cls_output, weights_list, l_aux


# ------------------------------ parameter init ------------------------------

def init_params(key, *, img_size, in_ch, out_ch, patch_size, embed_dim,
                depth, n_heads, dim_head, scale_dim, out_ch_scale, kernel_size):
    keys = iter(jax.random.split(key, 256))
    nk = lambda: next(keys)
    sc = 0.02
    f32, bf16 = jnp.float32, jnp.bfloat16

    def pack_conv(cin_true, cout_true, cin_carr):
        """True HWIO conv weight embedded in a lane-dense packed GEMM weight:
        K = taps x carried-Cin (zero rows for channel pad), N = Cout -> CPAD."""
        wt = jax.random.normal(nk(), (kernel_size, kernel_size, cin_true,
                                      cout_true), f32) * sc
        cout_p = _round_up(cout_true, CPAD)
        wp = jnp.zeros((kernel_size, kernel_size, cin_carr, cout_p), f32)
        wp = wp.at[:, :, :cin_true, :cout_true].set(wt)
        wp = wp.reshape(kernel_size * kernel_size * cin_carr, cout_p)
        return wp.astype(bf16), jnp.zeros((cout_p,), f32)

    def resblock_p(ch_true):
        w1, b1 = pack_conv(ch_true, ch_true, CPAD)
        w2, b2 = pack_conv(ch_true, ch_true, CPAD)
        return {"w1": w1, "b1": b1, "w2": w2, "b2": b2}

    h = img_size // patch_size
    w = img_size // patch_size
    num_token = h * w
    mlp_dim = int(embed_dim * scale_dim)
    inner = n_heads * dim_head
    c_up_true = out_ch * out_ch_scale

    head_w, head_b = pack_conv(in_ch, out_ch, in_ch)   # first conv reads 3-ch img

    # patch embedding consumes the CPAD-carried head feature: zero rows at pads
    pw_true = jax.random.normal(nk(), (patch_size * patch_size, out_ch,
                                       embed_dim), f32) * sc
    patch_w = jnp.zeros((patch_size * patch_size, CPAD, embed_dim), f32)
    patch_w = patch_w.at[:, :out_ch, :].set(pw_true)
    patch_w = (patch_w.reshape(patch_size * patch_size * CPAD, embed_dim)
               .astype(bf16))
    patch_b = jnp.zeros((embed_dim,), f32)

    layers = []
    for _ in range(depth):
        layers.append({
            "ln1_g": jnp.ones((embed_dim,), f32),
            "ln1_b": jnp.zeros((embed_dim,), f32),
            "w_qkv": (jax.random.normal(nk(), (embed_dim, 3 * inner), f32)
                      * sc).astype(bf16),
            "w_o": (jax.random.normal(nk(), (inner, embed_dim), f32)
                    * sc).astype(bf16),
            "b_o": jnp.zeros((embed_dim,), f32),
            "ln2_g": jnp.ones((embed_dim,), f32),
            "ln2_b": jnp.zeros((embed_dim,), f32),
            "w_mlp1": (jax.random.normal(nk(), (embed_dim, mlp_dim), f32)
                       * sc).astype(bf16),
            "b_mlp1": jnp.zeros((mlp_dim,), f32),
            "w_mlp2": (jax.random.normal(nk(), (mlp_dim, embed_dim), f32)
                       * sc).astype(bf16),
            "b_mlp2": jnp.zeros((embed_dim,), f32),
        })

    vit = {
        "patch_size": patch_size, "dim": embed_dim, "heads": n_heads,
        "dim_head": dim_head,
        "patch_w": patch_w, "patch_b": patch_b,
        "pos_emb": (jax.random.normal(nk(), (1, num_token, embed_dim), f32)
                    * sc).astype(bf16),
        "layers": layers,
        "ln_f_g": jnp.ones((embed_dim,), f32),
        "ln_f_b": jnp.zeros((embed_dim,), f32),
    }

    # patch_embed_to_img_feature: Linear(embed_dim -> ps^2 * c_up); the per-pixel
    # channel group is pre-padded to CPAD (zero columns) so the rearranged image
    # feature is already lane-dense for the tail convs.
    p2i_true = jax.random.normal(nk(), (embed_dim, patch_size * patch_size,
                                        c_up_true), f32) * sc
    p2i_w = jnp.zeros((embed_dim, patch_size * patch_size, CPAD), f32)
    p2i_w = p2i_w.at[:, :, :c_up_true].set(p2i_true)
    p2i_w = p2i_w.reshape(embed_dim, patch_size * patch_size * CPAD).astype(bf16)
    p2i_b = jnp.zeros((patch_size * patch_size * CPAD,), f32)

    tc1_w, tc1_b = pack_conv(c_up_true, c_up_true // 2, CPAD)
    tc2_w, tc2_b = pack_conv(c_up_true // 2, 3, CPAD)
    tail = {
        "res1": resblock_p(c_up_true),
        "conv1_w": tc1_w, "conv1_b": tc1_b,
        "res2": resblock_p(c_up_true // 2),
        "conv2_w": tc2_w, "conv2_b": tc2_b,
    }

    return {
        "cfg": {"patch_size": patch_size, "h": h, "w": w,
                "kernel_size": kernel_size},
        "head_conv_w": head_w, "head_conv_b": head_b,
        "head_res1": resblock_p(out_ch), "head_res2": resblock_p(out_ch),
        "vit": vit,
        "p2i_w": p2i_w, "p2i_b": p2i_b,
        "tail": tail,
    }


# ----------------------------------- main -----------------------------------

if __name__ == "__main__":
    # Small config consistent with the module (in_ch=3 so the image residual
    # `img_hq + img_lq` is well-formed against the 3-channel tail output).
    B, in_ch, img_size = 2, 3, 16
    out_ch, patch_size, embed_dim = 8, 8, 32
    depth, n_heads, dim_head = 2, 4, 8
    scale_dim, out_ch_scale, kernel_size = 4, 2, 3

    key = jax.random.PRNGKey(0)
    k_param, k_data = jax.random.split(key)
    params = init_params(
        k_param, img_size=img_size, in_ch=in_ch, out_ch=out_ch,
        patch_size=patch_size, embed_dim=embed_dim, depth=depth,
        n_heads=n_heads, dim_head=dim_head, scale_dim=scale_dim,
        out_ch_scale=out_ch_scale, kernel_size=kernel_size)

    img_lq = jax.random.uniform(k_data, (B, in_ch, img_size, img_size),
                                jnp.float32)

    fwd = jax.jit(functools.partial(mowe_forward, params=params))
    img_hq, cls_output, weights_list, l_aux = fwd(img_lq)
    jax.block_until_ready(img_hq)
    jax.block_until_ready(cls_output)

    assert img_hq.shape == (B, 3, img_size, img_size)
    assert cls_output.shape == (B, embed_dim)
    print("KERNEL_OK")
</pallas_src>

<mosaic_0001>
module attributes {stable_mosaic.version = 11 : i64} {
  func.func @_mm_kernel(%arg0: i32, %arg1: i32, %arg2: i32, %arg3: memref<256x27xbf16, #tpu.memory_space<vmem>>, %arg4: memref<27x128xbf16, #tpu.memory_space<vmem>>, %arg5: memref<1x128xf32, #tpu.memory_space<vmem>>, %arg6: memref<256x128xbf16, #tpu.memory_space<vmem>>, %arg7: memref<256x128xf32, #tpu.memory_space<vmem>>) attributes {dimension_semantics = [#tpu.dimension_semantics<parallel>, #tpu.dimension_semantics<parallel>, #tpu.dimension_semantics<arbitrary>], iteration_bounds = array<i64: 2, 1, 1>, scalar_prefetch = 0 : i64, scratch_operands = 1 : i64, tpu.core_type = #tpu.core_type<tc>, window_params = [{transform_indices = @transform_0, window_bounds = array<i64: 256, 27>}, {transform_indices = @transform_1, window_bounds = array<i64: 27, 128>}, {transform_indices = @transform_2, window_bounds = array<i64: 1, 128>}, {transform_indices = @transform_3, window_bounds = array<i64: 256, 128>}]} {
    %c0_i32 = arith.constant 0 : i32
    %0 = arith.cmpi eq, %arg2, %c0_i32 : i32
    %1 = arith.extui %0 : i1 to i32
    %c0_i32_0 = arith.constant 0 : i32
    %2 = arith.cmpi ne, %1, %c0_i32_0 : i32
    scf.if %2 {
      %cst_10 = arith.constant 0.000000e+00 : f32
      %12 = vector.broadcast %cst_10 : f32 to vector<256x128xf32>
      %c0_11 = arith.constant 0 : index
      %c0_12 = arith.constant 0 : index
      %13 = vector.load %arg7[%c0_11, %c0_12] : memref<256x128xf32, #tpu.memory_space<vmem>>, vector<256x128xf32>
      tpu.vector_store %arg7[%c0_11, %c0_12], %12 {strides = array<i32>} : memref<256x128xf32, #tpu.memory_space<vmem>>, vector<256x128xf32>,
    } else {
    }
    %c0 = arith.constant 0 : index
    %c0_1 = arith.constant 0 : index
    %3 = vector.load %arg3[%c0, %c0_1] : memref<256x27xbf16, #tpu.memory_space<vmem>>, vector<256x27xbf16>
    %c0_2 = arith.constant 0 : index
    %c0_3 = arith.constant 0 : index
    %4 = vector.load %arg7[%c0_2, %c0_3] : memref<256x128xf32, #tpu.memory_space<vmem>>, vector<256x128xf32>
    %c0_4 = arith.constant 0 : index
    %c0_5 = arith.constant 0 : index
    %5 = vector.load %arg4[%c0_4, %c0_5] : memref<27x128xbf16, #tpu.memory_space<vmem>>, vector<27x128xbf16>
    %cst = arith.constant dense<0.000000e+00> : vector<256x128xf32>
    %6 = tpu.matmul %3, %5, %cst {dimension_numbers = #tpu.dot_dimension_numbers<[1], [0], [0], [1], [0, 0, 1, 1], [], []>} : vector<256x27xbf16>, vector<27x128xbf16>, vector<256x128xf32> -> vector<256x128xf32>
    %7 = arith.addf %4, %6 : vector<256x128xf32>
    %c0_6 = arith.constant 0 : index
    %c0_7 = arith.constant 0 : index
    %8 = vector.load %arg7[%c0_6, %c0_7] : memref<256x128xf32, #tpu.memory_space<vmem>>, vector<256x128xf32>
    tpu.vector_store %arg7[%c0_6, %c0_7], %7 {strides = array<i32>} : memref<256x128xf32, #tpu.memory_space<vmem>>, vector<256x128xf32>,
    %c0_i32_8 = arith.constant 0 : i32
    %9 = arith.cmpi eq, %arg2, %c0_i32_8 : i32
    %10 = arith.extui %9 : i1 to i32
    %c0_i32_9 = arith.constant 0 : i32
    %11 = arith.cmpi ne, %10, %c0_i32_9 : i32
    scf.if %11 {
      %c0_10 = arith.constant 0 : index
      %c0_11 = arith.constant 0 : index
      %12 = vector.load %arg7[%c0_10, %c0_11] : memref<256x128xf32, #tpu.memory_space<vmem>>, vector<256x128xf32>
      %c0_12 = arith.constant 0 : index
      %c0_13 = arith.constant 0 : index
      %13 = vector.load %arg5[%c0_12, %c0_13] : memref<1x128xf32, #tpu.memory_space<vmem>>, vector<1x128xf32>
      %14 = vector.broadcast %13 : vector<1x128xf32> to vector<256x128xf32>
      %15 = arith.addf %12, %14 : vector<256x128xf32>
      %16 = arith.truncf %15 : vector<256x128xf32> to vector<256x128xbf16>
      %c0_14 = arith.constant 0 : index
      %c0_15 = arith.constant 0 : index
      %17 = vector.load %arg6[%c0_14, %c0_15] : memref<256x128xbf16, #tpu.memory_space<vmem>>, vector<256x128xbf16>
      tpu.vector_store %arg6[%c0_14, %c0_15], %16 {strides = array<i32>} : memref<256x128xbf16, #tpu.memory_space<vmem>>, vector<256x128xbf16>,
    } else {
    }
    return
  }
  func.func @transform_0(%arg0: i32, %arg1: i32, %arg2: i32) -> (i32, i32) {
    %c0_i32 = arith.constant 0 : i32
    return %arg0, %arg2 : i32, i32
  }
  func.func @transform_1(%arg0: i32, %arg1: i32, %arg2: i32) -> (i32, i32) {
    %c0_i32 = arith.constant 0 : i32
    return %arg2, %arg1 : i32, i32
  }
  func.func @transform_2(%arg0: i32, %arg1: i32, %arg2: i32) -> (i32, i32) {
    %c0_i32 = arith.constant 0 : i32
    %c0_i32_0 = arith.constant 0 : i32
    return %c0_i32, %arg1 : i32, i32
  }
  func.func @transform_3(%arg0: i32, %arg1: i32, %arg2: i32) -> (i32, i32) {
    %c0_i32 = arith.constant 0 : i32
    return %arg0, %arg1 : i32, i32
  }
}

module attributes {stable_mosaic.version = 11 : i64} {
  func.func @_mm_kernel(%arg0: i32, %arg1: i32, %arg2: i32, %arg3: memref<256x1152xbf16, #tpu.memory_space<vmem>>, %arg4: memref<1152x128xbf16, #tpu.memory_space<vmem>>, %arg5: memref<1x128xf32, #tpu.memory_space<vmem>>, %arg6: memref<256x128xbf16, #tpu.memory_space<vmem>>, %arg7: memref<256x128xf32, #tpu.memory_space<vmem>>) attributes {dimension_semantics = [#tpu.dimension_semantics<parallel>, #tpu.dimension_semantics<parallel>, #tpu.dimension_semantics<arbitrary>], iteration_bounds = array<i64: 2, 1, 1>, scalar_prefetch = 0 : i64, scratch_operands = 1 : i64, tpu.core_type = #tpu.core_type<tc>, window_params = [{transform_indices = @transform_0, window_bounds = array<i64: 256, 1152>}, {transform_indices = @transform_1, window_bounds = array<i64: 1152, 128>}, {transform_indices = @transform_2, window_bounds = array<i64: 1, 128>}, {transform_indices = @transform_3, window_bounds = array<i64: 256, 128>}]} {
    %c0_i32 = arith.constant 0 : i32
    %0 = arith.cmpi eq, %arg2, %c0_i32 : i32
    %1 = arith.extui %0 : i1 to i32
    %c0_i32_0 = arith.constant 0 : i32
    %2 = arith.cmpi ne, %1, %c0_i32_0 : i32
    scf.if %2 {
      %cst_10 = arith.constant 0.000000e+00 : f32
      %12 = vector.broadcast %cst_10 : f32 to vector<256x128xf32>
      %c0_11 = arith.constant 0 : index
      %c0_12 = arith.constant 0 : index
      %13 = vector.load %arg7[%c0_11, %c0_12] : memref<256x128xf32, #tpu.memory_space<vmem>>, vector<256x128xf32>
      tpu.vector_store %arg7[%c0_11, %c0_12], %12 {strides = array<i32>} : memref<256x128xf32, #tpu.memory_space<vmem>>, vector<256x128xf32>,
    } else {
    }
    %c0 = arith.constant 0 : index
    %c0_1 = arith.constant 0 : index
    %3 = vector.load %arg3[%c0, %c0_1] : memref<256x1152xbf16, #tpu.memory_space<vmem>>, vector<256x1152xbf16>
    %c0_2 = arith.constant 0 : index
    %c0_3 = arith.constant 0 : index
    %4 = vector.load %arg7[%c0_2, %c0_3] : memref<256x128xf32, #tpu.memory_space<vmem>>, vector<256x128xf32>
    %c0_4 = arith.constant 0 : index
    %c0_5 = arith.constant 0 : index
    %5 = vector.load %arg4[%c0_4, %c0_5] : memref<1152x128xbf16, #tpu.memory_space<vmem>>, vector<1152x128xbf16>
    %cst = arith.constant dense<0.000000e+00> : vector<256x128xf32>
    %6 = tpu.matmul %3, %5, %cst {dimension_numbers = #tpu.dot_dimension_numbers<[1], [0], [0], [1], [0, 0, 1, 1], [], []>} : vector<256x1152xbf16>, vector<1152x128xbf16>, vector<256x128xf32> -> vector<256x128xf32>
    %7 = arith.addf %4, %6 : vector<256x128xf32>
    %c0_6 = arith.constant 0 : index
    %c0_7 = arith.constant 0 : index
    %8 = vector.load %arg7[%c0_6, %c0_7] : memref<256x128xf32, #tpu.memory_space<vmem>>, vector<256x128xf32>
    tpu.vector_store %arg7[%c0_6, %c0_7], %7 {strides = array<i32>} : memref<256x128xf32, #tpu.memory_space<vmem>>, vector<256x128xf32>,
    %c0_i32_8 = arith.constant 0 : i32
    %9 = arith.cmpi eq, %arg2, %c0_i32_8 : i32
    %10 = arith.extui %9 : i1 to i32
    %c0_i32_9 = arith.constant 0 : i32
    %11 = arith.cmpi ne, %10, %c0_i32_9 : i32
    scf.if %11 {
      %c0_10 = arith.constant 0 : index
      %c0_11 = arith.constant 0 : index
      %12 = vector.load %arg7[%c0_10, %c0_11] : memref<256x128xf32, #tpu.memory_space<vmem>>, vector<256x128xf32>
      %c0_12 = arith.constant 0 : index
      %c0_13 = arith.constant 0 : index
      %13 = vector.load %arg5[%c0_12, %c0_13] : memref<1x128xf32, #tpu.memory_space<vmem>>, vector<1x128xf32>
      %14 = vector.broadcast %13 : vector<1x128xf32> to vector<256x128xf32>
      %15 = arith.addf %12, %14 : vector<256x128xf32>
      %cst_14 = arith.constant 0.000000e+00 : f32
      %16 = vector.broadcast %cst_14 : f32 to vector<256x128xf32>
      %17 = arith.maximumf %15, %16 : vector<256x128xf32>
      %18 = arith.truncf %17 : vector<256x128xf32> to vector<256x128xbf16>
      %c0_15 = arith.constant 0 : index
      %c0_16 = arith.constant 0 : index
      %19 = vector.load %arg6[%c0_15, %c0_16] : memref<256x128xbf16, #tpu.memory_space<vmem>>, vector<256x128xbf16>
      tpu.vector_store %arg6[%c0_15, %c0_16], %18 {strides = array<i32>} : memref<256x128xbf16, #tpu.memory_space<vmem>>, vector<256x128xbf16>,
    } else {
    }
    return
  }
  func.func @transform_0(%arg0: i32, %arg1: i32, %arg2: i32) -> (i32, i32) {
    %c0_i32 = arith.constant 0 : i32
    return %arg0, %arg2 : i32, i32
  }
  func.func @transform_1(%arg0: i32, %arg1: i32, %arg2: i32) -> (i32, i32) {
    %c0_i32 = arith.constant 0 : i32
    return %arg2, %arg1 : i32, i32
  }
  func.func @transform_2(%arg0: i32, %arg1: i32, %arg2: i32) -> (i32, i32) {
    %c0_i32 = arith.constant 0 : i32
    %c0_i32_0 = arith.constant 0 : i32
    return %c0_i32, %arg1 : i32, i32
  }
  func.func @transform_3(%arg0: i32, %arg1: i32, %arg2: i32) -> (i32, i32) {
    %c0_i32 = arith.constant 0 : i32
    return %arg0, %arg1 : i32, i32
  }
}

module attributes {stable_mosaic.version = 11 : i64} {
  func.func @_mm_kernel(%arg0: i32, %arg1: i32, %arg2: i32, %arg3: memref<256x1152xbf16, #tpu.memory_space<vmem>>, %arg4: memref<1152x128xbf16, #tpu.memory_space<vmem>>, %arg5: memref<1x128xf32, #tpu.memory_space<vmem>>, %arg6: memref<256x128xbf16, #tpu.memory_space<vmem>>, %arg7: memref<256x128xbf16, #tpu.memory_space<vmem>>, %arg8: memref<256x128xf32, #tpu.memory_space<vmem>>) attributes {dimension_semantics = [#tpu.dimension_semantics<parallel>, #tpu.dimension_semantics<parallel>, #tpu.dimension_semantics<arbitrary>], iteration_bounds = array<i64: 2, 1, 1>, scalar_prefetch = 0 : i64, scratch_operands = 1 : i64, tpu.core_type = #tpu.core_type<tc>, window_params = [{transform_indices = @transform_0, window_bounds = array<i64: 256, 1152>}, {transform_indices = @transform_1, window_bounds = array<i64: 1152, 128>}, {transform_indices = @transform_2, window_bounds = array<i64: 1, 128>}, {transform_indices = @transform_3, window_bounds = array<i64: 256, 128>}, {transform_indices = @transform_4, window_bounds = array<i64: 256, 128>}]} {
    %c0_i32 = arith.constant 0 : i32
    %0 = arith.cmpi eq, %arg2, %c0_i32 : i32
    %1 = arith.extui %0 : i1 to i32
    %c0_i32_0 = arith.constant 0 : i32
    %2 = arith.cmpi ne, %1, %c0_i32_0 : i32
    scf.if %2 {
      %cst_10 = arith.constant 0.000000e+00 : f32
      %12 = vector.broadcast %cst_10 : f32 to vector<256x128xf32>
      %c0_11 = arith.constant 0 : index
      %c0_12 = arith.constant 0 : index
      %13 = vector.load %arg8[%c0_11, %c0_12] : memref<256x128xf32, #tpu.memory_space<vmem>>, vector<256x128xf32>
      tpu.vector_store %arg8[%c0_11, %c0_12], %12 {strides = array<i32>} : memref<256x128xf32, #tpu.memory_space<vmem>>, vector<256x128xf32>,
    } else {
    }
    %c0 = arith.constant 0 : index
    %c0_1 = arith.constant 0 : index
    %3 = vector.load %arg3[%c0, %c0_1] : memref<256x1152xbf16, #tpu.memory_space<vmem>>, vector<256x1152xbf16>
    %c0_2 = arith.constant 0 : index
    %c0_3 = arith.constant 0 : index
    %4 = vector.load %arg8[%c0_2, %c0_3] : memref<256x128xf32, #tpu.memory_space<vmem>>, vector<256x128xf32>
    %c0_4 = arith.constant 0 : index
    %c0_5 = arith.constant 0 : index
    %5 = vector.load %arg4[%c0_4, %c0_5] : memref<1152x128xbf16, #tpu.memory_space<vmem>>, vector<1152x128xbf16>
    %cst = arith.constant dense<0.000000e+00> : vector<256x128xf32>
    %6 = tpu.matmul %3, %5, %cst {dimension_numbers = #tpu.dot_dimension_numbers<[1], [0], [0], [1], [0, 0, 1, 1], [], []>} : vector<256x1152xbf16>, vector<1152x128xbf16>, vector<256x128xf32> -> vector<256x128xf32>
    %7 = arith.addf %4, %6 : vector<256x128xf32>
    %c0_6 = arith.constant 0 : index
    %c0_7 = arith.constant 0 : index
    %8 = vector.load %arg8[%c0_6, %c0_7] : memref<256x128xf32, #tpu.memory_space<vmem>>, vector<256x128xf32>
    tpu.vector_store %arg8[%c0_6, %c0_7], %7 {strides = array<i32>} : memref<256x128xf32, #tpu.memory_space<vmem>>, vector<256x128xf32>,
    %c0_i32_8 = arith.constant 0 : i32
    %9 = arith.cmpi eq, %arg2, %c0_i32_8 : i32
    %10 = arith.extui %9 : i1 to i32
    %c0_i32_9 = arith.constant 0 : i32
    %11 = arith.cmpi ne, %10, %c0_i32_9 : i32
    scf.if %11 {
      %c0_10 = arith.constant 0 : index
      %c0_11 = arith.constant 0 : index
      %12 = vector.load %arg8[%c0_10, %c0_11] : memref<256x128xf32, #tpu.memory_space<vmem>>, vector<256x128xf32>
      %c0_12 = arith.constant 0 : index
      %c0_13 = arith.constant 0 : index
      %13 = vector.load %arg5[%c0_12, %c0_13] : memref<1x128xf32, #tpu.memory_space<vmem>>, vector<1x128xf32>
      %14 = vector.broadcast %13 : vector<1x128xf32> to vector<256x128xf32>
      %15 = arith.addf %12, %14 : vector<256x128xf32>
      %c0_14 = arith.constant 0 : index
      %c0_15 = arith.constant 0 : index
      %16 = vector.load %arg6[%c0_14, %c0_15] : memref<256x128xbf16, #tpu.memory_space<vmem>>, vector<256x128xbf16>
      %17 = arith.extf %16 : vector<256x128xbf16> to vector<256x128xf32>
      %18 = arith.addf %15, %17 : vector<256x128xf32>
      %19 = arith.truncf %18 : vector<256x128xf32> to vector<256x128xbf16>
      %c0_16 = arith.constant 0 : index
      %c0_17 = arith.constant 0 : index
      %20 = vector.load %arg7[%c0_16, %c0_17] : memref<256x128xbf16, #tpu.memory_space<vmem>>, vector<256x128xbf16>
      tpu.vector_store %arg7[%c0_16, %c0_17], %19 {strides = array<i32>} : memref<256x128xbf16, #tpu.memory_space<vmem>>, vector<256x128xbf16>,
    } else {
    }
    return
  }
  func.func @transform_0(%arg0: i32, %arg1: i32, %arg2: i32) -> (i32, i32) {
    %c0_i32 = arith.constant 0 : i32
    return %arg0, %arg2 : i32, i32
  }
  func.func @transform_1(%arg0: i32, %arg1: i32, %arg2: i32) -> (i32, i32) {
    %c0_i32 = arith.constant 0 : i32
    return %arg2, %arg1 : i32, i32
  }
  func.func @transform_2(%arg0: i32, %arg1: i32, %arg2: i32) -> (i32, i32) {
    %c0_i32 = arith.constant 0 : i32
    %c0_i32_0 = arith.constant 0 : i32
    return %c0_i32, %arg1 : i32, i32
  }
  func.func @transform_3(%arg0: i32, %arg1: i32, %arg2: i32) -> (i32, i32) {
    %c0_i32 = arith.constant 0 : i32
    return %arg0, %arg1 : i32, i32
  }
  func.func @transform_4(%arg0: i32, %arg1: i32, %arg2: i32) -> (i32, i32) {
    %c0_i32 = arith.constant 0 : i32
    return %arg0, %arg1 : i32, i32
  }
}

module attributes {stable_mosaic.version = 11 : i64} {
  func.func @_mm_kernel(%arg0: i32, %arg1: i32, %arg2: i32, %arg3: memref<8x32xbf16, #tpu.memory_space<vmem>>, %arg4: memref<32x96xbf16, #tpu.memory_space<vmem>>, %arg5: memref<1x32xf32, #tpu.memory_space<vmem>>, %arg6: memref<1x32xf32, #tpu.memory_space<vmem>>, %arg7: memref<8x96xbf16, #tpu.memory_space<vmem>>, %arg8: memref<8x96xf32, #tpu.memory_space<vmem>>) attributes {dimension_semantics = [#tpu.dimension_semantics<parallel>, #tpu.dimension_semantics<parallel>, #tpu.dimension_semantics<arbitrary>], iteration_bounds = array<i64: 1, 1, 1>, scalar_prefetch = 0 : i64, scratch_operands = 1 : i64, tpu.core_type = #tpu.core_type<tc>, window_params = [{transform_indices = @transform_0, window_bounds = array<i64: 8, 32>}, {transform_indices = @transform_1, window_bounds = array<i64: 32, 96>}, {transform_indices = @transform_2, window_bounds = array<i64: 1, 32>}, {transform_indices = @transform_3, window_bounds = array<i64: 1, 32>}, {transform_indices = @transform_4, window_bounds = array<i64: 8, 96>}]} {
    %c0_i32 = arith.constant 0 : i32
    %0 = arith.cmpi eq, %arg2, %c0_i32 : i32
    %1 = arith.extui %0 : i1 to i32
    %c0_i32_0 = arith.constant 0 : i32
    %2 = arith.cmpi ne, %1, %c0_i32_0 : i32
    scf.if %2 {
      %cst_19 = arith.constant 0.000000e+00 : f32
      %38 = vector.broadcast %cst_19 : f32 to vector<8x96xf32>
      %c0_20 = arith.constant 0 : index
      %c0_21 = arith.constant 0 : index
      %39 = vector.load %arg8[%c0_20, %c0_21] : memref<8x96xf32, #tpu.memory_space<vmem>>, vector<8x96xf32>
      tpu.vector_store %arg8[%c0_20, %c0_21], %38 {strides = array<i32>} : memref<8x96xf32, #tpu.memory_space<vmem>>, vector<8x96xf32>,
    } else {
    }
    %c0 = arith.constant 0 : index
    %c0_1 = arith.constant 0 : index
    %3 = vector.load %arg3[%c0, %c0_1] : memref<8x32xbf16, #tpu.memory_space<vmem>>, vector<8x32xbf16>
    %4 = arith.extf %3 : vector<8x32xbf16> to vector<8x32xf32>
    %cst = arith.constant dense<0.000000e+00> : vector<8xf32>
    %5 = vector.multi_reduction <add>, %4, %cst [1] : vector<8x32xf32> to vector<8xf32>
    %6 = vector.shape_cast %5 : vector<8xf32> to vector<8x1xf32>
    %cst_2 = arith.constant 3.200000e+01 : f32
    %7 = vector.broadcast %cst_2 : f32 to vector<8x1xf32>
    %8 = arith.divf %6, %7 : vector<8x1xf32>
    %9 = vector.broadcast %8 : vector<8x1xf32> to vector<8x32xf32>
    %10 = arith.subf %4, %9 : vector<8x32xf32>
    %11 = arith.mulf %10, %10 : vector<8x32xf32>
    %cst_3 = arith.constant dense<0.000000e+00> : vector<8xf32>
    %12 = vector.multi_reduction <add>, %11, %cst_3 [1] : vector<8x32xf32> to vector<8xf32>
    %13 = vector.shape_cast %12 : vector<8xf32> to vector<8x1xf32>
    %cst_4 = arith.constant 3.200000e+01 : f32
    %14 = vector.broadcast %cst_4 : f32 to vector<8x1xf32>
    %15 = arith.divf %13, %14 : vector<8x1xf32>
    %16 = vector.broadcast %8 : vector<8x1xf32> to vector<8x32xf32>
    %17 = arith.subf %4, %16 : vector<8x32xf32>
    %cst_5 = arith.constant 9.99999974E-6 : f32
    %18 = vector.broadcast %cst_5 : f32 to vector<8x1xf32>
    %19 = arith.addf %15, %18 : vector<8x1xf32>
    %20 = math.rsqrt %19 : vector<8x1xf32>
    %21 = vector.broadcast %20 : vector<8x1xf32> to vector<8x32xf32>
    %22 = arith.mulf %17, %21 : vector<8x32xf32>
    %c0_6 = arith.constant 0 : index
    %c0_7 = arith.constant 0 : index
    %23 = vector.load %arg5[%c0_6, %c0_7] : memref<1x32xf32, #tpu.memory_space<vmem>>, vector<1x32xf32>
    %24 = vector.broadcast %23 : vector<1x32xf32> to vector<8x32xf32>
    %25 = arith.mulf %22, %24 : vector<8x32xf32>
    %c0_8 = arith.constant 0 : index
    %c0_9 = arith.constant 0 : index
    %26 = vector.load %arg6[%c0_8, %c0_9] : memref<1x32xf32, #tpu.memory_space<vmem>>, vector<1x32xf32>
    %27 = vector.broadcast %26 : vector<1x32xf32> to vector<8x32xf32>
    %28 = arith.addf %25, %27 : vector<8x32xf32>
    %29 = arith.truncf %28 : vector<8x32xf32> to vector<8x32xbf16>
    %c0_10 = arith.constant 0 : index
    %c0_11 = arith.constant 0 : index
    %30 = vector.load %arg8[%c0_10, %c0_11] : memref<8x96xf32, #tpu.memory_space<vmem>>, vector<8x96xf32>
    %c0_12 = arith.constant 0 : index
    %c0_13 = arith.constant 0 : index
    %31 = vector.load %arg4[%c0_12, %c0_13] : memref<32x96xbf16, #tpu.memory_space<vmem>>, vector<32x96xbf16>
    %cst_14 = arith.constant dense<0.000000e+00> : vector<8x96xf32>
    %32 = tpu.matmul %29, %31, %cst_14 {dimension_numbers = #tpu.dot_dimension_numbers<[1], [0], [0], [1], [0, 0, 1, 1], [], []>} : vector<8x32xbf16>, vector<32x96xbf16>, vector<8x96xf32> -> vector<8x96xf32>
    %33 = arith.addf %30, %32 : vector<8x96xf32>
    %c0_15 = arith.constant 0 : index
    %c0_16 = arith.constant 0 : index
    %34 = vector.load %arg8[%c0_15, %c0_16] : memref<8x96xf32, #tpu.memory_space<vmem>>, vector<8x96xf32>
    tpu.vector_store %arg8[%c0_15, %c0_16], %33 {strides = array<i32>} : memref<8x96xf32, #tpu.memory_space<vmem>>, vector<8x96xf32>,
    %c0_i32_17 = arith.constant 0 : i32
    %35 = arith.cmpi eq, %arg2, %c0_i32_17 : i32
    %36 = arith.extui %35 : i1 to i32
    %c0_i32_18 = arith.constant 0 : i32
    %37 = arith.cmpi ne, %36, %c0_i32_18 : i32
    scf.if %37 {
      %c0_19 = arith.constant 0 : index
      %c0_20 = arith.constant 0 : index
      %38 = vector.load %arg8[%c0_19, %c0_20] : memref<8x96xf32, #tpu.memory_space<vmem>>, vector<8x96xf32>
      %39 = arith.truncf %38 : vector<8x96xf32> to vector<8x96xbf16>
      %c0_21 = arith.constant 0 : index
      %c0_22 = arith.constant 0 : index
      %40 = vector.load %arg7[%c0_21, %c0_22] : memref<8x96xbf16, #tpu.memory_space<vmem>>, vector<8x96xbf16>
      tpu.vector_store %arg7[%c0_21, %c0_22], %39 {strides = array<i32>} : memref<8x96xbf16, #tpu.memory_space<vmem>>, vector<8x96xbf16>,
    } else {
    }
    return
  }
  func.func @transform_0(%arg0: i32, %arg1: i32, %arg2: i32) -> (i32, i32) {
    %c0_i32 = arith.constant 0 : i32
    return %arg0, %arg2 : i32, i32
  }
  func.func @transform_1(%arg0: i32, %arg1: i32, %arg2: i32) -> (i32, i32) {
    %c0_i32 = arith.constant 0 : i32
    return %arg2, %arg1 : i32, i32
  }
  func.func @transform_2(%arg0: i32, %arg1: i32, %arg2: i32) -> (i32, i32) {
    %c0_i32 = arith.constant 0 : i32
    %c0_i32_0 = arith.constant 0 : i32
    return %c0_i32, %arg2 : i32, i32
  }
  func.func @transform_3(%arg0: i32, %arg1: i32, %arg2: i32) -> (i32, i32) {
    %c0_i32 = arith.constant 0 : i32
    %c0_i32_0 = arith.constant 0 : i32
    return %c0_i32, %arg2 : i32, i32
  }
  func.func @transform_4(%arg0: i32, %arg1: i32, %arg2: i32) -> (i32, i32) {
    %c0_i32 = arith.constant 0 : i32
    return %arg0, %arg1 : i32, i32
  }
}

module attributes {stable_mosaic.version = 11 : i64} {
  func.func @_mm_kernel(%arg0: i32, %arg1: i32, %arg2: i32, %arg3: memref<8x1024xbf16, #tpu.memory_space<vmem>>, %arg4: memref<1024x32xbf16, #tpu.memory_space<vmem>>, %arg5: memref<1x32xf32, #tpu.memory_space<vmem>>, %arg6: memref<8x32xbf16, #tpu.memory_space<vmem>>, %arg7: memref<8x32xbf16, #tpu.memory_space<vmem>>, %arg8: memref<8x32xf32, #tpu.memory_space<vmem>>) attributes {dimension_semantics = [#tpu.dimension_semantics<parallel>, #tpu.dimension_semantics<parallel>, #tpu.dimension_semantics<arbitrary>], iteration_bounds = array<i64: 1, 1, 8>, scalar_prefetch = 0 : i64, scratch_operands = 1 : i64, tpu.core_type = #tpu.core_type<tc>, window_params = [{transform_indices = @transform_0, window_bounds = array<i64: 8, 1024>}, {transform_indices = @transform_1, window_bounds = array<i64: 1024, 32>}, {transform_indices = @transform_2, window_bounds = array<i64: 1, 32>}, {transform_indices = @transform_3, window_bounds = array<i64: 8, 32>}, {transform_indices = @transform_4, window_bounds = array<i64: 8, 32>}]} {
    %c0_i32 = arith.constant 0 : i32
    %0 = arith.cmpi eq, %arg2, %c0_i32 : i32
    %1 = arith.extui %0 : i1 to i32
    %c0_i32_0 = arith.constant 0 : i32
    %2 = arith.cmpi ne, %1, %c0_i32_0 : i32
    scf.if %2 {
      %cst_9 = arith.constant 0.000000e+00 : f32
      %12 = vector.broadcast %cst_9 : f32 to vector<8x32xf32>
      %c0_10 = arith.constant 0 : index
      %c0_11 = arith.constant 0 : index
      %13 = vector.load %arg8[%c0_10, %c0_11] : memref<8x32xf32, #tpu.memory_space<vmem>>, vector<8x32xf32>
      tpu.vector_store %arg8[%c0_10, %c0_11], %12 {strides = array<i32>} : memref<8x32xf32, #tpu.memory_space<vmem>>, vector<8x32xf32>,
    } else {
    }
    %c0 = arith.constant 0 : index
    %c0_1 = arith.constant 0 : index
    %3 = vector.load %arg3[%c0, %c0_1] : memref<8x1024xbf16, #tpu.memory_space<vmem>>, vector<8x1024xbf16>
    %c0_2 = arith.constant 0 : index
    %c0_3 = arith.constant 0 : index
    %4 = vector.load %arg8[%c0_2, %c0_3] : memref<8x32xf32, #tpu.memory_space<vmem>>, vector<8x32xf32>
    %c0_4 = arith.constant 0 : index
    %c0_5 = arith.constant 0 : index
    %5 = vector.load %arg4[%c0_4, %c0_5] : memref<1024x32xbf16, #tpu.memory_space<vmem>>, vector<1024x32xbf16>
    %cst = arith.constant dense<0.000000e+00> : vector<8x32xf32>
    %6 = tpu.matmul %3, %5, %cst {dimension_numbers = #tpu.dot_dimension_numbers<[1], [0], [0], [1], [0, 0, 1, 1], [], []>} : vector<8x1024xbf16>, vector<1024x32xbf16>, vector<8x32xf32> -> vector<8x32xf32>
    %7 = arith.addf %4, %6 : vector<8x32xf32>
    %c0_6 = arith.constant 0 : index
    %c0_7 = arith.constant 0 : index
    %8 = vector.load %arg8[%c0_6, %c0_7] : memref<8x32xf32, #tpu.memory_space<vmem>>, vector<8x32xf32>
    tpu.vector_store %arg8[%c0_6, %c0_7], %7 {strides = array<i32>} : memref<8x32xf32, #tpu.memory_space<vmem>>, vector<8x32xf32>,
    %c7_i32 = arith.constant 7 : i32
    %9 = arith.cmpi eq, %arg2, %c7_i32 : i32
    %10 = arith.extui %9 : i1 to i32
    %c0_i32_8 = arith.constant 0 : i32
    %11 = arith.cmpi ne, %10, %c0_i32_8 : i32
    scf.if %11 {
      %c0_9 = arith.constant 0 : index
      %c0_10 = arith.constant 0 : index
      %12 = vector.load %arg8[%c0_9, %c0_10] : memref<8x32xf32, #tpu.memory_space<vmem>>, vector<8x32xf32>
      %c0_11 = arith.constant 0 : index
      %c0_12 = arith.constant 0 : index
      %13 = vector.load %arg5[%c0_11, %c0_12] : memref<1x32xf32, #tpu.memory_space<vmem>>, vector<1x32xf32>
      %14 = vector.broadcast %13 : vector<1x32xf32> to vector<8x32xf32>
      %15 = arith.addf %12, %14 : vector<8x32xf32>
      %c0_13 = arith.constant 0 : index
      %c0_14 = arith.constant 0 : index
      %16 = vector.load %arg6[%c0_13, %c0_14] : memref<8x32xbf16, #tpu.memory_space<vmem>>, vector<8x32xbf16>
      %17 = arith.extf %16 : vector<8x32xbf16> to vector<8x32xf32>
      %18 = arith.addf %15, %17 : vector<8x32xf32>
      %19 = arith.truncf %18 : vector<8x32xf32> to vector<8x32xbf16>
      %c0_15 = arith.constant 0 : index
      %c0_16 = arith.constant 0 : index
      %20 = vector.load %arg7[%c0_15, %c0_16] : memref<8x32xbf16, #tpu.memory_space<vmem>>, vector<8x32xbf16>
      tpu.vector_store %arg7[%c0_15, %c0_16], %19 {strides = array<i32>} : memref<8x32xbf16, #tpu.memory_space<vmem>>, vector<8x32xbf16>,
    } else {
    }
    return
  }
  func.func @transform_0(%arg0: i32, %arg1: i32, %arg2: i32) -> (i32, i32) {
    %c0_i32 = arith.constant 0 : i32
    return %arg0, %arg2 : i32, i32
  }
  func.func @transform_1(%arg0: i32, %arg1: i32, %arg2: i32) -> (i32, i32) {
    %c0_i32 = arith.constant 0 : i32
    return %arg2, %arg1 : i32, i32
  }
  func.func @transform_2(%arg0: i32, %arg1: i32, %arg2: i32) -> (i32, i32) {
    %c0_i32 = arith.constant 0 : i32
    %c0_i32_0 = arith.constant 0 : i32
    return %c0_i32, %arg1 : i32, i32
  }
  func.func @transform_3(%arg0: i32, %arg1: i32, %arg2: i32) -> (i32, i32) {
    %c0_i32 = arith.constant 0 : i32
    return %arg0, %arg1 : i32, i32
  }
  func.func @transform_4(%arg0: i32, %arg1: i32, %arg2: i32) -> (i32, i32) {
    %c0_i32 = arith.constant 0 : i32
    return %arg0, %arg1 : i32, i32
  }
}

module attributes {stable_mosaic.version = 11 : i64} {
  func.func @_attn_kernel(%arg0: i32, %arg1: memref<1x4x96xbf16, #tpu.memory_space<vmem>>, %arg2: memref<1x4x32xbf16, #tpu.memory_space<vmem>>) attributes {dimension_semantics = [#tpu.dimension_semantics<parallel>], iteration_bounds = array<i64: 2>, scalar_prefetch = 0 : i64, scratch_operands = 0 : i64, tpu.core_type = #tpu.core_type<tc>, window_params = [{transform_indices = @transform_0, window_bounds = array<i64: 1, 4, 96>}, {transform_indices = @transform_1, window_bounds = array<i64: 1, 4, 32>}]} {
    %c0 = arith.constant 0 : index
    %c0_0 = arith.constant 0 : index
    %c0_1 = arith.constant 0 : index
    %0 = vector.load %arg1[%c0, %c0_0, %c0_1] : memref<1x4x96xbf16, #tpu.memory_space<vmem>>, vector<1x4x96xbf16>
    %1 = vector.shape_cast %0 : vector<1x4x96xbf16> to vector<4x96xbf16>
    %2 = vector.extract_strided_slice %1 {offsets = [0, 0], sizes = [4, 8], strides = [1, 1]} : vector<4x96xbf16> to vector<4x8xbf16>
    %3 = vector.extract_strided_slice %1 {offsets = [0, 32], sizes = [4, 8], strides = [1, 1]} : vector<4x96xbf16> to vector<4x8xbf16>
    %4 = vector.extract_strided_slice %1 {offsets = [0, 64], sizes = [4, 8], strides = [1, 1]} : vector<4x96xbf16> to vector<4x8xbf16>
    %cst = arith.constant dense<0.000000e+00> : vector<4x4xf32>
    %5 = tpu.matmul %2, %3, %cst {dimension_numbers = #tpu.dot_dimension_numbers<[1], [1], [0], [0], [0, 0, 1, 0], [], []>} : vector<4x8xbf16>, vector<4x8xbf16>, vector<4x4xf32> -> vector<4x4xf32>
    %cst_2 = arith.constant 0.353553385 : f32
    %6 = vector.broadcast %cst_2 : f32 to vector<4x4xf32>
    %7 = arith.mulf %5, %6 : vector<4x4xf32>
    %cst_3 = arith.constant dense<0xFF800000> : vector<4xf32>
    %8 = vector.multi_reduction <maximumf>, %7, %cst_3 [1] : vector<4x4xf32> to vector<4xf32>
    %9 = vector.shape_cast %8 : vector<4xf32> to vector<4x1xf32>
    %10 = vector.broadcast %9 : vector<4x1xf32> to vector<4x4xf32>
    %11 = arith.subf %7, %10 : vector<4x4xf32>
    %12 = math.exp %11 : vector<4x4xf32>
    %cst_4 = arith.constant dense<0.000000e+00> : vector<4xf32>
    %13 = vector.multi_reduction <add>, %12, %cst_4 [1] : vector<4x4xf32> to vector<4xf32>
    %14 = vector.shape_cast %13 : vector<4xf32> to vector<4x1xf32>
    %15 = vector.broadcast %14 : vector<4x1xf32> to vector<4x4xf32>
    %16 = arith.divf %12, %15 : vector<4x4xf32>
    %17 = arith.truncf %16 : vector<4x4xf32> to vector<4x4xbf16>
    %cst_5 = arith.constant dense<0.000000e+00> : vector<4x8xf32>
    %18 = tpu.matmul %17, %4, %cst_5 {dimension_numbers = #tpu.dot_dimension_numbers<[1], [0], [0], [1], [0, 0, 1, 1], [], []>} : vector<4x4xbf16>, vector<4x8xbf16>, vector<4x8xf32> -> vector<4x8xf32>
    %19 = vector.extract_strided_slice %1 {offsets = [0, 8], sizes = [4, 8], strides = [1, 1]} : vector<4x96xbf16> to vector<4x8xbf16>
    %20 = vector.extract_strided_slice %1 {offsets = [0, 40], sizes = [4, 8], strides = [1, 1]} : vector<4x96xbf16> to vector<4x8xbf16>
    %21 = vector.extract_strided_slice %1 {offsets = [0, 72], sizes = [4, 8], strides = [1, 1]} : vector<4x96xbf16> to vector<4x8xbf16>
    %cst_6 = arith.constant dense<0.000000e+00> : vector<4x4xf32>
    %22 = tpu.matmul %19, %20, %cst_6 {dimension_numbers = #tpu.dot_dimension_numbers<[1], [1], [0], [0], [0, 0, 1, 0], [], []>} : vector<4x8xbf16>, vector<4x8xbf16>, vector<4x4xf32> -> vector<4x4xf32>
    %cst_7 = arith.constant 0.353553385 : f32
    %23 = vector.broadcast %cst_7 : f32 to vector<4x4xf32>
    %24 = arith.mulf %22, %23 : vector<4x4xf32>
    %cst_8 = arith.constant dense<0xFF800000> : vector<4xf32>
    %25 = vector.multi_reduction <maximumf>, %24, %cst_8 [1] : vector<4x4xf32> to vector<4xf32>
    %26 = vector.shape_cast %25 : vector<4xf32> to vector<4x1xf32>
    %27 = vector.broadcast %26 : vector<4x1xf32> to vector<4x4xf32>
    %28 = arith.subf %24, %27 : vector<4x4xf32>
    %29 = math.exp %28 : vector<4x4xf32>
    %cst_9 = arith.constant dense<0.000000e+00> : vector<4xf32>
    %30 = vector.multi_reduction <add>, %29, %cst_9 [1] : vector<4x4xf32> to vector<4xf32>
    %31 = vector.shape_cast %30 : vector<4xf32> to vector<4x1xf32>
    %32 = vector.broadcast %31 : vector<4x1xf32> to vector<4x4xf32>
    %33 = arith.divf %29, %32 : vector<4x4xf32>
    %34 = arith.truncf %33 : vector<4x4xf32> to vector<4x4xbf16>
    %cst_10 = arith.constant dense<0.000000e+00> : vector<4x8xf32>
    %35 = tpu.matmul %34, %21, %cst_10 {dimension_numbers = #tpu.dot_dimension_numbers<[1], [0], [0], [1], [0, 0, 1, 1], [], []>} : vector<4x4xbf16>, vector<4x8xbf16>, vector<4x8xf32> -> vector<4x8xf32>
    %36 = vector.extract_strided_slice %1 {offsets = [0, 16], sizes = [4, 8], strides = [1, 1]} : vector<4x96xbf16> to vector<4x8xbf16>
    %37 = vector.extract_strided_slice %1 {offsets = [0, 48], sizes = [4, 8], strides = [1, 1]} : vector<4x96xbf16> to vector<4x8xbf16>
    %38 = vector.extract_strided_slice %1 {offsets = [0, 80], sizes = [4, 8], strides = [1, 1]} : vector<4x96xbf16> to vector<4x8xbf16>
    %cst_11 = arith.constant dense<0.000000e+00> : vector<4x4xf32>
    %39 = tpu.matmul %36, %37, %cst_11 {dimension_numbers = #tpu.dot_dimension_numbers<[1], [1], [0], [0], [0, 0, 1, 0], [], []>} : vector<4x8xbf16>, vector<4x8xbf16>, vector<4x4xf32> -> vector<4x4xf32>
    %cst_12 = arith.constant 0.353553385 : f32
    %40 = vector.broadcast %cst_12 : f32 to vector<4x4xf32>
    %41 = arith.mulf %39, %40 : vector<4x4xf32>
    %cst_13 = arith.constant dense<0xFF800000> : vector<4xf32>
    %42 = vector.multi_reduction <maximumf>, %41, %cst_13 [1] : vector<4x4xf32> to vector<4xf32>
    %43 = vector.shape_cast %42 : vector<4xf32> to vector<4x1xf32>
    %44 = vector.broadcast %43 : vector<4x1xf32> to vector<4x4xf32>
    %45 = arith.subf %41, %44 : vector<4x4xf32>
    %46 = math.exp %45 : vector<4x4xf32>
    %cst_14 = arith.constant dense<0.000000e+00> : vector<4xf32>
    %47 = vector.multi_reduction <add>, %46, %cst_14 [1] : vector<4x4xf32> to vector<4xf32>
    %48 = vector.shape_cast %47 : vector<4xf32> to vector<4x1xf32>
    %49 = vector.broadcast %48 : vector<4x1xf32> to vector<4x4xf32>
    %50 = arith.divf %46, %49 : vector<4x4xf32>
    %51 = arith.truncf %50 : vector<4x4xf32> to vector<4x4xbf16>
    %cst_15 = arith.constant dense<0.000000e+00> : vector<4x8xf32>
    %52 = tpu.matmul %51, %38, %cst_15 {dimension_numbers = #tpu.dot_dimension_numbers<[1], [0], [0], [1], [0, 0, 1, 1], [], []>} : vector<4x4xbf16>, vector<4x8xbf16>, vector<4x8xf32> -> vector<4x8xf32>
    %53 = vector.extract_strided_slice %1 {offsets = [0, 24], sizes = [4, 8], strides = [1, 1]} : vector<4x96xbf16> to vector<4x8xbf16>
    %54 = vector.extract_strided_slice %1 {offsets = [0, 56], sizes = [4, 8], strides = [1, 1]} : vector<4x96xbf16> to vector<4x8xbf16>
    %55 = vector.extract_strided_slice %1 {offsets = [0, 88], sizes = [4, 8], strides = [1, 1]} : vector<4x96xbf16> to vector<4x8xbf16>
    %cst_16 = arith.constant dense<0.000000e+00> : vector<4x4xf32>
    %56 = tpu.matmul %53, %54, %cst_16 {dimension_numbers = #tpu.dot_dimension_numbers<[1], [1], [0], [0], [0, 0, 1, 0], [], []>} : vector<4x8xbf16>, vector<4x8xbf16>, vector<4x4xf32> -> vector<4x4xf32>
    %cst_17 = arith.constant 0.353553385 : f32
    %57 = vector.broadcast %cst_17 : f32 to vector<4x4xf32>
    %58 = arith.mulf %56, %57 : vector<4x4xf32>
    %cst_18 = arith.constant dense<0xFF800000> : vector<4xf32>
    %59 = vector.multi_reduction <maximumf>, %58, %cst_18 [1] : vector<4x4xf32> to vector<4xf32>
    %60 = vector.shape_cast %59 : vector<4xf32> to vector<4x1xf32>
    %61 = vector.broadcast %60 : vector<4x1xf32> to vector<4x4xf32>
    %62 = arith.subf %58, %61 : vector<4x4xf32>
    %63 = math.exp %62 : vector<4x4xf32>
    %cst_19 = arith.constant dense<0.000000e+00> : vector<4xf32>
    %64 = vector.multi_reduction <add>, %63, %cst_19 [1] : vector<4x4xf32> to vector<4xf32>
    %65 = vector.shape_cast %64 : vector<4xf32> to vector<4x1xf32>
    %66 = vector.broadcast %65 : vector<4x1xf32> to vector<4x4xf32>
    %67 = arith.divf %63, %66 : vector<4x4xf32>
    %68 = arith.truncf %67 : vector<4x4xf32> to vector<4x4xbf16>
    %cst_20 = arith.constant dense<0.000000e+00> : vector<4x8xf32>
    %69 = tpu.matmul %68, %55, %cst_20 {dimension_numbers = #tpu.dot_dimension_numbers<[1], [0], [0], [1], [0, 0, 1, 1], [], []>} : vector<4x4xbf16>, vector<4x8xbf16>, vector<4x8xf32> -> vector<4x8xf32>
    %70 = tpu.concatenate %18, %35, %52, %69 in 1 : vector<4x8xf32>, vector<4x8xf32>, vector<4x8xf32>, vector<4x8xf32> -> vector<4x32xf32>
    %71 = arith.truncf %70 : vector<4x32xf32> to vector<4x32xbf16>
    %c0_21 = arith.constant 0 : index
    %c0_22 = arith.constant 0 : index
    %c0_23 = arith.constant 0 : index
    %72 = vector.load %arg2[%c0_21, %c0_22, %c0_23] : memref<1x4x32xbf16, #tpu.memory_space<vmem>>, vector<1x4x32xbf16>
    %73 = vector.shape_cast %72 : vector<1x4x32xbf16> to vector<4x32xbf16>
    %74 = vector.shape_cast %71 : vector<4x32xbf16> to vector<1x4x32xbf16>
    tpu.vector_store %arg2[%c0_21, %c0_22, %c0_23], %74 {strides = array<i32>} : memref<1x4x32xbf16, #tpu.memory_space<vmem>>, vector<1x4x32xbf16>,
    return
  }
  func.func @transform_0(%arg0: i32) -> (i32, i32, i32) {
    %c0_i32 = arith.constant 0 : i32
    %c0_i32_0 = arith.constant 0 : i32
    %c0_i32_1 = arith.constant 0 : i32
    return %arg0, %c0_i32, %c0_i32_0 : i32, i32, i32
  }
  func.func @transform_1(%arg0: i32) -> (i32, i32, i32) {
    %c0_i32 = arith.constant 0 : i32
    %c0_i32_0 = arith.constant 0 : i32
    %c0_i32_1 = arith.constant 0 : i32
    return %arg0, %c0_i32, %c0_i32_0 : i32, i32, i32
  }
}

module attributes {stable_mosaic.version = 11 : i64} {
  func.func @_mm_kernel(%arg0: i32, %arg1: i32, %arg2: i32, %arg3: memref<8x32xbf16, #tpu.memory_space<vmem>>, %arg4: memref<32x32xbf16, #tpu.memory_space<vmem>>, %arg5: memref<1x32xf32, #tpu.memory_space<vmem>>, %arg6: memref<8x32xbf16, #tpu.memory_space<vmem>>, %arg7: memref<8x32xbf16, #tpu.memory_space<vmem>>, %arg8: memref<8x32xf32, #tpu.memory_space<vmem>>) attributes {dimension_semantics = [#tpu.dimension_semantics<parallel>, #tpu.dimension_semantics<parallel>, #tpu.dimension_semantics<arbitrary>], iteration_bounds = array<i64: 1, 1, 1>, scalar_prefetch = 0 : i64, scratch_operands = 1 : i64, tpu.core_type = #tpu.core_type<tc>, window_params = [{transform_indices = @transform_0, window_bounds = array<i64: 8, 32>}, {transform_indices = @transform_1, window_bounds = array<i64: 32, 32>}, {transform_indices = @transform_2, window_bounds = array<i64: 1, 32>}, {transform_indices = @transform_3, window_bounds = array<i64: 8, 32>}, {transform_indices = @transform_4, window_bounds = array<i64: 8, 32>}]} {
    %c0_i32 = arith.constant 0 : i32
    %0 = arith.cmpi eq, %arg2, %c0_i32 : i32
    %1 = arith.extui %0 : i1 to i32
    %c0_i32_0 = arith.constant 0 : i32
    %2 = arith.cmpi ne, %1, %c0_i32_0 : i32
    scf.if %2 {
      %cst_10 = arith.constant 0.000000e+00 : f32
      %12 = vector.broadcast %cst_10 : f32 to vector<8x32xf32>
      %c0_11 = arith.constant 0 : index
      %c0_12 = arith.constant 0 : index
      %13 = vector.load %arg8[%c0_11, %c0_12] : memref<8x32xf32, #tpu.memory_space<vmem>>, vector<8x32xf32>
      tpu.vector_store %arg8[%c0_11, %c0_12], %12 {strides = array<i32>} : memref<8x32xf32, #tpu.memory_space<vmem>>, vector<8x32xf32>,
    } else {
    }
    %c0 = arith.constant 0 : index
    %c0_1 = arith.constant 0 : index
    %3 = vector.load %arg3[%c0, %c0_1] : memref<8x32xbf16, #tpu.memory_space<vmem>>, vector<8x32xbf16>
    %c0_2 = arith.constant 0 : index
    %c0_3 = arith.constant 0 : index
    %4 = vector.load %arg8[%c0_2, %c0_3] : memref<8x32xf32, #tpu.memory_space<vmem>>, vector<8x32xf32>
    %c0_4 = arith.constant 0 : index
    %c0_5 = arith.constant 0 : index
    %5 = vector.load %arg4[%c0_4, %c0_5] : memref<32x32xbf16, #tpu.memory_space<vmem>>, vector<32x32xbf16>
    %cst = arith.constant dense<0.000000e+00> : vector<8x32xf32>
    %6 = tpu.matmul %3, %5, %cst {dimension_numbers = #tpu.dot_dimension_numbers<[1], [0], [0], [1], [0, 0, 1, 1], [], []>} : vector<8x32xbf16>, vector<32x32xbf16>, vector<8x32xf32> -> vector<8x32xf32>
    %7 = arith.addf %4, %6 : vector<8x32xf32>
    %c0_6 = arith.constant 0 : index
    %c0_7 = arith.constant 0 : index
    %8 = vector.load %arg8[%c0_6, %c0_7] : memref<8x32xf32, #tpu.memory_space<vmem>>, vector<8x32xf32>
    tpu.vector_store %arg8[%c0_6, %c0_7], %7 {strides = array<i32>} : memref<8x32xf32, #tpu.memory_space<vmem>>, vector<8x32xf32>,
    %c0_i32_8 = arith.constant 0 : i32
    %9 = arith.cmpi eq, %arg2, %c0_i32_8 : i32
    %10 = arith.extui %9 : i1 to i32
    %c0_i32_9 = arith.constant 0 : i32
    %11 = arith.cmpi ne, %10, %c0_i32_9 : i32
    scf.if %11 {
      %c0_10 = arith.constant 0 : index
      %c0_11 = arith.constant 0 : index
      %12 = vector.load %arg8[%c0_10, %c0_11] : memref<8x32xf32, #tpu.memory_space<vmem>>, vector<8x32xf32>
      %c0_12 = arith.constant 0 : index
      %c0_13 = arith.constant 0 : index
      %13 = vector.load %arg5[%c0_12, %c0_13] : memref<1x32xf32, #tpu.memory_space<vmem>>, vector<1x32xf32>
      %14 = vector.broadcast %13 : vector<1x32xf32> to vector<8x32xf32>
      %15 = arith.addf %12, %14 : vector<8x32xf32>
      %c0_14 = arith.constant 0 : index
      %c0_15 = arith.constant 0 : index
      %16 = vector.load %arg6[%c0_14, %c0_15] : memref<8x32xbf16, #tpu.memory_space<vmem>>, vector<8x32xbf16>
      %17 = arith.extf %16 : vector<8x32xbf16> to vector<8x32xf32>
      %18 = arith.addf %15, %17 : vector<8x32xf32>
      %19 = arith.truncf %18 : vector<8x32xf32> to vector<8x32xbf16>
      %c0_16 = arith.constant 0 : index
      %c0_17 = arith.constant 0 : index
      %20 = vector.load %arg7[%c0_16, %c0_17] : memref<8x32xbf16, #tpu.memory_space<vmem>>, vector<8x32xbf16>
      tpu.vector_store %arg7[%c0_16, %c0_17], %19 {strides = array<i32>} : memref<8x32xbf16, #tpu.memory_space<vmem>>, vector<8x32xbf16>,
    } else {
    }
    return
  }
  func.func @transform_0(%arg0: i32, %arg1: i32, %arg2: i32) -> (i32, i32) {
    %c0_i32 = arith.constant 0 : i32
    return %arg0, %arg2 : i32, i32
  }
  func.func @transform_1(%arg0: i32, %arg1: i32, %arg2: i32) -> (i32, i32) {
    %c0_i32 = arith.constant 0 : i32
    return %arg2, %arg1 : i32, i32
  }
  func.func @transform_2(%arg0: i32, %arg1: i32, %arg2: i32) -> (i32, i32) {
    %c0_i32 = arith.constant 0 : i32
    %c0_i32_0 = arith.constant 0 : i32
    return %c0_i32, %arg1 : i32, i32
  }
  func.func @transform_3(%arg0: i32, %arg1: i32, %arg2: i32) -> (i32, i32) {
    %c0_i32 = arith.constant 0 : i32
    return %arg0, %arg1 : i32, i32
  }
  func.func @transform_4(%arg0: i32, %arg1: i32, %arg2: i32) -> (i32, i32) {
    %c0_i32 = arith.constant 0 : i32
    return %arg0, %arg1 : i32, i32
  }
}

module attributes {stable_mosaic.version = 11 : i64} {
  func.func @_mm_kernel(%arg0: i32, %arg1: i32, %arg2: i32, %arg3: memref<8x128xbf16, #tpu.memory_space<vmem>>, %arg4: memref<128x32xbf16, #tpu.memory_space<vmem>>, %arg5: memref<1x32xf32, #tpu.memory_space<vmem>>, %arg6: memref<8x32xbf16, #tpu.memory_space<vmem>>, %arg7: memref<8x32xbf16, #tpu.memory_space<vmem>>, %arg8: memref<8x32xf32, #tpu.memory_space<vmem>>) attributes {dimension_semantics = [#tpu.dimension_semantics<parallel>, #tpu.dimension_semantics<parallel>, #tpu.dimension_semantics<arbitrary>], iteration_bounds = array<i64: 1, 1, 1>, scalar_prefetch = 0 : i64, scratch_operands = 1 : i64, tpu.core_type = #tpu.core_type<tc>, window_params = [{transform_indices = @transform_0, window_bounds = array<i64: 8, 128>}, {transform_indices = @transform_1, window_bounds = array<i64: 128, 32>}, {transform_indices = @transform_2, window_bounds = array<i64: 1, 32>}, {transform_indices = @transform_3, window_bounds = array<i64: 8, 32>}, {transform_indices = @transform_4, window_bounds = array<i64: 8, 32>}]} {
    %c0_i32 = arith.constant 0 : i32
    %0 = arith.cmpi eq, %arg2, %c0_i32 : i32
    %1 = arith.extui %0 : i1 to i32
    %c0_i32_0 = arith.constant 0 : i32
    %2 = arith.cmpi ne, %1, %c0_i32_0 : i32
    scf.if %2 {
      %cst_10 = arith.constant 0.000000e+00 : f32
      %12 = vector.broadcast %cst_10 : f32 to vector<8x32xf32>
      %c0_11 = arith.constant 0 : index
      %c0_12 = arith.constant 0 : index
      %13 = vector.load %arg8[%c0_11, %c0_12] : memref<8x32xf32, #tpu.memory_space<vmem>>, vector<8x32xf32>
      tpu.vector_store %arg8[%c0_11, %c0_12], %12 {strides = array<i32>} : memref<8x32xf32, #tpu.memory_space<vmem>>, vector<8x32xf32>,
    } else {
    }
    %c0 = arith.constant 0 : index
    %c0_1 = arith.constant 0 : index
    %3 = vector.load %arg3[%c0, %c0_1] : memref<8x128xbf16, #tpu.memory_space<vmem>>, vector<8x128xbf16>
    %c0_2 = arith.constant 0 : index
    %c0_3 = arith.constant 0 : index
    %4 = vector.load %arg8[%c0_2, %c0_3] : memref<8x32xf32, #tpu.memory_space<vmem>>, vector<8x32xf32>
    %c0_4 = arith.constant 0 : index
    %c0_5 = arith.constant 0 : index
    %5 = vector.load %arg4[%c0_4, %c0_5] : memref<128x32xbf16, #tpu.memory_space<vmem>>, vector<128x32xbf16>
    %cst = arith.constant dense<0.000000e+00> : vector<8x32xf32>
    %6 = tpu.matmul %3, %5, %cst {dimension_numbers = #tpu.dot_dimension_numbers<[1], [0], [0], [1], [0, 0, 1, 1], [], []>} : vector<8x128xbf16>, vector<128x32xbf16>, vector<8x32xf32> -> vector<8x32xf32>
    %7 = arith.addf %4, %6 : vector<8x32xf32>
    %c0_6 = arith.constant 0 : index
    %c0_7 = arith.constant 0 : index
    %8 = vector.load %arg8[%c0_6, %c0_7] : memref<8x32xf32, #tpu.memory_space<vmem>>, vector<8x32xf32>
    tpu.vector_store %arg8[%c0_6, %c0_7], %7 {strides = array<i32>} : memref<8x32xf32, #tpu.memory_space<vmem>>, vector<8x32xf32>,
    %c0_i32_8 = arith.constant 0 : i32
    %9 = arith.cmpi eq, %arg2, %c0_i32_8 : i32
    %10 = arith.extui %9 : i1 to i32
    %c0_i32_9 = arith.constant 0 : i32
    %11 = arith.cmpi ne, %10, %c0_i32_9 : i32
    scf.if %11 {
      %c0_10 = arith.constant 0 : index
      %c0_11 = arith.constant 0 : index
      %12 = vector.load %arg8[%c0_10, %c0_11] : memref<8x32xf32, #tpu.memory_space<vmem>>, vector<8x32xf32>
      %c0_12 = arith.constant 0 : index
      %c0_13 = arith.constant 0 : index
      %13 = vector.load %arg5[%c0_12, %c0_13] : memref<1x32xf32, #tpu.memory_space<vmem>>, vector<1x32xf32>
      %14 = vector.broadcast %13 : vector<1x32xf32> to vector<8x32xf32>
      %15 = arith.addf %12, %14 : vector<8x32xf32>
      %c0_14 = arith.constant 0 : index
      %c0_15 = arith.constant 0 : index
      %16 = vector.load %arg6[%c0_14, %c0_15] : memref<8x32xbf16, #tpu.memory_space<vmem>>, vector<8x32xbf16>
      %17 = arith.extf %16 : vector<8x32xbf16> to vector<8x32xf32>
      %18 = arith.addf %15, %17 : vector<8x32xf32>
      %19 = arith.truncf %18 : vector<8x32xf32> to vector<8x32xbf16>
      %c0_16 = arith.constant 0 : index
      %c0_17 = arith.constant 0 : index
      %20 = vector.load %arg7[%c0_16, %c0_17] : memref<8x32xbf16, #tpu.memory_space<vmem>>, vector<8x32xbf16>
      tpu.vector_store %arg7[%c0_16, %c0_17], %19 {strides = array<i32>} : memref<8x32xbf16, #tpu.memory_space<vmem>>, vector<8x32xbf16>,
    } else {
    }
    return
  }
  func.func @transform_0(%arg0: i32, %arg1: i32, %arg2: i32) -> (i32, i32) {
    %c0_i32 = arith.constant 0 : i32
    return %arg0, %arg2 : i32, i32
  }
  func.func @transform_1(%arg0: i32, %arg1: i32, %arg2: i32) -> (i32, i32) {
    %c0_i32 = arith.constant 0 : i32
    return %arg2, %arg1 : i32, i32
  }
  func.func @transform_2(%arg0: i32, %arg1: i32, %arg2: i32) -> (i32, i32) {
    %c0_i32 = arith.constant 0 : i32
    %c0_i32_0 = arith.constant 0 : i32
    return %c0_i32, %arg1 : i32, i32
  }
  func.func @transform_3(%arg0: i32, %arg1: i32, %arg2: i32) -> (i32, i32) {
    %c0_i32 = arith.constant 0 : i32
    return %arg0, %arg1 : i32, i32
  }
  func.func @transform_4(%arg0: i32, %arg1: i32, %arg2: i32) -> (i32, i32) {
    %c0_i32 = arith.constant 0 : i32
    return %arg0, %arg1 : i32, i32
  }
}

module attributes {stable_mosaic.version = 11 : i64} {
  func.func @_mm_kernel(%arg0: i32, %arg1: i32, %arg2: i32, %arg3: memref<8x32xbf16, #tpu.memory_space<vmem>>, %arg4: memref<32x128xbf16, #tpu.memory_space<vmem>>, %arg5: memref<1x128xf32, #tpu.memory_space<vmem>>, %arg6: memref<1x32xf32, #tpu.memory_space<vmem>>, %arg7: memref<1x32xf32, #tpu.memory_space<vmem>>, %arg8: memref<8x128xbf16, #tpu.memory_space<vmem>>, %arg9: memref<8x128xf32, #tpu.memory_space<vmem>>) attributes {dimension_semantics = [#tpu.dimension_semantics<parallel>, #tpu.dimension_semantics<parallel>, #tpu.dimension_semantics<arbitrary>], iteration_bounds = array<i64: 1, 1, 1>, scalar_prefetch = 0 : i64, scratch_operands = 1 : i64, tpu.core_type = #tpu.core_type<tc>, window_params = [{transform_indices = @transform_0, window_bounds = array<i64: 8, 32>}, {transform_indices = @transform_1, window_bounds = array<i64: 32, 128>}, {transform_indices = @transform_2, window_bounds = array<i64: 1, 128>}, {transform_indices = @transform_3, window_bounds = array<i64: 1, 32>}, {transform_indices = @transform_4, window_bounds = array<i64: 1, 32>}, {transform_indices = @transform_5, window_bounds = array<i64: 8, 128>}]} {
    %c0_i32 = arith.constant 0 : i32
    %0 = arith.cmpi eq, %arg2, %c0_i32 : i32
    %1 = arith.extui %0 : i1 to i32
    %c0_i32_0 = arith.constant 0 : i32
    %2 = arith.cmpi ne, %1, %c0_i32_0 : i32
    scf.if %2 {
      %cst_19 = arith.constant 0.000000e+00 : f32
      %38 = vector.broadcast %cst_19 : f32 to vector<8x128xf32>
      %c0_20 = arith.constant 0 : index
      %c0_21 = arith.constant 0 : index
      %39 = vector.load %arg9[%c0_20, %c0_21] : memref<8x128xf32, #tpu.memory_space<vmem>>, vector<8x128xf32>
      tpu.vector_store %arg9[%c0_20, %c0_21], %38 {strides = array<i32>} : memref<8x128xf32, #tpu.memory_space<vmem>>, vector<8x128xf32>,
    } else {
    }
    %c0 = arith.constant 0 : index
    %c0_1 = arith.constant 0 : index
    %3 = vector.load %arg3[%c0, %c0_1] : memref<8x32xbf16, #tpu.memory_space<vmem>>, vector<8x32xbf16>
    %4 = arith.extf %3 : vector<8x32xbf16> to vector<8x32xf32>
    %cst = arith.constant dense<0.000000e+00> : vector<8xf32>
    %5 = vector.multi_reduction <add>, %4, %cst [1] : vector<8x32xf32> to vector<8xf32>
    %6 = vector.shape_cast %5 : vector<8xf32> to vector<8x1xf32>
    %cst_2 = arith.constant 3.200000e+01 : f32
    %7 = vector.broadcast %cst_2 : f32 to vector<8x1xf32>
    %8 = arith.divf %6, %7 : vector<8x1xf32>
    %9 = vector.broadcast %8 : vector<8x1xf32> to vector<8x32xf32>
    %10 = arith.subf %4, %9 : vector<8x32xf32>
    %11 = arith.mulf %10, %10 : vector<8x32xf32>
    %cst_3 = arith.constant dense<0.000000e+00> : vector<8xf32>
    %12 = vector.multi_reduction <add>, %11, %cst_3 [1] : vector<8x32xf32> to vector<8xf32>
    %13 = vector.shape_cast %12 : vector<8xf32> to vector<8x1xf32>
    %cst_4 = arith.constant 3.200000e+01 : f32
    %14 = vector.broadcast %cst_4 : f32 to vector<8x1xf32>
    %15 = arith.divf %13, %14 : vector<8x1xf32>
    %16 = vector.broadcast %8 : vector<8x1xf32> to vector<8x32xf32>
    %17 = arith.subf %4, %16 : vector<8x32xf32>
    %cst_5 = arith.constant 9.99999974E-6 : f32
    %18 = vector.broadcast %cst_5 : f32 to vector<8x1xf32>
    %19 = arith.addf %15, %18 : vector<8x1xf32>
    %20 = math.rsqrt %19 : vector<8x1xf32>
    %21 = vector.broadcast %20 : vector<8x1xf32> to vector<8x32xf32>
    %22 = arith.mulf %17, %21 : vector<8x32xf32>
    %c0_6 = arith.constant 0 : index
    %c0_7 = arith.constant 0 : index
    %23 = vector.load %arg6[%c0_6, %c0_7] : memref<1x32xf32, #tpu.memory_space<vmem>>, vector<1x32xf32>
    %24 = vector.broadcast %23 : vector<1x32xf32> to vector<8x32xf32>
    %25 = arith.mulf %22, %24 : vector<8x32xf32>
    %c0_8 = arith.constant 0 : index
    %c0_9 = arith.constant 0 : index
    %26 = vector.load %arg7[%c0_8, %c0_9] : memref<1x32xf32, #tpu.memory_space<vmem>>, vector<1x32xf32>
    %27 = vector.broadcast %26 : vector<1x32xf32> to vector<8x32xf32>
    %28 = arith.addf %25, %27 : vector<8x32xf32>
    %29 = arith.truncf %28 : vector<8x32xf32> to vector<8x32xbf16>
    %c0_10 = arith.constant 0 : index
    %c0_11 = arith.constant 0 : index
    %30 = vector.load %arg9[%c0_10, %c0_11] : memref<8x128xf32, #tpu.memory_space<vmem>>, vector<8x128xf32>
    %c0_12 = arith.constant 0 : index
    %c0_13 = arith.constant 0 : index
    %31 = vector.load %arg4[%c0_12, %c0_13] : memref<32x128xbf16, #tpu.memory_space<vmem>>, vector<32x128xbf16>
    %cst_14 = arith.constant dense<0.000000e+00> : vector<8x128xf32>
    %32 = tpu.matmul %29, %31, %cst_14 {dimension_numbers = #tpu.dot_dimension_numbers<[1], [0], [0], [1], [0, 0, 1, 1], [], []>} : vector<8x32xbf16>, vector<32x128xbf16>, vector<8x128xf32> -> vector<8x128xf32>
    %33 = arith.addf %30, %32 : vector<8x128xf32>
    %c0_15 = arith.constant 0 : index
    %c0_16 = arith.constant 0 : index
    %34 = vector.load %arg9[%c0_15, %c0_16] : memref<8x128xf32, #tpu.memory_space<vmem>>, vector<8x128xf32>
    tpu.vector_store %arg9[%c0_15, %c0_16], %33 {strides = array<i32>} : memref<8x128xf32, #tpu.memory_space<vmem>>, vector<8x128xf32>,
    %c0_i32_17 = arith.constant 0 : i32
    %35 = arith.cmpi eq, %arg2, %c0_i32_17 : i32
    %36 = arith.extui %35 : i1 to i32
    %c0_i32_18 = arith.constant 0 : i32
    %37 = arith.cmpi ne, %36, %c0_i32_18 : i32
    scf.if %37 {
      %c0_19 = arith.constant 0 : index
      %c0_20 = arith.constant 0 : index
      %38 = vector.load %arg9[%c0_19, %c0_20] : memref<8x128xf32, #tpu.memory_space<vmem>>, vector<8x128xf32>
      %c0_21 = arith.constant 0 : index
      %c0_22 = arith.constant 0 : index
      %39 = vector.load %arg5[%c0_21, %c0_22] : memref<1x128xf32, #tpu.memory_space<vmem>>, vector<1x128xf32>
      %40 = vector.broadcast %39 : vector<1x128xf32> to vector<8x128xf32>
      %41 = arith.addf %38, %40 : vector<8x128xf32>
      %42 = arith.mulf %41, %41 : vector<8x128xf32>
      %43 = arith.mulf %41, %42 : vector<8x128xf32>
      %cst_23 = arith.constant 4.471500e-02 : f32
      %44 = vector.broadcast %cst_23 : f32 to vector<8x128xf32>
      %45 = arith.mulf %44, %43 : vector<8x128xf32>
      %46 = arith.addf %41, %45 : vector<8x128xf32>
      %cst_24 = arith.constant 0.797884583 : f32
      %47 = vector.broadcast %cst_24 : f32 to vector<8x128xf32>
      %48 = arith.mulf %47, %46 : vector<8x128xf32>
      %49 = math.tanh %48 : vector<8x128xf32>
      %cst_25 = arith.constant 1.000000e+00 : f32
      %50 = vector.broadcast %cst_25 : f32 to vector<8x128xf32>
      %51 = arith.addf %50, %49 : vector<8x128xf32>
      %cst_26 = arith.constant 5.000000e-01 : f32
      %52 = vector.broadcast %cst_26 : f32 to vector<8x128xf32>
      %53 = arith.mulf %52, %51 : vector<8x128xf32>
      %54 = arith.mulf %41, %53 : vector<8x128xf32>
      %55 = arith.truncf %54 : vector<8x128xf32> to vector<8x128xbf16>
      %c0_27 = arith.constant 0 : index
      %c0_28 = arith.constant 0 : index
      %56 = vector.load %arg8[%c0_27, %c0_28] : memref<8x128xbf16, #tpu.memory_space<vmem>>, vector<8x128xbf16>
      tpu.vector_store %arg8[%c0_27, %c0_28], %55 {strides = array<i32>} : memref<8x128xbf16, #tpu.memory_space<vmem>>, vector<8x128xbf16>,
    } else {
    }
    return
  }
  func.func @transform_0(%arg0: i32, %arg1: i32, %arg2: i32) -> (i32, i32) {
    %c0_i32 = arith.constant 0 : i32
    return %arg0, %arg2 : i32, i32
  }
  func.func @transform_1(%arg0: i32, %arg1: i32, %arg2: i32) -> (i32, i32) {
    %c0_i32 = arith.constant 0 : i32
    return %arg2, %arg1 : i32, i32
  }
  func.func @transform_2(%arg0: i32, %arg1: i32, %arg2: i32) -> (i32, i32) {
    %c0_i32 = arith.constant 0 : i32
    %c0_i32_0 = arith.constant 0 : i32
    return %c0_i32, %arg1 : i32, i32
  }
  func.func @transform_3(%arg0: i32, %arg1: i32, %arg2: i32) -> (i32, i32) {
    %c0_i32 = arith.constant 0 : i32
    %c0_i32_0 = arith.constant 0 : i32
    return %c0_i32, %arg2 : i32, i32
  }
  func.func @transform_4(%arg0: i32, %arg1: i32, %arg2: i32) -> (i32, i32) {
    %c0_i32 = arith.constant 0 : i32
    %c0_i32_0 = arith.constant 0 : i32
    return %c0_i32, %arg2 : i32, i32
  }
  func.func @transform_5(%arg0: i32, %arg1: i32, %arg2: i32) -> (i32, i32) {
    %c0_i32 = arith.constant 0 : i32
    return %arg0, %arg1 : i32, i32
  }
}

module attributes {stable_mosaic.version = 11 : i64} {
  func.func @_ln_kernel(%arg0: i32, %arg1: memref<8x32xbf16, #tpu.memory_space<vmem>>, %arg2: memref<1x32xf32, #tpu.memory_space<vmem>>, %arg3: memref<1x32xf32, #tpu.memory_space<vmem>>, %arg4: memref<8x32xbf16, #tpu.memory_space<vmem>>) attributes {dimension_semantics = [#tpu.dimension_semantics<parallel>], iteration_bounds = array<i64: 1>, scalar_prefetch = 0 : i64, scratch_operands = 0 : i64, tpu.core_type = #tpu.core_type<tc>, window_params = [{transform_indices = @transform_0, window_bounds = array<i64: 8, 32>}, {pipeline_mode = #tpu.pipeline_mode<synchronous>, transform_indices = @transform_1, window_bounds = array<i64: 1, 32>}, {pipeline_mode = #tpu.pipeline_mode<synchronous>, transform_indices = @transform_2, window_bounds = array<i64: 1, 32>}, {transform_indices = @transform_3, window_bounds = array<i64: 8, 32>}]} {
    %c0 = arith.constant 0 : index
    %c0_0 = arith.constant 0 : index
    %0 = vector.load %arg1[%c0, %c0_0] : memref<8x32xbf16, #tpu.memory_space<vmem>>, vector<8x32xbf16>
    %1 = arith.extf %0 : vector<8x32xbf16> to vector<8x32xf32>
    %cst = arith.constant dense<0.000000e+00> : vector<8xf32>
    %2 = vector.multi_reduction <add>, %1, %cst [1] : vector<8x32xf32> to vector<8xf32>
    %3 = vector.shape_cast %2 : vector<8xf32> to vector<8x1xf32>
    %cst_1 = arith.constant 3.200000e+01 : f32
    %4 = vector.broadcast %cst_1 : f32 to vector<8x1xf32>
    %5 = arith.divf %3, %4 : vector<8x1xf32>
    %6 = vector.broadcast %5 : vector<8x1xf32> to vector<8x32xf32>
    %7 = arith.subf %1, %6 : vector<8x32xf32>
    %8 = arith.mulf %7, %7 : vector<8x32xf32>
    %cst_2 = arith.constant dense<0.000000e+00> : vector<8xf32>
    %9 = vector.multi_reduction <add>, %8, %cst_2 [1] : vector<8x32xf32> to vector<8xf32>
    %10 = vector.shape_cast %9 : vector<8xf32> to vector<8x1xf32>
    %cst_3 = arith.constant 3.200000e+01 : f32
    %11 = vector.broadcast %cst_3 : f32 to vector<8x1xf32>
    %12 = arith.divf %10, %11 : vector<8x1xf32>
    %13 = vector.broadcast %5 : vector<8x1xf32> to vector<8x32xf32>
    %14 = arith.subf %1, %13 : vector<8x32xf32>
    %cst_4 = arith.constant 9.99999974E-6 : f32
    %15 = vector.broadcast %cst_4 : f32 to vector<8x1xf32>
    %16 = arith.addf %12, %15 : vector<8x1xf32>
    %17 = math.rsqrt %16 : vector<8x1xf32>
    %18 = vector.broadcast %17 : vector<8x1xf32> to vector<8x32xf32>
    %19 = arith.mulf %14, %18 : vector<8x32xf32>
    %c0_5 = arith.constant 0 : index
    %c0_6 = arith.constant 0 : index
    %20 = vector.load %arg2[%c0_5, %c0_6] : memref<1x32xf32, #tpu.memory_space<vmem>>, vector<1x32xf32>
    %21 = vector.broadcast %20 : vector<1x32xf32> to vector<8x32xf32>
    %22 = arith.mulf %19, %21 : vector<8x32xf32>
    %c0_7 = arith.constant 0 : index
    %c0_8 = arith.constant 0 : index
    %23 = vector.load %arg3[%c0_7, %c0_8] : memref<1x32xf32, #tpu.memory_space<vmem>>, vector<1x32xf32>
    %24 = vector.broadcast %23 : vector<1x32xf32> to vector<8x32xf32>
    %25 = arith.addf %22, %24 : vector<8x32xf32>
    %26 = arith.truncf %25 : vector<8x32xf32> to vector<8x32xbf16>
    %c0_9 = arith.constant 0 : index
    %c0_10 = arith.constant 0 : index
    %27 = vector.load %arg4[%c0_9, %c0_10] : memref<8x32xbf16, #tpu.memory_space<vmem>>, vector<8x32xbf16>
    tpu.vector_store %arg4[%c0_9, %c0_10], %26 {strides = array<i32>} : memref<8x32xbf16, #tpu.memory_space<vmem>>, vector<8x32xbf16>,
    return
  }
  func.func @transform_0(%arg0: i32) -> (i32, i32) {
    %c0_i32 = arith.constant 0 : i32
    %c0_i32_0 = arith.constant 0 : i32
    return %arg0, %c0_i32 : i32, i32
  }
  func.func @transform_1(%arg0: i32) -> (i32, i32) {
    %c0_i32 = arith.constant 0 : i32
    %c0_i32_0 = arith.constant 0 : i32
    %c0_i32_1 = arith.constant 0 : i32
    return %c0_i32, %c0_i32_0 : i32, i32
  }
  func.func @transform_2(%arg0: i32) -> (i32, i32) {
    %c0_i32 = arith.constant 0 : i32
    %c0_i32_0 = arith.constant 0 : i32
    %c0_i32_1 = arith.constant 0 : i32
    return %c0_i32, %c0_i32_0 : i32, i32
  }
  func.func @transform_3(%arg0: i32) -> (i32, i32) {
    %c0_i32 = arith.constant 0 : i32
    %c0_i32_0 = arith.constant 0 : i32
    return %arg0, %c0_i32 : i32, i32
  }
}

module attributes {stable_mosaic.version = 11 : i64} {
  func.func @_mm_kernel(%arg0: i32, %arg1: i32, %arg2: i32, %arg3: memref<8x32xbf16, #tpu.memory_space<vmem>>, %arg4: memref<32x512xbf16, #tpu.memory_space<vmem>>, %arg5: memref<1x512xf32, #tpu.memory_space<vmem>>, %arg6: memref<8x512xbf16, #tpu.memory_space<vmem>>, %arg7: memref<8x512xf32, #tpu.memory_space<vmem>>) attributes {dimension_semantics = [#tpu.dimension_semantics<parallel>, #tpu.dimension_semantics<parallel>, #tpu.dimension_semantics<arbitrary>], iteration_bounds = array<i64: 1, 16, 1>, scalar_prefetch = 0 : i64, scratch_operands = 1 : i64, tpu.core_type = #tpu.core_type<tc>, window_params = [{transform_indices = @transform_0, window_bounds = array<i64: 8, 32>}, {transform_indices = @transform_1, window_bounds = array<i64: 32, 512>}, {transform_indices = @transform_2, window_bounds = array<i64: 1, 512>}, {transform_indices = @transform_3, window_bounds = array<i64: 8, 512>}]} {
    %c0_i32 = arith.constant 0 : i32
    %0 = arith.cmpi eq, %arg2, %c0_i32 : i32
    %1 = arith.extui %0 : i1 to i32
    %c0_i32_0 = arith.constant 0 : i32
    %2 = arith.cmpi ne, %1, %c0_i32_0 : i32
    scf.if %2 {
      %cst_10 = arith.constant 0.000000e+00 : f32
      %12 = vector.broadcast %cst_10 : f32 to vector<8x512xf32>
      %c0_11 = arith.constant 0 : index
      %c0_12 = arith.constant 0 : index
      %13 = vector.load %arg7[%c0_11, %c0_12] : memref<8x512xf32, #tpu.memory_space<vmem>>, vector<8x512xf32>
      tpu.vector_store %arg7[%c0_11, %c0_12], %12 {strides = array<i32>} : memref<8x512xf32, #tpu.memory_space<vmem>>, vector<8x512xf32>,
    } else {
    }
    %c0 = arith.constant 0 : index
    %c0_1 = arith.constant 0 : index
    %3 = vector.load %arg3[%c0, %c0_1] : memref<8x32xbf16, #tpu.memory_space<vmem>>, vector<8x32xbf16>
    %c0_2 = arith.constant 0 : index
    %c0_3 = arith.constant 0 : index
    %4 = vector.load %arg7[%c0_2, %c0_3] : memref<8x512xf32, #tpu.memory_space<vmem>>, vector<8x512xf32>
    %c0_4 = arith.constant 0 : index
    %c0_5 = arith.constant 0 : index
    %5 = vector.load %arg4[%c0_4, %c0_5] : memref<32x512xbf16, #tpu.memory_space<vmem>>, vector<32x512xbf16>
    %cst = arith.constant dense<0.000000e+00> : vector<8x512xf32>
    %6 = tpu.matmul %3, %5, %cst {dimension_numbers = #tpu.dot_dimension_numbers<[1], [0], [0], [1], [0, 0, 1, 1], [], []>} : vector<8x32xbf16>, vector<32x512xbf16>, vector<8x512xf32> -> vector<8x512xf32>
    %7 = arith.addf %4, %6 : vector<8x512xf32>
    %c0_6 = arith.constant 0 : index
    %c0_7 = arith.constant 0 : index
    %8 = vector.load %arg7[%c0_6, %c0_7] : memref<8x512xf32, #tpu.memory_space<vmem>>, vector<8x512xf32>
    tpu.vector_store %arg7[%c0_6, %c0_7], %7 {strides = array<i32>} : memref<8x512xf32, #tpu.memory_space<vmem>>, vector<8x512xf32>,
    %c0_i32_8 = arith.constant 0 : i32
    %9 = arith.cmpi eq, %arg2, %c0_i32_8 : i32
    %10 = arith.extui %9 : i1 to i32
    %c0_i32_9 = arith.constant 0 : i32
    %11 = arith.cmpi ne, %10, %c0_i32_9 : i32
    scf.if %11 {
      %c0_10 = arith.constant 0 : index
      %c0_11 = arith.constant 0 : index
      %12 = vector.load %arg7[%c0_10, %c0_11] : memref<8x512xf32, #tpu.memory_space<vmem>>, vector<8x512xf32>
      %c0_12 = arith.constant 0 : index
      %c0_13 = arith.constant 0 : index
      %13 = vector.load %arg5[%c0_12, %c0_13] : memref<1x512xf32, #tpu.memory_space<vmem>>, vector<1x512xf32>
      %14 = vector.broadcast %13 : vector<1x512xf32> to vector<8x512xf32>
      %15 = arith.addf %12, %14 : vector<8x512xf32>
      %16 = arith.truncf %15 : vector<8x512xf32> to vector<8x512xbf16>
      %c0_14 = arith.constant 0 : index
      %c0_15 = arith.constant 0 : index
      %17 = vector.load %arg6[%c0_14, %c0_15] : memref<8x512xbf16, #tpu.memory_space<vmem>>, vector<8x512xbf16>
      tpu.vector_store %arg6[%c0_14, %c0_15], %16 {strides = array<i32>} : memref<8x512xbf16, #tpu.memory_space<vmem>>, vector<8x512xbf16>,
    } else {
    }
    return
  }
  func.func @transform_0(%arg0: i32, %arg1: i32, %arg2: i32) -> (i32, i32) {
    %c0_i32 = arith.constant 0 : i32
    return %arg0, %arg2 : i32, i32
  }
  func.func @transform_1(%arg0: i32, %arg1: i32, %arg2: i32) -> (i32, i32) {
    %c0_i32 = arith.constant 0 : i32
    return %arg2, %arg1 : i32, i32
  }
  func.func @transform_2(%arg0: i32, %arg1: i32, %arg2: i32) -> (i32, i32) {
    %c0_i32 = arith.constant 0 : i32
    %c0_i32_0 = arith.constant 0 : i32
    return %c0_i32, %arg1 : i32, i32
  }
  func.func @transform_3(%arg0: i32, %arg1: i32, %arg2: i32) -> (i32, i32) {
    %c0_i32 = arith.constant 0 : i32
    return %arg0, %arg1 : i32, i32
  }
}

module attributes {stable_mosaic.version = 11 : i64} {
  func.func @_mm_kernel(%arg0: i32, %arg1: i32, %arg2: i32, %arg3: memref<256x1152xbf16, #tpu.memory_space<vmem>>, %arg4: memref<1152x128xbf16, #tpu.memory_space<vmem>>, %arg5: memref<1x128xf32, #tpu.memory_space<vmem>>, %arg6: memref<256x128xbf16, #tpu.memory_space<vmem>>, %arg7: memref<256x128xf32, #tpu.memory_space<vmem>>) attributes {dimension_semantics = [#tpu.dimension_semantics<parallel>, #tpu.dimension_semantics<parallel>, #tpu.dimension_semantics<arbitrary>], iteration_bounds = array<i64: 2, 1, 1>, scalar_prefetch = 0 : i64, scratch_operands = 1 : i64, tpu.core_type = #tpu.core_type<tc>, window_params = [{transform_indices = @transform_0, window_bounds = array<i64: 256, 1152>}, {transform_indices = @transform_1, window_bounds = array<i64: 1152, 128>}, {transform_indices = @transform_2, window_bounds = array<i64: 1, 128>}, {transform_indices = @transform_3, window_bounds = array<i64: 256, 128>}]} {
    %c0_i32 = arith.constant 0 : i32
    %0 = arith.cmpi eq, %arg2, %c0_i32 : i32
    %1 = arith.extui %0 : i1 to i32
    %c0_i32_0 = arith.constant 0 : i32
    %2 = arith.cmpi ne, %1, %c0_i32_0 : i32
    scf.if %2 {
      %cst_10 = arith.constant 0.000000e+00 : f32
      %12 = vector.broadcast %cst_10 : f32 to vector<256x128xf32>
      %c0_11 = arith.constant 0 : index
      %c0_12 = arith.constant 0 : index
      %13 = vector.load %arg7[%c0_11, %c0_12] : memref<256x128xf32, #tpu.memory_space<vmem>>, vector<256x128xf32>
      tpu.vector_store %arg7[%c0_11, %c0_12], %12 {strides = array<i32>} : memref<256x128xf32, #tpu.memory_space<vmem>>, vector<256x128xf32>,
    } else {
    }
    %c0 = arith.constant 0 : index
    %c0_1 = arith.constant 0 : index
    %3 = vector.load %arg3[%c0, %c0_1] : memref<256x1152xbf16, #tpu.memory_space<vmem>>, vector<256x1152xbf16>
    %c0_2 = arith.constant 0 : index
    %c0_3 = arith.constant 0 : index
    %4 = vector.load %arg7[%c0_2, %c0_3] : memref<256x128xf32, #tpu.memory_space<vmem>>, vector<256x128xf32>
    %c0_4 = arith.constant 0 : index
    %c0_5 = arith.constant 0 : index
    %5 = vector.load %arg4[%c0_4, %c0_5] : memref<1152x128xbf16, #tpu.memory_space<vmem>>, vector<1152x128xbf16>
    %cst = arith.constant dense<0.000000e+00> : vector<256x128xf32>
    %6 = tpu.matmul %3, %5, %cst {dimension_numbers = #tpu.dot_dimension_numbers<[1], [0], [0], [1], [0, 0, 1, 1], [], []>} : vector<256x1152xbf16>, vector<1152x128xbf16>, vector<256x128xf32> -> vector<256x128xf32>
    %7 = arith.addf %4, %6 : vector<256x128xf32>
    %c0_6 = arith.constant 0 : index
    %c0_7 = arith.constant 0 : index
    %8 = vector.load %arg7[%c0_6, %c0_7] : memref<256x128xf32, #tpu.memory_space<vmem>>, vector<256x128xf32>
    tpu.vector_store %arg7[%c0_6, %c0_7], %7 {strides = array<i32>} : memref<256x128xf32, #tpu.memory_space<vmem>>, vector<256x128xf32>,
    %c0_i32_8 = arith.constant 0 : i32
    %9 = arith.cmpi eq, %arg2, %c0_i32_8 : i32
    %10 = arith.extui %9 : i1 to i32
    %c0_i32_9 = arith.constant 0 : i32
    %11 = arith.cmpi ne, %10, %c0_i32_9 : i32
    scf.if %11 {
      %c0_10 = arith.constant 0 : index
      %c0_11 = arith.constant 0 : index
      %12 = vector.load %arg7[%c0_10, %c0_11] : memref<256x128xf32, #tpu.memory_space<vmem>>, vector<256x128xf32>
      %c0_12 = arith.constant 0 : index
      %c0_13 = arith.constant 0 : index
      %13 = vector.load %arg5[%c0_12, %c0_13] : memref<1x128xf32, #tpu.memory_space<vmem>>, vector<1x128xf32>
      %14 = vector.broadcast %13 : vector<1x128xf32> to vector<256x128xf32>
      %15 = arith.addf %12, %14 : vector<256x128xf32>
      %16 = arith.truncf %15 : vector<256x128xf32> to vector<256x128xbf16>
      %c0_14 = arith.constant 0 : index
      %c0_15 = arith.constant 0 : index
      %17 = vector.load %arg6[%c0_14, %c0_15] : memref<256x128xbf16, #tpu.memory_space<vmem>>, vector<256x128xbf16>
      tpu.vector_store %arg6[%c0_14, %c0_15], %16 {strides = array<i32>} : memref<256x128xbf16, #tpu.memory_space<vmem>>, vector<256x128xbf16>,
    } else {
    }
    return
  }
  func.func @transform_0(%arg0: i32, %arg1: i32, %arg2: i32) -> (i32, i32) {
    %c0_i32 = arith.constant 0 : i32
    return %arg0, %arg2 : i32, i32
  }
  func.func @transform_1(%arg0: i32, %arg1: i32, %arg2: i32) -> (i32, i32) {
    %c0_i32 = arith.constant 0 : i32
    return %arg2, %arg1 : i32, i32
  }
  func.func @transform_2(%arg0: i32, %arg1: i32, %arg2: i32) -> (i32, i32) {
    %c0_i32 = arith.constant 0 : i32
    %c0_i32_0 = arith.constant 0 : i32
    return %c0_i32, %arg1 : i32, i32
  }
  func.func @transform_3(%arg0: i32, %arg1: i32, %arg2: i32) -> (i32, i32) {
    %c0_i32 = arith.constant 0 : i32
    return %arg0, %arg1 : i32, i32
  }
}

module attributes {stable_mosaic.version = 11 : i64} {
  func.func @_mm_kernel(%arg0: i32, %arg1: i32, %arg2: i32, %arg3: memref<256x1152xbf16, #tpu.memory_space<vmem>>, %arg4: memref<1152x128xbf16, #tpu.memory_space<vmem>>, %arg5: memref<1x128xf32, #tpu.memory_space<vmem>>, %arg6: memref<256x128xbf16, #tpu.memory_space<vmem>>, %arg7: memref<256x128xbf16, #tpu.memory_space<vmem>>, %arg8: memref<256x128xf32, #tpu.memory_space<vmem>>) attributes {dimension_semantics = [#tpu.dimension_semantics<parallel>, #tpu.dimension_semantics<parallel>, #tpu.dimension_semantics<arbitrary>], iteration_bounds = array<i64: 2, 1, 1>, scalar_prefetch = 0 : i64, scratch_operands = 1 : i64, tpu.core_type = #tpu.core_type<tc>, window_params = [{transform_indices = @transform_0, window_bounds = array<i64: 256, 1152>}, {transform_indices = @transform_1, window_bounds = array<i64: 1152, 128>}, {transform_indices = @transform_2, window_bounds = array<i64: 1, 128>}, {transform_indices = @transform_3, window_bounds = array<i64: 256, 128>}, {transform_indices = @transform_4, window_bounds = array<i64: 256, 128>}]} {
    %c0_i32 = arith.constant 0 : i32
    %0 = arith.cmpi eq, %arg2, %c0_i32 : i32
    %1 = arith.extui %0 : i1 to i32
    %c0_i32_0 = arith.constant 0 : i32
    %2 = arith.cmpi ne, %1, %c0_i32_0 : i32
    scf.if %2 {
      %cst_10 = arith.constant 0.000000e+00 : f32
      %12 = vector.broadcast %cst_10 : f32 to vector<256x128xf32>
      %c0_11 = arith.constant 0 : index
      %c0_12 = arith.constant 0 : index
      %13 = vector.load %arg8[%c0_11, %c0_12] : memref<256x128xf32, #tpu.memory_space<vmem>>, vector<256x128xf32>
      tpu.vector_store %arg8[%c0_11, %c0_12], %12 {strides = array<i32>} : memref<256x128xf32, #tpu.memory_space<vmem>>, vector<256x128xf32>,
    } else {
    }
    %c0 = arith.constant 0 : index
    %c0_1 = arith.constant 0 : index
    %3 = vector.load %arg3[%c0, %c0_1] : memref<256x1152xbf16, #tpu.memory_space<vmem>>, vector<256x1152xbf16>
    %c0_2 = arith.constant 0 : index
    %c0_3 = arith.constant 0 : index
    %4 = vector.load %arg8[%c0_2, %c0_3] : memref<256x128xf32, #tpu.memory_space<vmem>>, vector<256x128xf32>
    %c0_4 = arith.constant 0 : index
    %c0_5 = arith.constant 0 : index
    %5 = vector.load %arg4[%c0_4, %c0_5] : memref<1152x128xbf16, #tpu.memory_space<vmem>>, vector<1152x128xbf16>
    %cst = arith.constant dense<0.000000e+00> : vector<256x128xf32>
    %6 = tpu.matmul %3, %5, %cst {dimension_numbers = #tpu.dot_dimension_numbers<[1], [0], [0], [1], [0, 0, 1, 1], [], []>} : vector<256x1152xbf16>, vector<1152x128xbf16>, vector<256x128xf32> -> vector<256x128xf32>
    %7 = arith.addf %4, %6 : vector<256x128xf32>
    %c0_6 = arith.constant 0 : index
    %c0_7 = arith.constant 0 : index
    %8 = vector.load %arg8[%c0_6, %c0_7] : memref<256x128xf32, #tpu.memory_space<vmem>>, vector<256x128xf32>
    tpu.vector_store %arg8[%c0_6, %c0_7], %7 {strides = array<i32>} : memref<256x128xf32, #tpu.memory_space<vmem>>, vector<256x128xf32>,
    %c0_i32_8 = arith.constant 0 : i32
    %9 = arith.cmpi eq, %arg2, %c0_i32_8 : i32
    %10 = arith.extui %9 : i1 to i32
    %c0_i32_9 = arith.constant 0 : i32
    %11 = arith.cmpi ne, %10, %c0_i32_9 : i32
    scf.if %11 {
      %c0_10 = arith.constant 0 : index
      %c0_11 = arith.constant 0 : index
      %12 = vector.load %arg8[%c0_10, %c0_11] : memref<256x128xf32, #tpu.memory_space<vmem>>, vector<256x128xf32>
      %c0_12 = arith.constant 0 : index
      %c0_13 = arith.constant 0 : index
      %13 = vector.load %arg5[%c0_12, %c0_13] : memref<1x128xf32, #tpu.memory_space<vmem>>, vector<1x128xf32>
      %14 = vector.broadcast %13 : vector<1x128xf32> to vector<256x128xf32>
      %15 = arith.addf %12, %14 : vector<256x128xf32>
      %16 = arith.negf %15 : vector<256x128xf32>
      %17 = math.exp %16 : vector<256x128xf32>
      %cst_14 = arith.constant 1.000000e+00 : f32
      %18 = vector.broadcast %cst_14 : f32 to vector<256x128xf32>
      %19 = arith.addf %18, %17 : vector<256x128xf32>
      %20 = arith.divf %18, %19 : vector<256x128xf32>
      %c0_15 = arith.constant 0 : index
      %c0_16 = arith.constant 0 : index
      %21 = vector.load %arg6[%c0_15, %c0_16] : memref<256x128xbf16, #tpu.memory_space<vmem>>, vector<256x128xbf16>
      %22 = arith.extf %21 : vector<256x128xbf16> to vector<256x128xf32>
      %23 = arith.addf %20, %22 : vector<256x128xf32>
      %24 = arith.truncf %23 : vector<256x128xf32> to vector<256x128xbf16>
      %c0_17 = arith.constant 0 : index
      %c0_18 = arith.constant 0 : index
      %25 = vector.load %arg7[%c0_17, %c0_18] : memref<256x128xbf16, #tpu.memory_space<vmem>>, vector<256x128xbf16>
      tpu.vector_store %arg7[%c0_17, %c0_18], %24 {strides = array<i32>} : memref<256x128xbf16, #tpu.memory_space<vmem>>, vector<256x128xbf16>,
    } else {
    }
    return
  }
  func.func @transform_0(%arg0: i32, %arg1: i32, %arg2: i32) -> (i32, i32) {
    %c0_i32 = arith.constant 0 : i32
    return %arg0, %arg2 : i32, i32
  }
  func.func @transform_1(%arg0: i32, %arg1: i32, %arg2: i32) -> (i32, i32) {
    %c0_i32 = arith.constant 0 : i32
    return %arg2, %arg1 : i32, i32
  }
  func.func @transform_2(%arg0: i32, %arg1: i32, %arg2: i32) -> (i32, i32) {
    %c0_i32 = arith.constant 0 : i32
    %c0_i32_0 = arith.constant 0 : i32
    return %c0_i32, %arg1 : i32, i32
  }
  func.func @transform_3(%arg0: i32, %arg1: i32, %arg2: i32) -> (i32, i32) {
    %c0_i32 = arith.constant 0 : i32
    return %arg0, %arg1 : i32, i32
  }
  func.func @transform_4(%arg0: i32, %arg1: i32, %arg2: i32) -> (i32, i32) {
    %c0_i32 = arith.constant 0 : i32
    return %arg0, %arg1 : i32, i32
  }
}

</mosaic_0001>

<bundles_post_ra>
// kernel: mowe_forward.24
= control target key start
LH: loop header
LB: loop body
LE: loop exit
PB: predicated region body
PF: predicated region fallthrough
CT: control target
= control target key end

     0   :  { %8 = vsyncpa [#allocation4], 0  ;;  %s1475_s12 = smov 0   ;;  %s1477_s13 = smov 0   ;;  %s1646_s0 = inlined_call_operand.vmem [shape: bf16[512,27], index: 0, kind: input, shape index: {}]   ;;  %s1647_s1 = inlined_call_operand.hbm [shape: bf16[27,128], index: 1, kind: input, shape index: {}]   ;;  %s1648_s2 = inlined_call_operand.vmem [shape: f32[1,128], index: 2, kind: input, shape index: {}]   ;;  %s1649_s3 = inlined_call_operand.vmem [shape: bf16[512,128], index: 3, kind: output, shape index: {}]  }
   0x1   :  { %s1479_s14 = smov 0  }
   0x2 LB: > { %s1073_s15 = sadd.s32 4294967295, %s1449_s14   ;;  %s33_s16 = sadd.s32 1, %s1445_s13  ;;  %s1449_s14 = sphi %s1479_s14, %s14_s14   ;;  %s1445_s13 = sphi %s1477_s13, %s1659_s13   ;;  %s1441_s12 = sphi %s1475_s12, %s1658_s12  }
   0x3   : > { %p35_p0 = scmp.ge.s32.totalorder %s33_s16, 2  ;;  %p1075_p1 = scmp.ge.s32.totalorder %s1449_s14, 1 }
   0x4   : > { %p148_p2 = scmp.lt.s32.totalorder %s1449_s14, 3  ;;  %p1500_p4 = scmp.eq.s32.totalorder %s1073_s15, 0 }
   0x5   : > { %s1661_s16 = smov (%p35_p0, %s33_s16), 0  ;;  %s1451_s19 = smov [#allocation3]  }
   0x6   : > { %p1496_p3 = pnand %p1075_p1, %p148_p2  ;;  %s164_s20 = sshll.u32 %s1451_s19, 4  ;;  %s165_s20 = int_to_ptr.vmem [resolvable:$true] %s164_s20 }
   0x7   : > { %s1654_s18 = scalar_select %p1500_p4, 1, 0 }
   0x8   : > { %s1653_s17 = scalar_select %p1496_p3, 1, 0 }
   0x9   : > { %p1343_p5 = pneg %p1496_p3  ;;  %s1395_s24 = scalar_lea.hbm %s1647_s1, 256 }
   0xa   : > { %p1396_p7 = scmp.ne.s32.totalorder %s1647_s1, %s1395_s24  ;;  %p1402_p11 = scmp.lt.u32.totalorder %s1395_s24, %s1647_s1 }
   0xb   : > { %p1508_p6 = pnand %p1500_p4, %p1343_p5 }
   0xd   : > { %p1397_p8 = pneg %p1508_p6 }
   0xf   : > { %p1398_p9 = pnand %p1397_p8, %p1396_p7 }
  0x11   : > { %p1399_p10 = pneg %p1398_p9 }
  0x13   : > { %p1404_p12 = pnand %p1402_p11, %p1399_p10 }
  0x15   : > { %1407 = shalt.err (!%p1404_p12)
}
  0x16   : > { %s1408_s29 = scalar_lea.vmem %s165_s20, 256  ;;  %p1416_p2 = scmp.lt.s32.totalorder %s165_s20, %s165_s20 }
  0x17   : > { %p1409_p13 = scmp.ne.s32.totalorder %s165_s20, %s1408_s29  ;;  %p1417_p5 = scmp.lt.s32.totalorder %s1408_s29, %s1408_s29 }
  0x19   : > { %p1411_p0 = pnand %p1409_p13, %p1397_p8  ;;  %p1418_p4 = por %p1417_p5, %p1416_p2 }
  0x1b   : > { %p1412_p1 = pneg %p1411_p0 }
  0x1d   : > { %p1419_p3 = pnand %p1418_p4, %p1412_p1 }
  0x1f   : > { %1422 = shalt.err (!%p1419_p3)
}
  0x20   : > { %s1452_s30 = smov 64   ;;  %s1453_s4 = smov 4  }
  0x21   : > { %1346 = dma.hbm_to_vmem [thread:$0]  (!%p1508_p6), %s1647_s1, 256, %s165_s20, [#allocation4], %s1452_s30, %s1452_s30, %s1453_s4  }
  0x22   : > { %p1656_p7 = scmp.ne.s32.totalorder %s1653_s17, 0 }
  0x23   : > { %p1657_p9 = scmp.ne.s32.totalorder (!%p1656_p7), %s1654_s18, 0 }
  0x24   : > { %198 = sbr.rel (%p1656_p7) target bundleno = 299 (0x12b), region = 32 }
  0x2b   : > { %1436 = dma.done.wait (%p1657_p9), [#allocation4], 256  }
  0x2c   : > { %1438 = vsyncadd (%p1657_p9), [#allocation4], 4294967040  ;;  %s1081_s7 = sshll.u32 %s1441_s12, 5  ;;  %vm498_vm0 = vcmask 1044480   ;;  %vm499_vm1 = vcmask 1045504   ;;  %v1454_v0 = vmov 65535  }
  0x2d   : > { %p232_p3 = scmp.lt.s32.totalorder %s1081_s7, 63  ;;  %v500_v1 = vsel %vm498_vm0, 4294967295, %v1454_v0  ;;  %vm449_vm2 = vcmask 220160   ;;  %v1377_v2 = vld [vmem:[#allocation3] sm:$0xff]   ;;  %v1378_v4 = vld [vmem:[#allocation3 + $0x8] sm:$0x3f]  }
  0x2e   : > { %v501_v3 = vsel %vm499_vm1, %v500_v1, 0  ;;  %1299 = vmatprep.subr.bf16.mxu0 %v1377_v2  ;;  %1335 = vmatprep.subr.bf16.mxu1 %v1377_v2  ;;  %v1580_v23 = vld [vmem:[%s1648_s2] ss:$0 sm:$0xff] }
  0x2f   : > { %s1663_s7 = smov (!%p232_p3, %s1081_s7), 63  ;;  %1300 = vmatpush3.bf16.msra.mxu0 %v1377_v2  ;;  %1337 = vmatpush3.bf16.msra.mxu1 %v1377_v2  ;;  %v503_v6 = vand.u32 %v1378_v4, %v501_v3 }
  0x30   : > { %s1082_s8 = sshll.u32 %s1663_s7, 2 }
  0x31   : > { %s1543_s11 = scalar_lea.vmem %s1646_s0, %s1082_s8  ;;  %1301 = vmatprep.subr.bf16.mxu0 %v503_v6  ;;  %1336 = vmatprep.subr.bf16.mxu1 %v503_v6  ;;  %s1593_s19 = scalar_lea.vmem %s1649_s3, %s1082_s8 }
  0x32   : > { %v1379_v5 = vld [vmem:[%s1543_s11] sm:$0xff]   ;;  %v1381_v8 = vld [vmem:[%s1543_s11 + $0x8] sm:$0xff]   ;;  %v1383_v10 = vld [vmem:[%s1543_s11 + $0x10] sm:$0xff]  }
  0x33   : > { %v1380_v7 = vld [vmem:[%s1543_s11 + $0x40] sm:$0xff]   ;;  %1303 = vmatprep.mubr.msk.bf16.mxu0 %vm449_vm2, %v1379_v5  ;;  %v1382_v9 = vld [vmem:[%s1543_s11 + $0x48] sm:$0xff]   ;;  %1302 = vmatpush3.bf16.msra.mxu0 %v503_v6  ;;  %v1384_v11 = vld [vmem:[%s1543_s11 + $0x50] sm:$0xff]  }
  0x34   : > { %1319 = vmatprep.mubr.msk.bf16.mxu1 %vm449_vm2, %v1380_v7  ;;  %1338 = vmatpush3.bf16.msra.mxu1 %v503_v6  ;;  %v1385_v12 = vld [vmem:[%s1543_s11 + $0x18] sm:$0xff]   ;;  %v1387_v14 = vld [vmem:[%s1543_s11 + $0x20] sm:$0xff]   ;;  %v1389_v16 = vld [vmem:[%s1543_s11 + $0x28] sm:$0xff]  }
  0x35   : > { %v1386_v13 = vld [vmem:[%s1543_s11 + $0x58] sm:$0xff]   ;;  %v1388_v15 = vld [vmem:[%s1543_s11 + $0x60] sm:$0xff]   ;;  %v1390_v17 = vld [vmem:[%s1543_s11 + $0x68] sm:$0xff]  }
  0x36   : > { %1304 = vmatmul.mubr.msk.bf16.vlgmr.msra.gmra.mrb[0].mxu0 %vm449_vm2, %v1381_v8  ;;  %v1391_v18 = vld [vmem:[%s1543_s11 + $0x30] sm:$0xff]   ;;  %v1393_v20 = vld [vmem:[%s1543_s11 + $0x38] sm:$0xff]  }
  0x37   : > { %1320 = vmatmul.mubr.msk.bf16.vlgmr.msra.gmra.mrb[0].mxu1 %vm449_vm2, %v1382_v9  ;;  %1307 = vmatprep.mubr.msk.bf16.mxu0 %vm449_vm2, %v1383_v10  ;;  %v1392_v19 = vld [vmem:[%s1543_s11 + $0x70] sm:$0xff]   ;;  %v1394_v21 = vld [vmem:[%s1543_s11 + $0x78] sm:$0xff]  }
  0x38   : > { %1323 = vmatprep.mubr.msk.bf16.mxu1 %vm449_vm2, %v1384_v11 }
  0x3e   : > { %1308 = vmatmul.mubr.msk.bf16.gmra.mrb[4].mxu0 %vm449_vm2, %v1385_v12 }
  0x3f   : > { %1324 = vmatmul.mubr.msk.bf16.gmra.mrb[4].mxu1 %vm449_vm2, %v1386_v13  ;;  %1311 = vmatprep.mubr.msk.bf16.mxu0 %vm449_vm2, %v1387_v14 }
  0x40   : > { %1327 = vmatprep.mubr.msk.bf16.mxu1 %vm449_vm2, %v1388_v15 }
  0x46   : > { %1312 = vmatmul.mubr.msk.bf16.gmra.mrb[8].mxu0 %vm449_vm2, %v1389_v16 }
  0x47   : > { %1328 = vmatmul.mubr.msk.bf16.gmra.mrb[8].mxu1 %vm449_vm2, %v1390_v17  ;;  %1315 = vmatprep.mubr.msk.bf16.mxu0 %vm449_vm2, %v1391_v18 }
  0x48   : > { %1331 = vmatprep.mubr.msk.bf16.mxu1 %vm449_vm2, %v1392_v19 }
  0x4e   : > { %1316 = vmatmul.mubr.msk.bf16.gmra.mrb[12].mxu0 %vm449_vm2, %v1393_v20 }
  0x4f   : > { %1332 = vmatmul.mubr.msk.bf16.gmra.mrb[12].mxu1 %vm449_vm2, %v1394_v21 }
 0x109   : > { %v1305_v22 = vpop.f32.mrb[0].mxu0 }
 0x10a   : > { %v1321_v24 = vpop.f32.mrb[0].mxu1  ;;  %v539_v25 = vpop.f32.mrb[1].mxu0  ;;  %v774_v29 = vadd.f32 %v1305_v22, %v1580_v23 }
 0x10b   : > { %v603_v26 = vpop.f32.mrb[1].mxu1  ;;  %v1306_v27 = vpop.f32.mrb[2].mxu0  ;;  %v790_v30 = vadd.f32 %v1321_v24, %v1580_v23  ;;  %v772_v35 = vadd.f32 %v1580_v23, %v539_v25 }
 0x10c   : > { %v1322_v28 = vpop.f32.mrb[2].mxu1  ;;  %v775_v31 = vadd.f32 %v1306_v27, %v1580_v23  ;;  %v542_v33 = vpop.f32.mrb[3].mxu0  ;;  %v788_v36 = vadd.f32 %v1580_v23, %v603_v26 }
 0x10d   : > { %v791_v32 = vadd.f32 %v1322_v28, %v1580_v23  ;;  %v606_v34 = vpop.f32.mrb[3].mxu1  ;;  %v773_v37 = vadd.f32 %v1580_v23, %v542_v33 }
 0x10e   : > { %v789_v38 = vadd.f32 %v1580_v23, %v606_v34  ;;  %v1194_v39 = vpack.c.bf16 %v775_v31, %v774_v29 }
 0x10f   : > { %v1234_v40 = vpack.c.bf16 %v791_v32, %v790_v30  ;;  %v1189_v41 = vpack.c.bf16 %v773_v37, %v772_v35 }
 0x110   : > { %v1229_v42 = vpack.c.bf16 %v789_v38, %v788_v36  ;;  %1266 = vst [vmem:[%s1593_s19 + $0x8] sm:$0xff] %v1194_v39  }
 0x111   : > { %1274 = vst [vmem:[%s1593_s19 + $0x48] sm:$0xff] %v1234_v40   ;;  %1190 = vst [vmem:[%s1593_s19] sm:$0xff] %v1189_v41   ;;  %v1309_v43 = vpop.f32.mrb[4].mxu0 }
 0x112   : > { %1273 = vst [vmem:[%s1593_s19 + $0x40] sm:$0xff] %v1229_v42   ;;  %v1325_v44 = vpop.f32.mrb[4].mxu1  ;;  %v555_v45 = vpop.f32.mrb[5].mxu0  ;;  %v778_v49 = vadd.f32 %v1309_v43, %v1580_v23 }
 0x113   : > { %v619_v46 = vpop.f32.mrb[5].mxu1  ;;  %v1310_v47 = vpop.f32.mrb[6].mxu0  ;;  %v794_v50 = vadd.f32 %v1325_v44, %v1580_v23  ;;  %v776_v55 = vadd.f32 %v1580_v23, %v555_v45 }
 0x114   : > { %v1326_v48 = vpop.f32.mrb[6].mxu1  ;;  %v779_v51 = vadd.f32 %v1310_v47, %v1580_v23  ;;  %v558_v53 = vpop.f32.mrb[7].mxu0  ;;  %v792_v56 = vadd.f32 %v1580_v23, %v619_v46 }
 0x115   : > { %v795_v52 = vadd.f32 %v1326_v48, %v1580_v23  ;;  %v622_v54 = vpop.f32.mrb[7].mxu1  ;;  %v777_v57 = vadd.f32 %v1580_v23, %v558_v53 }
 0x116   : > { %v793_v58 = vadd.f32 %v1580_v23, %v622_v54  ;;  %v1204_v59 = vpack.c.bf16 %v779_v51, %v778_v49 }
 0x117   : > { %v1244_v60 = vpack.c.bf16 %v795_v52, %v794_v50  ;;  %v1199_v61 = vpack.c.bf16 %v777_v57, %v776_v55 }
 0x118   : > { %v1239_v62 = vpack.c.bf16 %v793_v58, %v792_v56  ;;  %1268 = vst [vmem:[%s1593_s19 + $0x18] sm:$0xff] %v1204_v59  }
 0x119   : > { %1276 = vst [vmem:[%s1593_s19 + $0x58] sm:$0xff] %v1244_v60   ;;  %1267 = vst [vmem:[%s1593_s19 + $0x10] sm:$0xff] %v1199_v61   ;;  %v1313_v63 = vpop.f32.mrb[8].mxu0 }
 0x11a   : > { %1275 = vst [vmem:[%s1593_s19 + $0x50] sm:$0xff] %v1239_v62   ;;  %v1329_v0 = vpop.f32.mrb[8].mxu1  ;;  %v571_v1 = vpop.f32.mrb[9].mxu0  ;;  %v782_v5 = vadd.f32 %v1313_v63, %v1580_v23 }
 0x11b   : > { %v635_v2 = vpop.f32.mrb[9].mxu1  ;;  %v1314_v3 = vpop.f32.mrb[10].mxu0  ;;  %v798_v6 = vadd.f32 %v1329_v0, %v1580_v23  ;;  %v780_v11 = vadd.f32 %v1580_v23, %v571_v1 }
 0x11c   : > { %v1330_v4 = vpop.f32.mrb[10].mxu1  ;;  %v783_v7 = vadd.f32 %v1314_v3, %v1580_v23  ;;  %v574_v9 = vpop.f32.mrb[11].mxu0  ;;  %v796_v12 = vadd.f32 %v1580_v23, %v635_v2 }
 0x11d   : > { %v799_v8 = vadd.f32 %v1330_v4, %v1580_v23  ;;  %v638_v10 = vpop.f32.mrb[11].mxu1  ;;  %v781_v13 = vadd.f32 %v1580_v23, %v574_v9 }
 0x11e   : > { %v797_v14 = vadd.f32 %v1580_v23, %v638_v10  ;;  %v1214_v15 = vpack.c.bf16 %v783_v7, %v782_v5 }
 0x11f   : > { %v1254_v16 = vpack.c.bf16 %v799_v8, %v798_v6  ;;  %v1209_v17 = vpack.c.bf16 %v781_v13, %v780_v11 }
 0x120   : > { %v1249_v18 = vpack.c.bf16 %v797_v14, %v796_v12  ;;  %1270 = vst [vmem:[%s1593_s19 + $0x28] sm:$0xff] %v1214_v15  }
 0x121   : > { %1278 = vst [vmem:[%s1593_s19 + $0x68] sm:$0xff] %v1254_v16   ;;  %1269 = vst [vmem:[%s1593_s19 + $0x20] sm:$0xff] %v1209_v17   ;;  %v1317_v19 = vpop.f32.mrb[12].mxu0 }
 0x122   : > { %1277 = vst [vmem:[%s1593_s19 + $0x60] sm:$0xff] %v1249_v18   ;;  %v1333_v20 = vpop.f32.mrb[12].mxu1  ;;  %v587_v21 = vpop.f32.mrb[13].mxu0  ;;  %v786_v26 = vadd.f32 %v1317_v19, %v1580_v23 }
 0x123   : > { %v651_v22 = vpop.f32.mrb[13].mxu1  ;;  %v1318_v24 = vpop.f32.mrb[14].mxu0  ;;  %v802_v27 = vadd.f32 %v1333_v20, %v1580_v23  ;;  %v784_v32 = vadd.f32 %v1580_v23, %v587_v21 }
 0x124   : > { %v1334_v25 = vpop.f32.mrb[14].mxu1  ;;  %v787_v28 = vadd.f32 %v1318_v24, %v1580_v23  ;;  %v590_v30 = vpop.f32.mrb[15].mxu0  ;;  %v800_v33 = vadd.f32 %v1580_v23, %v651_v22 }
 0x125   : > { %v803_v29 = vadd.f32 %v1334_v25, %v1580_v23  ;;  %v654_v31 = vpop.f32.mrb[15].mxu1  ;;  %v785_v34 = vadd.f32 %v1580_v23, %v590_v30 }
 0x126   : > { %v801_v35 = vadd.f32 %v1580_v23, %v654_v31  ;;  %v1224_v36 = vpack.c.bf16 %v787_v28, %v786_v26 }
 0x127   : > { %v1264_v37 = vpack.c.bf16 %v803_v29, %v802_v27  ;;  %v1219_v38 = vpack.c.bf16 %v785_v34, %v784_v32 }
 0x128   : > { %v1259_v39 = vpack.c.bf16 %v801_v35, %v800_v33  ;;  %1272 = vst [vmem:[%s1593_s19 + $0x38] sm:$0xff] %v1224_v36  }
 0x129   : > { %1280 = vst [vmem:[%s1593_s19 + $0x78] sm:$0xff] %v1264_v37   ;;  %1271 = vst [vmem:[%s1593_s19 + $0x30] sm:$0xff] %v1219_v38  }
 0x12a   : > { %1279 = vst [vmem:[%s1593_s19 + $0x70] sm:$0xff] %v1259_v39  }
 0x12b PF: > { %s14_s14 = sadd.s32 1, %s1449_s14   ;;  %s1658_s12 = smov %s1445_s13 }
 0x12c   : > { %p11_p4 = scmp.ge.s32.totalorder %s14_s14, 4   ;;  %s1659_s13 = smov %s1661_s16 }
 0x12e   :  { %13 = sbr.rel (!%p11_p4) target bundleno = 2 (0x2), region = 79 }
 0x135   :  { %992 = vsyncpa [#allocation4], 1 }
 0x136   :  { %994 = vsyncpa [#allocation4 + $0x1], 1 }

// kernel: mowe_forward.30
= control target key start
LH: loop header
LB: loop body
LE: loop exit
PB: predicated region body
PF: predicated region fallthrough
CT: control target
= control target key end

     0   :  { %vm26_vm0 = vcmask 261120   ;;  %vm22_vm1 = vcmask 785408   ;;  %v154_v9 = vmov 0.0   ;;  %vm155_vm2 = vmmov 0   ;;  %s204_s0 = inlined_call_operand.vmem [shape: bf16[8,32], index: 0, kind: input, shape index: {}]   ;;  %s205_s1 = inlined_call_operand.vmem [shape: bf16[32,96], index: 1, kind: input, shape index: {}]   ;;  %s206_s2 = inlined_call_operand.vmem [shape: f32[1,32], index: 2, kind: input, shape index: {}]   ;;  %s207_s3 = inlined_call_operand.vmem [shape: f32[1,32], index: 3, kind: input, shape index: {}]   ;;  %s208_s4 = inlined_call_operand.vmem [shape: bf16[8,96], index: 4, kind: output, shape index: {}]  }
   0x1   :  { %v24_v0 = vld [vmem:[%s204_s0] sm:$0xf]  ;;  %140 = vmatprep.subr.bf16.mxu0 %v154_v9  ;;  %23 = vst.msk [vmem:[#allocation2] sm:$0xff] %vm22_vm1, %v154_v9  ;;  %v151_v10 = vld [vmem:[%s205_s1 + $0x8] sm:$0xff]   ;;  %144 = vmatprep.mubr.msk.bf16.mxu0 %vm155_vm2, %v154_v9  ;;  %vm126_vm3 = vcmask 781312  }
   0x2   :  { %v25_v1 = vunpack.c.l.bf16 %v24_v0  ;;  %v150_v8 = vld [vmem:[%s205_s1] sm:$0xff]  }
   0x3   :  { %141 = vmatpush3.bf16.msra.mxu0 %v150_v8  ;;  %v132_v15 = vld [vmem:[%s206_s2] ss:$0 sm:$0xff] }
   0x4   :  { %v27_v2 = vsel %vm26_vm0, %v25_v1, 0.0  ;;  %142 = vmatprep.subr.bf16.mxu0 %v154_v9  ;;  %v133_v17 = vld [vmem:[%s207_s3] ss:$0 sm:$0xff] }
   0x5   :  { %28 = vadd.xlane.f32.xlu0 %v27_v2 }
   0x7   :  { %143 = vmatpush3.bf16.msra.mxu0 %v151_v10 }
   0x8   :  { %v58_v21 = vld [vmem:[#allocation2] sm:$0xff] }
  0x92   :  { %v29_v3 = vpop.xlane.xlu0 %28 }
  0x93   :  { %v31_v4 = vmul.f32 0.03125, %v29_v3 }
  0x95   :  { %v32_v5 = vsub.f32 %v25_v1, %v31_v4 }
  0x97   :  { %v33_v6 = vmul.f32 %v32_v5, %v32_v5 }
  0x99   :  { %v34_v7 = vsel %vm26_vm0, %v33_v6, 0.0 }
  0x9a   :  { %35 = vadd.xlane.f32.xlu0 %v34_v7 }
 0x127   :  { %v36_v11 = vpop.xlane.xlu0 %35 }
 0x128   :  { %v37_v12 = vmul.f32 0.03125, %v36_v11 }
 0x12a   :  { %v38_v13 = vadd.f32 1e-05, %v37_v12 }
 0x12c   :  { %152 = vrsqrt.f32 %v38_v13 }
 0x136   :  { %v153_v14 = vpop.eup %152 }
 0x137   :  { %v40_v16 = vmul.f32 %v153_v14, %v32_v5 }
 0x139   :  { %v48_v18 = vmul.f32 %v132_v15, %v40_v16 }
 0x13b   :  { %v56_v19 = vadd.f32 %v133_v17, %v48_v18 }
 0x13d   :  { %v57_v20 = vpack.c.bf16 %v56_v19, %v56_v19 }
 0x13f   :  { %145 = vmatmul.mubr.msk.bf16.vlgmr.msra.gmra.mrb[0].mxu0 %vm26_vm0, %v57_v20 }
 0x212   :  { %v112_v22 = vpop.f32.mrb[0].mxu0 }
 0x213   :  { %v118_v23 = vadd.f32 %v112_v22, %v58_v21  ;;  %v146_v24 = vpop.f32.mrb[1].mxu0 }
 0x214   :  { %v115_v25 = vpop.f32.mrb[2].mxu0 }
 0x215   :  { %120 = vst.msk [vmem:[#allocation2] sm:$0xff] %vm22_vm1, %v118_v23  ;;  %v147_v26 = vpop.f32.mrb[3].mxu0 }
 0x21c   :  { %v124_v27 = vld [vmem:[#allocation2] sm:$0xff] }
 0x21d   :  { %v125_v28 = vpack.c.bf16 %v124_v27, %v124_v27 }
 0x21f   :  { %127 = vst.msk [vmem:[%s208_s4] sm:$0xf] %vm126_vm3, %v125_v28 }

// kernel: mowe_forward.29
= control target key start
LH: loop header
LB: loop body
LE: loop exit
PB: predicated region body
PF: predicated region fallthrough
CT: control target
= control target key end

     0   :  { %s1494_s15 = smov 0   ;;  %s1496_s16 = smov 0   ;;  %s1614_s0 = inlined_call_operand.vmem [shape: bf16[8,8192], index: 0, kind: input, shape index: {}]   ;;  %s1615_s1 = inlined_call_operand.vmem [shape: bf16[8192,32], index: 1, kind: input, shape index: {}]   ;;  %s1616_s2 = inlined_call_operand.vmem [shape: f32[1,32], index: 2, kind: input, shape index: {}]   ;;  %s1617_s3 = inlined_call_operand.vmem [shape: bf16[8,32], index: 3, kind: input, shape index: {}]   ;;  %s1618_s4 = inlined_call_operand.vmem [shape: bf16[8,32], index: 4, kind: output, shape index: {}]  }
   0x1   :  { %s1498_s17 = smov 0  }
   0x2 LB: > { %s26_s18 = sadd.s32 1, %s1462_s16  ;;  %p1176_p0 = scmp.ge.s32.totalorder %s1466_s17, 1  ;;  %s1466_s17 = sphi %s1498_s17, %s14_s17   ;;  %s1462_s16 = sphi %s1496_s16, %s1620_s16   ;;  %s1458_s15 = sphi %s1494_s15, %s1619_s15  }
   0x3   : > { %p27_p1 = scmp.ge.s32.totalorder %s26_s18, 8  ;;  %p228_p2 = scmp.lt.s32.totalorder %s1466_s17, 9 }
   0x5   : > { %s1622_s18 = smov (%p27_p1, %s26_s18), 0  ;;  %p229_p3 = pnand %p1176_p0, %p228_p2 }
   0x6   : > { %s1177_s19 = sshll.u32 (!%p229_p3), %s1458_s15, 3  ;;  %s1179_s20 = sshll.u32 (!%p229_p3), %s1458_s15, 7 }
   0x7   : > { %232 = sbr.rel (%p229_p3) target bundleno = 326 (0x146), region = 36  ;;  %p281_p4 = scmp.lt.s32.totalorder (!%p229_p3), %s1177_s19, 63 }
   0x8   : > { %p289_p5 = scmp.lt.s32.totalorder (!%p229_p3), %s1179_s20, 1023  ;;  %p1181_p6 = scmp.ne.s32.totalorder (!%p229_p3), %s1458_s15, 0 }
   0xe   : > { %s1624_s19 = smov (!%p281_p4, %s1177_s19), 63  ;;  %s1626_s20 = smov (!%p289_p5, %s1179_s20), 1023 }
   0xf   : > { %s1178_s21 = sshll.u32 %s1624_s19, 2  ;;  %s1180_s25 = sshll.u32 %s1626_s20, 2  ;;  %vm319_vm0 = vcmask (!%p1181_p6), 261120   ;;  %v1468_v0 = vmov (!%p1181_p6), 0.0  }
  0x10   : > { %s1519_s24 = scalar_lea.vmem %s1614_s0, %s1178_s21  ;;  %s1524_s28 = scalar_lea.vmem %s1615_s1, %s1180_s25  ;;  %320 = vst.msk [vmem:[#allocation2] sm:$0xff] (!%p1181_p6), %vm319_vm0, %v1468_v0 }
  0x11   : > { %318 = sbr.rel (%p1181_p6) target bundleno = 24 (0x18), region = 40 }
  0x18 PF: > { %v1372_v1 = vld [vmem:[%s1524_s28 + $0x40] sm:$0xff]   ;;  %v1376_v5 = vld [vmem:[%s1524_s28 + $0x48] sm:$0xff]   ;;  %v1380_v9 = vld [vmem:[%s1524_s28 + $0x50] sm:$0xff]   ;;  %vm1027_vm1 = vcmask 261120   ;;  %p1254_p7 = scmp.ne.s32.totalorder %s1458_s15, 7 }
  0x19   : > { %v1373_v2 = vld [vmem:[%s1524_s28 + $0xc0] sm:$0xff]   ;;  %1259 = vmatprep.subr.bf16.mxu0 %v1372_v1  ;;  %v1377_v6 = vld [vmem:[%s1524_s28 + $0xc8] sm:$0xff]   ;;  %v1381_v10 = vld [vmem:[%s1524_s28 + $0xd0] sm:$0xff]   ;;  %vm1046_vm2 = vcmask (!%p1254_p7), 257024  }
  0x1a   : > { %v1374_v3 = vld [vmem:[%s1524_s28] sm:$0xff]   ;;  %1281 = vmatprep.subr.bf16.mxu1 %v1373_v2  ;;  %v1378_v7 = vld [vmem:[%s1524_s28 + $0x8] sm:$0xff]   ;;  %v1382_v11 = vld [vmem:[%s1524_s28 + $0x10] sm:$0xff]  }
  0x1b   : > { %v1375_v4 = vld [vmem:[%s1524_s28 + $0x80] sm:$0xff]   ;;  %1260 = vmatpush3.bf16.msra.mxu0 %v1374_v3  ;;  %v1379_v8 = vld [vmem:[%s1524_s28 + $0x88] sm:$0xff]   ;;  %v1383_v12 = vld [vmem:[%s1524_s28 + $0x90] sm:$0xff]  }
  0x1c   : > { %1282 = vmatpush3.bf16.msra.mxu1 %v1375_v4  ;;  %1261 = vmatprep.subr.bf16.mxu0 %v1376_v5  ;;  %v1384_v13 = vld [vmem:[%s1524_s28 + $0x58] sm:$0xff]   ;;  %v1388_v17 = vld [vmem:[%s1524_s28 + $0x60] sm:$0xff]   ;;  %v1392_v21 = vld [vmem:[%s1524_s28 + $0x68] sm:$0xff]  }
  0x1d   : > { %1283 = vmatprep.subr.bf16.mxu1 %v1377_v6  ;;  %v1385_v14 = vld [vmem:[%s1524_s28 + $0xd8] sm:$0xff]   ;;  %v1389_v18 = vld [vmem:[%s1524_s28 + $0xe0] sm:$0xff]   ;;  %v1393_v22 = vld [vmem:[%s1524_s28 + $0xe8] sm:$0xff]  }
  0x1e   : > { %v1386_v15 = vld [vmem:[%s1524_s28 + $0x18] sm:$0xff]   ;;  %v1390_v19 = vld [vmem:[%s1524_s28 + $0x20] sm:$0xff]   ;;  %v1394_v23 = vld [vmem:[%s1524_s28 + $0x28] sm:$0xff]  }
  0x1f   : > { %1262 = vmatpush3.bf16.msra.mxu0 %v1378_v7  ;;  %v1387_v16 = vld [vmem:[%s1524_s28 + $0x98] sm:$0xff]   ;;  %v1391_v20 = vld [vmem:[%s1524_s28 + $0xa0] sm:$0xff]   ;;  %v1395_v24 = vld [vmem:[%s1524_s28 + $0xa8] sm:$0xff]  }
  0x20   : > { %1284 = vmatpush3.bf16.msra.mxu1 %v1379_v8  ;;  %1263 = vmatprep.subr.bf16.mxu0 %v1380_v9  ;;  %v1396_v25 = vld [vmem:[%s1524_s28 + $0x70] sm:$0xff]   ;;  %v1400_v29 = vld [vmem:[%s1524_s28 + $0x78] sm:$0xff]   ;;  %v321_v33 = vld [vmem:[%s1519_s24] sm:$0xff] }
  0x21   : > { %1285 = vmatprep.subr.bf16.mxu1 %v1381_v10  ;;  %v1397_v26 = vld [vmem:[%s1524_s28 + $0xf0] sm:$0xff]   ;;  %v1401_v30 = vld [vmem:[%s1524_s28 + $0xf8] sm:$0xff]   ;;  %v322_v34 = vld [vmem:[%s1519_s24 + $0x8] sm:$0xff]  ;;  %v1182_v35 = vcombine.low %v321_v33, %v321_v33  ;;  %v1183_v36 = vcombine.high %v321_v33, %v321_v33 }
  0x22   : > { %v1398_v27 = vld [vmem:[%s1524_s28 + $0x30] sm:$0xff]   ;;  %v1402_v31 = vld [vmem:[%s1524_s28 + $0x38] sm:$0xff]   ;;  %v1184_v37 = vcombine.low %v322_v34, %v322_v34  ;;  %v1185_v38 = vcombine.high %v322_v34, %v322_v34  ;;  %v1408_v39 = vld [vmem:[%s1524_s28 + $0x140] sm:$0xff]  }
  0x23   : > { %1264 = vmatpush3.bf16.msra.mxu0 %v1382_v11  ;;  %v1399_v28 = vld [vmem:[%s1524_s28 + $0xb0] sm:$0xff]   ;;  %v1403_v32 = vld [vmem:[%s1524_s28 + $0xb8] sm:$0xff]   ;;  %v1409_v40 = vld [vmem:[%s1524_s28 + $0x1c0] sm:$0xff]   ;;  %898 = vmatprep.mubr.bf16.mxu0 %v1183_v36 }
  0x24   : > { %1286 = vmatpush3.bf16.msra.mxu1 %v1383_v12  ;;  %1265 = vmatprep.subr.bf16.mxu0 %v1384_v13  ;;  %v1410_v41 = vld [vmem:[%s1524_s28 + $0x100] sm:$0xff]   ;;  %v1412_v43 = vld [vmem:[%s1524_s28 + $0x148] sm:$0xff]   ;;  %v1416_v47 = vld [vmem:[%s1524_s28 + $0x150] sm:$0xff]  }
  0x25   : > { %1287 = vmatprep.subr.bf16.mxu1 %v1385_v14  ;;  %938 = vmatprep.mubr.bf16.mxu1 %v1185_v38  ;;  %v1411_v42 = vld [vmem:[%s1524_s28 + $0x180] sm:$0xff]   ;;  %v1413_v44 = vld [vmem:[%s1524_s28 + $0x1c8] sm:$0xff]   ;;  %v1417_v48 = vld [vmem:[%s1524_s28 + $0x1d0] sm:$0xff]  }
  0x26   : > { %v1414_v45 = vld [vmem:[%s1524_s28 + $0x108] sm:$0xff]   ;;  %v1418_v49 = vld [vmem:[%s1524_s28 + $0x110] sm:$0xff]   ;;  %v1420_v51 = vld [vmem:[%s1524_s28 + $0x158] sm:$0xff]  }
  0x27   : > { %1266 = vmatpush3.bf16.msra.mxu0 %v1386_v15  ;;  %v1415_v46 = vld [vmem:[%s1524_s28 + $0x188] sm:$0xff]   ;;  %v1419_v50 = vld [vmem:[%s1524_s28 + $0x190] sm:$0xff]   ;;  %v1421_v52 = vld [vmem:[%s1524_s28 + $0x1d8] sm:$0xff]  }
  0x28   : > { %1288 = vmatpush3.bf16.msra.mxu1 %v1387_v16  ;;  %1267 = vmatprep.subr.bf16.mxu0 %v1388_v17  ;;  %v1422_v53 = vld [vmem:[%s1524_s28 + $0x118] sm:$0xff]   ;;  %v1424_v55 = vld [vmem:[%s1524_s28 + $0x160] sm:$0xff]   ;;  %v1428_v59 = vld [vmem:[%s1524_s28 + $0x168] sm:$0xff]  }
  0x29   : > { %1289 = vmatprep.subr.bf16.mxu1 %v1389_v18  ;;  %v1423_v54 = vld [vmem:[%s1524_s28 + $0x198] sm:$0xff]   ;;  %v1425_v56 = vld [vmem:[%s1524_s28 + $0x1e0] sm:$0xff]   ;;  %v1429_v60 = vld [vmem:[%s1524_s28 + $0x1e8] sm:$0xff]  }
  0x2a   : > { %v1426_v57 = vld [vmem:[%s1524_s28 + $0x120] sm:$0xff]   ;;  %v1430_v61 = vld [vmem:[%s1524_s28 + $0x128] sm:$0xff]   ;;  %v1432_v63 = vld [vmem:[%s1524_s28 + $0x170] sm:$0xff]  }
  0x2b   : > { %1268 = vmatpush3.bf16.msra.mxu0 %v1390_v19  ;;  %v1427_v58 = vld [vmem:[%s1524_s28 + $0x1a0] sm:$0xff]   ;;  %v1431_v62 = vld [vmem:[%s1524_s28 + $0x1a8] sm:$0xff]   ;;  %v1433_v0 = vld [vmem:[%s1524_s28 + $0x1f0] sm:$0xff]  }
  0x2c   : > { %1290 = vmatpush3.bf16.msra.mxu1 %v1391_v20  ;;  %1269 = vmatprep.subr.bf16.mxu0 %v1392_v21  ;;  %v1434_v1 = vld [vmem:[%s1524_s28 + $0x130] sm:$0xff]   ;;  %v1436_v3 = vld [vmem:[%s1524_s28 + $0x178] sm:$0xff]  }
  0x2d   : > { %1291 = vmatprep.subr.bf16.mxu1 %v1393_v22  ;;  %v1435_v2 = vld [vmem:[%s1524_s28 + $0x1b0] sm:$0xff]   ;;  %v1437_v4 = vld [vmem:[%s1524_s28 + $0x1f8] sm:$0xff]  }
  0x2e   : > { %v1438_v5 = vld [vmem:[%s1524_s28 + $0x138] sm:$0xff]   ;;  %v323_v7 = vld [vmem:[%s1519_s24 + $0x10] sm:$0xff] }
  0x2f   : > { %1270 = vmatpush3.bf16.msra.mxu0 %v1394_v23  ;;  %v1439_v6 = vld [vmem:[%s1524_s28 + $0x1b8] sm:$0xff]   ;;  %v1186_v8 = vcombine.low %v323_v7, %v323_v7  ;;  %v1187_v9 = vcombine.high %v323_v7, %v323_v7 }
  0x30   : > { %1292 = vmatpush3.bf16.msra.mxu1 %v1395_v24  ;;  %1271 = vmatprep.subr.bf16.mxu0 %v1396_v25  ;;  %v324_v10 = vld [vmem:[%s1519_s24 + $0x18] sm:$0xff] }
  0x31   : > { %1293 = vmatprep.subr.bf16.mxu1 %v1397_v26  ;;  %v1188_v11 = vcombine.low %v324_v10, %v324_v10  ;;  %v1189_v12 = vcombine.high %v324_v10, %v324_v10 }
  0x33   : > { %1272 = vmatpush3.bf16.msra.mxu0 %v1398_v27 }
  0x34   : > { %1294 = vmatpush3.bf16.msra.mxu1 %v1399_v28  ;;  %1273 = vmatprep.subr.bf16.mxu0 %v1400_v29 }
  0x35   : > { %1295 = vmatprep.subr.bf16.mxu1 %v1401_v30 }
  0x37   : > { %1274 = vmatpush3.bf16.msra.mxu0 %v1402_v31 }
  0x38   : > { %1296 = vmatpush3.bf16.msra.mxu1 %v1403_v32  ;;  %1303 = vmatprep.subr.bf16.mxu0 %v1408_v39  ;;  %v1255_v39 = vld [vmem:[%s1616_s2] ss:$0 sm:$0xff] (!%p1254_p7) }
  0x39   : > { %1325 = vmatprep.subr.bf16.mxu1 %v1409_v40  ;;  %v1042_v40 = vld [vmem:[%s1617_s3] sm:$0xf] (!%p1254_p7) }
  0x3a   : > { %899 = vmatmul.mubr.bf16.vlgmr.msra.gmra.mrb[0].mxu0 %v1182_v35  ;;  %v325_v35 = vld [vmem:[#allocation2] sm:$0xff] }
  0x3b   : > { %939 = vmatmul.mubr.bf16.vlgmr.msra.gmra.mrb[0].mxu1 %v1184_v37  ;;  %1304 = vmatpush3.bf16.msra.mxu0 %v1410_v41 }
  0x3c   : > { %1326 = vmatpush3.bf16.msra.mxu1 %v1411_v42  ;;  %1305 = vmatprep.subr.bf16.mxu0 %v1412_v43  ;;  %v1043_v42 = vunpack.c.l.bf16 (!%p1254_p7), %v1042_v40 }
  0x3d   : > { %1327 = vmatprep.subr.bf16.mxu1 %v1413_v44  ;;  %978 = vmatprep.mubr.bf16.mxu0 %v1187_v9 }
  0x3e   : > { %1018 = vmatprep.mubr.bf16.mxu1 %v1189_v12 }
  0x3f   : > { %1306 = vmatpush3.bf16.msra.mxu0 %v1414_v45 }
  0x40   : > { %1328 = vmatpush3.bf16.msra.mxu1 %v1415_v46  ;;  %1307 = vmatprep.subr.bf16.mxu0 %v1416_v47 }
  0x41   : > { %1329 = vmatprep.subr.bf16.mxu1 %v1417_v48 }
  0x43   : > { %1308 = vmatpush3.bf16.msra.mxu0 %v1418_v49 }
  0x44   : > { %1330 = vmatpush3.bf16.msra.mxu1 %v1419_v50  ;;  %1309 = vmatprep.subr.bf16.mxu0 %v1420_v51 }
  0x45   : > { %1331 = vmatprep.subr.bf16.mxu1 %v1421_v52 }
  0x47   : > { %1310 = vmatpush3.bf16.msra.mxu0 %v1422_v53 }
  0x48   : > { %1332 = vmatpush3.bf16.msra.mxu1 %v1423_v54  ;;  %1311 = vmatprep.subr.bf16.mxu0 %v1424_v55 }
  0x49   : > { %1333 = vmatprep.subr.bf16.mxu1 %v1425_v56 }
  0x4b   : > { %1312 = vmatpush3.bf16.msra.mxu0 %v1426_v57 }
  0x4c   : > { %1334 = vmatpush3.bf16.msra.mxu1 %v1427_v58  ;;  %1313 = vmatprep.subr.bf16.mxu0 %v1428_v59 }
  0x4d   : > { %1335 = vmatprep.subr.bf16.mxu1 %v1429_v60 }
  0x4f   : > { %1314 = vmatpush3.bf16.msra.mxu0 %v1430_v61 }
  0x50   : > { %1336 = vmatpush3.bf16.msra.mxu1 %v1431_v62  ;;  %1315 = vmatprep.subr.bf16.mxu0 %v1432_v63 }
  0x51   : > { %1337 = vmatprep.subr.bf16.mxu1 %v1433_v0 }
  0x53   : > { %1316 = vmatpush3.bf16.msra.mxu0 %v1434_v1 }
  0x54   : > { %1338 = vmatpush3.bf16.msra.mxu1 %v1435_v2  ;;  %1317 = vmatprep.subr.bf16.mxu0 %v1436_v3 }
  0x55   : > { %1339 = vmatprep.subr.bf16.mxu1 %v1437_v4 }
  0x57   : > { %1318 = vmatpush3.bf16.msra.mxu0 %v1438_v5 }
  0x58   : > { %1340 = vmatpush3.bf16.msra.mxu1 %v1439_v6 }
  0x5a   : > { %979 = vmatmul.mubr.bf16.vlgmr.msra.gmra.mrb[4].mxu0 %v1186_v8 }
  0x5b   : > { %1019 = vmatmul.mubr.bf16.vlgmr.msra.gmra.mrb[4].mxu1 %v1188_v11 }
 0x10d   : > { %v1275_v13 = vpop.f32.mrb[0].mxu0 }
 0x10e   : > { %v1297_v14 = vpop.f32.mrb[0].mxu1  ;;  %v1276_v15 = vpop.f32.mrb[1].mxu0 }
 0x10f   : > { %v1298_v16 = vpop.f32.mrb[1].mxu1  ;;  %v1277_v17 = vadd.f32 %v1276_v15, %v1275_v13  ;;  %v1278_v19 = vpop.f32.mrb[2].mxu0 }
 0x110   : > { %v1299_v18 = vadd.f32 %v1298_v16, %v1297_v14  ;;  %v1300_v20 = vpop.f32.mrb[2].mxu1  ;;  %v1279_v21 = vpop.f32.mrb[3].mxu0 }
 0x111   : > { %v1301_v22 = vpop.f32.mrb[3].mxu1 }
 0x112   : > { %v941_v23 = vadd.f32 %v1299_v18, %v1277_v17 }
 0x12d   : > { %v1319_v24 = vpop.f32.mrb[4].mxu0 }
 0x12e   : > { %v1341_v25 = vpop.f32.mrb[4].mxu1  ;;  %v1320_v26 = vpop.f32.mrb[5].mxu0 }
 0x12f   : > { %v1342_v27 = vpop.f32.mrb[5].mxu1  ;;  %v1321_v28 = vadd.f32 %v1320_v26, %v1319_v24  ;;  %v1322_v30 = vpop.f32.mrb[6].mxu0 }
 0x130   : > { %v1343_v29 = vadd.f32 %v1342_v27, %v1341_v25  ;;  %v1344_v31 = vpop.f32.mrb[6].mxu1  ;;  %v1323_v32 = vpop.f32.mrb[7].mxu0 }
 0x131   : > { %v1345_v33 = vpop.f32.mrb[7].mxu1  ;;  %v981_v34 = vadd.f32 %v1321_v28, %v941_v23  ;;  %1032 = sbr.rel (%p1254_p7) target bundleno = 326 (0x146), region = 44 }
 0x133   : > { %v1021_v36 = vadd.f32 %v1343_v29, %v981_v34 }
 0x135   : > { %v1026_v37 = vadd.f32 %v1021_v36, %v325_v35 }
 0x137   : > { %1028 = vst.msk [vmem:[#allocation2] sm:$0xff] %vm1027_vm1, %v1026_v37 }
 0x13e   : > { %v1033_v38 = vld [vmem:[#allocation2] sm:$0xff] }
 0x13f   : > { %v1041_v41 = vadd.f32 %v1255_v39, %v1033_v38 }
 0x141   : > { %v1044_v43 = vadd.f32 %v1043_v42, %v1041_v41 }
 0x143   : > { %v1045_v44 = vpack.c.bf16 %v1044_v43, %v1044_v43 }
 0x145   : > { %1047 = vst.msk [vmem:[%s1618_s4] sm:$0xf] %vm1046_vm2, %v1045_v44 }
 0x146 PF: > { %s14_s17 = sadd.s32 1, %s1466_s17   ;;  %s1619_s15 = smov %s1462_s16 }
 0x147   : > { %p11_p8 = scmp.ge.s32.totalorder %s14_s17, 10   ;;  %s1620_s16 = smov %s1622_s18 }
 0x149   :  { %13 = sbr.rel (!%p11_p8) target bundleno = 2 (0x2), region = 83 }

// kernel: mowe_forward.31
= control target key start
LH: loop header
LB: loop body
LE: loop exit
PB: predicated region body
PF: predicated region fallthrough
CT: control target
= control target key end

     0   :  { %s798_s6 = smov 0   ;;  %s887_s0 = inlined_call_operand.vmem [shape: bf16[2,4,96], index: 0, kind: input, shape index: {}]   ;;  %s888_s1 = inlined_call_operand.vmem [shape: bf16[2,4,32], index: 1, kind: output, shape index: {}]  }
   0x1 LB: > { %s641_s7 = sadd.s32 4294967295, %s769_s6   ;;  %p645_p0 = scmp.ge.s32.totalorder %s769_s6, 1  ;;  %s769_s6 = sphi %s798_s6, %s11_s6  }
   0x2   : > { %p86_p1 = scmp.lt.s32.totalorder %s769_s6, 3 }
   0x4   : > { %p87_p2 = pnand %p645_p0, %p86_p1 }
   0x5   : > { %p104_p3 = scmp.lt.s32.totalorder (!%p87_p2), %s641_s7, 1  ;;  %v118_v0 = vlaneseq (!%p87_p2)  ;;  %v771_v1 = vmov (!%p87_p2), 1983009808   ;;  %v772_v3 = vmov (!%p87_p2), 0.0   ;;  %vm773_vm0 = vmmov (!%p87_p2), 0   ;;  %s774_s12 = smov (!%p87_p2), 96  }
   0x6   : > { %90 = sbr.rel (%p87_p2) target bundleno = 1602 (0x642), region = 24  ;;  %v116_v2 = vunpack.c.l.s4 (!%p87_p2), %v771_v1  ;;  %674 = vmatprep.subr.bf16.mxu0 (!%p87_p2), %v772_v3  ;;  %680 = vmatprep.subr.bf16.mxu1 (!%p87_p2), %v772_v3  ;;  %vm124_vm1 = vcmask (!%p87_p2), 64512   ;;  %s775_s13 = smov (!%p87_p2), 64   ;;  %vm172_vm2 = vcmask (!%p87_p2), 27648   ;;  %vm191_vm3 = vcmask (!%p87_p2), 1041408  }
   0x7   : > { %v119_v4 = vshrl.u32 (!%p87_p2), %v118_v0, 7  ;;  %676 = vmatprep.mubr.msk.bf16.mxu0 (!%p87_p2), %vm773_vm0, %v772_v3  ;;  %682 = vmatprep.mubr.msk.bf16.mxu1 (!%p87_p2), %vm773_vm0, %v772_v3  ;;  %s776_s14 = smov (!%p87_p2), 88   ;;  %s777_s15 = smov (!%p87_p2), 72   ;;  %vm187_vm4 = vcmask (!%p87_p2), 31744   ;;  %vm581_vm5 = vcmask (!%p87_p2), 130048   ;;  %vm583_vm6 = vcmask (!%p87_p2), 195584  }
   0x8   : > { %v117_v5 = vunpack.c.0.s8 (!%p87_p2), %v116_v2  ;;  %s778_s16 = smov (!%p87_p2), 120   ;;  %s779_s17 = smov (!%p87_p2), 80   ;;  %vm586_vm7 = vcmask (!%p87_p2), 254976  }
   0x9   : > { %s780_s18 = smov (!%p87_p2), 112   ;;  %s781_s19 = smov (!%p87_p2), 104  }
   0xa   : > { %v120_v6 = vsub.s32 (!%p87_p2), %v117_v5, %v119_v4  ;;  %s782_s20 = smov (!%p87_p2), 56   ;;  %s783_s21 = smov (!%p87_p2), 48  }
   0xb   : > { %s784_s22 = smov (!%p87_p2), 40   ;;  %s785_s23 = smov (!%p87_p2), 8  }
   0xc   : > { %s786_s24 = smov (!%p87_p2), 16   ;;  %s787_s25 = smov (!%p87_p2), 24  }
   0xd   : > { %s890_s7 = smov (!%p104_p3, %s641_s7), 1 }
   0xe   : > { %s646_s8 = sshll.u32 %s890_s7, 1 }
   0xf   : > { %s107_s11 = scalar_lea.vmem %s887_s0, %s646_s8  ;;  %s111_s28 = scalar_lea.vmem %s888_s1, %s646_s8 }
  0x10   : > { %v113_v7 = vld [vmem:[%s107_s11] sm:$0x3] }
  0x11   : > { %v820_v8 = vrot.slane %v113_v7, %v120_v6 }
  0x13   : > { %122 = vrot.lane.b32.xlu0 %v820_v8, %s774_s12  ;;  %185 = vrot.lane.b32.xlu1 %v820_v8, %s775_s13 }
  0x17   : > { %237 = vrot.lane.b32.xlu1 %v820_v8, %s776_s14 }
  0x85   : > { %v123_v9 = vpop.permute.xlu0 %122  ;;  %v186_v17 = vpop.permute.xlu1 %185 }
  0x86   : > { %v129_v10 = vsel %vm124_vm1, %v123_v9, 0  ;;  %v193_v18 = vsel %vm191_vm3, %v186_v17, 0 }
  0x87   : > { %675 = vmatpush3.bf16.xpose.msra.mxu0 %v129_v10  ;;  %681 = vmatpush3.bf16.msra.mxu1 %v193_v18 }
  0x88   : > { %692 = vmatprep.subr.bf16.mxu0 %v772_v3  ;;  %686 = vmatprep.subr.bf16.mxu1 %v772_v3 }
  0x89   : > { %v238_v24 = vpop.permute.xlu1 %237 }
  0x8a   : > { %v243_v30 = vsel %vm124_vm1, %v238_v24, 0 }
  0x8e   : > { %677 = vmatmul.mubr.msk.bf16.vlgmr.msra.gmra.mrb[0].mxu0 %vm124_vm1, %v113_v7 }
  0x8f   : > { %694 = vmatprep.mubr.msk.bf16.mxu0 %vm773_vm0, %v772_v3 }
 0x161   : > { %v165_v11 = vpop.f32.mrb[0].mxu0 }
 0x162   : > { %v171_v12 = vmul.f32 0.35355338, %v165_v11  ;;  %v678_v13 = vpop.f32.mrb[1].mxu0 }
 0x163   : > { %v168_v14 = vpop.f32.mrb[2].mxu0 }
 0x164   : > { %v679_v15 = vpop.f32.mrb[3].mxu0  ;;  %v173_v16 = vsel %vm172_vm2, %v171_v12, -inf }
 0x165   : > { %174 = vmax.xlane.f32.xlu0 %v173_v16 }
 0x17b   : > { %459 = vrot.lane.b32.xlu0 %v820_v8, %s777_s15 }
 0x1f2   : > { %v175_v19 = vpop.xlane.xlu0 %174 }
 0x1f3   : > { %v176_v20 = vsub.f32 %v171_v12, %v175_v19 }
 0x1f5   : > { %v177_v21 = vmul.f32 1.442695, %v176_v20 }
 0x1f6   : > { %v460_v33 = vpop.permute.xlu0 %459 }
 0x1f7   : > { %747 = vpow2.f32 %v177_v21  ;;  %v465_v35 = vsel %vm124_vm1, %v460_v33, 0 }
 0x201   : > { %v748_v22 = vpop.eup %747 }
 0x202   : > { %v179_v23 = vsel %vm172_vm2, %v748_v22, 0.0 }
 0x203   : > { %180 = vadd.xlane.f32.xlu1 %v179_v23 }
 0x214   : > { %235 = vrot.lane.b32.xlu1 %v820_v8, %s778_s16 }
 0x218   : > { %348 = vrot.lane.b32.xlu1 %v820_v8, %s779_s17 }
 0x21c   : > { %346 = vrot.lane.b32.xlu1 %v820_v8, %s780_s18 }
 0x220   : > { %457 = vrot.lane.b32.xlu1 %v820_v8, %s781_s19 }
 0x290   : > { %v181_v25 = vpop.xlane.xlu1 %180 }
 0x291   : > { %749 = vrcp.f32 %v181_v25 }
 0x294   : > { %v236_v28 = vpop.permute.xlu1 %235 }
 0x298   : > { %v349_v31 = vpop.permute.xlu1 %348 }
 0x299   : > { %v354_v32 = vsel %vm124_vm1, %v349_v31, 0 }
 0x29b   : > { %v750_v26 = vpop.eup %749 }
 0x29c   : > { %v183_v27 = vmul.f32 %v750_v26, %v748_v22  ;;  %v347_v34 = vpop.permute.xlu1 %346 }
 0x29e   : > { %v184_v29 = vpack.c.bf16 %v183_v27, %v183_v27 }
 0x2a0   : > { %683 = vmatmul.mubr.msk.bf16.vlgmr.msra.gmra.mrb[0].mxu1 %vm187_vm4, %v184_v29  ;;  %v458_v36 = vpop.permute.xlu1 %457 }
 0x2a1   : > { %687 = vmatpush3.bf16.xpose.msra.mxu1 %v243_v30  ;;  %688 = vmatprep.mubr.msk.bf16.mxu1 %vm773_vm0, %v772_v3 }
 0x2a2   : > { %698 = vmatprep.subr.bf16.mxu1 %v772_v3 }
 0x2a8   : > { %689 = vmatmul.mubr.msk.bf16.vlgmr.msra.gmra.mrb[4].mxu1 %vm124_vm1, %v236_v28 }
 0x2a9   : > { %699 = vmatpush3.bf16.xpose.msra.mxu1 %v354_v32  ;;  %700 = vmatprep.mubr.msk.bf16.mxu1 %vm773_vm0, %v772_v3 }
 0x2aa   : > { %710 = vmatprep.subr.bf16.mxu1 %v772_v3 }
 0x2b0   : > { %701 = vmatmul.mubr.msk.bf16.vlgmr.msra.gmra.mrb[8].mxu1 %vm124_vm1, %v347_v34 }
 0x2b1   : > { %711 = vmatpush3.bf16.xpose.msra.mxu1 %v465_v35  ;;  %712 = vmatprep.mubr.msk.bf16.mxu1 %vm773_vm0, %v772_v3 }
 0x2b8   : > { %713 = vmatmul.mubr.msk.bf16.vlgmr.msra.gmra.mrb[12].mxu1 %vm124_vm1, %v458_v36 }
 0x373   : > { %v854_v37 = vpop.f32.mrb[0].mxu1 }
 0x374   : > { %v684_v38 = vpop.f32.mrb[1].mxu1 }
 0x375   : > { %v232_v39 = vpop.f32.mrb[2].mxu1 }
 0x376   : > { %v685_v40 = vpop.f32.mrb[3].mxu1 }
 0x37b   : > { %v279_v41 = vpop.f32.mrb[4].mxu1 }
 0x37c   : > { %v285_v42 = vmul.f32 0.35355338, %v279_v41  ;;  %v690_v43 = vpop.f32.mrb[5].mxu1 }
 0x37d   : > { %v282_v44 = vpop.f32.mrb[6].mxu1 }
 0x37e   : > { %v691_v45 = vpop.f32.mrb[7].mxu1  ;;  %v286_v46 = vsel %vm172_vm2, %v285_v42, -inf }
 0x37f   : > { %287 = vmax.xlane.f32.xlu1 %v286_v46 }
 0x383   : > { %v390_v47 = vpop.f32.mrb[8].mxu1 }
 0x384   : > { %v396_v48 = vmul.f32 0.35355338, %v390_v47  ;;  %v702_v49 = vpop.f32.mrb[9].mxu1 }
 0x385   : > { %v393_v50 = vpop.f32.mrb[10].mxu1 }
 0x386   : > { %v397_v51 = vsel %vm172_vm2, %v396_v48, -inf  ;;  %v703_v52 = vpop.f32.mrb[11].mxu1 }
 0x387   : > { %398 = vmax.xlane.f32.xlu0 %v397_v51 }
 0x38b   : > { %v501_v53 = vpop.f32.mrb[12].mxu1 }
 0x38c   : > { %v507_v54 = vmul.f32 0.35355338, %v501_v53  ;;  %v714_v55 = vpop.f32.mrb[13].mxu1 }
 0x38d   : > { %v504_v56 = vpop.f32.mrb[14].mxu1 }
 0x38e   : > { %v508_v57 = vsel %vm172_vm2, %v507_v54, -inf  ;;  %v715_v58 = vpop.f32.mrb[15].mxu1 }
 0x38f   : > { %509 = vmax.xlane.f32.xlu1 %v508_v57 }
 0x40c   : > { %v288_v59 = vpop.xlane.xlu1 %287 }
 0x40d   : > { %v289_v60 = vsub.f32 %v285_v42, %v288_v59 }
 0x40f   : > { %v290_v61 = vmul.f32 1.442695, %v289_v60 }
 0x411   : > { %751 = vpow2.f32 %v290_v61 }
 0x414   : > { %v399_v6 = vpop.xlane.xlu0 %398 }
 0x415   : > { %v400_v7 = vsub.f32 %v396_v48, %v399_v6 }
 0x417   : > { %v401_v9 = vmul.f32 1.442695, %v400_v7 }
 0x41b   : > { %v752_v62 = vpop.eup %751 }
 0x41c   : > { %v510_v63 = vpop.xlane.xlu1 %509  ;;  %v292_v0 = vsel %vm172_vm2, %v752_v62, 0.0 }
 0x41d   : > { %v511_v1 = vsub.f32 %v507_v54, %v510_v63  ;;  %293 = vadd.xlane.f32.xlu1 %v292_v0 }
 0x41f   : > { %v512_v2 = vmul.f32 1.442695, %v511_v1 }
 0x421   : > { %753 = vpow2.f32 %v512_v2 }
 0x422   : > { %755 = vpow2.f32 %v401_v9 }
 0x42b   : > { %v754_v4 = vpop.eup %753 }
 0x42c   : > { %v514_v5 = vsel %vm172_vm2, %v754_v4, 0.0  ;;  %v756_v10 = vpop.eup %755 }
 0x42d   : > { %515 = vadd.xlane.f32.xlu0 %v514_v5  ;;  %v403_v11 = vsel %vm172_vm2, %v756_v10, 0.0 }
 0x42e   : > { %298 = vrot.lane.b32.xlu1 %v820_v8, %s782_s20 }
 0x443   : > { %409 = vrot.lane.b32.xlu0 %v820_v8, %s783_s21 }
 0x452   : > { %404 = vadd.xlane.f32.xlu1 %v403_v11 }
 0x463   : > { %520 = vrot.lane.b32.xlu1 %v820_v8, %s784_s22 }
 0x4aa   : > { %v294_v12 = vpop.xlane.xlu1 %293 }
 0x4ab   : > { %757 = vrcp.f32 %v294_v12 }
 0x4ae   : > { %v299_v13 = vpop.permute.xlu1 %298 }
 0x4af   : > { %v304_v14 = vsel %vm191_vm3, %v299_v13, 0 }
 0x4b0   : > { %693 = vmatpush3.bf16.msra.mxu0 %v304_v14 }
 0x4b1   : > { %704 = vmatprep.subr.bf16.mxu0 %v772_v3 }
 0x4b5   : > { %v758_v15 = vpop.eup %757 }
 0x4b6   : > { %v296_v16 = vmul.f32 %v758_v15, %v752_v62 }
 0x4b8   : > { %v297_v17 = vpack.c.bf16 %v296_v16, %v296_v16 }
 0x4ba   : > { %695 = vmatmul.mubr.msk.bf16.vlgmr.msra.gmra.mrb[4].mxu0 %vm187_vm4, %v297_v17  ;;  %v516_v18 = vpop.xlane.xlu0 %515 }
 0x4bb   : > { %706 = vmatprep.mubr.msk.bf16.mxu0 %vm773_vm0, %v772_v3 }
 0x4be   : > { %v410_v19 = vpop.permute.xlu0 %409 }
 0x4bf   : > { %v415_v8 = vsel %vm191_vm3, %v410_v19, 0 }
 0x4c0   : > { %705 = vmatpush3.bf16.msra.mxu0 %v415_v8 }
 0x4c1   : > { %716 = vmatprep.subr.bf16.mxu0 %v772_v3 }
 0x4df   : > { %v405_v20 = vpop.xlane.xlu1 %404 }
 0x4e0   : > { %759 = vrcp.f32 %v405_v20 }
 0x4e1   : > { %761 = vrcp.f32 %v516_v18 }
 0x4e3   : > { %v521_v22 = vpop.permute.xlu1 %520 }
 0x4e4   : > { %v526_v24 = vsel %vm191_vm3, %v521_v22, 0 }
 0x4ea   : > { %v760_v21 = vpop.eup %759 }
 0x4eb   : > { %v407_v23 = vmul.f32 %v760_v21, %v756_v10  ;;  %v762_v26 = vpop.eup %761 }
 0x4ec   : > { %v518_v27 = vmul.f32 %v762_v26, %v754_v4 }
 0x4ed   : > { %v408_v25 = vpack.c.bf16 %v407_v23, %v407_v23 }
 0x4ee   : > { %v519_v28 = vpack.c.bf16 %v518_v27, %v518_v27 }
 0x4ef   : > { %707 = vmatmul.mubr.msk.bf16.vlgmr.msra.gmra.mrb[8].mxu0 %vm187_vm4, %v408_v25 }
 0x4f0   : > { %717 = vmatpush3.bf16.msra.mxu0 %v526_v24  ;;  %718 = vmatprep.mubr.msk.bf16.mxu0 %vm773_vm0, %v772_v3 }
 0x4f7   : > { %719 = vmatmul.mubr.msk.bf16.vlgmr.msra.gmra.mrb[12].mxu0 %vm187_vm4, %v519_v28 }
 0x58d   : > { %v340_v29 = vpop.f32.mrb[4].mxu0 }
 0x58e   : > { %569 = vrot.lane.b32.xlu1 %v340_v29, %s785_s23  ;;  %v696_v30 = vpop.f32.mrb[5].mxu0 }
 0x58f   : > { %v343_v31 = vpop.f32.mrb[6].mxu0 }
 0x590   : > { %v697_v32 = vpop.f32.mrb[7].mxu0 }
 0x5c2   : > { %v451_v33 = vpop.f32.mrb[8].mxu0 }
 0x5c3   : > { %573 = vrot.lane.b32.xlu0 %v451_v33, %s786_s24  ;;  %v708_v34 = vpop.f32.mrb[9].mxu0 }
 0x5c4   : > { %v454_v35 = vpop.f32.mrb[10].mxu0 }
 0x5c5   : > { %v709_v36 = vpop.f32.mrb[11].mxu0 }
 0x5ca   : > { %v562_v38 = vpop.f32.mrb[12].mxu0 }
 0x5cb   : > { %577 = vrot.lane.b32.xlu1 %v562_v38, %s787_s25  ;;  %v720_v3 = vpop.f32.mrb[13].mxu0 }
 0x5cc   : > { %v565_v39 = vpop.f32.mrb[14].mxu0 }
 0x5cd   : > { %v721_v40 = vpop.f32.mrb[15].mxu0 }
 0x600   : > { %v570_v41 = vpop.permute.xlu1 %569 }
 0x601   : > { %v580_v43 = vsel %vm124_vm1, %v854_v37, %v570_v41 }
 0x635   : > { %v574_v42 = vpop.permute.xlu0 %573 }
 0x636   : > { %v582_v44 = vsel %vm581_vm5, %v580_v43, %v574_v42 }
 0x63d   : > { %v578_v45 = vpop.permute.xlu1 %577 }
 0x63e   : > { %v584_v46 = vsel %vm583_vm6, %v582_v44, %v578_v45 }
 0x63f   : > { %v585_v47 = vpack.c.bf16 %v584_v46, %v584_v46 }
 0x641   : > { %587 = vst.msk [vmem:[%s111_s28] sm:$0x3] %vm586_vm7, %v585_v47 }
 0x642 PF: > { %s11_s6 = sadd.s32 1, %s769_s6  }
 0x643   : > { %p8_p4 = scmp.ge.s32.totalorder %s11_s6, 4  }
 0x645   :  { %10 = sbr.rel (!%p8_p4) target bundleno = 1 (0x1), region = 54 }

// kernel: mowe_forward.25
= control target key start
LH: loop header
LB: loop body
LE: loop exit
PB: predicated region body
PF: predicated region fallthrough
CT: control target
= control target key end

     0   :  { %s4331_s12 = smov 0   ;;  %s4333_s13 = smov 0   ;;  %s5124_s0 = inlined_call_operand.vmem [shape: bf16[512,1152], index: 0, kind: input, shape index: {}]   ;;  %s5125_s1 = inlined_call_operand.vmem [shape: bf16[1152,128], index: 1, kind: input, shape index: {}]   ;;  %s5126_s2 = inlined_call_operand.vmem [shape: f32[1,128], index: 2, kind: input, shape index: {}]   ;;  %s5127_s3 = inlined_call_operand.vmem [shape: bf16[512,128], index: 3, kind: output, shape index: {}]  }
   0x1   :  { %s4335_s14 = smov 0  }
   0x2 LB: > { %s32_s15 = sadd.s32 1, %s4305_s13  ;;  %p3063_p0 = scmp.ge.s32.totalorder %s4309_s14, 1  ;;  %s4309_s14 = sphi %s4335_s14, %s13_s14   ;;  %s4305_s13 = sphi %s4333_s13, %s5129_s13   ;;  %s4301_s12 = sphi %s4331_s12, %s5128_s12  }
   0x3   : > { %p34_p1 = scmp.ge.s32.totalorder %s32_s15, 2  ;;  %p191_p2 = scmp.lt.s32.totalorder %s4309_s14, 3 }
   0x5   : > { %s5131_s15 = smov (%p34_p1, %s32_s15), 0  ;;  %p192_p3 = pnand %p3063_p0, %p191_p2 }
   0x6   : > { %v4007_v0 = vld [vmem:[%s5125_s1 + $0x40] sm:$0xff] (!%p192_p3)   ;;  %s3064_s18 = sshll.u32 (!%p192_p3), %s4301_s12, 5  ;;  %v4009_v2 = vld [vmem:[%s5125_s1 + $0x48] sm:$0xff] (!%p192_p3)   ;;  %v4011_v4 = vld [vmem:[%s5125_s1 + $0x50] sm:$0xff] (!%p192_p3)  }
   0x7   : > { %195 = sbr.rel (%p192_p3) target bundleno = 547 (0x223), region = 32  ;;  %v4008_v1 = vld [vmem:[%s5125_s1] sm:$0xff] (!%p192_p3)   ;;  %3446 = vmatprep.subr.bf16.mxu0 (!%p192_p3), %v4007_v0  ;;  %3966 = vmatprep.subr.bf16.mxu1 (!%p192_p3), %v4007_v0  ;;  %p236_p4 = scmp.lt.s32.totalorder (!%p192_p3), %s3064_s18, 63  ;;  %v4010_v3 = vld [vmem:[%s5125_s1 + $0x8] sm:$0xff] (!%p192_p3)   ;;  %v4012_v5 = vld [vmem:[%s5125_s1 + $0x10] sm:$0xff] (!%p192_p3)  }
   0x8   : > { %3447 = vmatpush3.bf16.msra.mxu0 (!%p192_p3), %v4008_v1  ;;  %3974 = vmatpush3.bf16.msra.mxu1 (!%p192_p3), %v4008_v1  ;;  %v4013_v6 = vld [vmem:[%s5125_s1 + $0x58] sm:$0xff] (!%p192_p3)   ;;  %v4015_v8 = vld [vmem:[%s5125_s1 + $0x60] sm:$0xff] (!%p192_p3)   ;;  %v4017_v10 = vld [vmem:[%s5125_s1 + $0x68] sm:$0xff] (!%p192_p3)  }
   0x9   : > { %3448 = vmatprep.subr.bf16.mxu0 (!%p192_p3), %v4009_v2  ;;  %3967 = vmatprep.subr.bf16.mxu1 (!%p192_p3), %v4009_v2  ;;  %v4014_v7 = vld [vmem:[%s5125_s1 + $0x18] sm:$0xff] (!%p192_p3)   ;;  %v4016_v9 = vld [vmem:[%s5125_s1 + $0x20] sm:$0xff] (!%p192_p3)   ;;  %v4018_v13 = vld [vmem:[%s5125_s1 + $0x28] sm:$0xff] (!%p192_p3)  }
   0xa   : > { %v4019_v14 = vld [vmem:[%s5125_s1 + $0x70] sm:$0xff] (!%p192_p3)   ;;  %v4021_v16 = vld [vmem:[%s5125_s1 + $0x78] sm:$0xff] (!%p192_p3)   ;;  %v4029_v18 = vld [vmem:[%s5125_s1 + $0xc0] sm:$0xff] (!%p192_p3)  }
   0xb   : > { %v4020_v15 = vld [vmem:[%s5125_s1 + $0x30] sm:$0xff] (!%p192_p3)   ;;  %v4022_v17 = vld [vmem:[%s5125_s1 + $0x38] sm:$0xff] (!%p192_p3)   ;;  %v4032_v21 = vld [vmem:[%s5125_s1 + $0x140] sm:$0xff] (!%p192_p3)  }
   0xc   : > { %3449 = vmatpush3.bf16.msra.mxu0 (!%p192_p3), %v4010_v3  ;;  %3975 = vmatpush3.bf16.msra.mxu1 (!%p192_p3), %v4010_v3  ;;  %v4030_v22 = vld [vmem:[%s5125_s1 + $0x80] sm:$0xff] (!%p192_p3)   ;;  %v4031_v23 = vld [vmem:[%s5125_s1 + $0xc8] sm:$0xff] (!%p192_p3)   ;;  %v4041_v31 = vld [vmem:[%s5125_s1 + $0xd0] sm:$0xff] (!%p192_p3)  }
   0xd   : > { %3450 = vmatprep.subr.bf16.mxu0 (!%p192_p3), %v4011_v4  ;;  %3968 = vmatprep.subr.bf16.mxu1 (!%p192_p3), %v4011_v4  ;;  %v4034_v24 = vld [vmem:[%s5125_s1 + $0x100] sm:$0xff] (!%p192_p3)   ;;  %v4033_v27 = vld [vmem:[%s5125_s1 + $0x88] sm:$0xff] (!%p192_p3)   ;;  %v4042_v32 = vld [vmem:[%s5125_s1 + $0x90] sm:$0xff] (!%p192_p3)  }
   0xe   : > { %s5133_s18 = smov (!%p236_p4, %s3064_s18), 63  ;;  %v4052_v28 = vld [vmem:[%s5125_s1 + $0x148] sm:$0xff]   ;;  %v4043_v34 = vld [vmem:[%s5125_s1 + $0xd8] sm:$0xff]   ;;  %v4051_v40 = vld [vmem:[%s5125_s1 + $0xe0] sm:$0xff]  }
   0xf   : > { %s3982_s4 = smul.u32 36, %s5133_s18  ;;  %v4054_v33 = vld [vmem:[%s5125_s1 + $0x108] sm:$0xff]   ;;  %v4044_v37 = vld [vmem:[%s5125_s1 + $0x98] sm:$0xff]   ;;  %v4053_v41 = vld [vmem:[%s5125_s1 + $0xa0] sm:$0xff]   ;;  %s3067_s6 = sshll.u32 %s5133_s18, 2 }
  0x10   : > { %3451 = vmatpush3.bf16.msra.mxu0 %v4012_v5  ;;  %3976 = vmatpush3.bf16.msra.mxu1 %v4012_v5  ;;  %v4055_v42 = vld [vmem:[%s5125_s1 + $0xe8] sm:$0xff]   ;;  %v4066_v43 = vld [vmem:[%s5125_s1 + $0x150] sm:$0xff]   ;;  %v4065_v52 = vld [vmem:[%s5125_s1 + $0xf8] sm:$0xff]   ;;  %s5029_s9 = scalar_lea.vmem %s5127_s3, %s3067_s6 }
  0x11   : > { %3452 = vmatprep.subr.bf16.mxu0 %v4013_v6  ;;  %3969 = vmatprep.subr.bf16.mxu1 %v4013_v6  ;;  %s4382_s11 = scalar_lea.vmem %s5124_s0, %s3982_s4  ;;  %v4068_v46 = vld [vmem:[%s5125_s1 + $0x110] sm:$0xff]   ;;  %v4056_v47 = vld [vmem:[%s5125_s1 + $0xa8] sm:$0xff]   ;;  %v4083_v55 = vld [vmem:[%s5125_s1 + $0x158] sm:$0xff]  }
  0x12   : > { %v4025_v11 = vld [vmem:[%s4382_s11 + $0x4] ss:$36 sps:$4 sm:$0xff]   ;;  %v4035_v25 = vld [vmem:[%s4382_s11 + $0x4c] ss:$36 sps:$4 sm:$0xff]   ;;  %v4045_v35 = vld [vmem:[%s4382_s11 + $0x94] ss:$36 sps:$4 sm:$0xff]  }
  0x13   : > { %v4028_v12 = vld [vmem:[%s4382_s11 + $0x364] ss:$36 sps:$4 sm:$0xff]   ;;  %1840 = vmatprep.mubr.bf16.mxu0 %v4025_v11  ;;  %v4037_v26 = vld [vmem:[%s4382_s11 + $0x3ac] ss:$36 sps:$4 sm:$0xff]   ;;  %v4047_v36 = vld [vmem:[%s4382_s11 + $0x3f4] ss:$36 sps:$4 sm:$0xff]  }
  0x14   : > { %3453 = vmatpush3.bf16.msra.mxu0 %v4014_v7  ;;  %3977 = vmatpush3.bf16.msra.mxu1 %v4014_v7  ;;  %v4023_v19 = vld [vmem:[%s4382_s11] ss:$36 sps:$4 sm:$0xff]   ;;  %v4039_v29 = vld [vmem:[%s4382_s11 + $0x48] ss:$36 sps:$4 sm:$0xff]   ;;  %v4049_v38 = vld [vmem:[%s4382_s11 + $0x90] ss:$36 sps:$4 sm:$0xff]  }
  0x15   : > { %3454 = vmatprep.subr.bf16.mxu0 %v4015_v8  ;;  %3970 = vmatprep.subr.bf16.mxu1 %v4015_v8  ;;  %v4026_v20 = vld [vmem:[%s4382_s11 + $0x360] ss:$36 sps:$4 sm:$0xff]   ;;  %v4040_v30 = vld [vmem:[%s4382_s11 + $0x3a8] ss:$36 sps:$4 sm:$0xff]   ;;  %v4050_v39 = vld [vmem:[%s4382_s11 + $0x3f0] ss:$36 sps:$4 sm:$0xff]  }
  0x16   : > { %1936 = vmatprep.mubr.bf16.mxu1 %v4028_v12  ;;  %v4057_v44 = vld [vmem:[%s4382_s11 + $0xdc] ss:$36 sps:$4 sm:$0xff]   ;;  %v4063_v48 = vld [vmem:[%s5125_s1 + $0xf0] sm:$0xff]   ;;  %v4069_v53 = vld [vmem:[%s4382_s11 + $0x124] ss:$36 sps:$4 sm:$0xff]  }
  0x17   : > { %v4059_v45 = vld [vmem:[%s4382_s11 + $0x43c] ss:$36 sps:$4 sm:$0xff]   ;;  %v4064_v51 = vld [vmem:[%s5125_s1 + $0xb0] sm:$0xff]   ;;  %v4071_v58 = vld [vmem:[%s4382_s11 + $0x8] ss:$36 sps:$4 sm:$0xff]  }
  0x18   : > { %3455 = vmatpush3.bf16.msra.mxu0 %v4016_v9  ;;  %3978 = vmatpush3.bf16.msra.mxu1 %v4016_v9  ;;  %v4061_v49 = vld [vmem:[%s4382_s11 + $0xd8] ss:$36 sps:$4 sm:$0xff]   ;;  %v4073_v54 = vld [vmem:[%s4382_s11 + $0xc] ss:$36 sps:$4 sm:$0xff]   ;;  %v4074_v59 = vld [vmem:[%s4382_s11 + $0x120] ss:$36 sps:$4 sm:$0xff]  }
  0x19   : > { %3456 = vmatprep.subr.bf16.mxu0 %v4017_v10  ;;  %3971 = vmatprep.subr.bf16.mxu1 %v4017_v10  ;;  %v4062_v50 = vld [vmem:[%s4382_s11 + $0x438] ss:$36 sps:$4 sm:$0xff]   ;;  %v4075_v60 = vld [vmem:[%s5125_s1 + $0x1c0] sm:$0xff]   ;;  %v4077_v62 = vld [vmem:[%s4382_s11 + $0x16c] ss:$36 sps:$4 sm:$0xff]  }
  0x1a   : > { %v4084_v56 = vld [vmem:[%s5125_s1 + $0x118] sm:$0xff]   ;;  %v4076_v61 = vld [vmem:[%s5125_s1 + $0x180] sm:$0xff]   ;;  %v4091_v1 = vld [vmem:[%s5125_s1 + $0x1c8] sm:$0xff]  }
  0x1b   : > { %v4067_v57 = vld [vmem:[%s5125_s1 + $0xb8] sm:$0xff]   ;;  %v4093_v0 = vld [vmem:[%s5125_s1 + $0x160] sm:$0xff]   ;;  %v4092_v3 = vld [vmem:[%s5125_s1 + $0x188] sm:$0xff]  }
  0x1c   : > { %3457 = vmatpush3.bf16.msra.mxu0 %v4018_v13  ;;  %3979 = vmatpush3.bf16.msra.mxu1 %v4018_v13  ;;  %v4079_v63 = vld [vmem:[%s4382_s11 + $0x54] ss:$36 sps:$4 sm:$0xff]   ;;  %v4094_v2 = vld [vmem:[%s5125_s1 + $0x120] sm:$0xff]   ;;  %v4081_v4 = vld [vmem:[%s4382_s11 + $0x168] ss:$36 sps:$4 sm:$0xff]  }
  0x1d   : > { %3458 = vmatprep.subr.bf16.mxu0 %v4019_v14  ;;  %3972 = vmatprep.subr.bf16.mxu1 %v4019_v14  ;;  %v4082_v5 = vld [vmem:[%s4382_s11 + $0x50] ss:$36 sps:$4 sm:$0xff]   ;;  %v4087_v7 = vld [vmem:[%s4382_s11 + $0x9c] ss:$36 sps:$4 sm:$0xff]   ;;  %v4107_v8 = vld [vmem:[%s5125_s1 + $0x168] sm:$0xff]  }
  0x1e   : > { %v4085_v6 = vld [vmem:[%s4382_s11 + $0x1b4] ss:$36 sps:$4 sm:$0xff]   ;;  %v4109_v10 = vld [vmem:[%s5125_s1 + $0x128] sm:$0xff]   ;;  %v4095_v14 = vld [vmem:[%s4382_s11 + $0x1fc] ss:$36 sps:$4 sm:$0xff]  }
  0x1f   : > { %v4108_v9 = vld [vmem:[%s5125_s1 + $0x1d0] sm:$0xff]   ;;  %v4090_v13 = vld [vmem:[%s4382_s11 + $0x98] ss:$36 sps:$4 sm:$0xff]  }
  0x20   : > { %3459 = vmatpush3.bf16.msra.mxu0 %v4020_v15  ;;  %3980 = vmatpush3.bf16.msra.mxu1 %v4020_v15  ;;  %v4110_v11 = vld [vmem:[%s5125_s1 + $0x190] sm:$0xff]  }
  0x21   : > { %3460 = vmatprep.subr.bf16.mxu0 %v4021_v16  ;;  %3973 = vmatprep.subr.bf16.mxu1 %v4021_v16  ;;  %v4089_v12 = vld [vmem:[%s4382_s11 + $0x1b0] ss:$36 sps:$4 sm:$0xff]  }
  0x22   : > { %v4117_v15 = vld [vmem:[%s5125_s1 + $0x170] sm:$0xff]  }
  0x23   : > { %v4118_v16 = vld [vmem:[%s5125_s1 + $0x130] sm:$0xff]  }
  0x24   : > { %3461 = vmatpush3.bf16.msra.mxu0 %v4022_v17  ;;  %3981 = vmatpush3.bf16.msra.mxu1 %v4022_v17  ;;  %v4097_v17 = vld [vmem:[%s4382_s11 + $0xe4] ss:$36 sps:$4 sm:$0xff]  }
  0x25   : > { %3558 = vmatprep.subr.bf16.mxu1 %v4029_v18  ;;  %3670 = vmatprep.subr.bf16.mxu0 %v4032_v21  ;;  %v4125_v18 = vld [vmem:[%s5125_s1 + $0x1d8] sm:$0xff]   ;;  %v4100_v21 = vld [vmem:[%s4382_s11 + $0xe0] ss:$36 sps:$4 sm:$0xff]  }
  0x27   : > { %1841 = vmatmul.mubr.bf16.vlgmr.msra.gmra.mrb[0].mxu0 %v4023_v19  ;;  %1937 = vmatmul.mubr.bf16.vlgmr.msra.gmra.mrb[0].mxu1 %v4026_v20  ;;  %v4126_v19 = vld [vmem:[%s5125_s1 + $0x198] sm:$0xff]  }
  0x28   : > { %3559 = vmatpush3.bf16.msra.mxu1 %v4030_v22  ;;  %3671 = vmatpush3.bf16.msra.mxu0 %v4034_v24  ;;  %v4099_v20 = vld [vmem:[%s4382_s11 + $0x1f8] ss:$36 sps:$4 sm:$0xff]   ;;  %v4101_v22 = vld [vmem:[%s4382_s11 + $0x244] ss:$36 sps:$4 sm:$0xff]  }
  0x29   : > { %3560 = vmatprep.subr.bf16.mxu1 %v4031_v23  ;;  %1848 = vmatprep.mubr.bf16.mxu0 %v4035_v25  ;;  %v4103_v23 = vld [vmem:[%s4382_s11 + $0x12c] ss:$36 sps:$4 sm:$0xff]   ;;  %v4133_v24 = vld [vmem:[%s5125_s1 + $0x178] sm:$0xff]  }
  0x2a   : > { %1944 = vmatprep.mubr.bf16.mxu1 %v4037_v26  ;;  %3672 = vmatprep.subr.bf16.mxu0 %v4052_v28  ;;  %v4134_v25 = vld [vmem:[%s5125_s1 + $0x138] sm:$0xff]   ;;  %v4141_v26 = vld [vmem:[%s5125_s1 + $0x1e0] sm:$0xff]  }
  0x2b   : > { %v4142_v28 = vld [vmem:[%s5125_s1 + $0x1a0] sm:$0xff]  }
  0x2c   : > { %3561 = vmatpush3.bf16.msra.mxu1 %v4033_v27  ;;  %3673 = vmatpush3.bf16.msra.mxu0 %v4054_v33  ;;  %v4105_v27 = vld [vmem:[%s4382_s11 + $0x240] ss:$36 sps:$4 sm:$0xff]   ;;  %v4156_v33 = vld [vmem:[%s5125_s1 + $0x1e8] sm:$0xff]  }
  0x2d   : > { %3562 = vmatprep.subr.bf16.mxu1 %v4041_v31  ;;  %3674 = vmatprep.subr.bf16.mxu0 %v4066_v43  ;;  %v4111_v31 = vld [vmem:[%s4382_s11 + $0x28c] ss:$36 sps:$4 sm:$0xff]   ;;  %v4127_v43 = vld [vmem:[%s4382_s11 + $0x31c] ss:$36 sps:$4 sm:$0xff]  }
  0x2f   : > { %1849 = vmatmul.mubr.bf16.gmra.mrb[4].mxu0 %v4039_v29  ;;  %1945 = vmatmul.mubr.bf16.gmra.mrb[4].mxu1 %v4040_v30  ;;  %v4143_v29 = vld [vmem:[%s5125_s1 + $0x200] sm:$0xff]   ;;  %v4106_v30 = vld [vmem:[%s4382_s11 + $0x128] ss:$36 sps:$4 sm:$0xff]  }
  0x30   : > { %3563 = vmatpush3.bf16.msra.mxu1 %v4042_v32  ;;  %1856 = vmatprep.mubr.bf16.mxu0 %v4045_v35  ;;  %v4113_v32 = vld [vmem:[%s4382_s11 + $0x174] ss:$36 sps:$4 sm:$0xff]   ;;  %v4157_v35 = vld [vmem:[%s5125_s1 + $0x1a8] sm:$0xff]  }
  0x31   : > { %3564 = vmatprep.subr.bf16.mxu1 %v4043_v34  ;;  %1952 = vmatprep.mubr.bf16.mxu1 %v4047_v36  ;;  %v4115_v34 = vld [vmem:[%s4382_s11 + $0x288] ss:$36 sps:$4 sm:$0xff]   ;;  %v4116_v36 = vld [vmem:[%s4382_s11 + $0x170] ss:$36 sps:$4 sm:$0xff]  }
  0x32   : > { %3675 = vmatpush3.bf16.msra.mxu0 %v4068_v46  ;;  %v4132_v46 = vld [vmem:[%s4382_s11 + $0x200] ss:$36 sps:$4 sm:$0xff]  }
  0x33   : > { %3676 = vmatprep.subr.bf16.mxu0 %v4083_v55  ;;  %v4158_v55 = vld [vmem:[%s5125_s1 + $0x208] sm:$0xff]  }
  0x34   : > { %3565 = vmatpush3.bf16.msra.mxu1 %v4044_v37  ;;  %v4119_v37 = vld [vmem:[%s4382_s11 + $0x2d4] ss:$36 sps:$4 sm:$0xff]  }
  0x35   : > { %3566 = vmatprep.subr.bf16.mxu1 %v4051_v40  ;;  %v4124_v40 = vld [vmem:[%s4382_s11 + $0x1b8] ss:$36 sps:$4 sm:$0xff]  }
  0x36   : > { %3677 = vmatpush3.bf16.msra.mxu0 %v4084_v56  ;;  %v4173_v56 = vld [vmem:[%s5125_s1 + $0x210] sm:$0xff]  }
  0x37   : > { %1857 = vmatmul.mubr.bf16.gmra.mrb[8].mxu0 %v4049_v38  ;;  %1953 = vmatmul.mubr.bf16.gmra.mrb[8].mxu1 %v4050_v39  ;;  %v4121_v38 = vld [vmem:[%s4382_s11 + $0x1bc] ss:$36 sps:$4 sm:$0xff]   ;;  %v4123_v39 = vld [vmem:[%s4382_s11 + $0x2d0] ss:$36 sps:$4 sm:$0xff]  }
  0x38   : > { %3567 = vmatpush3.bf16.msra.mxu1 %v4053_v41  ;;  %1864 = vmatprep.mubr.bf16.mxu0 %v4057_v44  ;;  %v4171_v41 = vld [vmem:[%s5125_s1 + $0x1f0] sm:$0xff]   ;;  %v4129_v44 = vld [vmem:[%s4382_s11 + $0x204] ss:$36 sps:$4 sm:$0xff]  }
  0x39   : > { %3568 = vmatprep.subr.bf16.mxu1 %v4055_v42  ;;  %1960 = vmatprep.mubr.bf16.mxu1 %v4059_v45  ;;  %v4172_v42 = vld [vmem:[%s5125_s1 + $0x1b0] sm:$0xff]   ;;  %v4131_v45 = vld [vmem:[%s4382_s11 + $0x318] ss:$36 sps:$4 sm:$0xff]  }
  0x3a   : > { %3678 = vmatprep.subr.bf16.mxu0 %v4093_v0  ;;  %v4155_v0 = vld [vmem:[%s4382_s11 + $0xa0] ss:$36 sps:$4 sm:$0xff]  }
  0x3b   : > { %3679 = vmatpush3.bf16.msra.mxu0 %v4094_v2  ;;  %v4161_v2 = vld [vmem:[%s4382_s11 + $0xec] ss:$36 sps:$4 sm:$0xff]  }
  0x3c   : > { %3569 = vmatpush3.bf16.msra.mxu1 %v4056_v47  ;;  %3680 = vmatprep.subr.bf16.mxu0 %v4107_v8  ;;  %v4186_v47 = vld [vmem:[%s5125_s1 + $0x1f8] sm:$0xff]  }
  0x3d   : > { %3570 = vmatprep.subr.bf16.mxu1 %v4063_v48  ;;  %v4187_v48 = vld [vmem:[%s5125_s1 + $0x1b8] sm:$0xff]  }
  0x3e   : > { %v4167_v8 = vld [vmem:[%s4382_s11 + $0x134] ss:$36 sps:$4 sm:$0xff]  }
  0x3f   : > { %1865 = vmatmul.mubr.bf16.gmra.mrb[12].mxu0 %v4061_v49  ;;  %1961 = vmatmul.mubr.bf16.gmra.mrb[12].mxu1 %v4062_v50  ;;  %v4135_v49 = vld [vmem:[%s4382_s11 + $0x24c] ss:$36 sps:$4 sm:$0xff]   ;;  %v4139_v50 = vld [vmem:[%s4382_s11 + $0x14] ss:$36 sps:$4 sm:$0xff]  }
  0x40   : > { %3571 = vmatpush3.bf16.msra.mxu1 %v4064_v51  ;;  %1872 = vmatprep.mubr.bf16.mxu0 %v4069_v53  ;;  %v4137_v51 = vld [vmem:[%s4382_s11 + $0x10] ss:$36 sps:$4 sm:$0xff]  }
  0x41   : > { %3572 = vmatprep.subr.bf16.mxu1 %v4065_v52  ;;  %2001 = vmatprep.mubr.bf16.mxu1 %v4073_v54  ;;  %v4140_v52 = vld [vmem:[%s4382_s11 + $0x248] ss:$36 sps:$4 sm:$0xff]   ;;  %v4144_v53 = vld [vmem:[%s4382_s11 + $0x294] ss:$36 sps:$4 sm:$0xff]   ;;  %v4146_v54 = vld [vmem:[%s4382_s11 + $0x5c] ss:$36 sps:$4 sm:$0xff]  }
  0x42   : > { %3681 = vmatpush3.bf16.msra.mxu0 %v4109_v10  ;;  %v4169_v10 = vld [vmem:[%s4382_s11 + $0x368] ss:$36 sps:$4 sm:$0xff]  }
  0x43   : > { %3682 = vmatprep.subr.bf16.mxu0 %v4117_v15  ;;  %v4179_v15 = vld [vmem:[%s4382_s11 + $0x178] ss:$36 sps:$4 sm:$0xff]  }
  0x44   : > { %3573 = vmatpush3.bf16.msra.mxu1 %v4067_v57  ;;  %v4148_v57 = vld [vmem:[%s4382_s11 + $0x290] ss:$36 sps:$4 sm:$0xff]  }
  0x45   : > { %3782 = vmatprep.subr.bf16.mxu1 %v4075_v60  ;;  %v4152_v60 = vld [vmem:[%s4382_s11 + $0xa4] ss:$36 sps:$4 sm:$0xff]  }
  0x46   : > { %3683 = vmatpush3.bf16.msra.mxu0 %v4118_v16  ;;  %v4180_v16 = vld [vmem:[%s4382_s11 + $0x3fc] ss:$36 sps:$4 sm:$0xff]  }
  0x47   : > { %1873 = vmatmul.mubr.bf16.gmra.mrb[16].mxu0 %v4074_v59  ;;  %2002 = vmatmul.mubr.bf16.vlgmr.msra.gmra.mrb[16].mxu1 %v4071_v58  ;;  %v4149_v58 = vld [vmem:[%s4382_s11 + $0x58] ss:$36 sps:$4 sm:$0xff]  }
  0x48   : > { %3783 = vmatpush3.bf16.msra.mxu1 %v4076_v61  ;;  %1880 = vmatprep.mubr.bf16.mxu0 %v4077_v62  ;;  %v4150_v59 = vld [vmem:[%s4382_s11 + $0x2dc] ss:$36 sps:$4 sm:$0xff]  }
  0x49   : > { %2009 = vmatprep.mubr.bf16.mxu1 %v4079_v63  ;;  %3784 = vmatprep.subr.bf16.mxu1 %v4091_v1  ;;  %v4188_v61 = vld [vmem:[%s5125_s1 + $0x218] sm:$0xff]   ;;  %v4201_v62 = vld [vmem:[%s5125_s1 + $0x220] sm:$0xff]  }
  0x4a   : > { %3684 = vmatprep.subr.bf16.mxu0 %v4133_v24  ;;  %v4154_v63 = vld [vmem:[%s4382_s11 + $0x2d8] ss:$36 sps:$4 sm:$0xff]   ;;  %v4159_v1 = vld [vmem:[%s4382_s11 + $0x324] ss:$36 sps:$4 sm:$0xff]  }
  0x4b   : > { %3685 = vmatpush3.bf16.msra.mxu0 %v4134_v25  ;;  %v4195_v24 = vld [vmem:[%s4382_s11 + $0x254] ss:$36 sps:$4 sm:$0xff]   ;;  %v4199_v25 = vld [vmem:[%s4382_s11 + $0x1c] ss:$36 sps:$4 sm:$0xff]  }
  0x4c   : > { %3785 = vmatpush3.bf16.msra.mxu1 %v4092_v3  ;;  %3918 = vmatprep.subr.bf16.mxu0 %v4143_v29  ;;  %v4214_v3 = vld [vmem:[%s5125_s1 + $0x228] sm:$0xff]  }
  0x4d   : > { %3786 = vmatprep.subr.bf16.mxu1 %v4108_v9  ;;  %v4240_v9 = vld [vmem:[%s5125_s1 + $0x238] sm:$0xff]  }
  0x4f   : > { %1881 = vmatmul.mubr.bf16.gmra.mrb[20].mxu0 %v4081_v4  ;;  %2010 = vmatmul.mubr.bf16.gmra.mrb[20].mxu1 %v4082_v5  ;;  %v4163_v4 = vld [vmem:[%s4382_s11 + $0x320] ss:$36 sps:$4 sm:$0xff]   ;;  %v4164_v5 = vld [vmem:[%s4382_s11 + $0xe8] ss:$36 sps:$4 sm:$0xff]  }
  0x50   : > { %1888 = vmatprep.mubr.bf16.mxu0 %v4085_v6  ;;  %2017 = vmatprep.mubr.bf16.mxu1 %v4087_v7  ;;  %v4227_v6 = vld [vmem:[%s5125_s1 + $0x230] sm:$0xff]  }
  0x51   : > { %3787 = vmatpush3.bf16.msra.mxu1 %v4110_v11  ;;  %v4165_v7 = vld [vmem:[%s4382_s11 + $0x36c] ss:$36 sps:$4 sm:$0xff]  }
  0x52   : > { %3788 = vmatprep.subr.bf16.mxu1 %v4125_v18  ;;  %v4170_v11 = vld [vmem:[%s4382_s11 + $0x130] ss:$36 sps:$4 sm:$0xff]   ;;  %v4184_v18 = vld [vmem:[%s4382_s11 + $0x3f8] ss:$36 sps:$4 sm:$0xff]  }
  0x55   : > { %3789 = vmatpush3.bf16.msra.mxu1 %v4126_v19  ;;  %v4185_v19 = vld [vmem:[%s4382_s11 + $0x1c0] ss:$36 sps:$4 sm:$0xff]  }
  0x56   : > { %3790 = vmatprep.subr.bf16.mxu1 %v4141_v26  ;;  %v4197_v26 = vld [vmem:[%s4382_s11 + $0x18] ss:$36 sps:$4 sm:$0xff]  }
  0x57   : > { %1889 = vmatmul.mubr.bf16.gmra.mrb[24].mxu0 %v4089_v12  ;;  %2018 = vmatmul.mubr.bf16.gmra.mrb[24].mxu1 %v4090_v13  ;;  %v4174_v12 = vld [vmem:[%s4382_s11 + $0x3b4] ss:$36 sps:$4 sm:$0xff]   ;;  %v4176_v13 = vld [vmem:[%s4382_s11 + $0x17c] ss:$36 sps:$4 sm:$0xff]  }
  0x58   : > { %1896 = vmatprep.mubr.bf16.mxu0 %v4095_v14  ;;  %2025 = vmatprep.mubr.bf16.mxu1 %v4097_v17  ;;  %v4178_v14 = vld [vmem:[%s4382_s11 + $0x3b0] ss:$36 sps:$4 sm:$0xff]   ;;  %v4182_v17 = vld [vmem:[%s4382_s11 + $0x1c4] ss:$36 sps:$4 sm:$0xff]  }
  0x59   : > { %3791 = vmatpush3.bf16.msra.mxu1 %v4142_v28  ;;  %v4202_v28 = vld [vmem:[%s4382_s11 + $0x29c] ss:$36 sps:$4 sm:$0xff]  }
  0x5a   : > { %3792 = vmatprep.subr.bf16.mxu1 %v4156_v33  ;;  %v4210_v33 = vld [vmem:[%s4382_s11 + $0xac] ss:$36 sps:$4 sm:$0xff]  }
  0x5d   : > { %3793 = vmatpush3.bf16.msra.mxu1 %v4157_v35  ;;  %v4213_v35 = vld [vmem:[%s4382_s11 + $0xa8] ss:$36 sps:$4 sm:$0xff]  }
  0x5e   : > { %3794 = vmatprep.subr.bf16.mxu1 %v4171_v41  ;;  %v4223_v41 = vld [vmem:[%s4382_s11 + $0x13c] ss:$36 sps:$4 sm:$0xff]  }
  0x5f   : > { %1897 = vmatmul.mubr.bf16.gmra.mrb[28].mxu0 %v4099_v20  ;;  %2026 = vmatmul.mubr.bf16.gmra.mrb[28].mxu1 %v4100_v21  ;;  %v4189_v20 = vld [vmem:[%s4382_s11 + $0x444] ss:$36 sps:$4 sm:$0xff]   ;;  %v4191_v21 = vld [vmem:[%s4382_s11 + $0x20c] ss:$36 sps:$4 sm:$0xff]  }
  0x60   : > { %1904 = vmatprep.mubr.bf16.mxu0 %v4101_v22  ;;  %2033 = vmatprep.mubr.bf16.mxu1 %v4103_v23  ;;  %v4193_v22 = vld [vmem:[%s4382_s11 + $0x440] ss:$36 sps:$4 sm:$0xff]   ;;  %v4194_v23 = vld [vmem:[%s4382_s11 + $0x208] ss:$36 sps:$4 sm:$0xff]  }
  0x61   : > { %3795 = vmatpush3.bf16.msra.mxu1 %v4172_v42  ;;  %v4225_v42 = vld [vmem:[%s4382_s11 + $0x370] ss:$36 sps:$4 sm:$0xff]  }
  0x62   : > { %3796 = vmatprep.subr.bf16.mxu1 %v4186_v47  ;;  %v4233_v47 = vld [vmem:[%s4382_s11 + $0x180] ss:$36 sps:$4 sm:$0xff]  }
  0x65   : > { %3797 = vmatpush3.bf16.msra.mxu1 %v4187_v48  ;;  %v4234_v48 = vld [vmem:[%s4382_s11 + $0x404] ss:$36 sps:$4 sm:$0xff]  }
  0x67   : > { %1905 = vmatmul.mubr.bf16.gmra.mrb[32].mxu0 %v4105_v27  ;;  %2034 = vmatmul.mubr.bf16.gmra.mrb[32].mxu1 %v4106_v30  ;;  %v4200_v27 = vld [vmem:[%s4382_s11 + $0x250] ss:$36 sps:$4 sm:$0xff]   ;;  %v4206_v30 = vld [vmem:[%s4382_s11 + $0x298] ss:$36 sps:$4 sm:$0xff]  }
  0x68   : > { %1912 = vmatprep.mubr.bf16.mxu0 %v4111_v31  ;;  %2041 = vmatprep.mubr.bf16.mxu1 %v4113_v32  ;;  %v4207_v31 = vld [vmem:[%s4382_s11 + $0x60] ss:$36 sps:$4 sm:$0xff]  }
  0x69   : > { %v4208_v32 = vld [vmem:[%s4382_s11 + $0x2e4] ss:$36 sps:$4 sm:$0xff]  }
  0x6f   : > { %1913 = vmatmul.mubr.bf16.gmra.mrb[36].mxu0 %v4115_v34  ;;  %2042 = vmatmul.mubr.bf16.gmra.mrb[36].mxu1 %v4116_v36  ;;  %v4212_v34 = vld [vmem:[%s4382_s11 + $0x2e0] ss:$36 sps:$4 sm:$0xff]   ;;  %v4215_v36 = vld [vmem:[%s4382_s11 + $0x32c] ss:$36 sps:$4 sm:$0xff]  }
  0x70   : > { %1920 = vmatprep.mubr.bf16.mxu0 %v4119_v37  ;;  %2049 = vmatprep.mubr.bf16.mxu1 %v4121_v38  ;;  %v4217_v37 = vld [vmem:[%s4382_s11 + $0xf4] ss:$36 sps:$4 sm:$0xff]   ;;  %v4219_v38 = vld [vmem:[%s4382_s11 + $0x328] ss:$36 sps:$4 sm:$0xff]  }
  0x77   : > { %1921 = vmatmul.mubr.bf16.gmra.mrb[40].mxu0 %v4123_v39  ;;  %2050 = vmatmul.mubr.bf16.gmra.mrb[40].mxu1 %v4124_v40  ;;  %v4220_v39 = vld [vmem:[%s4382_s11 + $0xf0] ss:$36 sps:$4 sm:$0xff]  }
  0x78   : > { %1928 = vmatprep.mubr.bf16.mxu0 %v4127_v43  ;;  %2057 = vmatprep.mubr.bf16.mxu1 %v4129_v44  ;;  %v4221_v40 = vld [vmem:[%s4382_s11 + $0x374] ss:$36 sps:$4 sm:$0xff]   ;;  %v4228_v44 = vld [vmem:[%s4382_s11 + $0x3bc] ss:$36 sps:$4 sm:$0xff]  }
  0x79   : > { %v4226_v43 = vld [vmem:[%s4382_s11 + $0x138] ss:$36 sps:$4 sm:$0xff]  }
  0x7f   : > { %1929 = vmatmul.mubr.bf16.gmra.mrb[44].mxu0 %v4131_v45  ;;  %2058 = vmatmul.mubr.bf16.gmra.mrb[44].mxu1 %v4132_v46  ;;  %v4230_v45 = vld [vmem:[%s4382_s11 + $0x184] ss:$36 sps:$4 sm:$0xff]   ;;  %v4232_v46 = vld [vmem:[%s4382_s11 + $0x3b8] ss:$36 sps:$4 sm:$0xff]  }
  0x80   : > { %2065 = vmatprep.mubr.bf16.mxu1 %v4135_v49  ;;  %2162 = vmatprep.mubr.bf16.mxu0 %v4139_v50  ;;  %v4236_v49 = vld [vmem:[%s4382_s11 + $0x1cc] ss:$36 sps:$4 sm:$0xff]   ;;  %v4238_v50 = vld [vmem:[%s4382_s11 + $0x400] ss:$36 sps:$4 sm:$0xff]  }
  0x87   : > { %2066 = vmatmul.mubr.bf16.gmra.mrb[48].mxu1 %v4140_v52  ;;  %2163 = vmatmul.mubr.bf16.vlgmr.msra.gmra.mrb[48].mxu0 %v4137_v51  ;;  %v4239_v51 = vld [vmem:[%s4382_s11 + $0x1c8] ss:$36 sps:$4 sm:$0xff]  }
  0x88   : > { %3919 = vmatpush3.bf16.msra.mxu0 %v4143_v29  ;;  %2073 = vmatprep.mubr.bf16.mxu1 %v4144_v53  ;;  %v4204_v29 = vld [vmem:[%s4382_s11 + $0x64] ss:$36 sps:$4 sm:$0xff]   ;;  %v4241_v52 = vld [vmem:[%s4382_s11 + $0x44c] ss:$36 sps:$4 sm:$0xff]   ;;  %v4243_v53 = vld [vmem:[%s4382_s11 + $0x214] ss:$36 sps:$4 sm:$0xff]  }
  0x89   : > { %2170 = vmatprep.mubr.bf16.mxu0 %v4146_v54  ;;  %3920 = vmatprep.subr.bf16.mxu0 %v4158_v55 }
  0x8c   : > { %3921 = vmatpush3.bf16.msra.mxu0 %v4158_v55 }
  0x8d   : > { %3922 = vmatprep.subr.bf16.mxu0 %v4173_v56 }
  0x8f   : > { %2074 = vmatmul.mubr.bf16.gmra.mrb[52].mxu1 %v4148_v57  ;;  %2171 = vmatmul.mubr.bf16.gmra.mrb[52].mxu0 %v4149_v58  ;;  %v4245_v58 = vld [vmem:[%s4382_s11 + $0x448] ss:$36 sps:$4 sm:$0xff]  }
  0x90   : > { %2081 = vmatprep.mubr.bf16.mxu1 %v4150_v59  ;;  %2178 = vmatprep.mubr.bf16.mxu0 %v4152_v60  ;;  %v4246_v59 = vld [vmem:[%s4382_s11 + $0x210] ss:$36 sps:$4 sm:$0xff]  }
  0x91   : > { %3923 = vmatpush3.bf16.msra.mxu0 %v4173_v56 }
  0x92   : > { %3924 = vmatprep.subr.bf16.mxu0 %v4188_v61 }
  0x95   : > { %3925 = vmatpush3.bf16.msra.mxu0 %v4188_v61 }
  0x96   : > { %3926 = vmatprep.subr.bf16.mxu0 %v4201_v62 }
  0x97   : > { %2082 = vmatmul.mubr.bf16.gmra.mrb[56].mxu1 %v4154_v63  ;;  %2179 = vmatmul.mubr.bf16.gmra.mrb[56].mxu0 %v4155_v0  ;;  %v4247_v0 = vld [vmem:[%s4382_s11 + $0x25c] ss:$36 sps:$4 sm:$0xff]  }
  0x98   : > { %2089 = vmatprep.mubr.bf16.mxu1 %v4159_v1  ;;  %2186 = vmatprep.mubr.bf16.mxu0 %v4161_v2  ;;  %v4249_v1 = vld [vmem:[%s4382_s11 + $0x20] ss:$36 sps:$4 sm:$0xff]  }
  0x99   : > { %3927 = vmatpush3.bf16.msra.mxu0 %v4201_v62 }
  0x9a   : > { %3928 = vmatprep.subr.bf16.mxu0 %v4214_v3 }
  0x9d   : > { %3929 = vmatpush3.bf16.msra.mxu0 %v4214_v3 }
  0x9e   : > { %3930 = vmatprep.subr.bf16.mxu0 %v4227_v6 }
  0x9f   : > { %2090 = vmatmul.mubr.bf16.gmra.mrb[60].mxu1 %v4163_v4  ;;  %2187 = vmatmul.mubr.bf16.gmra.mrb[60].mxu0 %v4164_v5 }
  0xa0   : > { %2097 = vmatprep.mubr.bf16.mxu1 %v4165_v7  ;;  %2194 = vmatprep.mubr.bf16.mxu0 %v4167_v8 }
  0xa1   : > { %3931 = vmatpush3.bf16.msra.mxu0 %v4227_v6 }
  0xa2   : > { %3932 = vmatprep.subr.bf16.mxu0 %v4240_v9 }
  0xa5   : > { %3933 = vmatpush3.bf16.msra.mxu0 %v4240_v9 }
  0xa7   : > { %2098 = vmatmul.mubr.bf16.gmra.mrb[64].mxu1 %v4169_v10  ;;  %2195 = vmatmul.mubr.bf16.gmra.mrb[64].mxu0 %v4170_v11  ;;  %v4250_v10 = vld [vmem:[%s4382_s11 + $0x258] ss:$36 sps:$4 sm:$0xff]   ;;  %v4251_v11 = vld [vmem:[%s4382_s11 + $0x68] ss:$36 sps:$4 sm:$0xff]  }
  0xa8   : > { %2105 = vmatprep.mubr.bf16.mxu1 %v4174_v12  ;;  %2202 = vmatprep.mubr.bf16.mxu0 %v4176_v13 }
  0xaf   : > { %2106 = vmatmul.mubr.bf16.gmra.mrb[68].mxu1 %v4178_v14  ;;  %2203 = vmatmul.mubr.bf16.gmra.mrb[68].mxu0 %v4179_v15 }
  0xb0   : > { %2113 = vmatprep.mubr.bf16.mxu1 %v4180_v16  ;;  %2210 = vmatprep.mubr.bf16.mxu0 %v4182_v17  ;;  %v4252_v16 = vld [vmem:[%s4382_s11 + $0x2a4] ss:$36 sps:$4 sm:$0xff]   ;;  %v4254_v17 = vld [vmem:[%s4382_s11 + $0xb0] ss:$36 sps:$4 sm:$0xff]  }
  0xb7   : > { %2114 = vmatmul.mubr.bf16.gmra.mrb[72].mxu1 %v4184_v18  ;;  %2211 = vmatmul.mubr.bf16.gmra.mrb[72].mxu0 %v4185_v19 }
  0xb8   : > { %2121 = vmatprep.mubr.bf16.mxu1 %v4189_v20  ;;  %2218 = vmatprep.mubr.bf16.mxu0 %v4191_v21 }
  0xbf   : > { %2122 = vmatmul.mubr.bf16.gmra.mrb[76].mxu1 %v4193_v22  ;;  %2219 = vmatmul.mubr.bf16.gmra.mrb[76].mxu0 %v4194_v23 }
  0xc0   : > { %2226 = vmatprep.mubr.bf16.mxu0 %v4195_v24  ;;  %2323 = vmatprep.mubr.bf16.mxu1 %v4199_v25 }
  0xc7   : > { %2227 = vmatmul.mubr.bf16.gmra.mrb[80].mxu0 %v4200_v27  ;;  %2324 = vmatmul.mubr.bf16.vlgmr.msra.gmra.mrb[80].mxu1 %v4197_v26  ;;  %v4255_v26 = vld [vmem:[%s4382_s11 + $0x2a0] ss:$36 sps:$4 sm:$0xff]   ;;  %v4256_v27 = vld [vmem:[%s4382_s11 + $0xf8] ss:$36 sps:$4 sm:$0xff]  }
  0xc8   : > { %2234 = vmatprep.mubr.bf16.mxu0 %v4202_v28  ;;  %2331 = vmatprep.mubr.bf16.mxu1 %v4204_v29 }
  0xcf   : > { %2235 = vmatmul.mubr.bf16.gmra.mrb[84].mxu0 %v4206_v30  ;;  %2332 = vmatmul.mubr.bf16.gmra.mrb[84].mxu1 %v4207_v31 }
  0xd0   : > { %2242 = vmatprep.mubr.bf16.mxu0 %v4208_v32  ;;  %2339 = vmatprep.mubr.bf16.mxu1 %v4210_v33  ;;  %v4257_v32 = vld [vmem:[%s4382_s11 + $0x2ec] ss:$36 sps:$4 sm:$0xff]   ;;  %v4259_v33 = vld [vmem:[%s4382_s11 + $0x140] ss:$36 sps:$4 sm:$0xff]  }
  0xd7   : > { %2243 = vmatmul.mubr.bf16.gmra.mrb[88].mxu0 %v4212_v34  ;;  %2340 = vmatmul.mubr.bf16.gmra.mrb[88].mxu1 %v4213_v35 }
  0xd8   : > { %2250 = vmatprep.mubr.bf16.mxu0 %v4215_v36  ;;  %2347 = vmatprep.mubr.bf16.mxu1 %v4217_v37 }
  0xdf   : > { %2251 = vmatmul.mubr.bf16.gmra.mrb[92].mxu0 %v4219_v38  ;;  %2348 = vmatmul.mubr.bf16.gmra.mrb[92].mxu1 %v4220_v39 }
  0xe0   : > { %2258 = vmatprep.mubr.bf16.mxu0 %v4221_v40  ;;  %2355 = vmatprep.mubr.bf16.mxu1 %v4223_v41 }
  0xe7   : > { %2259 = vmatmul.mubr.bf16.gmra.mrb[96].mxu0 %v4225_v42  ;;  %2356 = vmatmul.mubr.bf16.gmra.mrb[96].mxu1 %v4226_v43  ;;  %v4260_v42 = vld [vmem:[%s4382_s11 + $0x2e8] ss:$36 sps:$4 sm:$0xff]  }
  0xe8   : > { %2266 = vmatprep.mubr.bf16.mxu0 %v4228_v44  ;;  %2363 = vmatprep.mubr.bf16.mxu1 %v4230_v45  ;;  %v4261_v43 = vld [vmem:[%s4382_s11 + $0x188] ss:$36 sps:$4 sm:$0xff]  }
  0xef   : > { %2267 = vmatmul.mubr.bf16.gmra.mrb[100].mxu0 %v4232_v46  ;;  %2364 = vmatmul.mubr.bf16.gmra.mrb[100].mxu1 %v4233_v47 }
  0xf0   : > { %2274 = vmatprep.mubr.bf16.mxu0 %v4234_v48  ;;  %2371 = vmatprep.mubr.bf16.mxu1 %v4236_v49  ;;  %v4262_v48 = vld [vmem:[%s4382_s11 + $0x334] ss:$36 sps:$4 sm:$0xff]  }
  0xf1   : > { %v4264_v49 = vld [vmem:[%s4382_s11 + $0x1d0] ss:$36 sps:$4 sm:$0xff]  }
  0xf7   : > { %2275 = vmatmul.mubr.bf16.gmra.mrb[104].mxu0 %v4238_v50  ;;  %2372 = vmatmul.mubr.bf16.gmra.mrb[104].mxu1 %v4239_v51 }
  0xf8   : > { %2282 = vmatprep.mubr.bf16.mxu0 %v4241_v52  ;;  %2379 = vmatprep.mubr.bf16.mxu1 %v4243_v53 }
  0xfa   : > { %v3534_v54 = vpop.f32.mrb[0].mxu1  ;;  %v3462_v55 = vpop.f32.mrb[0].mxu0 }
  0xfb   : > { %v3535_v56 = vpop.f32.mrb[1].mxu1  ;;  %v3463_v57 = vpop.f32.mrb[1].mxu0 }
  0xfc   : > { %v4685_v60 = vadd.f32 %v3535_v56, %v3534_v54  ;;  %v3537_v61 = vpop.f32.mrb[2].mxu1  ;;  %v4687_v62 = vadd.f32 %v3463_v57, %v3462_v55  ;;  %v3465_v63 = vpop.f32.mrb[2].mxu0 }
  0xfd   : > { %v3538_v2 = vpop.f32.mrb[3].mxu1  ;;  %v3466_v3 = vpop.f32.mrb[3].mxu0 }
  0xfe   : > { %v4691_v4 = vadd.f32 %v3538_v2, %v3537_v61  ;;  %v4693_v5 = vadd.f32 %v3466_v3, %v3465_v63  ;;  %v4267_v2 = vld [vmem:[%s4382_s11 + $0x37c] ss:$36 sps:$4 sm:$0xff]  }
  0xff   : > { %2283 = vmatmul.mubr.bf16.gmra.mrb[108].mxu0 %v4245_v58  ;;  %2380 = vmatmul.mubr.bf16.gmra.mrb[108].mxu1 %v4246_v59  ;;  %v4265_v58 = vld [vmem:[%s4382_s11 + $0x330] ss:$36 sps:$4 sm:$0xff]   ;;  %v4266_v59 = vld [vmem:[%s4382_s11 + $0x218] ss:$36 sps:$4 sm:$0xff]   ;;  %v4269_v3 = vld [vmem:[%s4382_s11 + $0x260] ss:$36 sps:$4 sm:$0xff]  }
 0x100   : > { %2387 = vmatprep.mubr.bf16.mxu1 %v4247_v0  ;;  %3934 = vmatprep.mubr.bf16.mxu0 %v4249_v1 }
 0x102   : > { %v3540_v6 = vpop.f32.mrb[4].mxu1  ;;  %v3468_v7 = vpop.f32.mrb[4].mxu0 }
 0x103   : > { %v3541_v8 = vpop.f32.mrb[5].mxu1  ;;  %v3469_v9 = vpop.f32.mrb[5].mxu0 }
 0x104   : > { %v4697_v12 = vadd.f32 %v3541_v8, %v3540_v6  ;;  %v3543_v13 = vpop.f32.mrb[6].mxu1  ;;  %v4699_v14 = vadd.f32 %v3469_v9, %v3468_v7  ;;  %v3471_v15 = vpop.f32.mrb[6].mxu0 }
 0x105   : > { %v3544_v18 = vpop.f32.mrb[7].mxu1  ;;  %v3472_v19 = vpop.f32.mrb[7].mxu0 }
 0x106   : > { %v4703_v20 = vadd.f32 %v3544_v18, %v3543_v13  ;;  %v4705_v21 = vadd.f32 %v3472_v19, %v3471_v15  ;;  %v4270_v18 = vld [vmem:[%s4382_s11 + $0x378] ss:$36 sps:$4 sm:$0xff]   ;;  %v4271_v19 = vld [vmem:[%s4382_s11 + $0x2a8] ss:$36 sps:$4 sm:$0xff]  }
 0x107   : > { %2388 = vmatmul.mubr.bf16.gmra.mrb[112].mxu1 %v4250_v10  ;;  %3935 = vmatmul.mubr.bf16.vlgmr.msra.gmra.mrb[112].mxu0 %v4251_v11 }
 0x108   : > { %2395 = vmatprep.mubr.bf16.mxu1 %v4252_v16  ;;  %3938 = vmatprep.mubr.bf16.mxu0 %v4254_v17 }
 0x10a   : > { %v3546_v22 = vpop.f32.mrb[8].mxu1  ;;  %v3474_v23 = vpop.f32.mrb[8].mxu0 }
 0x10b   : > { %v3547_v24 = vpop.f32.mrb[9].mxu1  ;;  %v3475_v25 = vpop.f32.mrb[9].mxu0 }
 0x10c   : > { %v4709_v28 = vadd.f32 %v3547_v24, %v3546_v22  ;;  %v3549_v29 = vpop.f32.mrb[10].mxu1  ;;  %v4711_v30 = vadd.f32 %v3475_v25, %v3474_v23  ;;  %v3477_v31 = vpop.f32.mrb[10].mxu0  ;;  %v4272_v25 = vld [vmem:[%s4382_s11 + $0x3c4] ss:$36 sps:$4 sm:$0xff]  }
 0x10d   : > { %v3550_v34 = vpop.f32.mrb[11].mxu1  ;;  %v3478_v35 = vpop.f32.mrb[11].mxu0 }
 0x10e   : > { %v4715_v36 = vadd.f32 %v3550_v34, %v3549_v29  ;;  %v4717_v37 = vadd.f32 %v3478_v35, %v3477_v31 }
 0x10f   : > { %2396 = vmatmul.mubr.bf16.gmra.mrb[116].mxu1 %v4255_v26  ;;  %3939 = vmatmul.mubr.bf16.gmra.mrb[116].mxu0 %v4256_v27  ;;  %v4274_v26 = vld [vmem:[%s4382_s11 + $0x2f0] ss:$36 sps:$4 sm:$0xff]  }
 0x110   : > { %2403 = vmatprep.mubr.bf16.mxu1 %v4257_v32  ;;  %3942 = vmatprep.mubr.bf16.mxu0 %v4259_v33 }
 0x112   : > { %v3552_v38 = vpop.f32.mrb[12].mxu1  ;;  %v3480_v39 = vpop.f32.mrb[12].mxu0 }
 0x113   : > { %v3553_v40 = vpop.f32.mrb[13].mxu1  ;;  %v3481_v41 = vpop.f32.mrb[13].mxu0 }
 0x114   : > { %v4721_v44 = vadd.f32 %v3553_v40, %v3552_v38  ;;  %v3555_v45 = vpop.f32.mrb[14].mxu1  ;;  %v4723_v46 = vadd.f32 %v3481_v41, %v3480_v39  ;;  %v3483_v47 = vpop.f32.mrb[14].mxu0  ;;  %v4275_v40 = vld [vmem:[%s4382_s11 + $0x3c0] ss:$36 sps:$4 sm:$0xff]   ;;  %v4276_v41 = vld [vmem:[%s4382_s11 + $0x338] ss:$36 sps:$4 sm:$0xff]  }
 0x115   : > { %v3556_v50 = vpop.f32.mrb[15].mxu1  ;;  %v3484_v51 = vpop.f32.mrb[15].mxu0 }
 0x116   : > { %v4727_v52 = vadd.f32 %v3556_v50, %v3555_v45  ;;  %v4729_v53 = vadd.f32 %v3484_v51, %v3483_v47  ;;  %v4277_v47 = vld [vmem:[%s4382_s11 + $0x40c] ss:$36 sps:$4 sm:$0xff]  }
 0x117   : > { %2404 = vmatmul.mubr.bf16.gmra.mrb[120].mxu1 %v4260_v42  ;;  %3943 = vmatmul.mubr.bf16.gmra.mrb[120].mxu0 %v4261_v43 }
 0x118   : > { %2411 = vmatprep.mubr.bf16.mxu1 %v4262_v48  ;;  %3946 = vmatprep.mubr.bf16.mxu0 %v4264_v49  ;;  %v4279_v48 = vld [vmem:[%s4382_s11 + $0x380] ss:$36 sps:$4 sm:$0xff]  }
 0x11a   : > { %v3574_v54 = vpop.f32.mrb[16].mxu1  ;;  %v3486_v55 = vpop.f32.mrb[16].mxu0 }
 0x11b   : > { %v3575_v56 = vpop.f32.mrb[17].mxu1  ;;  %v3487_v57 = vpop.f32.mrb[17].mxu0 }
 0x11c   : > { %v3576_v61 = vadd.f32 %v3575_v56, %v3574_v54  ;;  %v3577_v63 = vpop.f32.mrb[18].mxu1  ;;  %v4733_v0 = vadd.f32 %v3487_v57, %v3486_v55  ;;  %v3489_v1 = vpop.f32.mrb[18].mxu0 }
 0x11d   : > { %v3578_v6 = vpop.f32.mrb[19].mxu1  ;;  %v3490_v7 = vpop.f32.mrb[19].mxu0 }
 0x11e   : > { %v4738_v8 = vadd.f32 %v3576_v61, %v4687_v62  ;;  %v3579_v9 = vadd.f32 %v3578_v6, %v3577_v63  ;;  %v4740_v10 = vadd.f32 %v3490_v7, %v3489_v1  ;;  %v4280_v61 = vld [vmem:[%s4382_s11 + $0x408] ss:$36 sps:$4 sm:$0xff]   ;;  %v4282_v6 = vld [vmem:[%s4382_s11 + $0x454] ss:$36 sps:$4 sm:$0xff]  }
 0x11f   : > { %2412 = vmatmul.mubr.bf16.gmra.mrb[124].mxu1 %v4265_v58  ;;  %3947 = vmatmul.mubr.bf16.gmra.mrb[124].mxu0 %v4266_v59  ;;  %v4281_v63 = vld [vmem:[%s4382_s11 + $0x3c8] ss:$36 sps:$4 sm:$0xff]   ;;  %v4284_v7 = vld [vmem:[%s4382_s11 + $0x410] ss:$36 sps:$4 sm:$0xff]  }
 0x120   : > { %v4743_v11 = vadd.f32 %v3579_v9, %v4693_v5  ;;  %2419 = vmatprep.mubr.bf16.mxu1 %v4267_v2  ;;  %3950 = vmatprep.mubr.bf16.mxu0 %v4269_v3 }
 0x122   : > { %v3580_v13 = vpop.f32.mrb[20].mxu1  ;;  %v3492_v15 = vpop.f32.mrb[20].mxu0 }
 0x123   : > { %v3581_v16 = vpop.f32.mrb[21].mxu1  ;;  %v3493_v17 = vpop.f32.mrb[21].mxu0 }
 0x124   : > { %v3582_v62 = vadd.f32 %v3581_v16, %v3580_v13  ;;  %v3583_v22 = vpop.f32.mrb[22].mxu1  ;;  %v4747_v23 = vadd.f32 %v3493_v17, %v3492_v15  ;;  %v3495_v24 = vpop.f32.mrb[22].mxu0 }
 0x125   : > { %v3584_v27 = vpop.f32.mrb[23].mxu1  ;;  %v3496_v5 = vpop.f32.mrb[23].mxu0 }
 0x126   : > { %v4752_v29 = vadd.f32 %v3582_v62, %v4699_v14  ;;  %v3585_v31 = vadd.f32 %v3584_v27, %v3583_v22  ;;  %v4754_v32 = vadd.f32 %v3496_v5, %v3495_v24  ;;  %v4285_v24 = vld [vmem:[%s4382_s11 + $0x450] ss:$36 sps:$4 sm:$0xff]  }
 0x127   : > { %2420 = vmatmul.mubr.bf16.gmra.mrb[128].mxu1 %v4270_v18  ;;  %3951 = vmatmul.mubr.bf16.gmra.mrb[128].mxu0 %v4271_v19 }
 0x128   : > { %v4757_v33 = vadd.f32 %v3585_v31, %v4705_v21  ;;  %2427 = vmatprep.mubr.bf16.mxu1 %v4272_v25  ;;  %3954 = vmatprep.mubr.bf16.mxu0 %v4274_v26  ;;  %v4286_v25 = vld [vmem:[%s4382_s11 + $0x458] ss:$36 sps:$4 sm:$0xff]  }
 0x12a   : > { %v3586_v34 = vpop.f32.mrb[24].mxu1  ;;  %v3498_v35 = vpop.f32.mrb[24].mxu0 }
 0x12b   : > { %v3587_v38 = vpop.f32.mrb[25].mxu1  ;;  %v3499_v39 = vpop.f32.mrb[25].mxu0 }
 0x12c   : > { %v3588_v14 = vadd.f32 %v3587_v38, %v3586_v34  ;;  %v3589_v42 = vpop.f32.mrb[26].mxu1  ;;  %v4761_v43 = vadd.f32 %v3499_v39, %v3498_v35  ;;  %v3501_v45 = vpop.f32.mrb[26].mxu0 }
 0x12d   : > { %v3590_v49 = vpop.f32.mrb[27].mxu1  ;;  %v3502_v21 = vpop.f32.mrb[27].mxu0 }
 0x12e   : > { %v4766_v50 = vadd.f32 %v3588_v14, %v4711_v30  ;;  %v3591_v51 = vadd.f32 %v3590_v49, %v3589_v42  ;;  %v4768_v54 = vadd.f32 %v3502_v21, %v3501_v45 }
 0x12f   : > { %2428 = vmatmul.mubr.bf16.gmra.mrb[132].mxu1 %v4275_v40  ;;  %3955 = vmatmul.mubr.bf16.gmra.mrb[132].mxu0 %v4276_v41 }
 0x130   : > { %v4771_v55 = vadd.f32 %v3591_v51, %v4717_v37  ;;  %2435 = vmatprep.mubr.bf16.mxu1 %v4277_v47  ;;  %3958 = vmatprep.mubr.bf16.mxu0 %v4279_v48 }
 0x132   : > { %v3592_v56 = vpop.f32.mrb[28].mxu1  ;;  %v3504_v57 = vpop.f32.mrb[28].mxu0 }
 0x133   : > { %v3593_v58 = vpop.f32.mrb[29].mxu1  ;;  %v3505_v59 = vpop.f32.mrb[29].mxu0 }
 0x134   : > { %v3594_v30 = vadd.f32 %v3593_v58, %v3592_v56  ;;  %v3595_v1 = vpop.f32.mrb[30].mxu1  ;;  %v4775_v2 = vadd.f32 %v3505_v59, %v3504_v57  ;;  %v3507_v3 = vpop.f32.mrb[30].mxu0 }
 0x135   : > { %v3596_v9 = vpop.f32.mrb[31].mxu1  ;;  %v3508_v37 = vpop.f32.mrb[31].mxu0 }
 0x136   : > { %v4780_v13 = vadd.f32 %v3594_v30, %v4723_v46  ;;  %v3597_v15 = vadd.f32 %v3596_v9, %v3595_v1  ;;  %v4782_v16 = vadd.f32 %v3508_v37, %v3507_v3 }
 0x137   : > { %2436 = vmatmul.mubr.bf16.gmra.mrb[136].mxu1 %v4280_v61  ;;  %3959 = vmatmul.mubr.bf16.gmra.mrb[136].mxu0 %v4281_v63 }
 0x138   : > { %v4785_v17 = vadd.f32 %v3597_v15, %v4729_v53  ;;  %2443 = vmatprep.mubr.bf16.mxu1 %v4282_v6  ;;  %3962 = vmatprep.mubr.bf16.mxu0 %v4284_v7 }
 0x13a   : > { %v3598_v18 = vpop.f32.mrb[32].mxu1  ;;  %v3510_v19 = vpop.f32.mrb[32].mxu0 }
 0x13b   : > { %v3599_v62 = vpop.f32.mrb[33].mxu1  ;;  %v3511_v22 = vpop.f32.mrb[33].mxu0 }
 0x13c   : > { %v3600_v26 = vadd.f32 %v3599_v62, %v3598_v18  ;;  %v3601_v27 = vpop.f32.mrb[34].mxu1  ;;  %v3512_v46 = vadd.f32 %v3511_v22, %v3510_v19  ;;  %v3513_v5 = vpop.f32.mrb[34].mxu0 }
 0x13d   : > { %v3602_v31 = vpop.f32.mrb[35].mxu1  ;;  %v3514_v34 = vpop.f32.mrb[35].mxu0 }
 0x13e   : > { %v4790_v35 = vadd.f32 %v3600_v26, %v4733_v0  ;;  %v3603_v38 = vadd.f32 %v3602_v31, %v3601_v27  ;;  %v3515_v53 = vadd.f32 %v3514_v34, %v3513_v5 }
 0x13f   : > { %2444 = vmatmul.mubr.bf16.gmra.mrb[140].mxu1 %v4285_v24  ;;  %3963 = vmatmul.mubr.bf16.gmra.mrb[140].mxu0 %v4286_v25 }
 0x140   : > { %v4793_v39 = vadd.f32 %v3603_v38, %v4740_v10 }
 0x142   : > { %v3604_v40 = vpop.f32.mrb[36].mxu1  ;;  %v3516_v41 = vpop.f32.mrb[36].mxu0 }
 0x143   : > { %v3605_v14 = vpop.f32.mrb[37].mxu1  ;;  %v3517_v42 = vpop.f32.mrb[37].mxu0 }
 0x144   : > { %v3606_v45 = vadd.f32 %v3605_v14, %v3604_v40  ;;  %v3607_v47 = vpop.f32.mrb[38].mxu1  ;;  %v3518_v48 = vadd.f32 %v3517_v42, %v3516_v41  ;;  %v3519_v49 = vpop.f32.mrb[38].mxu0 }
 0x145   : > { %v3608_v21 = vpop.f32.mrb[39].mxu1  ;;  %v3520_v51 = vpop.f32.mrb[39].mxu0 }
 0x146   : > { %v4796_v0 = vadd.f32 %v3606_v45, %v4747_v23  ;;  %v3609_v56 = vadd.f32 %v3608_v21, %v3607_v47  ;;  %v3521_v57 = vadd.f32 %v3520_v51, %v3519_v49 }
 0x148   : > { %v4799_v58 = vadd.f32 %v3609_v56, %v4754_v32 }
 0x14a   : > { %v3610_v10 = vpop.f32.mrb[40].mxu1  ;;  %v3522_v59 = vpop.f32.mrb[40].mxu0 }
 0x14b   : > { %v3611_v61 = vpop.f32.mrb[41].mxu1  ;;  %v3523_v63 = vpop.f32.mrb[41].mxu0 }
 0x14c   : > { %v3612_v30 = vadd.f32 %v3611_v61, %v3610_v10  ;;  %v3613_v1 = vpop.f32.mrb[42].mxu1  ;;  %v4801_v3 = vadd.f32 %v3523_v63, %v3522_v59  ;;  %v3525_v6 = vpop.f32.mrb[42].mxu0 }
 0x14d   : > { %v3614_v7 = vpop.f32.mrb[43].mxu1  ;;  %v3526_v9 = vpop.f32.mrb[43].mxu0 }
 0x14e   : > { %v4804_v37 = vadd.f32 %v3612_v30, %v4761_v43  ;;  %v3615_v23 = vadd.f32 %v3614_v7, %v3613_v1  ;;  %v3527_v15 = vadd.f32 %v3526_v9, %v3525_v6 }
 0x150   : > { %v4807_v18 = vadd.f32 %v3615_v23, %v4768_v54 }
 0x152   : > { %v3616_v32 = vpop.f32.mrb[44].mxu1  ;;  %v3528_v19 = vpop.f32.mrb[44].mxu0 }
 0x153   : > { %v3617_v62 = vpop.f32.mrb[45].mxu1  ;;  %v3529_v22 = vpop.f32.mrb[45].mxu0 }
 0x154   : > { %v3618_v24 = vadd.f32 %v3617_v62, %v3616_v32  ;;  %v3619_v25 = vpop.f32.mrb[46].mxu1  ;;  %v4809_v26 = vadd.f32 %v3529_v22, %v3528_v19  ;;  %v3531_v27 = vpop.f32.mrb[46].mxu0 }
 0x155   : > { %v3620_v5 = vpop.f32.mrb[47].mxu1  ;;  %v3532_v31 = vpop.f32.mrb[47].mxu0 }
 0x156   : > { %v4812_v34 = vadd.f32 %v3618_v24, %v4775_v2  ;;  %v3621_v43 = vadd.f32 %v3620_v5, %v3619_v25  ;;  %v4814_v38 = vadd.f32 %v3532_v31, %v3531_v27 }
 0x158   : > { %v4817_v54 = vadd.f32 %v3621_v43, %v4782_v16 }
 0x15a   : > { %v3622_v40 = vpop.f32.mrb[48].mxu1  ;;  %v3686_v41 = vpop.f32.mrb[48].mxu0 }
 0x15b   : > { %v3623_v14 = vpop.f32.mrb[49].mxu1  ;;  %v3687_v42 = vpop.f32.mrb[49].mxu0 }
 0x15c   : > { %v3624_v45 = vadd.f32 %v3623_v14, %v3622_v40  ;;  %v3688_v47 = vadd.f32 %v3687_v42, %v3686_v41  ;;  %v3625_v49 = vpop.f32.mrb[50].mxu1  ;;  %v3689_v21 = vpop.f32.mrb[50].mxu0 }
 0x15d   : > { %v3626_v51 = vpop.f32.mrb[51].mxu1  ;;  %v3690_v56 = vpop.f32.mrb[51].mxu0 }
 0x15e   : > { %v4819_v10 = vadd.f32 %v3624_v45, %v3512_v46  ;;  %v4822_v2 = vadd.f32 %v3688_v47, %v4738_v8  ;;  %v3627_v59 = vadd.f32 %v3626_v51, %v3625_v49  ;;  %v3691_v61 = vadd.f32 %v3690_v56, %v3689_v21 }
 0x160   : > { %v4824_v63 = vadd.f32 %v3627_v59, %v3515_v53  ;;  %v4827_v16 = vadd.f32 %v3691_v61, %v4743_v11 }
 0x162   : > { %v3628_v30 = vpop.f32.mrb[52].mxu1  ;;  %v3692_v1 = vpop.f32.mrb[52].mxu0 }
 0x163   : > { %v3629_v6 = vpop.f32.mrb[53].mxu1  ;;  %v3693_v7 = vpop.f32.mrb[53].mxu0 }
 0x164   : > { %v3630_v9 = vadd.f32 %v3629_v6, %v3628_v30  ;;  %v3694_v23 = vadd.f32 %v3693_v7, %v3692_v1  ;;  %v3631_v32 = vpop.f32.mrb[54].mxu1  ;;  %v3695_v19 = vpop.f32.mrb[54].mxu0 }
 0x165   : > { %v3632_v46 = vpop.f32.mrb[55].mxu1  ;;  %v3696_v62 = vpop.f32.mrb[55].mxu0 }
 0x166   : > { %v4829_v22 = vadd.f32 %v3630_v9, %v3518_v48  ;;  %v4832_v8 = vadd.f32 %v3694_v23, %v4752_v29  ;;  %v3633_v53 = vadd.f32 %v3632_v46, %v3631_v32  ;;  %v3697_v24 = vadd.f32 %v3696_v62, %v3695_v19 }
 0x168   : > { %v4834_v25 = vadd.f32 %v3633_v53, %v3521_v57  ;;  %v4837_v11 = vadd.f32 %v3697_v24, %v4757_v33 }
 0x16a   : > { %v3634_v27 = vpop.f32.mrb[56].mxu1  ;;  %v3698_v5 = vpop.f32.mrb[56].mxu0 }
 0x16b   : > { %v3635_v31 = vpop.f32.mrb[57].mxu1  ;;  %v3699_v43 = vpop.f32.mrb[57].mxu0 }
 0x16c   : > { %v3636_v40 = vadd.f32 %v3635_v31, %v3634_v27  ;;  %v3700_v41 = vadd.f32 %v3699_v43, %v3698_v5  ;;  %v3637_v14 = vpop.f32.mrb[58].mxu1  ;;  %v3701_v42 = vpop.f32.mrb[58].mxu0 }
 0x16d   : > { %v3638_v48 = vpop.f32.mrb[59].mxu1  ;;  %v3702_v45 = vpop.f32.mrb[59].mxu0 }
 0x16e   : > { %v4840_v29 = vadd.f32 %v3636_v40, %v4801_v3  ;;  %v4843_v47 = vadd.f32 %v3700_v41, %v4766_v50  ;;  %v3639_v57 = vadd.f32 %v3638_v48, %v3637_v14  ;;  %v3703_v49 = vadd.f32 %v3702_v45, %v3701_v42 }
 0x170   : > { %v4845_v33 = vadd.f32 %v3639_v57, %v3527_v15  ;;  %v4848_v21 = vadd.f32 %v3703_v49, %v4771_v55 }
 0x172   : > { %v3640_v51 = vpop.f32.mrb[60].mxu1  ;;  %v3704_v56 = vpop.f32.mrb[60].mxu0 }
 0x173   : > { %v3641_v59 = vpop.f32.mrb[61].mxu1  ;;  %v3705_v61 = vpop.f32.mrb[61].mxu0 }
 0x174   : > { %v3642_v30 = vadd.f32 %v3641_v59, %v3640_v51  ;;  %v3706_v1 = vadd.f32 %v3705_v61, %v3704_v56  ;;  %v3643_v6 = vpop.f32.mrb[62].mxu1  ;;  %v3707_v7 = vpop.f32.mrb[62].mxu0 }
 0x175   : > { %v3644_v3 = vpop.f32.mrb[63].mxu1  ;;  %v3708_v9 = vpop.f32.mrb[63].mxu0 }
 0x176   : > { %v4851_v50 = vadd.f32 %v3642_v30, %v4809_v26  ;;  %v4854_v23 = vadd.f32 %v3706_v1, %v4780_v13  ;;  %v3645_v15 = vadd.f32 %v3644_v3, %v3643_v6  ;;  %v3709_v32 = vadd.f32 %v3708_v9, %v3707_v7 }
 0x178   : > { %v4857_v55 = vadd.f32 %v3645_v15, %v4814_v38  ;;  %v4860_v19 = vadd.f32 %v3709_v32, %v4785_v17 }
 0x17a   : > { %v3646_v46 = vpop.f32.mrb[64].mxu1  ;;  %v3710_v62 = vpop.f32.mrb[64].mxu0 }
 0x17b   : > { %v3647_v53 = vpop.f32.mrb[65].mxu1  ;;  %v3711_v24 = vpop.f32.mrb[65].mxu0 }
 0x17c   : > { %v3648_v27 = vadd.f32 %v3647_v53, %v3646_v46  ;;  %v3712_v5 = vadd.f32 %v3711_v24, %v3710_v62  ;;  %v3649_v31 = vpop.f32.mrb[66].mxu1  ;;  %v3713_v26 = vpop.f32.mrb[66].mxu0 }
 0x17d   : > { %v3650_v43 = vpop.f32.mrb[67].mxu1  ;;  %v3714_v40 = vpop.f32.mrb[67].mxu0 }
 0x17e   : > { %v4863_v13 = vadd.f32 %v3648_v27, %v4685_v60  ;;  %v4866_v41 = vadd.f32 %v3712_v5, %v4790_v35  ;;  %v3651_v38 = vadd.f32 %v3650_v43, %v3649_v31  ;;  %v3715_v14 = vadd.f32 %v3714_v40, %v3713_v26 }
 0x180   : > { %v4869_v17 = vadd.f32 %v3651_v38, %v4691_v4  ;;  %v4872_v42 = vadd.f32 %v3715_v14, %v4793_v39 }
 0x182   : > { %v3652_v48 = vpop.f32.mrb[68].mxu1  ;;  %v3716_v45 = vpop.f32.mrb[68].mxu0 }
 0x183   : > { %v3653_v57 = vpop.f32.mrb[69].mxu1  ;;  %v3717_v49 = vpop.f32.mrb[69].mxu0 }
 0x184   : > { %v3654_v51 = vadd.f32 %v3653_v57, %v3652_v48  ;;  %v3718_v56 = vadd.f32 %v3717_v49, %v3716_v45  ;;  %v3655_v59 = vpop.f32.mrb[70].mxu1  ;;  %v3719_v60 = vpop.f32.mrb[70].mxu0 }
 0x185   : > { %v3656_v61 = vpop.f32.mrb[71].mxu1  ;;  %v3720_v30 = vpop.f32.mrb[71].mxu0 }
 0x186   : > { %v4875_v35 = vadd.f32 %v3654_v51, %v4697_v12  ;;  %v4878_v1 = vadd.f32 %v3718_v56, %v4796_v0  ;;  %v3657_v4 = vadd.f32 %v3656_v61, %v3655_v59  ;;  %v3721_v6 = vadd.f32 %v3720_v30, %v3719_v60 }
 0x188   : > { %v4881_v39 = vadd.f32 %v3657_v4, %v4703_v20  ;;  %v4884_v7 = vadd.f32 %v3721_v6, %v4799_v58 }
 0x18a   : > { %v3658_v3 = vpop.f32.mrb[72].mxu1  ;;  %v3722_v9 = vpop.f32.mrb[72].mxu0 }
 0x18b   : > { %v3659_v15 = vpop.f32.mrb[73].mxu1  ;;  %v3723_v32 = vpop.f32.mrb[73].mxu0 }
 0x18c   : > { %v3660_v46 = vadd.f32 %v3659_v15, %v3658_v3  ;;  %v3724_v62 = vadd.f32 %v3723_v32, %v3722_v9  ;;  %v3661_v53 = vpop.f32.mrb[74].mxu1  ;;  %v3725_v12 = vpop.f32.mrb[74].mxu0 }
 0x18d   : > { %v3662_v24 = vpop.f32.mrb[75].mxu1  ;;  %v3726_v27 = vpop.f32.mrb[75].mxu0 }
 0x18e   : > { %v4887_v0 = vadd.f32 %v3660_v46, %v4709_v28  ;;  %v4890_v5 = vadd.f32 %v3724_v62, %v4804_v37  ;;  %v3663_v20 = vadd.f32 %v3662_v24, %v3661_v53  ;;  %v3727_v31 = vadd.f32 %v3726_v27, %v3725_v12 }
 0x190   : > { %v4893_v58 = vadd.f32 %v3663_v20, %v4715_v36  ;;  %v4896_v26 = vadd.f32 %v3727_v31, %v4807_v18 }
 0x192   : > { %v3664_v43 = vpop.f32.mrb[76].mxu1  ;;  %v3728_v40 = vpop.f32.mrb[76].mxu0 }
 0x193   : > { %v3665_v38 = vpop.f32.mrb[77].mxu1  ;;  %v3729_v14 = vpop.f32.mrb[77].mxu0 }
 0x194   : > { %v3666_v48 = vadd.f32 %v3665_v38, %v3664_v43  ;;  %v3730_v45 = vadd.f32 %v3729_v14, %v3728_v40  ;;  %v3667_v57 = vpop.f32.mrb[78].mxu1  ;;  %v3731_v28 = vpop.f32.mrb[78].mxu0 }
 0x195   : > { %v3668_v49 = vpop.f32.mrb[79].mxu1  ;;  %v3732_v51 = vpop.f32.mrb[79].mxu0 }
 0x196   : > { %v4899_v37 = vadd.f32 %v3666_v48, %v4721_v44  ;;  %v4902_v56 = vadd.f32 %v3730_v45, %v4812_v34  ;;  %v3669_v36 = vadd.f32 %v3668_v49, %v3667_v57  ;;  %v3733_v59 = vadd.f32 %v3732_v51, %v3731_v28 }
 0x198   : > { %v4905_v18 = vadd.f32 %v3669_v36, %v4727_v52  ;;  %v4908_v60 = vadd.f32 %v3733_v59, %v4817_v54 }
 0x19a   : > { %v3734_v61 = vpop.f32.mrb[80].mxu0  ;;  %v3798_v30 = vpop.f32.mrb[80].mxu1 }
 0x19b   : > { %v3735_v4 = vpop.f32.mrb[81].mxu0  ;;  %v3799_v6 = vpop.f32.mrb[81].mxu1 }
 0x19c   : > { %v3736_v3 = vadd.f32 %v3735_v4, %v3734_v61  ;;  %v3800_v9 = vadd.f32 %v3799_v6, %v3798_v30  ;;  %v3737_v15 = vpop.f32.mrb[82].mxu0  ;;  %v3801_v44 = vpop.f32.mrb[82].mxu1 }
 0x19d   : > { %v3738_v32 = vpop.f32.mrb[83].mxu0  ;;  %v3802_v46 = vpop.f32.mrb[83].mxu1 }
 0x19e   : > { %v4911_v34 = vadd.f32 %v3736_v3, %v4819_v10  ;;  %v3739_v62 = vadd.f32 %v3738_v32, %v3737_v15  ;;  %v3803_v53 = vadd.f32 %v3802_v46, %v3801_v44  ;;  %v4914_v52 = vadd.f32 %v3800_v9, %v4822_v2 }
 0x1a0   : > { %v4917_v54 = vadd.f32 %v3739_v62, %v4824_v63  ;;  %v4920_v12 = vadd.f32 %v3803_v53, %v4827_v16 }
 0x1a2   : > { %v3740_v24 = vpop.f32.mrb[84].mxu0  ;;  %v3804_v27 = vpop.f32.mrb[84].mxu1 }
 0x1a3   : > { %v3741_v20 = vpop.f32.mrb[85].mxu0  ;;  %v3805_v31 = vpop.f32.mrb[85].mxu1 }
 0x1a4   : > { %v3742_v43 = vadd.f32 %v3741_v20, %v3740_v24  ;;  %v3806_v40 = vadd.f32 %v3805_v31, %v3804_v27  ;;  %v3743_v38 = vpop.f32.mrb[86].mxu0  ;;  %v3807_v10 = vpop.f32.mrb[86].mxu1 }
 0x1a5   : > { %v3744_v14 = vpop.f32.mrb[87].mxu0  ;;  %v3808_v48 = vpop.f32.mrb[87].mxu1 }
 0x1a6   : > { %v4923_v45 = vadd.f32 %v3742_v43, %v4829_v22  ;;  %v3745_v2 = vadd.f32 %v3744_v14, %v3743_v38  ;;  %v3809_v57 = vadd.f32 %v3808_v48, %v3807_v10  ;;  %v4926_v63 = vadd.f32 %v3806_v40, %v4832_v8 }
 0x1a8   : > { %v4929_v16 = vadd.f32 %v3745_v2, %v4834_v25  ;;  %v4932_v28 = vadd.f32 %v3809_v57, %v4837_v11 }
 0x1aa   : > { %v3746_v49 = vpop.f32.mrb[88].mxu0  ;;  %v3810_v51 = vpop.f32.mrb[88].mxu1 }
 0x1ab   : > { %v3747_v36 = vpop.f32.mrb[89].mxu0  ;;  %v3811_v59 = vpop.f32.mrb[89].mxu1 }
 0x1ac   : > { %v3748_v61 = vadd.f32 %v3747_v36, %v3746_v49  ;;  %v3812_v30 = vadd.f32 %v3811_v59, %v3810_v51  ;;  %v3749_v4 = vpop.f32.mrb[90].mxu0  ;;  %v3813_v22 = vpop.f32.mrb[90].mxu1 }
 0x1ad   : > { %v3750_v6 = vpop.f32.mrb[91].mxu0  ;;  %v3814_v3 = vpop.f32.mrb[91].mxu1 }
 0x1ae   : > { %v4935_v9 = vadd.f32 %v3748_v61, %v4840_v29  ;;  %v3751_v8 = vadd.f32 %v3750_v6, %v3749_v4  ;;  %v3815_v15 = vadd.f32 %v3814_v3, %v3813_v22  ;;  %v4938_v25 = vadd.f32 %v3812_v30, %v4843_v47 }
 0x1b0   : > { %v4941_v11 = vadd.f32 %v3751_v8, %v4845_v33  ;;  %v4944_v44 = vadd.f32 %v3815_v15, %v4848_v21 }
 0x1b2   : > { %v3752_v32 = vpop.f32.mrb[92].mxu0  ;;  %v3816_v46 = vpop.f32.mrb[92].mxu1 }
 0x1b3   : > { %v3753_v62 = vpop.f32.mrb[93].mxu0  ;;  %v3817_v53 = vpop.f32.mrb[93].mxu1 }
 0x1b4   : > { %v3754_v24 = vadd.f32 %v3753_v62, %v3752_v32  ;;  %v3818_v27 = vadd.f32 %v3817_v53, %v3816_v46  ;;  %v3755_v20 = vpop.f32.mrb[94].mxu0  ;;  %v3819_v29 = vpop.f32.mrb[94].mxu1 }
 0x1b5   : > { %v3756_v31 = vpop.f32.mrb[95].mxu0  ;;  %v3820_v43 = vpop.f32.mrb[95].mxu1 }
 0x1b6   : > { %v4947_v40 = vadd.f32 %v3754_v24, %v4851_v50  ;;  %v3757_v47 = vadd.f32 %v3756_v31, %v3755_v20  ;;  %v3821_v38 = vadd.f32 %v3820_v43, %v3819_v29  ;;  %v4950_v33 = vadd.f32 %v3818_v27, %v4854_v23 }
 0x1b8   : > { %v4953_v21 = vadd.f32 %v3757_v47, %v4857_v55  ;;  %v4956_v10 = vadd.f32 %v3821_v38, %v4860_v19 }
 0x1ba   : > { %v3758_v14 = vpop.f32.mrb[96].mxu0  ;;  %v3822_v48 = vpop.f32.mrb[96].mxu1 }
 0x1bb   : > { %v3759_v2 = vpop.f32.mrb[97].mxu0  ;;  %v3823_v57 = vpop.f32.mrb[97].mxu1 }
 0x1bc   : > { %v3760_v49 = vadd.f32 %v3759_v2, %v3758_v14  ;;  %v3824_v51 = vadd.f32 %v3823_v57, %v3822_v48  ;;  %v3761_v36 = vpop.f32.mrb[98].mxu0  ;;  %v3825_v50 = vpop.f32.mrb[98].mxu1 }
 0x1bd   : > { %v3762_v59 = vpop.f32.mrb[99].mxu0  ;;  %v3826_v61 = vpop.f32.mrb[99].mxu1 }
 0x1be   : > { %v4959_v30 = vadd.f32 %v3760_v49, %v4863_v13  ;;  %v3763_v23 = vadd.f32 %v3762_v59, %v3761_v36  ;;  %v3827_v4 = vadd.f32 %v3826_v61, %v3825_v50  ;;  %v4962_v55 = vadd.f32 %v3824_v51, %v4866_v41 }
 0x1c0   : > { %v4965_v19 = vadd.f32 %v3763_v23, %v4869_v17  ;;  %v4968_v22 = vadd.f32 %v3827_v4, %v4872_v42 }
 0x1c2   : > { %v3764_v6 = vpop.f32.mrb[100].mxu0  ;;  %v3828_v3 = vpop.f32.mrb[100].mxu1 }
 0x1c3   : > { %v3765_v8 = vpop.f32.mrb[101].mxu0  ;;  %v3829_v15 = vpop.f32.mrb[101].mxu1 }
 0x1c4   : > { %v3766_v32 = vadd.f32 %v3765_v8, %v3764_v6  ;;  %v3830_v46 = vadd.f32 %v3829_v15, %v3828_v3  ;;  %v3767_v62 = vpop.f32.mrb[102].mxu0  ;;  %v3831_v13 = vpop.f32.mrb[102].mxu1 }
 0x1c5   : > { %v3768_v53 = vpop.f32.mrb[103].mxu0  ;;  %v3832_v24 = vpop.f32.mrb[103].mxu1 }
 0x1c6   : > { %v4971_v27 = vadd.f32 %v3766_v32, %v4875_v35  ;;  %v3769_v41 = vadd.f32 %v3768_v53, %v3767_v62  ;;  %v3833_v20 = vadd.f32 %v3832_v24, %v3831_v13  ;;  %v4974_v17 = vadd.f32 %v3830_v46, %v4878_v1 }
 0x1c8   : > { %v4977_v42 = vadd.f32 %v3769_v41, %v4881_v39  ;;  %v4980_v29 = vadd.f32 %v3833_v20, %v4884_v7  ;;  %v5009_v41 = vld [vmem:[%s5126_s2] ss:$0 sm:$0xff] }
 0x1ca   : > { %v3770_v31 = vpop.f32.mrb[104].mxu0  ;;  %v3834_v43 = vpop.f32.mrb[104].mxu1 }
 0x1cb   : > { %v3771_v47 = vpop.f32.mrb[105].mxu0  ;;  %v3835_v38 = vpop.f32.mrb[105].mxu1 }
 0x1cc   : > { %v3772_v14 = vadd.f32 %v3771_v47, %v3770_v31  ;;  %v3836_v48 = vadd.f32 %v3835_v38, %v3834_v43  ;;  %v3773_v2 = vpop.f32.mrb[106].mxu0  ;;  %v3837_v35 = vpop.f32.mrb[106].mxu1 }
 0x1cd   : > { %v3774_v57 = vpop.f32.mrb[107].mxu0  ;;  %v3838_v49 = vpop.f32.mrb[107].mxu1 }
 0x1ce   : > { %v4983_v51 = vadd.f32 %v3772_v14, %v4887_v0  ;;  %v3775_v1 = vadd.f32 %v3774_v57, %v3773_v2  ;;  %v3839_v36 = vadd.f32 %v3838_v49, %v3837_v35  ;;  %v4986_v39 = vadd.f32 %v3836_v48, %v4890_v5 }
 0x1d0   : > { %v4989_v7 = vadd.f32 %v3775_v1, %v4893_v58  ;;  %v4992_v50 = vadd.f32 %v3839_v36, %v4896_v26 }
 0x1d2   : > { %v3776_v59 = vpop.f32.mrb[108].mxu0  ;;  %v3840_v61 = vpop.f32.mrb[108].mxu1 }
 0x1d3   : > { %v3777_v23 = vpop.f32.mrb[109].mxu0  ;;  %v3841_v4 = vpop.f32.mrb[109].mxu1 }
 0x1d4   : > { %v3778_v6 = vadd.f32 %v3777_v23, %v3776_v59  ;;  %v3842_v3 = vadd.f32 %v3841_v4, %v3840_v61  ;;  %v3779_v8 = vpop.f32.mrb[110].mxu0  ;;  %v3843_v0 = vpop.f32.mrb[110].mxu1 }
 0x1d5   : > { %v3780_v15 = vpop.f32.mrb[111].mxu0  ;;  %v3844_v32 = vpop.f32.mrb[111].mxu1 }
 0x1d6   : > { %v4995_v46 = vadd.f32 %v3778_v6, %v4899_v37  ;;  %v3781_v5 = vadd.f32 %v3780_v15, %v3779_v8  ;;  %v3845_v62 = vadd.f32 %v3844_v32, %v3843_v0  ;;  %v4998_v58 = vadd.f32 %v3842_v3, %v4902_v56 }
 0x1d8   : > { %v5001_v26 = vadd.f32 %v3781_v5, %v4905_v18  ;;  %v5004_v13 = vadd.f32 %v3845_v62, %v4908_v60 }
 0x1da   : > { %v3846_v53 = vpop.f32.mrb[112].mxu1  ;;  %v3936_v24 = vpop.f32.mrb[112].mxu0 }
 0x1db   : > { %v2495_v37 = vadd.f32 %v3936_v24, %v4926_v63  ;;  %v3847_v20 = vpop.f32.mrb[113].mxu1  ;;  %v2486_v31 = vpop.f32.mrb[113].mxu0 }
 0x1dc   : > { %v3848_v56 = vadd.f32 %v3847_v20, %v3846_v53  ;;  %v2487_v43 = vadd.f32 %v2486_v31, %v4914_v52  ;;  %v3849_v18 = vpop.f32.mrb[114].mxu1  ;;  %v3937_v47 = vpop.f32.mrb[114].mxu0 }
 0x1dd   : > { %v2721_v60 = vadd.f32 %v5009_v41, %v2495_v37  ;;  %v2498_v38 = vadd.f32 %v3937_v47, %v4932_v28  ;;  %v3850_v14 = vpop.f32.mrb[115].mxu1  ;;  %v2489_v48 = vpop.f32.mrb[115].mxu0 }
 0x1de   : > { %v2719_v2 = vadd.f32 %v5009_v41, %v2487_v43  ;;  %v3851_v35 = vadd.f32 %v3850_v14, %v3849_v18  ;;  %v2490_v57 = vadd.f32 %v2489_v48, %v4920_v12  ;;  %v5018_v63 = vadd.f32 %v3848_v56, %v4911_v34 }
 0x1df   : > { %v2722_v49 = vadd.f32 %v5009_v41, %v2498_v38  ;;  %v2753_v36 = vmax.f32 %v2721_v60, 0.0 }
 0x1e0   : > { %v2720_v52 = vadd.f32 %v5009_v41, %v2490_v57  ;;  %v5024_v1 = vadd.f32 %v3851_v35, %v4917_v54  ;;  %v2751_v59 = vmax.f32 %v2719_v2, 0.0 }
 0x1e1   : > { %v2754_v28 = vmax.f32 %v2722_v49, 0.0 }
 0x1e2   : > { %v2752_v12 = vmax.f32 %v2720_v52, 0.0  ;;  %v3852_v34 = vpop.f32.mrb[116].mxu1  ;;  %v3940_v61 = vpop.f32.mrb[116].mxu0 }
 0x1e3   : > { %v3359_v23 = vpack.c.bf16 %v2754_v28, %v2753_v36  ;;  %v2511_v4 = vadd.f32 %v3940_v61, %v4950_v33  ;;  %v3853_v6 = vpop.f32.mrb[117].mxu1  ;;  %v2502_v3 = vpop.f32.mrb[117].mxu0 }
 0x1e4   : > { %v3354_v54 = vpack.c.bf16 %v2752_v12, %v2751_v59  ;;  %v3854_v8 = vadd.f32 %v3853_v6, %v3852_v34  ;;  %v2503_v0 = vadd.f32 %v2502_v3, %v4938_v25  ;;  %v3855_v15 = vpop.f32.mrb[118].mxu1  ;;  %v3941_v32 = vpop.f32.mrb[118].mxu0 }
 0x1e5   : > { %3431 = vst [vmem:[%s5029_s9 + $0x8] sm:$0xff] %v3359_v23   ;;  %v2725_v5 = vadd.f32 %v5009_v41, %v2511_v4  ;;  %v2514_v62 = vadd.f32 %v3941_v32, %v4956_v10  ;;  %v3856_v53 = vpop.f32.mrb[119].mxu1  ;;  %v2505_v24 = vpop.f32.mrb[119].mxu0 }
 0x1e6   : > { %3355 = vst [vmem:[%s5029_s9] sm:$0xff] %v3354_v54   ;;  %v2723_v37 = vadd.f32 %v5009_v41, %v2503_v0  ;;  %v3857_v20 = vadd.f32 %v3856_v53, %v3855_v15  ;;  %v2506_v33 = vadd.f32 %v2505_v24, %v4944_v44  ;;  %v5040_v31 = vadd.f32 %v3854_v8, %v4923_v45 }
 0x1e7   : > { %v2726_v25 = vadd.f32 %v5009_v41, %v2514_v62  ;;  %v2757_v10 = vmax.f32 %v2725_v5, 0.0 }
 0x1e8   : > { %v2724_v56 = vadd.f32 %v5009_v41, %v2506_v33  ;;  %v5045_v43 = vadd.f32 %v3857_v20, %v4929_v16  ;;  %v2755_v47 = vmax.f32 %v2723_v37, 0.0 }
 0x1e9   : > { %v2758_v18 = vmax.f32 %v2726_v25, 0.0 }
 0x1ea   : > { %v2756_v60 = vmax.f32 %v2724_v56, 0.0  ;;  %v3858_v38 = vpop.f32.mrb[120].mxu1  ;;  %v3944_v14 = vpop.f32.mrb[120].mxu0 }
 0x1eb   : > { %v3369_v48 = vpack.c.bf16 %v2758_v18, %v2757_v10  ;;  %v2527_v44 = vadd.f32 %v3944_v14, %v4974_v17  ;;  %v3859_v45 = vpop.f32.mrb[121].mxu1  ;;  %v2518_v2 = vpop.f32.mrb[121].mxu0 }
 0x1ec   : > { %v3364_v35 = vpack.c.bf16 %v2756_v60, %v2755_v47  ;;  %v3860_v57 = vadd.f32 %v3859_v45, %v3858_v38  ;;  %v2519_v49 = vadd.f32 %v2518_v2, %v4962_v55  ;;  %v3861_v52 = vpop.f32.mrb[122].mxu1  ;;  %v3945_v16 = vpop.f32.mrb[122].mxu0 }
 0x1ed   : > { %3433 = vst [vmem:[%s5029_s9 + $0x18] sm:$0xff] %v3369_v48   ;;  %v2729_v36 = vadd.f32 %v5009_v41, %v2527_v44  ;;  %v2530_v28 = vadd.f32 %v3945_v16, %v4980_v29  ;;  %v3862_v59 = vpop.f32.mrb[123].mxu1  ;;  %v2521_v12 = vpop.f32.mrb[123].mxu0 }
 0x1ee   : > { %3432 = vst [vmem:[%s5029_s9 + $0x10] sm:$0xff] %v3364_v35   ;;  %v2727_v34 = vadd.f32 %v5009_v41, %v2519_v49  ;;  %v3863_v61 = vadd.f32 %v3862_v59, %v3861_v52  ;;  %v2522_v17 = vadd.f32 %v2521_v12, %v4968_v22  ;;  %v5056_v23 = vadd.f32 %v3860_v57, %v4935_v9 }
 0x1ef   : > { %v2730_v55 = vadd.f32 %v5009_v41, %v2530_v28  ;;  %v2761_v29 = vmax.f32 %v2729_v36, 0.0 }
 0x1f0   : > { %v2728_v4 = vadd.f32 %v5009_v41, %v2522_v17  ;;  %v5061_v6 = vadd.f32 %v3863_v61, %v4941_v11  ;;  %v2759_v54 = vmax.f32 %v2727_v34, 0.0 }
 0x1f1   : > { %v2762_v3 = vmax.f32 %v2730_v55, 0.0 }
 0x1f2   : > { %v2760_v8 = vmax.f32 %v2728_v4, 0.0  ;;  %v3864_v0 = vpop.f32.mrb[124].mxu1  ;;  %v3948_v15 = vpop.f32.mrb[124].mxu0 }
 0x1f3   : > { %v3379_v32 = vpack.c.bf16 %v2762_v3, %v2761_v29  ;;  %v2543_v22 = vadd.f32 %v3948_v15, %v4998_v58  ;;  %v3865_v9 = vpop.f32.mrb[125].mxu1  ;;  %v2534_v5 = vpop.f32.mrb[125].mxu0 }
 0x1f4   : > { %v3374_v62 = vpack.c.bf16 %v2760_v8, %v2759_v54  ;;  %v3866_v53 = vadd.f32 %v3865_v9, %v3864_v0  ;;  %v2535_v24 = vadd.f32 %v2534_v5, %v4986_v39  ;;  %v3867_v37 = vpop.f32.mrb[126].mxu1  ;;  %v3949_v11 = vpop.f32.mrb[126].mxu0 }
 0x1f5   : > { %3435 = vst [vmem:[%s5029_s9 + $0x28] sm:$0xff] %v3379_v32   ;;  %v2733_v20 = vadd.f32 %v5009_v41, %v2543_v22  ;;  %v2546_v33 = vadd.f32 %v3949_v11, %v5004_v13  ;;  %v3868_v25 = vpop.f32.mrb[127].mxu1  ;;  %v2537_v56 = vpop.f32.mrb[127].mxu0 }
 0x1f6   : > { %3434 = vst [vmem:[%s5029_s9 + $0x20] sm:$0xff] %v3374_v62   ;;  %v2731_v10 = vadd.f32 %v5009_v41, %v2535_v24  ;;  %v3869_v18 = vadd.f32 %v3868_v25, %v3867_v37  ;;  %v2538_v58 = vadd.f32 %v2537_v56, %v4992_v50  ;;  %v2414_v47 = vadd.f32 %v3866_v53, %v4947_v40 }
 0x1f7   : > { %v2734_v60 = vadd.f32 %v5009_v41, %v2546_v33  ;;  %v2765_v14 = vmax.f32 %v2733_v20, 0.0 }
 0x1f8   : > { %v2732_v39 = vadd.f32 %v5009_v41, %v2538_v58  ;;  %v2417_v38 = vadd.f32 %v3869_v18, %v4953_v21  ;;  %v2763_v13 = vmax.f32 %v2731_v10, 0.0 }
 0x1f9   : > { %v2766_v48 = vmax.f32 %v2734_v60, 0.0 }
 0x1fa   : > { %v2764_v44 = vmax.f32 %v2732_v39, 0.0  ;;  %v3870_v45 = vpop.f32.mrb[128].mxu1  ;;  %v3952_v2 = vpop.f32.mrb[128].mxu0 }
 0x1fb   : > { %v3389_v35 = vpack.c.bf16 %v2766_v48, %v2765_v14  ;;  %v2559_v57 = vadd.f32 %v3952_v2, %v5040_v31  ;;  %v3871_v50 = vpop.f32.mrb[129].mxu1  ;;  %v2550_v49 = vpop.f32.mrb[129].mxu0 }
 0x1fc   : > { %v3384_v40 = vpack.c.bf16 %v2764_v44, %v2763_v13  ;;  %v3872_v52 = vadd.f32 %v3871_v50, %v3870_v45  ;;  %v2551_v16 = vadd.f32 %v2550_v49, %v5018_v63  ;;  %v3873_v36 = vpop.f32.mrb[130].mxu1  ;;  %v3953_v28 = vpop.f32.mrb[130].mxu0 }
 0x1fd   : > { %3437 = vst [vmem:[%s5029_s9 + $0x38] sm:$0xff] %v3389_v35   ;;  %v2737_v21 = vadd.f32 %v5009_v41, %v2559_v57  ;;  %v2562_v59 = vadd.f32 %v3953_v28, %v5045_v43  ;;  %v3874_v12 = vpop.f32.mrb[131].mxu1  ;;  %v2553_v34 = vpop.f32.mrb[131].mxu0 }
 0x1fe   : > { %3436 = vst [vmem:[%s5029_s9 + $0x30] sm:$0xff] %v3384_v40   ;;  %v2735_v61 = vadd.f32 %v5009_v41, %v2551_v16  ;;  %v3875_v17 = vadd.f32 %v3874_v12, %v3873_v36  ;;  %v2554_v31 = vadd.f32 %v2553_v34, %v5024_v1  ;;  %v2422_v55 = vadd.f32 %v3872_v52, %v4959_v30 }
 0x1ff   : > { %v2738_v4 = vadd.f32 %v5009_v41, %v2562_v59  ;;  %v2769_v3 = vmax.f32 %v2737_v21, 0.0 }
 0x200   : > { %v2736_v63 = vadd.f32 %v5009_v41, %v2554_v31  ;;  %v2425_v29 = vadd.f32 %v3875_v17, %v4965_v19  ;;  %v2767_v43 = vmax.f32 %v2735_v61, 0.0 }
 0x201   : > { %v2770_v54 = vmax.f32 %v2738_v4, 0.0 }
 0x202   : > { %v2768_v8 = vmax.f32 %v2736_v63, 0.0  ;;  %v3876_v0 = vpop.f32.mrb[132].mxu1  ;;  %v3956_v15 = vpop.f32.mrb[132].mxu0 }
 0x203   : > { %v3399_v32 = vpack.c.bf16 %v2770_v54, %v2769_v3  ;;  %v2575_v22 = vadd.f32 %v3956_v15, %v2414_v47  ;;  %v3877_v9 = vpop.f32.mrb[133].mxu1  ;;  %v2566_v1 = vpop.f32.mrb[133].mxu0 }
 0x204   : > { %v3394_v5 = vpack.c.bf16 %v2768_v8, %v2767_v43  ;;  %v3878_v30 = vadd.f32 %v3877_v9, %v3876_v0  ;;  %v2567_v62 = vadd.f32 %v2566_v1, %v5056_v23  ;;  %v3879_v53 = vpop.f32.mrb[134].mxu1  ;;  %v3957_v24 = vpop.f32.mrb[134].mxu0 }
 0x205   : > { %3439 = vst [vmem:[%s5029_s9 + $0x48] sm:$0xff] %v3399_v32   ;;  %v2741_v19 = vadd.f32 %v5009_v41, %v2575_v22  ;;  %v2578_v37 = vadd.f32 %v3957_v24, %v2417_v38  ;;  %v3880_v11 = vpop.f32.mrb[135].mxu1  ;;  %v2569_v20 = vpop.f32.mrb[135].mxu0 }
 0x206   : > { %3438 = vst [vmem:[%s5029_s9 + $0x40] sm:$0xff] %v3394_v5   ;;  %v2739_v33 = vadd.f32 %v5009_v41, %v2567_v62  ;;  %v3881_v25 = vadd.f32 %v3880_v11, %v3879_v53  ;;  %v2570_v56 = vadd.f32 %v2569_v20, %v5061_v6  ;;  %v2430_v10 = vadd.f32 %v3878_v30, %v4971_v27 }
 0x207   : > { %v2742_v18 = vadd.f32 %v5009_v41, %v2578_v37  ;;  %v2773_v47 = vmax.f32 %v2741_v19, 0.0 }
 0x208   : > { %v2740_v23 = vadd.f32 %v5009_v41, %v2570_v56  ;;  %v2433_v58 = vadd.f32 %v3881_v25, %v4977_v42  ;;  %v2771_v39 = vmax.f32 %v2739_v33, 0.0 }
 0x209   : > { %v2774_v60 = vmax.f32 %v2742_v18, 0.0 }
 0x20a   : > { %v2772_v38 = vmax.f32 %v2740_v23, 0.0  ;;  %v3882_v14 = vpop.f32.mrb[136].mxu1  ;;  %v3960_v48 = vpop.f32.mrb[136].mxu0 }
 0x20b   : > { %v3409_v13 = vpack.c.bf16 %v2774_v60, %v2773_v47  ;;  %v2591_v44 = vadd.f32 %v3960_v48, %v2430_v10  ;;  %v3883_v45 = vpop.f32.mrb[137].mxu1  ;;  %v2582_v6 = vpop.f32.mrb[137].mxu0 }
 0x20c   : > { %v3404_v2 = vpack.c.bf16 %v2772_v38, %v2771_v39  ;;  %v3884_v27 = vadd.f32 %v3883_v45, %v3882_v14  ;;  %v2583_v35 = vadd.f32 %v2582_v6, %v2422_v55  ;;  %v3885_v57 = vpop.f32.mrb[138].mxu1  ;;  %v3961_v50 = vpop.f32.mrb[138].mxu0 }
 0x20d   : > { %3441 = vst [vmem:[%s5029_s9 + $0x58] sm:$0xff] %v3409_v13   ;;  %v2745_v42 = vadd.f32 %v5009_v41, %v2591_v44  ;;  %v2594_v49 = vadd.f32 %v3961_v50, %v2433_v58  ;;  %v3886_v40 = vpop.f32.mrb[139].mxu1  ;;  %v2585_v52 = vpop.f32.mrb[139].mxu0 }
 0x20e   : > { %3440 = vst [vmem:[%s5029_s9 + $0x50] sm:$0xff] %v3404_v2   ;;  %v2743_v16 = vadd.f32 %v5009_v41, %v2583_v35  ;;  %v3887_v36 = vadd.f32 %v3886_v40, %v3885_v57  ;;  %v2586_v28 = vadd.f32 %v2585_v52, %v2425_v29  ;;  %v2438_v21 = vadd.f32 %v3884_v27, %v4983_v51 }
 0x20f   : > { %v2746_v59 = vadd.f32 %v5009_v41, %v2594_v49  ;;  %v2777_v61 = vmax.f32 %v2745_v42, 0.0 }
 0x210   : > { %v2744_v12 = vadd.f32 %v5009_v41, %v2586_v28  ;;  %v2441_v34 = vadd.f32 %v3887_v36, %v4989_v7  ;;  %v2775_v31 = vmax.f32 %v2743_v16, 0.0 }
 0x211   : > { %v2778_v17 = vmax.f32 %v2746_v59, 0.0 }
 0x212   : > { %v2776_v55 = vmax.f32 %v2744_v12, 0.0  ;;  %v3888_v4 = vpop.f32.mrb[140].mxu1  ;;  %v3964_v63 = vpop.f32.mrb[140].mxu0 }
 0x213   : > { %v3419_v3 = vpack.c.bf16 %v2778_v17, %v2777_v61  ;;  %v3889_v54 = vpop.f32.mrb[141].mxu1  ;;  %v2598_v43 = vpop.f32.mrb[141].mxu0 }
 0x214   : > { %v3414_v29 = vpack.c.bf16 %v2776_v55, %v2775_v31  ;;  %v3890_v8 = vadd.f32 %v3889_v54, %v3888_v4  ;;  %v2599_v51 = vadd.f32 %v2598_v43, %v2438_v21  ;;  %v3891_v0 = vpop.f32.mrb[142].mxu1  ;;  %v3965_v15 = vpop.f32.mrb[142].mxu0 }
 0x215   : > { %3443 = vst [vmem:[%s5029_s9 + $0x68] sm:$0xff] %v3419_v3   ;;  %v3892_v32 = vpop.f32.mrb[143].mxu1  ;;  %v2601_v22 = vpop.f32.mrb[143].mxu0 }
 0x216   : > { %3442 = vst [vmem:[%s5029_s9 + $0x60] sm:$0xff] %v3414_v29   ;;  %v2446_v7 = vadd.f32 %v3890_v8, %v4995_v46  ;;  %v2747_v9 = vadd.f32 %v5009_v41, %v2599_v51  ;;  %v3893_v1 = vadd.f32 %v3892_v32, %v3891_v0  ;;  %v2602_v5 = vadd.f32 %v2601_v22, %v2441_v34 }
 0x218   : > { %v2607_v30 = vadd.f32 %v3964_v63, %v2446_v7  ;;  %v2449_v62 = vadd.f32 %v3893_v1, %v5001_v26  ;;  %v2748_v53 = vadd.f32 %v5009_v41, %v2602_v5  ;;  %v2779_v19 = vmax.f32 %v2747_v9, 0.0 }
 0x21a   : > { %v2749_v24 = vadd.f32 %v5009_v41, %v2607_v30  ;;  %v2610_v37 = vadd.f32 %v3965_v15, %v2449_v62  ;;  %v2780_v11 = vmax.f32 %v2748_v53, 0.0 }
 0x21c   : > { %v2750_v20 = vadd.f32 %v5009_v41, %v2610_v37  ;;  %v3424_v33 = vpack.c.bf16 %v2780_v11, %v2779_v19  ;;  %v2781_v25 = vmax.f32 %v2749_v24, 0.0 }
 0x21e   : > { %v2782_v46 = vmax.f32 %v2750_v20, 0.0  ;;  %3444 = vst [vmem:[%s5029_s9 + $0x70] sm:$0xff] %v3424_v33  }
 0x220   : > { %v3429_v56 = vpack.c.bf16 %v2782_v46, %v2781_v25 }
 0x222   : > { %3445 = vst [vmem:[%s5029_s9 + $0x78] sm:$0xff] %v3429_v56  }
 0x223 PF: > { %s13_s14 = sadd.s32 1, %s4309_s14   ;;  %s5128_s12 = smov %s4305_s13 }
 0x224   : > { %p10_p5 = scmp.ge.s32.totalorder %s13_s14, 4   ;;  %s5129_s13 = smov %s5131_s15 }
 0x226   :  { %12 = sbr.rel (!%p10_p5) target bundleno = 2 (0x2), region = 76 }

// kernel: mowe_forward.26
= control target key start
LH: loop header
LB: loop body
LE: loop exit
PB: predicated region body
PF: predicated region fallthrough
CT: control target
= control target key end

     0   :  { %s4556_s15 = smov 0   ;;  %s4558_s16 = smov 0   ;;  %s5377_s0 = inlined_call_operand.vmem [shape: bf16[512,1152], index: 0, kind: input, shape index: {}]   ;;  %s5378_s1 = inlined_call_operand.vmem [shape: bf16[1152,128], index: 1, kind: input, shape index: {}]   ;;  %s5379_s2 = inlined_call_operand.vmem [shape: f32[1,128], index: 2, kind: input, shape index: {}]   ;;  %s5380_s3 = inlined_call_operand.vmem [shape: bf16[512,128], index: 3, kind: input, shape index: {}]   ;;  %s5381_s4 = inlined_call_operand.vmem [shape: bf16[512,128], index: 4, kind: output, shape index: {}]  }
   0x1   :  { %s4560_s17 = smov 0  }
   0x2 LB: > { %s33_s18 = sadd.s32 1, %s4525_s16  ;;  %p3202_p0 = scmp.ge.s32.totalorder %s4529_s17, 1  ;;  %s4529_s17 = sphi %s4560_s17, %s14_s17   ;;  %s4525_s16 = sphi %s4558_s16, %s5383_s16   ;;  %s4521_s15 = sphi %s4556_s15, %s5382_s15  }
   0x3   : > { %p35_p1 = scmp.ge.s32.totalorder %s33_s18, 2  ;;  %p232_p2 = scmp.lt.s32.totalorder %s4529_s17, 3 }
   0x5   : > { %s5385_s18 = smov (%p35_p1, %s33_s18), 0  ;;  %p233_p3 = pnand %p3202_p0, %p232_p2 }
   0x6   : > { %v4227_v0 = vld [vmem:[%s5378_s1 + $0x40] sm:$0xff] (!%p233_p3)   ;;  %s3203_s21 = sshll.u32 (!%p233_p3), %s4521_s15, 5  ;;  %v4229_v2 = vld [vmem:[%s5378_s1 + $0x48] sm:$0xff] (!%p233_p3)   ;;  %v4231_v4 = vld [vmem:[%s5378_s1 + $0x50] sm:$0xff] (!%p233_p3)  }
   0x7   : > { %236 = sbr.rel (%p233_p3) target bundleno = 547 (0x223), region = 36  ;;  %v4228_v1 = vld [vmem:[%s5378_s1] sm:$0xff] (!%p233_p3)   ;;  %3666 = vmatprep.subr.bf16.mxu0 (!%p233_p3), %v4227_v0  ;;  %4186 = vmatprep.subr.bf16.mxu1 (!%p233_p3), %v4227_v0  ;;  %p287_p4 = scmp.lt.s32.totalorder (!%p233_p3), %s3203_s21, 63  ;;  %v4230_v3 = vld [vmem:[%s5378_s1 + $0x8] sm:$0xff] (!%p233_p3)   ;;  %v4232_v5 = vld [vmem:[%s5378_s1 + $0x10] sm:$0xff] (!%p233_p3)  }
   0x8   : > { %3667 = vmatpush3.bf16.msra.mxu0 (!%p233_p3), %v4228_v1  ;;  %4194 = vmatpush3.bf16.msra.mxu1 (!%p233_p3), %v4228_v1  ;;  %v4233_v6 = vld [vmem:[%s5378_s1 + $0x58] sm:$0xff] (!%p233_p3)   ;;  %v4235_v8 = vld [vmem:[%s5378_s1 + $0x60] sm:$0xff] (!%p233_p3)   ;;  %v4237_v10 = vld [vmem:[%s5378_s1 + $0x68] sm:$0xff] (!%p233_p3)  }
   0x9   : > { %3668 = vmatprep.subr.bf16.mxu0 (!%p233_p3), %v4229_v2  ;;  %4187 = vmatprep.subr.bf16.mxu1 (!%p233_p3), %v4229_v2  ;;  %v4234_v7 = vld [vmem:[%s5378_s1 + $0x18] sm:$0xff] (!%p233_p3)   ;;  %v4236_v9 = vld [vmem:[%s5378_s1 + $0x20] sm:$0xff] (!%p233_p3)   ;;  %v4238_v13 = vld [vmem:[%s5378_s1 + $0x28] sm:$0xff] (!%p233_p3)  }
   0xa   : > { %v4239_v14 = vld [vmem:[%s5378_s1 + $0x70] sm:$0xff] (!%p233_p3)   ;;  %v4241_v16 = vld [vmem:[%s5378_s1 + $0x78] sm:$0xff] (!%p233_p3)   ;;  %v4249_v18 = vld [vmem:[%s5378_s1 + $0xc0] sm:$0xff] (!%p233_p3)  }
   0xb   : > { %v4240_v15 = vld [vmem:[%s5378_s1 + $0x30] sm:$0xff] (!%p233_p3)   ;;  %v4242_v17 = vld [vmem:[%s5378_s1 + $0x38] sm:$0xff] (!%p233_p3)   ;;  %v4252_v21 = vld [vmem:[%s5378_s1 + $0x140] sm:$0xff] (!%p233_p3)  }
   0xc   : > { %3669 = vmatpush3.bf16.msra.mxu0 (!%p233_p3), %v4230_v3  ;;  %4195 = vmatpush3.bf16.msra.mxu1 (!%p233_p3), %v4230_v3  ;;  %v4250_v22 = vld [vmem:[%s5378_s1 + $0x80] sm:$0xff] (!%p233_p3)   ;;  %v4251_v23 = vld [vmem:[%s5378_s1 + $0xc8] sm:$0xff] (!%p233_p3)   ;;  %v4261_v31 = vld [vmem:[%s5378_s1 + $0xd0] sm:$0xff] (!%p233_p3)  }
   0xd   : > { %3670 = vmatprep.subr.bf16.mxu0 (!%p233_p3), %v4231_v4  ;;  %4188 = vmatprep.subr.bf16.mxu1 (!%p233_p3), %v4231_v4  ;;  %v4254_v24 = vld [vmem:[%s5378_s1 + $0x100] sm:$0xff] (!%p233_p3)   ;;  %v4253_v27 = vld [vmem:[%s5378_s1 + $0x88] sm:$0xff] (!%p233_p3)   ;;  %v4262_v32 = vld [vmem:[%s5378_s1 + $0x90] sm:$0xff] (!%p233_p3)  }
   0xe   : > { %s5387_s21 = smov (!%p287_p4, %s3203_s21), 63  ;;  %v4272_v28 = vld [vmem:[%s5378_s1 + $0x148] sm:$0xff]   ;;  %v4263_v34 = vld [vmem:[%s5378_s1 + $0xd8] sm:$0xff]   ;;  %v4271_v40 = vld [vmem:[%s5378_s1 + $0xe0] sm:$0xff]  }
   0xf   : > { %s4202_s8 = smul.u32 36, %s5387_s21  ;;  %v4274_v33 = vld [vmem:[%s5378_s1 + $0x108] sm:$0xff]   ;;  %v4264_v37 = vld [vmem:[%s5378_s1 + $0x98] sm:$0xff]   ;;  %v4273_v41 = vld [vmem:[%s5378_s1 + $0xa0] sm:$0xff]  }
  0x10   : > { %3671 = vmatpush3.bf16.msra.mxu0 %v4232_v5  ;;  %4196 = vmatpush3.bf16.msra.mxu1 %v4232_v5  ;;  %v4275_v42 = vld [vmem:[%s5378_s1 + $0xe8] sm:$0xff]   ;;  %v4286_v43 = vld [vmem:[%s5378_s1 + $0x150] sm:$0xff]   ;;  %v4285_v52 = vld [vmem:[%s5378_s1 + $0xf8] sm:$0xff]  }
  0x11   : > { %3672 = vmatprep.subr.bf16.mxu0 %v4233_v6  ;;  %4189 = vmatprep.subr.bf16.mxu1 %v4233_v6  ;;  %s4607_s15 = scalar_lea.vmem %s5377_s0, %s4202_s8  ;;  %v4288_v46 = vld [vmem:[%s5378_s1 + $0x110] sm:$0xff]   ;;  %v4276_v47 = vld [vmem:[%s5378_s1 + $0xa8] sm:$0xff]   ;;  %v4303_v55 = vld [vmem:[%s5378_s1 + $0x158] sm:$0xff]  }
  0x12   : > { %v4245_v11 = vld [vmem:[%s4607_s15 + $0x4] ss:$36 sps:$4 sm:$0xff]   ;;  %v4255_v25 = vld [vmem:[%s4607_s15 + $0x4c] ss:$36 sps:$4 sm:$0xff]   ;;  %v4265_v35 = vld [vmem:[%s4607_s15 + $0x94] ss:$36 sps:$4 sm:$0xff]  }
  0x13   : > { %v4248_v12 = vld [vmem:[%s4607_s15 + $0x364] ss:$36 sps:$4 sm:$0xff]   ;;  %1900 = vmatprep.mubr.bf16.mxu0 %v4245_v11  ;;  %v4257_v26 = vld [vmem:[%s4607_s15 + $0x3ac] ss:$36 sps:$4 sm:$0xff]   ;;  %v4267_v36 = vld [vmem:[%s4607_s15 + $0x3f4] ss:$36 sps:$4 sm:$0xff]  }
  0x14   : > { %3673 = vmatpush3.bf16.msra.mxu0 %v4234_v7  ;;  %4197 = vmatpush3.bf16.msra.mxu1 %v4234_v7  ;;  %v4243_v19 = vld [vmem:[%s4607_s15] ss:$36 sps:$4 sm:$0xff]   ;;  %v4259_v29 = vld [vmem:[%s4607_s15 + $0x48] ss:$36 sps:$4 sm:$0xff]   ;;  %v4269_v38 = vld [vmem:[%s4607_s15 + $0x90] ss:$36 sps:$4 sm:$0xff]  }
  0x15   : > { %3674 = vmatprep.subr.bf16.mxu0 %v4235_v8  ;;  %4190 = vmatprep.subr.bf16.mxu1 %v4235_v8  ;;  %v4246_v20 = vld [vmem:[%s4607_s15 + $0x360] ss:$36 sps:$4 sm:$0xff]   ;;  %v4260_v30 = vld [vmem:[%s4607_s15 + $0x3a8] ss:$36 sps:$4 sm:$0xff]   ;;  %v4270_v39 = vld [vmem:[%s4607_s15 + $0x3f0] ss:$36 sps:$4 sm:$0xff]  }
  0x16   : > { %1996 = vmatprep.mubr.bf16.mxu1 %v4248_v12  ;;  %v4277_v44 = vld [vmem:[%s4607_s15 + $0xdc] ss:$36 sps:$4 sm:$0xff]   ;;  %v4283_v48 = vld [vmem:[%s5378_s1 + $0xf0] sm:$0xff]   ;;  %v4289_v53 = vld [vmem:[%s4607_s15 + $0x124] ss:$36 sps:$4 sm:$0xff]  }
  0x17   : > { %v4279_v45 = vld [vmem:[%s4607_s15 + $0x43c] ss:$36 sps:$4 sm:$0xff]   ;;  %v4284_v51 = vld [vmem:[%s5378_s1 + $0xb0] sm:$0xff]   ;;  %v4291_v58 = vld [vmem:[%s4607_s15 + $0x8] ss:$36 sps:$4 sm:$0xff]  }
  0x18   : > { %3675 = vmatpush3.bf16.msra.mxu0 %v4236_v9  ;;  %4198 = vmatpush3.bf16.msra.mxu1 %v4236_v9  ;;  %v4281_v49 = vld [vmem:[%s4607_s15 + $0xd8] ss:$36 sps:$4 sm:$0xff]   ;;  %v4293_v54 = vld [vmem:[%s4607_s15 + $0xc] ss:$36 sps:$4 sm:$0xff]   ;;  %v4294_v59 = vld [vmem:[%s4607_s15 + $0x120] ss:$36 sps:$4 sm:$0xff]  }
  0x19   : > { %3676 = vmatprep.subr.bf16.mxu0 %v4237_v10  ;;  %4191 = vmatprep.subr.bf16.mxu1 %v4237_v10  ;;  %v4282_v50 = vld [vmem:[%s4607_s15 + $0x438] ss:$36 sps:$4 sm:$0xff]   ;;  %v4295_v60 = vld [vmem:[%s5378_s1 + $0x1c0] sm:$0xff]   ;;  %v4297_v62 = vld [vmem:[%s4607_s15 + $0x16c] ss:$36 sps:$4 sm:$0xff]  }
  0x1a   : > { %v4304_v56 = vld [vmem:[%s5378_s1 + $0x118] sm:$0xff]   ;;  %v4296_v61 = vld [vmem:[%s5378_s1 + $0x180] sm:$0xff]   ;;  %v4311_v1 = vld [vmem:[%s5378_s1 + $0x1c8] sm:$0xff]  }
  0x1b   : > { %v4287_v57 = vld [vmem:[%s5378_s1 + $0xb8] sm:$0xff]   ;;  %v4313_v0 = vld [vmem:[%s5378_s1 + $0x160] sm:$0xff]   ;;  %v4312_v3 = vld [vmem:[%s5378_s1 + $0x188] sm:$0xff]  }
  0x1c   : > { %3677 = vmatpush3.bf16.msra.mxu0 %v4238_v13  ;;  %4199 = vmatpush3.bf16.msra.mxu1 %v4238_v13  ;;  %v4299_v63 = vld [vmem:[%s4607_s15 + $0x54] ss:$36 sps:$4 sm:$0xff]   ;;  %v4314_v2 = vld [vmem:[%s5378_s1 + $0x120] sm:$0xff]   ;;  %v4301_v4 = vld [vmem:[%s4607_s15 + $0x168] ss:$36 sps:$4 sm:$0xff]  }
  0x1d   : > { %3678 = vmatprep.subr.bf16.mxu0 %v4239_v14  ;;  %4192 = vmatprep.subr.bf16.mxu1 %v4239_v14  ;;  %v4302_v5 = vld [vmem:[%s4607_s15 + $0x50] ss:$36 sps:$4 sm:$0xff]   ;;  %v4307_v7 = vld [vmem:[%s4607_s15 + $0x9c] ss:$36 sps:$4 sm:$0xff]   ;;  %v4327_v8 = vld [vmem:[%s5378_s1 + $0x168] sm:$0xff]  }
  0x1e   : > { %v4305_v6 = vld [vmem:[%s4607_s15 + $0x1b4] ss:$36 sps:$4 sm:$0xff]   ;;  %v4329_v10 = vld [vmem:[%s5378_s1 + $0x128] sm:$0xff]   ;;  %v4315_v14 = vld [vmem:[%s4607_s15 + $0x1fc] ss:$36 sps:$4 sm:$0xff]  }
  0x1f   : > { %v4328_v9 = vld [vmem:[%s5378_s1 + $0x1d0] sm:$0xff]   ;;  %v4310_v13 = vld [vmem:[%s4607_s15 + $0x98] ss:$36 sps:$4 sm:$0xff]  }
  0x20   : > { %3679 = vmatpush3.bf16.msra.mxu0 %v4240_v15  ;;  %4200 = vmatpush3.bf16.msra.mxu1 %v4240_v15  ;;  %v4330_v11 = vld [vmem:[%s5378_s1 + $0x190] sm:$0xff]  }
  0x21   : > { %3680 = vmatprep.subr.bf16.mxu0 %v4241_v16  ;;  %4193 = vmatprep.subr.bf16.mxu1 %v4241_v16  ;;  %v4309_v12 = vld [vmem:[%s4607_s15 + $0x1b0] ss:$36 sps:$4 sm:$0xff]  }
  0x22   : > { %v4337_v15 = vld [vmem:[%s5378_s1 + $0x170] sm:$0xff]  }
  0x23   : > { %v4338_v16 = vld [vmem:[%s5378_s1 + $0x130] sm:$0xff]  }
  0x24   : > { %3681 = vmatpush3.bf16.msra.mxu0 %v4242_v17  ;;  %4201 = vmatpush3.bf16.msra.mxu1 %v4242_v17  ;;  %v4317_v17 = vld [vmem:[%s4607_s15 + $0xe4] ss:$36 sps:$4 sm:$0xff]  }
  0x25   : > { %3778 = vmatprep.subr.bf16.mxu1 %v4249_v18  ;;  %3890 = vmatprep.subr.bf16.mxu0 %v4252_v21  ;;  %v4345_v18 = vld [vmem:[%s5378_s1 + $0x1d8] sm:$0xff]   ;;  %v4320_v21 = vld [vmem:[%s4607_s15 + $0xe0] ss:$36 sps:$4 sm:$0xff]  }
  0x27   : > { %1901 = vmatmul.mubr.bf16.vlgmr.msra.gmra.mrb[0].mxu0 %v4243_v19  ;;  %1997 = vmatmul.mubr.bf16.vlgmr.msra.gmra.mrb[0].mxu1 %v4246_v20  ;;  %v4346_v19 = vld [vmem:[%s5378_s1 + $0x198] sm:$0xff]  }
  0x28   : > { %3779 = vmatpush3.bf16.msra.mxu1 %v4250_v22  ;;  %3891 = vmatpush3.bf16.msra.mxu0 %v4254_v24  ;;  %v4319_v20 = vld [vmem:[%s4607_s15 + $0x1f8] ss:$36 sps:$4 sm:$0xff]   ;;  %v4321_v22 = vld [vmem:[%s4607_s15 + $0x244] ss:$36 sps:$4 sm:$0xff]  }
  0x29   : > { %3780 = vmatprep.subr.bf16.mxu1 %v4251_v23  ;;  %1908 = vmatprep.mubr.bf16.mxu0 %v4255_v25  ;;  %v4323_v23 = vld [vmem:[%s4607_s15 + $0x12c] ss:$36 sps:$4 sm:$0xff]   ;;  %v4353_v24 = vld [vmem:[%s5378_s1 + $0x178] sm:$0xff]  }
  0x2a   : > { %2004 = vmatprep.mubr.bf16.mxu1 %v4257_v26  ;;  %3892 = vmatprep.subr.bf16.mxu0 %v4272_v28  ;;  %v4354_v25 = vld [vmem:[%s5378_s1 + $0x138] sm:$0xff]   ;;  %v4361_v26 = vld [vmem:[%s5378_s1 + $0x1e0] sm:$0xff]  }
  0x2b   : > { %v4362_v28 = vld [vmem:[%s5378_s1 + $0x1a0] sm:$0xff]  }
  0x2c   : > { %3781 = vmatpush3.bf16.msra.mxu1 %v4253_v27  ;;  %3893 = vmatpush3.bf16.msra.mxu0 %v4274_v33  ;;  %v4325_v27 = vld [vmem:[%s4607_s15 + $0x240] ss:$36 sps:$4 sm:$0xff]   ;;  %v4376_v33 = vld [vmem:[%s5378_s1 + $0x1e8] sm:$0xff]  }
  0x2d   : > { %3782 = vmatprep.subr.bf16.mxu1 %v4261_v31  ;;  %3894 = vmatprep.subr.bf16.mxu0 %v4286_v43  ;;  %v4331_v31 = vld [vmem:[%s4607_s15 + $0x28c] ss:$36 sps:$4 sm:$0xff]   ;;  %v4347_v43 = vld [vmem:[%s4607_s15 + $0x31c] ss:$36 sps:$4 sm:$0xff]  }
  0x2f   : > { %1909 = vmatmul.mubr.bf16.gmra.mrb[4].mxu0 %v4259_v29  ;;  %2005 = vmatmul.mubr.bf16.gmra.mrb[4].mxu1 %v4260_v30  ;;  %v4363_v29 = vld [vmem:[%s5378_s1 + $0x200] sm:$0xff]   ;;  %v4326_v30 = vld [vmem:[%s4607_s15 + $0x128] ss:$36 sps:$4 sm:$0xff]  }
  0x30   : > { %3783 = vmatpush3.bf16.msra.mxu1 %v4262_v32  ;;  %1916 = vmatprep.mubr.bf16.mxu0 %v4265_v35  ;;  %v4333_v32 = vld [vmem:[%s4607_s15 + $0x174] ss:$36 sps:$4 sm:$0xff]   ;;  %v4377_v35 = vld [vmem:[%s5378_s1 + $0x1a8] sm:$0xff]  }
  0x31   : > { %3784 = vmatprep.subr.bf16.mxu1 %v4263_v34  ;;  %2012 = vmatprep.mubr.bf16.mxu1 %v4267_v36  ;;  %v4335_v34 = vld [vmem:[%s4607_s15 + $0x288] ss:$36 sps:$4 sm:$0xff]   ;;  %v4336_v36 = vld [vmem:[%s4607_s15 + $0x170] ss:$36 sps:$4 sm:$0xff]  }
  0x32   : > { %3895 = vmatpush3.bf16.msra.mxu0 %v4288_v46  ;;  %v4352_v46 = vld [vmem:[%s4607_s15 + $0x200] ss:$36 sps:$4 sm:$0xff]  }
  0x33   : > { %3896 = vmatprep.subr.bf16.mxu0 %v4303_v55  ;;  %v4378_v55 = vld [vmem:[%s5378_s1 + $0x208] sm:$0xff]  }
  0x34   : > { %3785 = vmatpush3.bf16.msra.mxu1 %v4264_v37  ;;  %v4339_v37 = vld [vmem:[%s4607_s15 + $0x2d4] ss:$36 sps:$4 sm:$0xff]  }
  0x35   : > { %3786 = vmatprep.subr.bf16.mxu1 %v4271_v40  ;;  %v4344_v40 = vld [vmem:[%s4607_s15 + $0x1b8] ss:$36 sps:$4 sm:$0xff]  }
  0x36   : > { %3897 = vmatpush3.bf16.msra.mxu0 %v4304_v56  ;;  %v4393_v56 = vld [vmem:[%s5378_s1 + $0x210] sm:$0xff]  }
  0x37   : > { %1917 = vmatmul.mubr.bf16.gmra.mrb[8].mxu0 %v4269_v38  ;;  %2013 = vmatmul.mubr.bf16.gmra.mrb[8].mxu1 %v4270_v39  ;;  %v4341_v38 = vld [vmem:[%s4607_s15 + $0x1bc] ss:$36 sps:$4 sm:$0xff]   ;;  %v4343_v39 = vld [vmem:[%s4607_s15 + $0x2d0] ss:$36 sps:$4 sm:$0xff]  }
  0x38   : > { %3787 = vmatpush3.bf16.msra.mxu1 %v4273_v41  ;;  %1924 = vmatprep.mubr.bf16.mxu0 %v4277_v44  ;;  %v4391_v41 = vld [vmem:[%s5378_s1 + $0x1f0] sm:$0xff]   ;;  %v4349_v44 = vld [vmem:[%s4607_s15 + $0x204] ss:$36 sps:$4 sm:$0xff]  }
  0x39   : > { %3788 = vmatprep.subr.bf16.mxu1 %v4275_v42  ;;  %2020 = vmatprep.mubr.bf16.mxu1 %v4279_v45  ;;  %v4392_v42 = vld [vmem:[%s5378_s1 + $0x1b0] sm:$0xff]   ;;  %v4351_v45 = vld [vmem:[%s4607_s15 + $0x318] ss:$36 sps:$4 sm:$0xff]  }
  0x3a   : > { %3898 = vmatprep.subr.bf16.mxu0 %v4313_v0  ;;  %v4375_v0 = vld [vmem:[%s4607_s15 + $0xa0] ss:$36 sps:$4 sm:$0xff]  }
  0x3b   : > { %3899 = vmatpush3.bf16.msra.mxu0 %v4314_v2  ;;  %v4381_v2 = vld [vmem:[%s4607_s15 + $0xec] ss:$36 sps:$4 sm:$0xff]  }
  0x3c   : > { %3789 = vmatpush3.bf16.msra.mxu1 %v4276_v47  ;;  %3900 = vmatprep.subr.bf16.mxu0 %v4327_v8  ;;  %v4406_v47 = vld [vmem:[%s5378_s1 + $0x1f8] sm:$0xff]  }
  0x3d   : > { %3790 = vmatprep.subr.bf16.mxu1 %v4283_v48  ;;  %v4407_v48 = vld [vmem:[%s5378_s1 + $0x1b8] sm:$0xff]  }
  0x3e   : > { %v4387_v8 = vld [vmem:[%s4607_s15 + $0x134] ss:$36 sps:$4 sm:$0xff]  }
  0x3f   : > { %1925 = vmatmul.mubr.bf16.gmra.mrb[12].mxu0 %v4281_v49  ;;  %2021 = vmatmul.mubr.bf16.gmra.mrb[12].mxu1 %v4282_v50  ;;  %v4355_v49 = vld [vmem:[%s4607_s15 + $0x24c] ss:$36 sps:$4 sm:$0xff]   ;;  %v4359_v50 = vld [vmem:[%s4607_s15 + $0x14] ss:$36 sps:$4 sm:$0xff]  }
  0x40   : > { %3791 = vmatpush3.bf16.msra.mxu1 %v4284_v51  ;;  %1932 = vmatprep.mubr.bf16.mxu0 %v4289_v53  ;;  %v4357_v51 = vld [vmem:[%s4607_s15 + $0x10] ss:$36 sps:$4 sm:$0xff]  }
  0x41   : > { %3792 = vmatprep.subr.bf16.mxu1 %v4285_v52  ;;  %2061 = vmatprep.mubr.bf16.mxu1 %v4293_v54  ;;  %v4360_v52 = vld [vmem:[%s4607_s15 + $0x248] ss:$36 sps:$4 sm:$0xff]   ;;  %v4364_v53 = vld [vmem:[%s4607_s15 + $0x294] ss:$36 sps:$4 sm:$0xff]   ;;  %v4366_v54 = vld [vmem:[%s4607_s15 + $0x5c] ss:$36 sps:$4 sm:$0xff]  }
  0x42   : > { %3901 = vmatpush3.bf16.msra.mxu0 %v4329_v10  ;;  %v4389_v10 = vld [vmem:[%s4607_s15 + $0x368] ss:$36 sps:$4 sm:$0xff]  }
  0x43   : > { %3902 = vmatprep.subr.bf16.mxu0 %v4337_v15  ;;  %v4399_v15 = vld [vmem:[%s4607_s15 + $0x178] ss:$36 sps:$4 sm:$0xff]  }
  0x44   : > { %3793 = vmatpush3.bf16.msra.mxu1 %v4287_v57  ;;  %v4368_v57 = vld [vmem:[%s4607_s15 + $0x290] ss:$36 sps:$4 sm:$0xff]  }
  0x45   : > { %4002 = vmatprep.subr.bf16.mxu1 %v4295_v60  ;;  %v4372_v60 = vld [vmem:[%s4607_s15 + $0xa4] ss:$36 sps:$4 sm:$0xff]  }
  0x46   : > { %3903 = vmatpush3.bf16.msra.mxu0 %v4338_v16  ;;  %v4400_v16 = vld [vmem:[%s4607_s15 + $0x3fc] ss:$36 sps:$4 sm:$0xff]  }
  0x47   : > { %1933 = vmatmul.mubr.bf16.gmra.mrb[16].mxu0 %v4294_v59  ;;  %2062 = vmatmul.mubr.bf16.vlgmr.msra.gmra.mrb[16].mxu1 %v4291_v58  ;;  %v4369_v58 = vld [vmem:[%s4607_s15 + $0x58] ss:$36 sps:$4 sm:$0xff]  }
  0x48   : > { %4003 = vmatpush3.bf16.msra.mxu1 %v4296_v61  ;;  %1940 = vmatprep.mubr.bf16.mxu0 %v4297_v62  ;;  %v4370_v59 = vld [vmem:[%s4607_s15 + $0x2dc] ss:$36 sps:$4 sm:$0xff]  }
  0x49   : > { %2069 = vmatprep.mubr.bf16.mxu1 %v4299_v63  ;;  %4004 = vmatprep.subr.bf16.mxu1 %v4311_v1  ;;  %v4408_v61 = vld [vmem:[%s5378_s1 + $0x218] sm:$0xff]   ;;  %v4421_v62 = vld [vmem:[%s5378_s1 + $0x220] sm:$0xff]  }
  0x4a   : > { %3904 = vmatprep.subr.bf16.mxu0 %v4353_v24  ;;  %v4374_v63 = vld [vmem:[%s4607_s15 + $0x2d8] ss:$36 sps:$4 sm:$0xff]   ;;  %v4379_v1 = vld [vmem:[%s4607_s15 + $0x324] ss:$36 sps:$4 sm:$0xff]  }
  0x4b   : > { %3905 = vmatpush3.bf16.msra.mxu0 %v4354_v25  ;;  %v4415_v24 = vld [vmem:[%s4607_s15 + $0x254] ss:$36 sps:$4 sm:$0xff]   ;;  %v4419_v25 = vld [vmem:[%s4607_s15 + $0x1c] ss:$36 sps:$4 sm:$0xff]  }
  0x4c   : > { %4005 = vmatpush3.bf16.msra.mxu1 %v4312_v3  ;;  %4138 = vmatprep.subr.bf16.mxu0 %v4363_v29  ;;  %v4434_v3 = vld [vmem:[%s5378_s1 + $0x228] sm:$0xff]  }
  0x4d   : > { %4006 = vmatprep.subr.bf16.mxu1 %v4328_v9  ;;  %v4460_v9 = vld [vmem:[%s5378_s1 + $0x238] sm:$0xff]  }
  0x4f   : > { %1941 = vmatmul.mubr.bf16.gmra.mrb[20].mxu0 %v4301_v4  ;;  %2070 = vmatmul.mubr.bf16.gmra.mrb[20].mxu1 %v4302_v5  ;;  %v4383_v4 = vld [vmem:[%s4607_s15 + $0x320] ss:$36 sps:$4 sm:$0xff]   ;;  %v4384_v5 = vld [vmem:[%s4607_s15 + $0xe8] ss:$36 sps:$4 sm:$0xff]  }
  0x50   : > { %1948 = vmatprep.mubr.bf16.mxu0 %v4305_v6  ;;  %2077 = vmatprep.mubr.bf16.mxu1 %v4307_v7  ;;  %v4447_v6 = vld [vmem:[%s5378_s1 + $0x230] sm:$0xff]  }
  0x51   : > { %4007 = vmatpush3.bf16.msra.mxu1 %v4330_v11  ;;  %v4385_v7 = vld [vmem:[%s4607_s15 + $0x36c] ss:$36 sps:$4 sm:$0xff]  }
  0x52   : > { %4008 = vmatprep.subr.bf16.mxu1 %v4345_v18  ;;  %v4390_v11 = vld [vmem:[%s4607_s15 + $0x130] ss:$36 sps:$4 sm:$0xff]   ;;  %v4404_v18 = vld [vmem:[%s4607_s15 + $0x3f8] ss:$36 sps:$4 sm:$0xff]  }
  0x55   : > { %4009 = vmatpush3.bf16.msra.mxu1 %v4346_v19  ;;  %v4405_v19 = vld [vmem:[%s4607_s15 + $0x1c0] ss:$36 sps:$4 sm:$0xff]  }
  0x56   : > { %4010 = vmatprep.subr.bf16.mxu1 %v4361_v26  ;;  %v4417_v26 = vld [vmem:[%s4607_s15 + $0x18] ss:$36 sps:$4 sm:$0xff]  }
  0x57   : > { %1949 = vmatmul.mubr.bf16.gmra.mrb[24].mxu0 %v4309_v12  ;;  %2078 = vmatmul.mubr.bf16.gmra.mrb[24].mxu1 %v4310_v13  ;;  %v4394_v12 = vld [vmem:[%s4607_s15 + $0x3b4] ss:$36 sps:$4 sm:$0xff]   ;;  %v4396_v13 = vld [vmem:[%s4607_s15 + $0x17c] ss:$36 sps:$4 sm:$0xff]  }
  0x58   : > { %1956 = vmatprep.mubr.bf16.mxu0 %v4315_v14  ;;  %2085 = vmatprep.mubr.bf16.mxu1 %v4317_v17  ;;  %v4398_v14 = vld [vmem:[%s4607_s15 + $0x3b0] ss:$36 sps:$4 sm:$0xff]   ;;  %v4402_v17 = vld [vmem:[%s4607_s15 + $0x1c4] ss:$36 sps:$4 sm:$0xff]  }
  0x59   : > { %4011 = vmatpush3.bf16.msra.mxu1 %v4362_v28  ;;  %v4422_v28 = vld [vmem:[%s4607_s15 + $0x29c] ss:$36 sps:$4 sm:$0xff]  }
  0x5a   : > { %4012 = vmatprep.subr.bf16.mxu1 %v4376_v33  ;;  %v4430_v33 = vld [vmem:[%s4607_s15 + $0xac] ss:$36 sps:$4 sm:$0xff]  }
  0x5d   : > { %4013 = vmatpush3.bf16.msra.mxu1 %v4377_v35  ;;  %v4433_v35 = vld [vmem:[%s4607_s15 + $0xa8] ss:$36 sps:$4 sm:$0xff]  }
  0x5e   : > { %4014 = vmatprep.subr.bf16.mxu1 %v4391_v41  ;;  %v4443_v41 = vld [vmem:[%s4607_s15 + $0x13c] ss:$36 sps:$4 sm:$0xff]  }
  0x5f   : > { %1957 = vmatmul.mubr.bf16.gmra.mrb[28].mxu0 %v4319_v20  ;;  %2086 = vmatmul.mubr.bf16.gmra.mrb[28].mxu1 %v4320_v21  ;;  %v4409_v20 = vld [vmem:[%s4607_s15 + $0x444] ss:$36 sps:$4 sm:$0xff]   ;;  %v4411_v21 = vld [vmem:[%s4607_s15 + $0x20c] ss:$36 sps:$4 sm:$0xff]  }
  0x60   : > { %1964 = vmatprep.mubr.bf16.mxu0 %v4321_v22  ;;  %2093 = vmatprep.mubr.bf16.mxu1 %v4323_v23  ;;  %v4413_v22 = vld [vmem:[%s4607_s15 + $0x440] ss:$36 sps:$4 sm:$0xff]   ;;  %v4414_v23 = vld [vmem:[%s4607_s15 + $0x208] ss:$36 sps:$4 sm:$0xff]  }
  0x61   : > { %4015 = vmatpush3.bf16.msra.mxu1 %v4392_v42  ;;  %v4445_v42 = vld [vmem:[%s4607_s15 + $0x370] ss:$36 sps:$4 sm:$0xff]  }
  0x62   : > { %4016 = vmatprep.subr.bf16.mxu1 %v4406_v47  ;;  %v4453_v47 = vld [vmem:[%s4607_s15 + $0x180] ss:$36 sps:$4 sm:$0xff]  }
  0x65   : > { %4017 = vmatpush3.bf16.msra.mxu1 %v4407_v48  ;;  %v4454_v48 = vld [vmem:[%s4607_s15 + $0x404] ss:$36 sps:$4 sm:$0xff]  }
  0x67   : > { %1965 = vmatmul.mubr.bf16.gmra.mrb[32].mxu0 %v4325_v27  ;;  %2094 = vmatmul.mubr.bf16.gmra.mrb[32].mxu1 %v4326_v30  ;;  %v4420_v27 = vld [vmem:[%s4607_s15 + $0x250] ss:$36 sps:$4 sm:$0xff]   ;;  %v4426_v30 = vld [vmem:[%s4607_s15 + $0x298] ss:$36 sps:$4 sm:$0xff]  }
  0x68   : > { %1972 = vmatprep.mubr.bf16.mxu0 %v4331_v31  ;;  %2101 = vmatprep.mubr.bf16.mxu1 %v4333_v32  ;;  %v4427_v31 = vld [vmem:[%s4607_s15 + $0x60] ss:$36 sps:$4 sm:$0xff]  }
  0x69   : > { %v4428_v32 = vld [vmem:[%s4607_s15 + $0x2e4] ss:$36 sps:$4 sm:$0xff]  }
  0x6f   : > { %1973 = vmatmul.mubr.bf16.gmra.mrb[36].mxu0 %v4335_v34  ;;  %2102 = vmatmul.mubr.bf16.gmra.mrb[36].mxu1 %v4336_v36  ;;  %v4432_v34 = vld [vmem:[%s4607_s15 + $0x2e0] ss:$36 sps:$4 sm:$0xff]   ;;  %v4435_v36 = vld [vmem:[%s4607_s15 + $0x32c] ss:$36 sps:$4 sm:$0xff]  }
  0x70   : > { %1980 = vmatprep.mubr.bf16.mxu0 %v4339_v37  ;;  %2109 = vmatprep.mubr.bf16.mxu1 %v4341_v38  ;;  %v4437_v37 = vld [vmem:[%s4607_s15 + $0xf4] ss:$36 sps:$4 sm:$0xff]   ;;  %v4439_v38 = vld [vmem:[%s4607_s15 + $0x328] ss:$36 sps:$4 sm:$0xff]  }
  0x77   : > { %1981 = vmatmul.mubr.bf16.gmra.mrb[40].mxu0 %v4343_v39  ;;  %2110 = vmatmul.mubr.bf16.gmra.mrb[40].mxu1 %v4344_v40  ;;  %v4440_v39 = vld [vmem:[%s4607_s15 + $0xf0] ss:$36 sps:$4 sm:$0xff]  }
  0x78   : > { %1988 = vmatprep.mubr.bf16.mxu0 %v4347_v43  ;;  %2117 = vmatprep.mubr.bf16.mxu1 %v4349_v44  ;;  %v4441_v40 = vld [vmem:[%s4607_s15 + $0x374] ss:$36 sps:$4 sm:$0xff]   ;;  %v4448_v44 = vld [vmem:[%s4607_s15 + $0x3bc] ss:$36 sps:$4 sm:$0xff]  }
  0x79   : > { %v4446_v43 = vld [vmem:[%s4607_s15 + $0x138] ss:$36 sps:$4 sm:$0xff]  }
  0x7f   : > { %1989 = vmatmul.mubr.bf16.gmra.mrb[44].mxu0 %v4351_v45  ;;  %2118 = vmatmul.mubr.bf16.gmra.mrb[44].mxu1 %v4352_v46  ;;  %v4450_v45 = vld [vmem:[%s4607_s15 + $0x184] ss:$36 sps:$4 sm:$0xff]   ;;  %v4452_v46 = vld [vmem:[%s4607_s15 + $0x3b8] ss:$36 sps:$4 sm:$0xff]  }
  0x80   : > { %2125 = vmatprep.mubr.bf16.mxu1 %v4355_v49  ;;  %2222 = vmatprep.mubr.bf16.mxu0 %v4359_v50  ;;  %v4456_v49 = vld [vmem:[%s4607_s15 + $0x1cc] ss:$36 sps:$4 sm:$0xff]   ;;  %v4458_v50 = vld [vmem:[%s4607_s15 + $0x400] ss:$36 sps:$4 sm:$0xff]  }
  0x87   : > { %2126 = vmatmul.mubr.bf16.gmra.mrb[48].mxu1 %v4360_v52  ;;  %2223 = vmatmul.mubr.bf16.vlgmr.msra.gmra.mrb[48].mxu0 %v4357_v51  ;;  %v4459_v51 = vld [vmem:[%s4607_s15 + $0x1c8] ss:$36 sps:$4 sm:$0xff]  }
  0x88   : > { %4139 = vmatpush3.bf16.msra.mxu0 %v4363_v29  ;;  %2133 = vmatprep.mubr.bf16.mxu1 %v4364_v53  ;;  %v4424_v29 = vld [vmem:[%s4607_s15 + $0x64] ss:$36 sps:$4 sm:$0xff]   ;;  %v4461_v52 = vld [vmem:[%s4607_s15 + $0x44c] ss:$36 sps:$4 sm:$0xff]   ;;  %v4463_v53 = vld [vmem:[%s4607_s15 + $0x214] ss:$36 sps:$4 sm:$0xff]  }
  0x89   : > { %2230 = vmatprep.mubr.bf16.mxu0 %v4366_v54  ;;  %4140 = vmatprep.subr.bf16.mxu0 %v4378_v55 }
  0x8c   : > { %4141 = vmatpush3.bf16.msra.mxu0 %v4378_v55 }
  0x8d   : > { %4142 = vmatprep.subr.bf16.mxu0 %v4393_v56 }
  0x8f   : > { %2134 = vmatmul.mubr.bf16.gmra.mrb[52].mxu1 %v4368_v57  ;;  %2231 = vmatmul.mubr.bf16.gmra.mrb[52].mxu0 %v4369_v58  ;;  %v4465_v58 = vld [vmem:[%s4607_s15 + $0x448] ss:$36 sps:$4 sm:$0xff]  }
  0x90   : > { %2141 = vmatprep.mubr.bf16.mxu1 %v4370_v59  ;;  %2238 = vmatprep.mubr.bf16.mxu0 %v4372_v60  ;;  %v4466_v59 = vld [vmem:[%s4607_s15 + $0x210] ss:$36 sps:$4 sm:$0xff]  }
  0x91   : > { %4143 = vmatpush3.bf16.msra.mxu0 %v4393_v56 }
  0x92   : > { %4144 = vmatprep.subr.bf16.mxu0 %v4408_v61 }
  0x95   : > { %4145 = vmatpush3.bf16.msra.mxu0 %v4408_v61 }
  0x96   : > { %4146 = vmatprep.subr.bf16.mxu0 %v4421_v62 }
  0x97   : > { %2142 = vmatmul.mubr.bf16.gmra.mrb[56].mxu1 %v4374_v63  ;;  %2239 = vmatmul.mubr.bf16.gmra.mrb[56].mxu0 %v4375_v0  ;;  %v4467_v0 = vld [vmem:[%s4607_s15 + $0x25c] ss:$36 sps:$4 sm:$0xff]  }
  0x98   : > { %2149 = vmatprep.mubr.bf16.mxu1 %v4379_v1  ;;  %2246 = vmatprep.mubr.bf16.mxu0 %v4381_v2  ;;  %v4469_v1 = vld [vmem:[%s4607_s15 + $0x20] ss:$36 sps:$4 sm:$0xff]  }
  0x99   : > { %4147 = vmatpush3.bf16.msra.mxu0 %v4421_v62 }
  0x9a   : > { %4148 = vmatprep.subr.bf16.mxu0 %v4434_v3 }
  0x9d   : > { %4149 = vmatpush3.bf16.msra.mxu0 %v4434_v3 }
  0x9e   : > { %4150 = vmatprep.subr.bf16.mxu0 %v4447_v6 }
  0x9f   : > { %2150 = vmatmul.mubr.bf16.gmra.mrb[60].mxu1 %v4383_v4  ;;  %2247 = vmatmul.mubr.bf16.gmra.mrb[60].mxu0 %v4384_v5 }
  0xa0   : > { %2157 = vmatprep.mubr.bf16.mxu1 %v4385_v7  ;;  %2254 = vmatprep.mubr.bf16.mxu0 %v4387_v8 }
  0xa1   : > { %4151 = vmatpush3.bf16.msra.mxu0 %v4447_v6 }
  0xa2   : > { %4152 = vmatprep.subr.bf16.mxu0 %v4460_v9 }
  0xa5   : > { %4153 = vmatpush3.bf16.msra.mxu0 %v4460_v9 }
  0xa7   : > { %2158 = vmatmul.mubr.bf16.gmra.mrb[64].mxu1 %v4389_v10  ;;  %2255 = vmatmul.mubr.bf16.gmra.mrb[64].mxu0 %v4390_v11  ;;  %v4470_v10 = vld [vmem:[%s4607_s15 + $0x258] ss:$36 sps:$4 sm:$0xff]   ;;  %v4471_v11 = vld [vmem:[%s4607_s15 + $0x68] ss:$36 sps:$4 sm:$0xff]  }
  0xa8   : > { %2165 = vmatprep.mubr.bf16.mxu1 %v4394_v12  ;;  %2262 = vmatprep.mubr.bf16.mxu0 %v4396_v13 }
  0xaf   : > { %2166 = vmatmul.mubr.bf16.gmra.mrb[68].mxu1 %v4398_v14  ;;  %2263 = vmatmul.mubr.bf16.gmra.mrb[68].mxu0 %v4399_v15 }
  0xb0   : > { %2173 = vmatprep.mubr.bf16.mxu1 %v4400_v16  ;;  %2270 = vmatprep.mubr.bf16.mxu0 %v4402_v17  ;;  %v4472_v16 = vld [vmem:[%s4607_s15 + $0x2a4] ss:$36 sps:$4 sm:$0xff]   ;;  %v4474_v17 = vld [vmem:[%s4607_s15 + $0xb0] ss:$36 sps:$4 sm:$0xff]  }
  0xb7   : > { %2174 = vmatmul.mubr.bf16.gmra.mrb[72].mxu1 %v4404_v18  ;;  %2271 = vmatmul.mubr.bf16.gmra.mrb[72].mxu0 %v4405_v19 }
  0xb8   : > { %2181 = vmatprep.mubr.bf16.mxu1 %v4409_v20  ;;  %2278 = vmatprep.mubr.bf16.mxu0 %v4411_v21 }
  0xbf   : > { %2182 = vmatmul.mubr.bf16.gmra.mrb[76].mxu1 %v4413_v22  ;;  %2279 = vmatmul.mubr.bf16.gmra.mrb[76].mxu0 %v4414_v23 }
  0xc0   : > { %2286 = vmatprep.mubr.bf16.mxu0 %v4415_v24  ;;  %2383 = vmatprep.mubr.bf16.mxu1 %v4419_v25 }
  0xc7   : > { %2287 = vmatmul.mubr.bf16.gmra.mrb[80].mxu0 %v4420_v27  ;;  %2384 = vmatmul.mubr.bf16.vlgmr.msra.gmra.mrb[80].mxu1 %v4417_v26  ;;  %v4475_v26 = vld [vmem:[%s4607_s15 + $0x2a0] ss:$36 sps:$4 sm:$0xff]   ;;  %v4476_v27 = vld [vmem:[%s4607_s15 + $0xf8] ss:$36 sps:$4 sm:$0xff]  }
  0xc8   : > { %2294 = vmatprep.mubr.bf16.mxu0 %v4422_v28  ;;  %2391 = vmatprep.mubr.bf16.mxu1 %v4424_v29 }
  0xcf   : > { %2295 = vmatmul.mubr.bf16.gmra.mrb[84].mxu0 %v4426_v30  ;;  %2392 = vmatmul.mubr.bf16.gmra.mrb[84].mxu1 %v4427_v31 }
  0xd0   : > { %2302 = vmatprep.mubr.bf16.mxu0 %v4428_v32  ;;  %2399 = vmatprep.mubr.bf16.mxu1 %v4430_v33  ;;  %v4477_v32 = vld [vmem:[%s4607_s15 + $0x2ec] ss:$36 sps:$4 sm:$0xff]   ;;  %v4479_v33 = vld [vmem:[%s4607_s15 + $0x140] ss:$36 sps:$4 sm:$0xff]  }
  0xd7   : > { %2303 = vmatmul.mubr.bf16.gmra.mrb[88].mxu0 %v4432_v34  ;;  %2400 = vmatmul.mubr.bf16.gmra.mrb[88].mxu1 %v4433_v35 }
  0xd8   : > { %2310 = vmatprep.mubr.bf16.mxu0 %v4435_v36  ;;  %2407 = vmatprep.mubr.bf16.mxu1 %v4437_v37 }
  0xdf   : > { %2311 = vmatmul.mubr.bf16.gmra.mrb[92].mxu0 %v4439_v38  ;;  %2408 = vmatmul.mubr.bf16.gmra.mrb[92].mxu1 %v4440_v39 }
  0xe0   : > { %2318 = vmatprep.mubr.bf16.mxu0 %v4441_v40  ;;  %2415 = vmatprep.mubr.bf16.mxu1 %v4443_v41 }
  0xe7   : > { %2319 = vmatmul.mubr.bf16.gmra.mrb[96].mxu0 %v4445_v42  ;;  %2416 = vmatmul.mubr.bf16.gmra.mrb[96].mxu1 %v4446_v43  ;;  %v4480_v42 = vld [vmem:[%s4607_s15 + $0x2e8] ss:$36 sps:$4 sm:$0xff]  }
  0xe8   : > { %2326 = vmatprep.mubr.bf16.mxu0 %v4448_v44  ;;  %2423 = vmatprep.mubr.bf16.mxu1 %v4450_v45  ;;  %v4481_v43 = vld [vmem:[%s4607_s15 + $0x188] ss:$36 sps:$4 sm:$0xff]  }
  0xef   : > { %2327 = vmatmul.mubr.bf16.gmra.mrb[100].mxu0 %v4452_v46  ;;  %2424 = vmatmul.mubr.bf16.gmra.mrb[100].mxu1 %v4453_v47 }
  0xf0   : > { %2334 = vmatprep.mubr.bf16.mxu0 %v4454_v48  ;;  %2431 = vmatprep.mubr.bf16.mxu1 %v4456_v49  ;;  %v4482_v48 = vld [vmem:[%s4607_s15 + $0x334] ss:$36 sps:$4 sm:$0xff]  }
  0xf1   : > { %v4484_v49 = vld [vmem:[%s4607_s15 + $0x1d0] ss:$36 sps:$4 sm:$0xff]  }
  0xf7   : > { %2335 = vmatmul.mubr.bf16.gmra.mrb[104].mxu0 %v4458_v50  ;;  %2432 = vmatmul.mubr.bf16.gmra.mrb[104].mxu1 %v4459_v51 }
  0xf8   : > { %2342 = vmatprep.mubr.bf16.mxu0 %v4461_v52  ;;  %2439 = vmatprep.mubr.bf16.mxu1 %v4463_v53 }
  0xfa   : > { %v3754_v54 = vpop.f32.mrb[0].mxu1  ;;  %v3682_v55 = vpop.f32.mrb[0].mxu0 }
  0xfb   : > { %v3755_v56 = vpop.f32.mrb[1].mxu1  ;;  %v3683_v57 = vpop.f32.mrb[1].mxu0 }
  0xfc   : > { %v4910_v60 = vadd.f32 %v3755_v56, %v3754_v54  ;;  %v3757_v61 = vpop.f32.mrb[2].mxu1  ;;  %v4912_v62 = vadd.f32 %v3683_v57, %v3682_v55  ;;  %v3685_v63 = vpop.f32.mrb[2].mxu0 }
  0xfd   : > { %v3758_v2 = vpop.f32.mrb[3].mxu1  ;;  %v3686_v3 = vpop.f32.mrb[3].mxu0 }
  0xfe   : > { %v4916_v4 = vadd.f32 %v3758_v2, %v3757_v61  ;;  %v4918_v5 = vadd.f32 %v3686_v3, %v3685_v63  ;;  %v4487_v2 = vld [vmem:[%s4607_s15 + $0x37c] ss:$36 sps:$4 sm:$0xff]  }
  0xff   : > { %2343 = vmatmul.mubr.bf16.gmra.mrb[108].mxu0 %v4465_v58  ;;  %2440 = vmatmul.mubr.bf16.gmra.mrb[108].mxu1 %v4466_v59  ;;  %v4485_v58 = vld [vmem:[%s4607_s15 + $0x330] ss:$36 sps:$4 sm:$0xff]   ;;  %v4486_v59 = vld [vmem:[%s4607_s15 + $0x218] ss:$36 sps:$4 sm:$0xff]   ;;  %v4489_v3 = vld [vmem:[%s4607_s15 + $0x260] ss:$36 sps:$4 sm:$0xff]  }
 0x100   : > { %2447 = vmatprep.mubr.bf16.mxu1 %v4467_v0  ;;  %4154 = vmatprep.mubr.bf16.mxu0 %v4469_v1 }
 0x102   : > { %v3760_v6 = vpop.f32.mrb[4].mxu1  ;;  %v3688_v7 = vpop.f32.mrb[4].mxu0 }
 0x103   : > { %v3761_v8 = vpop.f32.mrb[5].mxu1  ;;  %v3689_v9 = vpop.f32.mrb[5].mxu0 }
 0x104   : > { %v4922_v12 = vadd.f32 %v3761_v8, %v3760_v6  ;;  %v3763_v13 = vpop.f32.mrb[6].mxu1  ;;  %v4924_v14 = vadd.f32 %v3689_v9, %v3688_v7  ;;  %v3691_v15 = vpop.f32.mrb[6].mxu0 }
 0x105   : > { %v3764_v18 = vpop.f32.mrb[7].mxu1  ;;  %v3692_v19 = vpop.f32.mrb[7].mxu0 }
 0x106   : > { %v4928_v20 = vadd.f32 %v3764_v18, %v3763_v13  ;;  %v4930_v21 = vadd.f32 %v3692_v19, %v3691_v15  ;;  %v4490_v18 = vld [vmem:[%s4607_s15 + $0x378] ss:$36 sps:$4 sm:$0xff]   ;;  %v4491_v19 = vld [vmem:[%s4607_s15 + $0x2a8] ss:$36 sps:$4 sm:$0xff]  }
 0x107   : > { %2448 = vmatmul.mubr.bf16.gmra.mrb[112].mxu1 %v4470_v10  ;;  %4155 = vmatmul.mubr.bf16.vlgmr.msra.gmra.mrb[112].mxu0 %v4471_v11 }
 0x108   : > { %2455 = vmatprep.mubr.bf16.mxu1 %v4472_v16  ;;  %4158 = vmatprep.mubr.bf16.mxu0 %v4474_v17 }
 0x10a   : > { %v3766_v22 = vpop.f32.mrb[8].mxu1  ;;  %v3694_v23 = vpop.f32.mrb[8].mxu0 }
 0x10b   : > { %v3767_v24 = vpop.f32.mrb[9].mxu1  ;;  %v3695_v25 = vpop.f32.mrb[9].mxu0 }
 0x10c   : > { %v4934_v28 = vadd.f32 %v3767_v24, %v3766_v22  ;;  %v3769_v29 = vpop.f32.mrb[10].mxu1  ;;  %v4936_v30 = vadd.f32 %v3695_v25, %v3694_v23  ;;  %v3697_v31 = vpop.f32.mrb[10].mxu0  ;;  %v4492_v25 = vld [vmem:[%s4607_s15 + $0x3c4] ss:$36 sps:$4 sm:$0xff]  }
 0x10d   : > { %v3770_v34 = vpop.f32.mrb[11].mxu1  ;;  %v3698_v35 = vpop.f32.mrb[11].mxu0 }
 0x10e   : > { %v4940_v36 = vadd.f32 %v3770_v34, %v3769_v29  ;;  %v4942_v37 = vadd.f32 %v3698_v35, %v3697_v31 }
 0x10f   : > { %2456 = vmatmul.mubr.bf16.gmra.mrb[116].mxu1 %v4475_v26  ;;  %4159 = vmatmul.mubr.bf16.gmra.mrb[116].mxu0 %v4476_v27  ;;  %v4494_v26 = vld [vmem:[%s4607_s15 + $0x2f0] ss:$36 sps:$4 sm:$0xff]  }
 0x110   : > { %2463 = vmatprep.mubr.bf16.mxu1 %v4477_v32  ;;  %4162 = vmatprep.mubr.bf16.mxu0 %v4479_v33 }
 0x112   : > { %v3772_v38 = vpop.f32.mrb[12].mxu1  ;;  %v3700_v39 = vpop.f32.mrb[12].mxu0 }
 0x113   : > { %v3773_v40 = vpop.f32.mrb[13].mxu1  ;;  %v3701_v41 = vpop.f32.mrb[13].mxu0 }
 0x114   : > { %v4946_v44 = vadd.f32 %v3773_v40, %v3772_v38  ;;  %v3775_v45 = vpop.f32.mrb[14].mxu1  ;;  %v4948_v46 = vadd.f32 %v3701_v41, %v3700_v39  ;;  %v3703_v47 = vpop.f32.mrb[14].mxu0  ;;  %v4495_v40 = vld [vmem:[%s4607_s15 + $0x3c0] ss:$36 sps:$4 sm:$0xff]   ;;  %v4496_v41 = vld [vmem:[%s4607_s15 + $0x338] ss:$36 sps:$4 sm:$0xff]  }
 0x115   : > { %v3776_v50 = vpop.f32.mrb[15].mxu1  ;;  %v3704_v51 = vpop.f32.mrb[15].mxu0 }
 0x116   : > { %v4952_v52 = vadd.f32 %v3776_v50, %v3775_v45  ;;  %v4954_v53 = vadd.f32 %v3704_v51, %v3703_v47  ;;  %v4497_v47 = vld [vmem:[%s4607_s15 + $0x40c] ss:$36 sps:$4 sm:$0xff]  }
 0x117   : > { %2464 = vmatmul.mubr.bf16.gmra.mrb[120].mxu1 %v4480_v42  ;;  %4163 = vmatmul.mubr.bf16.gmra.mrb[120].mxu0 %v4481_v43 }
 0x118   : > { %2471 = vmatprep.mubr.bf16.mxu1 %v4482_v48  ;;  %4166 = vmatprep.mubr.bf16.mxu0 %v4484_v49  ;;  %v4499_v48 = vld [vmem:[%s4607_s15 + $0x380] ss:$36 sps:$4 sm:$0xff]  }
 0x11a   : > { %v3794_v54 = vpop.f32.mrb[16].mxu1  ;;  %v3706_v55 = vpop.f32.mrb[16].mxu0 }
 0x11b   : > { %v3795_v56 = vpop.f32.mrb[17].mxu1  ;;  %v3707_v57 = vpop.f32.mrb[17].mxu0 }
 0x11c   : > { %v3796_v61 = vadd.f32 %v3795_v56, %v3794_v54  ;;  %v3797_v63 = vpop.f32.mrb[18].mxu1  ;;  %v4958_v0 = vadd.f32 %v3707_v57, %v3706_v55  ;;  %v3709_v1 = vpop.f32.mrb[18].mxu0 }
 0x11d   : > { %v3798_v6 = vpop.f32.mrb[19].mxu1  ;;  %v3710_v7 = vpop.f32.mrb[19].mxu0 }
 0x11e   : > { %v4963_v8 = vadd.f32 %v3796_v61, %v4912_v62  ;;  %v3799_v9 = vadd.f32 %v3798_v6, %v3797_v63  ;;  %v4965_v10 = vadd.f32 %v3710_v7, %v3709_v1  ;;  %v4500_v61 = vld [vmem:[%s4607_s15 + $0x408] ss:$36 sps:$4 sm:$0xff]   ;;  %v4502_v6 = vld [vmem:[%s4607_s15 + $0x454] ss:$36 sps:$4 sm:$0xff]  }
 0x11f   : > { %2472 = vmatmul.mubr.bf16.gmra.mrb[124].mxu1 %v4485_v58  ;;  %4167 = vmatmul.mubr.bf16.gmra.mrb[124].mxu0 %v4486_v59  ;;  %v4501_v63 = vld [vmem:[%s4607_s15 + $0x3c8] ss:$36 sps:$4 sm:$0xff]   ;;  %v4504_v7 = vld [vmem:[%s4607_s15 + $0x410] ss:$36 sps:$4 sm:$0xff]  }
 0x120   : > { %v4968_v11 = vadd.f32 %v3799_v9, %v4918_v5  ;;  %2479 = vmatprep.mubr.bf16.mxu1 %v4487_v2  ;;  %4170 = vmatprep.mubr.bf16.mxu0 %v4489_v3 }
 0x122   : > { %v3800_v13 = vpop.f32.mrb[20].mxu1  ;;  %v3712_v15 = vpop.f32.mrb[20].mxu0 }
 0x123   : > { %v3801_v16 = vpop.f32.mrb[21].mxu1  ;;  %v3713_v17 = vpop.f32.mrb[21].mxu0 }
 0x124   : > { %v3802_v62 = vadd.f32 %v3801_v16, %v3800_v13  ;;  %v3803_v22 = vpop.f32.mrb[22].mxu1  ;;  %v4972_v23 = vadd.f32 %v3713_v17, %v3712_v15  ;;  %v3715_v24 = vpop.f32.mrb[22].mxu0 }
 0x125   : > { %v3804_v27 = vpop.f32.mrb[23].mxu1  ;;  %v3716_v5 = vpop.f32.mrb[23].mxu0 }
 0x126   : > { %v4977_v29 = vadd.f32 %v3802_v62, %v4924_v14  ;;  %v3805_v31 = vadd.f32 %v3804_v27, %v3803_v22  ;;  %v4979_v32 = vadd.f32 %v3716_v5, %v3715_v24  ;;  %v4505_v24 = vld [vmem:[%s4607_s15 + $0x450] ss:$36 sps:$4 sm:$0xff]  }
 0x127   : > { %2480 = vmatmul.mubr.bf16.gmra.mrb[128].mxu1 %v4490_v18  ;;  %4171 = vmatmul.mubr.bf16.gmra.mrb[128].mxu0 %v4491_v19 }
 0x128   : > { %v4982_v33 = vadd.f32 %v3805_v31, %v4930_v21  ;;  %2487 = vmatprep.mubr.bf16.mxu1 %v4492_v25  ;;  %4174 = vmatprep.mubr.bf16.mxu0 %v4494_v26  ;;  %v4506_v25 = vld [vmem:[%s4607_s15 + $0x458] ss:$36 sps:$4 sm:$0xff]   ;;  %s3206_s15 = sshll.u32 %s5387_s21, 2 }
 0x129   : > { %s5228_s22 = scalar_lea.vmem %s5380_s3, %s3206_s15  ;;  %s5267_s27 = scalar_lea.vmem %s5381_s4, %s3206_s15 }
 0x12a   : > { %v3806_v34 = vpop.f32.mrb[24].mxu1  ;;  %v3718_v35 = vpop.f32.mrb[24].mxu0 }
 0x12b   : > { %v3807_v38 = vpop.f32.mrb[25].mxu1  ;;  %v3719_v39 = vpop.f32.mrb[25].mxu0 }
 0x12c   : > { %v3808_v14 = vadd.f32 %v3807_v38, %v3806_v34  ;;  %v3809_v42 = vpop.f32.mrb[26].mxu1  ;;  %v4986_v43 = vadd.f32 %v3719_v39, %v3718_v35  ;;  %v3721_v45 = vpop.f32.mrb[26].mxu0 }
 0x12d   : > { %v3810_v49 = vpop.f32.mrb[27].mxu1  ;;  %v3722_v21 = vpop.f32.mrb[27].mxu0 }
 0x12e   : > { %v4991_v50 = vadd.f32 %v3808_v14, %v4936_v30  ;;  %v3811_v51 = vadd.f32 %v3810_v49, %v3809_v42  ;;  %v4993_v54 = vadd.f32 %v3722_v21, %v3721_v45 }
 0x12f   : > { %2488 = vmatmul.mubr.bf16.gmra.mrb[132].mxu1 %v4495_v40  ;;  %4175 = vmatmul.mubr.bf16.gmra.mrb[132].mxu0 %v4496_v41 }
 0x130   : > { %v4996_v55 = vadd.f32 %v3811_v51, %v4942_v37  ;;  %2495 = vmatprep.mubr.bf16.mxu1 %v4497_v47  ;;  %4178 = vmatprep.mubr.bf16.mxu0 %v4499_v48 }
 0x132   : > { %v3812_v56 = vpop.f32.mrb[28].mxu1  ;;  %v3724_v57 = vpop.f32.mrb[28].mxu0 }
 0x133   : > { %v3813_v58 = vpop.f32.mrb[29].mxu1  ;;  %v3725_v59 = vpop.f32.mrb[29].mxu0 }
 0x134   : > { %v3814_v30 = vadd.f32 %v3813_v58, %v3812_v56  ;;  %v3815_v1 = vpop.f32.mrb[30].mxu1  ;;  %v5000_v2 = vadd.f32 %v3725_v59, %v3724_v57  ;;  %v3727_v3 = vpop.f32.mrb[30].mxu0 }
 0x135   : > { %v3816_v9 = vpop.f32.mrb[31].mxu1  ;;  %v3728_v37 = vpop.f32.mrb[31].mxu0 }
 0x136   : > { %v5005_v13 = vadd.f32 %v3814_v30, %v4948_v46  ;;  %v3817_v15 = vadd.f32 %v3816_v9, %v3815_v1  ;;  %v5007_v16 = vadd.f32 %v3728_v37, %v3727_v3 }
 0x137   : > { %2496 = vmatmul.mubr.bf16.gmra.mrb[136].mxu1 %v4500_v61  ;;  %4179 = vmatmul.mubr.bf16.gmra.mrb[136].mxu0 %v4501_v63 }
 0x138   : > { %v5010_v17 = vadd.f32 %v3817_v15, %v4954_v53  ;;  %2503 = vmatprep.mubr.bf16.mxu1 %v4502_v6  ;;  %4182 = vmatprep.mubr.bf16.mxu0 %v4504_v7 }
 0x13a   : > { %v3818_v18 = vpop.f32.mrb[32].mxu1  ;;  %v3730_v19 = vpop.f32.mrb[32].mxu0 }
 0x13b   : > { %v3819_v62 = vpop.f32.mrb[33].mxu1  ;;  %v3731_v22 = vpop.f32.mrb[33].mxu0 }
 0x13c   : > { %v3820_v26 = vadd.f32 %v3819_v62, %v3818_v18  ;;  %v3821_v27 = vpop.f32.mrb[34].mxu1  ;;  %v3732_v46 = vadd.f32 %v3731_v22, %v3730_v19  ;;  %v3733_v5 = vpop.f32.mrb[34].mxu0 }
 0x13d   : > { %v3822_v31 = vpop.f32.mrb[35].mxu1  ;;  %v3734_v34 = vpop.f32.mrb[35].mxu0 }
 0x13e   : > { %v5015_v35 = vadd.f32 %v3820_v26, %v4958_v0  ;;  %v3823_v38 = vadd.f32 %v3822_v31, %v3821_v27  ;;  %v3735_v53 = vadd.f32 %v3734_v34, %v3733_v5 }
 0x13f   : > { %2504 = vmatmul.mubr.bf16.gmra.mrb[140].mxu1 %v4505_v24  ;;  %4183 = vmatmul.mubr.bf16.gmra.mrb[140].mxu0 %v4506_v25 }
 0x140   : > { %v5018_v39 = vadd.f32 %v3823_v38, %v4965_v10 }
 0x142   : > { %v3824_v40 = vpop.f32.mrb[36].mxu1  ;;  %v3736_v41 = vpop.f32.mrb[36].mxu0 }
 0x143   : > { %v3825_v14 = vpop.f32.mrb[37].mxu1  ;;  %v3737_v42 = vpop.f32.mrb[37].mxu0 }
 0x144   : > { %v3826_v45 = vadd.f32 %v3825_v14, %v3824_v40  ;;  %v3827_v47 = vpop.f32.mrb[38].mxu1  ;;  %v3738_v48 = vadd.f32 %v3737_v42, %v3736_v41  ;;  %v3739_v49 = vpop.f32.mrb[38].mxu0 }
 0x145   : > { %v3828_v21 = vpop.f32.mrb[39].mxu1  ;;  %v3740_v51 = vpop.f32.mrb[39].mxu0 }
 0x146   : > { %v5021_v0 = vadd.f32 %v3826_v45, %v4972_v23  ;;  %v3829_v56 = vadd.f32 %v3828_v21, %v3827_v47  ;;  %v3741_v57 = vadd.f32 %v3740_v51, %v3739_v49 }
 0x148   : > { %v5024_v58 = vadd.f32 %v3829_v56, %v4979_v32 }
 0x14a   : > { %v3830_v10 = vpop.f32.mrb[40].mxu1  ;;  %v3742_v59 = vpop.f32.mrb[40].mxu0 }
 0x14b   : > { %v3831_v61 = vpop.f32.mrb[41].mxu1  ;;  %v3743_v63 = vpop.f32.mrb[41].mxu0 }
 0x14c   : > { %v3832_v30 = vadd.f32 %v3831_v61, %v3830_v10  ;;  %v3833_v1 = vpop.f32.mrb[42].mxu1  ;;  %v5026_v3 = vadd.f32 %v3743_v63, %v3742_v59  ;;  %v3745_v6 = vpop.f32.mrb[42].mxu0 }
 0x14d   : > { %v3834_v7 = vpop.f32.mrb[43].mxu1  ;;  %v3746_v9 = vpop.f32.mrb[43].mxu0 }
 0x14e   : > { %v5029_v37 = vadd.f32 %v3832_v30, %v4986_v43  ;;  %v3835_v23 = vadd.f32 %v3834_v7, %v3833_v1  ;;  %v3747_v15 = vadd.f32 %v3746_v9, %v3745_v6 }
 0x150   : > { %v5032_v18 = vadd.f32 %v3835_v23, %v4993_v54 }
 0x152   : > { %v3836_v32 = vpop.f32.mrb[44].mxu1  ;;  %v3748_v19 = vpop.f32.mrb[44].mxu0 }
 0x153   : > { %v3837_v62 = vpop.f32.mrb[45].mxu1  ;;  %v3749_v22 = vpop.f32.mrb[45].mxu0 }
 0x154   : > { %v3838_v24 = vadd.f32 %v3837_v62, %v3836_v32  ;;  %v3839_v25 = vpop.f32.mrb[46].mxu1  ;;  %v5034_v26 = vadd.f32 %v3749_v22, %v3748_v19  ;;  %v3751_v27 = vpop.f32.mrb[46].mxu0 }
 0x155   : > { %v3840_v5 = vpop.f32.mrb[47].mxu1  ;;  %v3752_v31 = vpop.f32.mrb[47].mxu0 }
 0x156   : > { %v5037_v34 = vadd.f32 %v3838_v24, %v5000_v2  ;;  %v3841_v43 = vadd.f32 %v3840_v5, %v3839_v25  ;;  %v5039_v38 = vadd.f32 %v3752_v31, %v3751_v27 }
 0x158   : > { %v5042_v54 = vadd.f32 %v3841_v43, %v5007_v16 }
 0x15a   : > { %v3842_v40 = vpop.f32.mrb[48].mxu1  ;;  %v3906_v41 = vpop.f32.mrb[48].mxu0 }
 0x15b   : > { %v3843_v14 = vpop.f32.mrb[49].mxu1  ;;  %v3907_v42 = vpop.f32.mrb[49].mxu0 }
 0x15c   : > { %v3844_v45 = vadd.f32 %v3843_v14, %v3842_v40  ;;  %v3908_v47 = vadd.f32 %v3907_v42, %v3906_v41  ;;  %v3845_v49 = vpop.f32.mrb[50].mxu1  ;;  %v3909_v21 = vpop.f32.mrb[50].mxu0 }
 0x15d   : > { %v3846_v51 = vpop.f32.mrb[51].mxu1  ;;  %v3910_v56 = vpop.f32.mrb[51].mxu0 }
 0x15e   : > { %v5044_v10 = vadd.f32 %v3844_v45, %v3732_v46  ;;  %v5047_v2 = vadd.f32 %v3908_v47, %v4963_v8  ;;  %v3847_v59 = vadd.f32 %v3846_v51, %v3845_v49  ;;  %v3911_v61 = vadd.f32 %v3910_v56, %v3909_v21 }
 0x160   : > { %v5049_v63 = vadd.f32 %v3847_v59, %v3735_v53  ;;  %v5052_v16 = vadd.f32 %v3911_v61, %v4968_v11 }
 0x162   : > { %v3848_v30 = vpop.f32.mrb[52].mxu1  ;;  %v3912_v1 = vpop.f32.mrb[52].mxu0 }
 0x163   : > { %v3849_v6 = vpop.f32.mrb[53].mxu1  ;;  %v3913_v7 = vpop.f32.mrb[53].mxu0 }
 0x164   : > { %v3850_v9 = vadd.f32 %v3849_v6, %v3848_v30  ;;  %v3914_v23 = vadd.f32 %v3913_v7, %v3912_v1  ;;  %v3851_v32 = vpop.f32.mrb[54].mxu1  ;;  %v3915_v19 = vpop.f32.mrb[54].mxu0 }
 0x165   : > { %v3852_v46 = vpop.f32.mrb[55].mxu1  ;;  %v3916_v62 = vpop.f32.mrb[55].mxu0 }
 0x166   : > { %v5054_v22 = vadd.f32 %v3850_v9, %v3738_v48  ;;  %v5057_v8 = vadd.f32 %v3914_v23, %v4977_v29  ;;  %v3853_v53 = vadd.f32 %v3852_v46, %v3851_v32  ;;  %v3917_v24 = vadd.f32 %v3916_v62, %v3915_v19 }
 0x168   : > { %v5059_v25 = vadd.f32 %v3853_v53, %v3741_v57  ;;  %v5062_v11 = vadd.f32 %v3917_v24, %v4982_v33 }
 0x16a   : > { %v3854_v27 = vpop.f32.mrb[56].mxu1  ;;  %v3918_v5 = vpop.f32.mrb[56].mxu0 }
 0x16b   : > { %v3855_v31 = vpop.f32.mrb[57].mxu1  ;;  %v3919_v43 = vpop.f32.mrb[57].mxu0 }
 0x16c   : > { %v3856_v40 = vadd.f32 %v3855_v31, %v3854_v27  ;;  %v3920_v41 = vadd.f32 %v3919_v43, %v3918_v5  ;;  %v3857_v14 = vpop.f32.mrb[58].mxu1  ;;  %v3921_v42 = vpop.f32.mrb[58].mxu0 }
 0x16d   : > { %v3858_v48 = vpop.f32.mrb[59].mxu1  ;;  %v3922_v45 = vpop.f32.mrb[59].mxu0 }
 0x16e   : > { %v5065_v29 = vadd.f32 %v3856_v40, %v5026_v3  ;;  %v5068_v47 = vadd.f32 %v3920_v41, %v4991_v50  ;;  %v3859_v57 = vadd.f32 %v3858_v48, %v3857_v14  ;;  %v3923_v49 = vadd.f32 %v3922_v45, %v3921_v42 }
 0x170   : > { %v5070_v33 = vadd.f32 %v3859_v57, %v3747_v15  ;;  %v5073_v21 = vadd.f32 %v3923_v49, %v4996_v55 }
 0x172   : > { %v3860_v51 = vpop.f32.mrb[60].mxu1  ;;  %v3924_v56 = vpop.f32.mrb[60].mxu0 }
 0x173   : > { %v3861_v59 = vpop.f32.mrb[61].mxu1  ;;  %v3925_v61 = vpop.f32.mrb[61].mxu0 }
 0x174   : > { %v3862_v30 = vadd.f32 %v3861_v59, %v3860_v51  ;;  %v3926_v1 = vadd.f32 %v3925_v61, %v3924_v56  ;;  %v3863_v6 = vpop.f32.mrb[62].mxu1  ;;  %v3927_v7 = vpop.f32.mrb[62].mxu0 }
 0x175   : > { %v3864_v3 = vpop.f32.mrb[63].mxu1  ;;  %v3928_v9 = vpop.f32.mrb[63].mxu0 }
 0x176   : > { %v5076_v50 = vadd.f32 %v3862_v30, %v5034_v26  ;;  %v5079_v23 = vadd.f32 %v3926_v1, %v5005_v13  ;;  %v3865_v15 = vadd.f32 %v3864_v3, %v3863_v6  ;;  %v3929_v32 = vadd.f32 %v3928_v9, %v3927_v7 }
 0x178   : > { %v5082_v55 = vadd.f32 %v3865_v15, %v5039_v38  ;;  %v5085_v19 = vadd.f32 %v3929_v32, %v5010_v17 }
 0x17a   : > { %v3866_v46 = vpop.f32.mrb[64].mxu1  ;;  %v3930_v62 = vpop.f32.mrb[64].mxu0 }
 0x17b   : > { %v3867_v53 = vpop.f32.mrb[65].mxu1  ;;  %v3931_v24 = vpop.f32.mrb[65].mxu0 }
 0x17c   : > { %v3868_v27 = vadd.f32 %v3867_v53, %v3866_v46  ;;  %v3932_v5 = vadd.f32 %v3931_v24, %v3930_v62  ;;  %v3869_v31 = vpop.f32.mrb[66].mxu1  ;;  %v3933_v26 = vpop.f32.mrb[66].mxu0 }
 0x17d   : > { %v3870_v43 = vpop.f32.mrb[67].mxu1  ;;  %v3934_v40 = vpop.f32.mrb[67].mxu0 }
 0x17e   : > { %v5088_v13 = vadd.f32 %v3868_v27, %v4910_v60  ;;  %v5091_v41 = vadd.f32 %v3932_v5, %v5015_v35  ;;  %v3871_v38 = vadd.f32 %v3870_v43, %v3869_v31  ;;  %v3935_v14 = vadd.f32 %v3934_v40, %v3933_v26 }
 0x180   : > { %v5094_v17 = vadd.f32 %v3871_v38, %v4916_v4  ;;  %v5097_v42 = vadd.f32 %v3935_v14, %v5018_v39 }
 0x182   : > { %v3872_v48 = vpop.f32.mrb[68].mxu1  ;;  %v3936_v45 = vpop.f32.mrb[68].mxu0 }
 0x183   : > { %v3873_v57 = vpop.f32.mrb[69].mxu1  ;;  %v3937_v49 = vpop.f32.mrb[69].mxu0 }
 0x184   : > { %v3874_v51 = vadd.f32 %v3873_v57, %v3872_v48  ;;  %v3938_v56 = vadd.f32 %v3937_v49, %v3936_v45  ;;  %v3875_v59 = vpop.f32.mrb[70].mxu1  ;;  %v3939_v60 = vpop.f32.mrb[70].mxu0 }
 0x185   : > { %v3876_v61 = vpop.f32.mrb[71].mxu1  ;;  %v3940_v30 = vpop.f32.mrb[71].mxu0 }
 0x186   : > { %v5100_v35 = vadd.f32 %v3874_v51, %v4922_v12  ;;  %v5103_v1 = vadd.f32 %v3938_v56, %v5021_v0  ;;  %v3877_v4 = vadd.f32 %v3876_v61, %v3875_v59  ;;  %v3941_v6 = vadd.f32 %v3940_v30, %v3939_v60 }
 0x188   : > { %v5106_v39 = vadd.f32 %v3877_v4, %v4928_v20  ;;  %v5109_v7 = vadd.f32 %v3941_v6, %v5024_v58 }
 0x18a   : > { %v3878_v3 = vpop.f32.mrb[72].mxu1  ;;  %v3942_v9 = vpop.f32.mrb[72].mxu0 }
 0x18b   : > { %v3879_v15 = vpop.f32.mrb[73].mxu1  ;;  %v3943_v32 = vpop.f32.mrb[73].mxu0 }
 0x18c   : > { %v3880_v46 = vadd.f32 %v3879_v15, %v3878_v3  ;;  %v3944_v62 = vadd.f32 %v3943_v32, %v3942_v9  ;;  %v3881_v53 = vpop.f32.mrb[74].mxu1  ;;  %v3945_v12 = vpop.f32.mrb[74].mxu0 }
 0x18d   : > { %v3882_v24 = vpop.f32.mrb[75].mxu1  ;;  %v3946_v27 = vpop.f32.mrb[75].mxu0 }
 0x18e   : > { %v5112_v0 = vadd.f32 %v3880_v46, %v4934_v28  ;;  %v5115_v5 = vadd.f32 %v3944_v62, %v5029_v37  ;;  %v3883_v20 = vadd.f32 %v3882_v24, %v3881_v53  ;;  %v3947_v31 = vadd.f32 %v3946_v27, %v3945_v12 }
 0x190   : > { %v5118_v58 = vadd.f32 %v3883_v20, %v4940_v36  ;;  %v5121_v26 = vadd.f32 %v3947_v31, %v5032_v18 }
 0x192   : > { %v3884_v43 = vpop.f32.mrb[76].mxu1  ;;  %v3948_v40 = vpop.f32.mrb[76].mxu0 }
 0x193   : > { %v3885_v38 = vpop.f32.mrb[77].mxu1  ;;  %v3949_v14 = vpop.f32.mrb[77].mxu0 }
 0x194   : > { %v3886_v48 = vadd.f32 %v3885_v38, %v3884_v43  ;;  %v3950_v45 = vadd.f32 %v3949_v14, %v3948_v40  ;;  %v3887_v57 = vpop.f32.mrb[78].mxu1  ;;  %v3951_v28 = vpop.f32.mrb[78].mxu0 }
 0x195   : > { %v3888_v49 = vpop.f32.mrb[79].mxu1  ;;  %v3952_v51 = vpop.f32.mrb[79].mxu0 }
 0x196   : > { %v5124_v37 = vadd.f32 %v3886_v48, %v4946_v44  ;;  %v5127_v56 = vadd.f32 %v3950_v45, %v5037_v34  ;;  %v3889_v36 = vadd.f32 %v3888_v49, %v3887_v57  ;;  %v3953_v59 = vadd.f32 %v3952_v51, %v3951_v28 }
 0x198   : > { %v5130_v18 = vadd.f32 %v3889_v36, %v4952_v52  ;;  %v5133_v60 = vadd.f32 %v3953_v59, %v5042_v54 }
 0x19a   : > { %v3954_v61 = vpop.f32.mrb[80].mxu0  ;;  %v4018_v30 = vpop.f32.mrb[80].mxu1 }
 0x19b   : > { %v3955_v4 = vpop.f32.mrb[81].mxu0  ;;  %v4019_v6 = vpop.f32.mrb[81].mxu1 }
 0x19c   : > { %v3956_v3 = vadd.f32 %v3955_v4, %v3954_v61  ;;  %v4020_v9 = vadd.f32 %v4019_v6, %v4018_v30  ;;  %v3957_v15 = vpop.f32.mrb[82].mxu0  ;;  %v4021_v44 = vpop.f32.mrb[82].mxu1 }
 0x19d   : > { %v3958_v32 = vpop.f32.mrb[83].mxu0  ;;  %v4022_v46 = vpop.f32.mrb[83].mxu1 }
 0x19e   : > { %v5136_v34 = vadd.f32 %v3956_v3, %v5044_v10  ;;  %v3959_v62 = vadd.f32 %v3958_v32, %v3957_v15  ;;  %v4023_v53 = vadd.f32 %v4022_v46, %v4021_v44  ;;  %v5139_v52 = vadd.f32 %v4020_v9, %v5047_v2 }
 0x1a0   : > { %v5142_v54 = vadd.f32 %v3959_v62, %v5049_v63  ;;  %v5145_v12 = vadd.f32 %v4023_v53, %v5052_v16 }
 0x1a2   : > { %v3960_v24 = vpop.f32.mrb[84].mxu0  ;;  %v4024_v27 = vpop.f32.mrb[84].mxu1 }
 0x1a3   : > { %v3961_v20 = vpop.f32.mrb[85].mxu0  ;;  %v4025_v31 = vpop.f32.mrb[85].mxu1 }
 0x1a4   : > { %v3962_v43 = vadd.f32 %v3961_v20, %v3960_v24  ;;  %v4026_v40 = vadd.f32 %v4025_v31, %v4024_v27  ;;  %v3963_v38 = vpop.f32.mrb[86].mxu0  ;;  %v4027_v10 = vpop.f32.mrb[86].mxu1 }
 0x1a5   : > { %v3964_v14 = vpop.f32.mrb[87].mxu0  ;;  %v4028_v48 = vpop.f32.mrb[87].mxu1 }
 0x1a6   : > { %v5148_v45 = vadd.f32 %v3962_v43, %v5054_v22  ;;  %v3965_v2 = vadd.f32 %v3964_v14, %v3963_v38  ;;  %v4029_v57 = vadd.f32 %v4028_v48, %v4027_v10  ;;  %v5151_v63 = vadd.f32 %v4026_v40, %v5057_v8 }
 0x1a8   : > { %v5154_v16 = vadd.f32 %v3965_v2, %v5059_v25  ;;  %v5157_v28 = vadd.f32 %v4029_v57, %v5062_v11 }
 0x1aa   : > { %v3966_v49 = vpop.f32.mrb[88].mxu0  ;;  %v4030_v51 = vpop.f32.mrb[88].mxu1 }
 0x1ab   : > { %v3967_v36 = vpop.f32.mrb[89].mxu0  ;;  %v4031_v59 = vpop.f32.mrb[89].mxu1 }
 0x1ac   : > { %v3968_v61 = vadd.f32 %v3967_v36, %v3966_v49  ;;  %v4032_v30 = vadd.f32 %v4031_v59, %v4030_v51  ;;  %v3969_v4 = vpop.f32.mrb[90].mxu0  ;;  %v4033_v22 = vpop.f32.mrb[90].mxu1 }
 0x1ad   : > { %v3970_v6 = vpop.f32.mrb[91].mxu0  ;;  %v4034_v3 = vpop.f32.mrb[91].mxu1 }
 0x1ae   : > { %v5160_v9 = vadd.f32 %v3968_v61, %v5065_v29  ;;  %v3971_v8 = vadd.f32 %v3970_v6, %v3969_v4  ;;  %v4035_v15 = vadd.f32 %v4034_v3, %v4033_v22  ;;  %v5163_v25 = vadd.f32 %v4032_v30, %v5068_v47 }
 0x1b0   : > { %v5166_v11 = vadd.f32 %v3971_v8, %v5070_v33  ;;  %v5169_v44 = vadd.f32 %v4035_v15, %v5073_v21 }
 0x1b2   : > { %v3972_v32 = vpop.f32.mrb[92].mxu0  ;;  %v4036_v46 = vpop.f32.mrb[92].mxu1 }
 0x1b3   : > { %v3973_v62 = vpop.f32.mrb[93].mxu0  ;;  %v4037_v53 = vpop.f32.mrb[93].mxu1 }
 0x1b4   : > { %v3974_v24 = vadd.f32 %v3973_v62, %v3972_v32  ;;  %v4038_v27 = vadd.f32 %v4037_v53, %v4036_v46  ;;  %v3975_v20 = vpop.f32.mrb[94].mxu0  ;;  %v4039_v29 = vpop.f32.mrb[94].mxu1 }
 0x1b5   : > { %v3976_v31 = vpop.f32.mrb[95].mxu0  ;;  %v4040_v43 = vpop.f32.mrb[95].mxu1 }
 0x1b6   : > { %v5172_v40 = vadd.f32 %v3974_v24, %v5076_v50  ;;  %v3977_v47 = vadd.f32 %v3976_v31, %v3975_v20  ;;  %v4041_v38 = vadd.f32 %v4040_v43, %v4039_v29  ;;  %v5175_v33 = vadd.f32 %v4038_v27, %v5079_v23 }
 0x1b8   : > { %v5178_v21 = vadd.f32 %v3977_v47, %v5082_v55  ;;  %v5181_v10 = vadd.f32 %v4041_v38, %v5085_v19 }
 0x1ba   : > { %v3978_v14 = vpop.f32.mrb[96].mxu0  ;;  %v4042_v48 = vpop.f32.mrb[96].mxu1 }
 0x1bb   : > { %v3979_v2 = vpop.f32.mrb[97].mxu0  ;;  %v4043_v57 = vpop.f32.mrb[97].mxu1 }
 0x1bc   : > { %v3980_v49 = vadd.f32 %v3979_v2, %v3978_v14  ;;  %v4044_v51 = vadd.f32 %v4043_v57, %v4042_v48  ;;  %v3981_v36 = vpop.f32.mrb[98].mxu0  ;;  %v4045_v50 = vpop.f32.mrb[98].mxu1 }
 0x1bd   : > { %v3982_v59 = vpop.f32.mrb[99].mxu0  ;;  %v4046_v61 = vpop.f32.mrb[99].mxu1 }
 0x1be   : > { %v5184_v30 = vadd.f32 %v3980_v49, %v5088_v13  ;;  %v3983_v23 = vadd.f32 %v3982_v59, %v3981_v36  ;;  %v4047_v4 = vadd.f32 %v4046_v61, %v4045_v50  ;;  %v5187_v55 = vadd.f32 %v4044_v51, %v5091_v41 }
 0x1c0   : > { %v5190_v19 = vadd.f32 %v3983_v23, %v5094_v17  ;;  %v5193_v22 = vadd.f32 %v4047_v4, %v5097_v42 }
 0x1c2   : > { %v3984_v6 = vpop.f32.mrb[100].mxu0  ;;  %v4048_v3 = vpop.f32.mrb[100].mxu1 }
 0x1c3   : > { %v3985_v8 = vpop.f32.mrb[101].mxu0  ;;  %v4049_v15 = vpop.f32.mrb[101].mxu1 }
 0x1c4   : > { %v3986_v32 = vadd.f32 %v3985_v8, %v3984_v6  ;;  %v4050_v46 = vadd.f32 %v4049_v15, %v4048_v3  ;;  %v3987_v62 = vpop.f32.mrb[102].mxu0  ;;  %v4051_v13 = vpop.f32.mrb[102].mxu1 }
 0x1c5   : > { %v3988_v53 = vpop.f32.mrb[103].mxu0  ;;  %v4052_v24 = vpop.f32.mrb[103].mxu1 }
 0x1c6   : > { %v5196_v27 = vadd.f32 %v3986_v32, %v5100_v35  ;;  %v3989_v41 = vadd.f32 %v3988_v53, %v3987_v62  ;;  %v4053_v20 = vadd.f32 %v4052_v24, %v4051_v13  ;;  %v5199_v17 = vadd.f32 %v4050_v46, %v5103_v1  ;;  %v3493_v53 = vld [vmem:[%s5228_s22] sm:$0xff]  }
 0x1c8   : > { %v5202_v42 = vadd.f32 %v3989_v41, %v5106_v39  ;;  %v5205_v29 = vadd.f32 %v4053_v20, %v5109_v7  ;;  %v5244_v20 = vld [vmem:[%s5379_s2] ss:$0 sm:$0xff] }
 0x1ca   : > { %v3990_v31 = vpop.f32.mrb[104].mxu0  ;;  %v4054_v43 = vpop.f32.mrb[104].mxu1 }
 0x1cb   : > { %v3991_v47 = vpop.f32.mrb[105].mxu0  ;;  %v4055_v38 = vpop.f32.mrb[105].mxu1 }
 0x1cc   : > { %v3992_v14 = vadd.f32 %v3991_v47, %v3990_v31  ;;  %v4056_v48 = vadd.f32 %v4055_v38, %v4054_v43  ;;  %v3993_v35 = vpop.f32.mrb[106].mxu0  ;;  %v4057_v2 = vpop.f32.mrb[106].mxu1 }
 0x1cd   : > { %v3994_v57 = vpop.f32.mrb[107].mxu0  ;;  %v4058_v49 = vpop.f32.mrb[107].mxu1 }
 0x1ce   : > { %v5208_v1 = vadd.f32 %v3992_v14, %v5112_v0  ;;  %v3995_v51 = vadd.f32 %v3994_v57, %v3993_v35  ;;  %v4059_v39 = vadd.f32 %v4058_v49, %v4057_v2  ;;  %v5211_v36 = vadd.f32 %v4056_v48, %v5115_v5 }
 0x1d0   : > { %v5214_v7 = vadd.f32 %v3995_v51, %v5118_v58  ;;  %v5217_v50 = vadd.f32 %v4059_v39, %v5121_v26 }
 0x1d2   : > { %v3996_v59 = vpop.f32.mrb[108].mxu0  ;;  %v4060_v61 = vpop.f32.mrb[108].mxu1 }
 0x1d3   : > { %v3997_v23 = vpop.f32.mrb[109].mxu0  ;;  %v4061_v4 = vpop.f32.mrb[109].mxu1 }
 0x1d4   : > { %v3998_v6 = vadd.f32 %v3997_v23, %v3996_v59  ;;  %v4062_v0 = vadd.f32 %v4061_v4, %v4060_v61  ;;  %v3999_v3 = vpop.f32.mrb[110].mxu0  ;;  %v4063_v8 = vpop.f32.mrb[110].mxu1 }
 0x1d5   : > { %v4000_v15 = vpop.f32.mrb[111].mxu0  ;;  %v4064_v32 = vpop.f32.mrb[111].mxu1 }
 0x1d6   : > { %v5221_v5 = vadd.f32 %v3998_v6, %v5124_v37  ;;  %v4001_v58 = vadd.f32 %v4000_v15, %v3999_v3  ;;  %v4065_v46 = vadd.f32 %v4064_v32, %v4063_v8  ;;  %v5231_v26 = vadd.f32 %v4062_v0, %v5127_v56  ;;  %v3636_v37 = vld [vmem:[%s5228_s22 + $0x8] sm:$0xff]   ;;  %v3638_v6 = vld [vmem:[%s5228_s22 + $0x18] sm:$0xff]   ;;  %v3637_v8 = vld [vmem:[%s5228_s22 + $0x10] sm:$0xff]  }
 0x1d7   : > { %v3498_v47 = vunpack.c.l.bf16 %v3636_v37  ;;  %v3499_v57 = vunpack.c.h.bf16 %v3636_v37  ;;  %v3506_v37 = vunpack.c.l.bf16 %v3638_v6 }
 0x1d8   : > { %v5234_v62 = vadd.f32 %v4001_v58, %v5130_v18  ;;  %v5237_v13 = vadd.f32 %v4065_v46, %v5133_v60  ;;  %v3494_v60 = vunpack.c.l.bf16 %v3493_v53 }
 0x1da   : > { %v4066_v24 = vpop.f32.mrb[112].mxu1  ;;  %v4156_v41 = vpop.f32.mrb[112].mxu0 }
 0x1db   : > { %v2555_v31 = vadd.f32 %v4156_v41, %v5151_v63  ;;  %v4067_v43 = vpop.f32.mrb[113].mxu1  ;;  %v2546_v56 = vpop.f32.mrb[113].mxu0  ;;  %v3495_v63 = vunpack.c.h.bf16 %v3493_v53 }
 0x1dc   : > { %v4068_v38 = vadd.f32 %v4067_v43, %v4066_v24  ;;  %v2547_v18 = vadd.f32 %v2546_v56, %v5139_v52  ;;  %v4069_v14 = vpop.f32.mrb[114].mxu1  ;;  %v4157_v48 = vpop.f32.mrb[114].mxu0  ;;  %v3502_v43 = vunpack.c.l.bf16 %v3637_v8 }
 0x1dd   : > { %v2781_v35 = vadd.f32 %v5244_v20, %v2555_v31  ;;  %v2558_v2 = vadd.f32 %v4157_v48, %v5157_v28  ;;  %v4070_v49 = vpop.f32.mrb[115].mxu1  ;;  %v2549_v51 = vpop.f32.mrb[115].mxu0  ;;  %v3503_v48 = vunpack.c.h.bf16 %v3637_v8 }
 0x1de   : > { %v2779_v39 = vadd.f32 %v5244_v20, %v2547_v18  ;;  %v4071_v59 = vadd.f32 %v4070_v49, %v4069_v14  ;;  %v2550_v61 = vadd.f32 %v2549_v51, %v5145_v12  ;;  %v5253_v52 = vadd.f32 %v4068_v38, %v5136_v34 }
 0x1df   : > { %v2782_v23 = vadd.f32 %v5244_v20, %v2558_v2  ;;  %v2877_v0 = vadd.f32 %v3498_v47, %v2781_v35 }
 0x1e0   : > { %v2780_v4 = vadd.f32 %v5244_v20, %v2550_v61  ;;  %v5259_v28 = vadd.f32 %v4071_v59, %v5142_v54  ;;  %v2875_v15 = vadd.f32 %v3494_v60, %v2779_v39  ;;  %v3507_v60 = vunpack.c.h.bf16 %v3638_v6  ;;  %v3639_v61 = vld [vmem:[%s5228_s22 + $0x20] sm:$0xff]  }
 0x1e1   : > { %v2878_v3 = vadd.f32 %v3499_v57, %v2782_v23 }
 0x1e2   : > { %v2876_v34 = vadd.f32 %v3495_v63, %v2780_v4  ;;  %v4072_v12 = vpop.f32.mrb[116].mxu1  ;;  %v4160_v32 = vpop.f32.mrb[116].mxu0  ;;  %v3640_v63 = vld [vmem:[%s5228_s22 + $0x28] sm:$0xff]  }
 0x1e3   : > { %v3564_v58 = vpack.c.bf16 %v2878_v3, %v2877_v0  ;;  %v2571_v46 = vadd.f32 %v4160_v32, %v5175_v33  ;;  %v4073_v54 = vpop.f32.mrb[117].mxu1  ;;  %v2562_v53 = vpop.f32.mrb[117].mxu0  ;;  %v3514_v3 = vunpack.c.l.bf16 %v3640_v63  ;;  %v3510_v32 = vunpack.c.l.bf16 %v3639_v61 }
 0x1e4   : > { %v3559_v24 = vpack.c.bf16 %v2876_v34, %v2875_v15  ;;  %v4074_v41 = vadd.f32 %v4073_v54, %v4072_v12  ;;  %v2563_v31 = vadd.f32 %v2562_v53, %v5163_v25  ;;  %v4075_v56 = vpop.f32.mrb[118].mxu1  ;;  %v4161_v47 = vpop.f32.mrb[118].mxu0  ;;  %v3515_v53 = vunpack.c.h.bf16 %v3640_v63 }
 0x1e5   : > { %3651 = vst [vmem:[%s5267_s27 + $0x8] sm:$0xff] %v3564_v58   ;;  %v2785_v38 = vadd.f32 %v5244_v20, %v2571_v46  ;;  %v2574_v18 = vadd.f32 %v4161_v47, %v5181_v10  ;;  %v4076_v33 = vpop.f32.mrb[119].mxu1  ;;  %v2565_v14 = vpop.f32.mrb[119].mxu0 }
 0x1e6   : > { %3560 = vst [vmem:[%s5267_s27] sm:$0xff] %v3559_v24   ;;  %v2783_v35 = vadd.f32 %v5244_v20, %v2563_v31  ;;  %v4077_v2 = vadd.f32 %v4076_v33, %v4075_v56  ;;  %v2566_v25 = vadd.f32 %v2565_v14, %v5169_v44  ;;  %v5278_v57 = vadd.f32 %v4074_v41, %v5148_v45  ;;  %v3641_v14 = vld [vmem:[%s5228_s22 + $0x30] sm:$0xff]  }
 0x1e7   : > { %v2786_v49 = vadd.f32 %v5244_v20, %v2574_v18  ;;  %v2881_v39 = vadd.f32 %v3506_v37, %v2785_v38  ;;  %v3511_v41 = vunpack.c.h.bf16 %v3639_v61  ;;  %v3642_v18 = vld [vmem:[%s5228_s22 + $0x38] sm:$0xff]   ;;  %v3518_v61 = vunpack.c.l.bf16 %v3641_v14 }
 0x1e8   : > { %v2784_v51 = vadd.f32 %v5244_v20, %v2566_v25  ;;  %v5284_v10 = vadd.f32 %v4077_v2, %v5154_v16  ;;  %v2879_v23 = vadd.f32 %v3502_v43, %v2783_v35 }
 0x1e9   : > { %v2882_v59 = vadd.f32 %v3507_v60, %v2786_v49  ;;  %v3522_v49 = vunpack.c.l.bf16 %v3642_v18 }
 0x1ea   : > { %v2880_v4 = vadd.f32 %v3503_v48, %v2784_v51  ;;  %v4078_v6 = vpop.f32.mrb[120].mxu1  ;;  %v4164_v0 = vpop.f32.mrb[120].mxu0 }
 0x1eb   : > { %v3574_v44 = vpack.c.bf16 %v2882_v59, %v2881_v39  ;;  %v2587_v45 = vadd.f32 %v4164_v0, %v5199_v17  ;;  %v4079_v8 = vpop.f32.mrb[121].mxu1  ;;  %v2578_v15 = vpop.f32.mrb[121].mxu0 }
 0x1ec   : > { %v3569_v34 = vpack.c.bf16 %v2880_v4, %v2879_v23  ;;  %v4080_v12 = vadd.f32 %v4079_v8, %v4078_v6  ;;  %v2579_v16 = vadd.f32 %v2578_v15, %v5187_v55  ;;  %v4081_v58 = vpop.f32.mrb[122].mxu1  ;;  %v4165_v46 = vpop.f32.mrb[122].mxu0 }
 0x1ed   : > { %3653 = vst [vmem:[%s5267_s27 + $0x18] sm:$0xff] %v3574_v44   ;;  %v2789_v37 = vadd.f32 %v5244_v20, %v2587_v45  ;;  %v2590_v54 = vadd.f32 %v4165_v46, %v5205_v29  ;;  %v4082_v17 = vpop.f32.mrb[123].mxu1  ;;  %v2581_v24 = vpop.f32.mrb[123].mxu0  ;;  %v3523_v44 = vunpack.c.h.bf16 %v3642_v18 }
 0x1ee   : > { %3652 = vst [vmem:[%s5267_s27 + $0x10] sm:$0xff] %v3569_v34   ;;  %v2787_v31 = vadd.f32 %v5244_v20, %v2579_v16  ;;  %v4083_v43 = vadd.f32 %v4082_v17, %v4081_v58  ;;  %v2582_v55 = vadd.f32 %v2581_v24, %v5193_v22  ;;  %v5296_v56 = vadd.f32 %v4080_v12, %v5160_v9 }
 0x1ef   : > { %v2790_v47 = vadd.f32 %v5244_v20, %v2590_v54  ;;  %v2885_v60 = vadd.f32 %v3514_v3, %v2789_v37  ;;  %v3519_v3 = vunpack.c.h.bf16 %v3641_v14  ;;  %v3643_v37 = vld [vmem:[%s5228_s22 + $0x40] sm:$0xff]  }
 0x1f0   : > { %v2788_v38 = vadd.f32 %v5244_v20, %v2582_v55  ;;  %v5302_v29 = vadd.f32 %v4083_v43, %v5166_v11  ;;  %v2883_v48 = vadd.f32 %v3510_v32, %v2787_v31  ;;  %v3644_v32 = vld [vmem:[%s5228_s22 + $0x48] sm:$0xff]  }
 0x1f1   : > { %v2886_v33 = vadd.f32 %v3515_v53, %v2790_v47  ;;  %v3530_v31 = vunpack.c.l.bf16 %v3644_v32 }
 0x1f2   : > { %v2884_v35 = vadd.f32 %v3511_v41, %v2788_v38  ;;  %v4084_v2 = vpop.f32.mrb[124].mxu1  ;;  %v4168_v25 = vpop.f32.mrb[124].mxu0 }
 0x1f3   : > { %v3584_v22 = vpack.c.bf16 %v2886_v33, %v2885_v60  ;;  %v2603_v9 = vadd.f32 %v4168_v25, %v5231_v26  ;;  %v4085_v51 = vpop.f32.mrb[125].mxu1  ;;  %v2594_v63 = vpop.f32.mrb[125].mxu0 }
 0x1f4   : > { %v3579_v39 = vpack.c.bf16 %v2884_v35, %v2883_v48  ;;  %v4086_v59 = vadd.f32 %v4085_v51, %v4084_v2  ;;  %v2595_v11 = vadd.f32 %v2594_v63, %v5211_v36  ;;  %v4087_v23 = vpop.f32.mrb[126].mxu1  ;;  %v4169_v4 = vpop.f32.mrb[126].mxu0  ;;  %v3531_v48 = vunpack.c.h.bf16 %v3644_v32  ;;  %v3646_v63 = vld [vmem:[%s5228_s22 + $0x58] sm:$0xff]  }
 0x1f5   : > { %3655 = vst [vmem:[%s5267_s27 + $0x28] sm:$0xff] %v3584_v22   ;;  %v2793_v6 = vadd.f32 %v5244_v20, %v2603_v9  ;;  %v2606_v0 = vadd.f32 %v4169_v4, %v5237_v13  ;;  %v4088_v26 = vpop.f32.mrb[127].mxu1  ;;  %v2597_v45 = vpop.f32.mrb[127].mxu0  ;;  %v3527_v2 = vunpack.c.h.bf16 %v3643_v37  ;;  %v3539_v32 = vunpack.c.h.bf16 %v3646_v63 }
 0x1f6   : > { %3654 = vst [vmem:[%s5267_s27 + $0x20] sm:$0xff] %v3579_v39   ;;  %v2791_v8 = vadd.f32 %v5244_v20, %v2595_v11  ;;  %v4089_v15 = vadd.f32 %v4088_v26, %v4087_v23  ;;  %v2598_v36 = vadd.f32 %v2597_v45, %v5217_v50  ;;  %v2474_v34 = vadd.f32 %v4086_v59, %v5172_v40  ;;  %v3645_v11 = vld [vmem:[%s5228_s22 + $0x50] sm:$0xff]  }
 0x1f7   : > { %v2794_v12 = vadd.f32 %v5244_v20, %v2606_v0  ;;  %v2889_v58 = vadd.f32 %v3522_v49, %v2793_v6 }
 0x1f8   : > { %v2792_v16 = vadd.f32 %v5244_v20, %v2598_v36  ;;  %v2477_v13 = vadd.f32 %v4089_v15, %v5178_v21  ;;  %v2887_v54 = vadd.f32 %v3518_v61, %v2791_v8  ;;  %v3526_v21 = vunpack.c.l.bf16 %v3643_v37 }
 0x1f9   : > { %v2890_v46 = vadd.f32 %v3523_v44, %v2794_v12  ;;  %v3538_v44 = vunpack.c.l.bf16 %v3646_v63 }
 0x1fa   : > { %v2888_v53 = vadd.f32 %v3519_v3, %v2792_v16  ;;  %v4090_v17 = vpop.f32.mrb[128].mxu1  ;;  %v4172_v24 = vpop.f32.mrb[128].mxu0 }
 0x1fb   : > { %v3594_v41 = vpack.c.bf16 %v2890_v46, %v2889_v58  ;;  %v2619_v50 = vadd.f32 %v4172_v24, %v5278_v57  ;;  %v4091_v40 = vpop.f32.mrb[129].mxu1  ;;  %v2610_v43 = vpop.f32.mrb[129].mxu0  ;;  %v3535_v46 = vunpack.c.h.bf16 %v3645_v11 }
 0x1fc   : > { %v3589_v55 = vpack.c.bf16 %v2888_v53, %v2887_v54  ;;  %v4092_v47 = vadd.f32 %v4091_v40, %v4090_v17  ;;  %v2611_v38 = vadd.f32 %v2610_v43, %v5253_v52  ;;  %v4093_v18 = vpop.f32.mrb[130].mxu1  ;;  %v4173_v60 = vpop.f32.mrb[130].mxu0  ;;  %v3647_v40 = vld [vmem:[%s5228_s22 + $0x60] sm:$0xff]  }
 0x1fd   : > { %3657 = vst [vmem:[%s5267_s27 + $0x38] sm:$0xff] %v3594_v41   ;;  %v2797_v33 = vadd.f32 %v5244_v20, %v2619_v50  ;;  %v2622_v14 = vadd.f32 %v4173_v60, %v5284_v10  ;;  %v4094_v57 = vpop.f32.mrb[131].mxu1  ;;  %v2613_v35 = vpop.f32.mrb[131].mxu0  ;;  %v3648_v41 = vld [vmem:[%s5228_s22 + $0x68] sm:$0xff]  }
 0x1fe   : > { %3656 = vst [vmem:[%s5267_s27 + $0x30] sm:$0xff] %v3589_v55   ;;  %v2795_v25 = vadd.f32 %v5244_v20, %v2611_v38  ;;  %v4095_v22 = vadd.f32 %v4094_v57, %v4093_v18  ;;  %v2614_v52 = vadd.f32 %v2613_v35, %v5259_v28  ;;  %v2482_v9 = vadd.f32 %v4092_v47, %v5184_v30 }
 0x1ff   : > { %v2798_v49 = vadd.f32 %v5244_v20, %v2622_v14  ;;  %v2893_v39 = vadd.f32 %v3530_v31, %v2797_v33  ;;  %v3542_v57 = vunpack.c.l.bf16 %v3647_v40 }
 0x200   : > { %v2796_v51 = vadd.f32 %v5244_v20, %v2614_v52  ;;  %v5332_v10 = vadd.f32 %v4095_v22, %v5190_v19  ;;  %v2891_v61 = vadd.f32 %v3526_v21, %v2795_v25  ;;  %v3534_v19 = vunpack.c.l.bf16 %v3645_v11 }
 0x201   : > { %v2894_v59 = vadd.f32 %v3531_v48, %v2798_v49  ;;  %v3547_v22 = vunpack.c.h.bf16 %v3648_v41 }
 0x202   : > { %v2892_v23 = vadd.f32 %v3527_v2, %v2796_v51  ;;  %v4096_v4 = vpop.f32.mrb[132].mxu1  ;;  %v4176_v6 = vpop.f32.mrb[132].mxu0  ;;  %v3543_v51 = vunpack.c.h.bf16 %v3647_v40 }
 0x203   : > { %v3604_v0 = vpack.c.bf16 %v2894_v59, %v2893_v39  ;;  %v2635_v28 = vadd.f32 %v4176_v6, %v2474_v34  ;;  %v4097_v30 = vpop.f32.mrb[133].mxu1  ;;  %v2626_v26 = vpop.f32.mrb[133].mxu0 }
 0x204   : > { %v3599_v45 = vpack.c.bf16 %v2892_v23, %v2891_v61  ;;  %v4098_v3 = vadd.f32 %v4097_v30, %v4096_v4  ;;  %v2627_v8 = vadd.f32 %v2626_v26, %v5296_v56  ;;  %v4099_v15 = vpop.f32.mrb[134].mxu1  ;;  %v4177_v36 = vpop.f32.mrb[134].mxu0  ;;  %v3649_v26 = vld [vmem:[%s5228_s22 + $0x70] sm:$0xff]  }
 0x205   : > { %3659 = vst [vmem:[%s5267_s27 + $0x48] sm:$0xff] %v3604_v0   ;;  %v2801_v12 = vadd.f32 %v5244_v20, %v2635_v28  ;;  %v2638_v16 = vadd.f32 %v4177_v36, %v2477_v13  ;;  %v4100_v58 = vpop.f32.mrb[135].mxu1  ;;  %v2629_v34 = vpop.f32.mrb[135].mxu0 }
 0x206   : > { %3658 = vst [vmem:[%s5267_s27 + $0x40] sm:$0xff] %v3599_v45   ;;  %v2799_v37 = vadd.f32 %v5244_v20, %v2627_v8  ;;  %v4101_v54 = vadd.f32 %v4100_v58, %v4099_v15  ;;  %v2630_v53 = vadd.f32 %v2629_v34, %v5302_v29  ;;  %v2490_v56 = vadd.f32 %v4098_v3, %v5196_v27  ;;  %v3650_v34 = vld [vmem:[%s5228_s22 + $0x78] sm:$0xff]  }
 0x207   : > { %v2802_v17 = vadd.f32 %v5244_v20, %v2638_v16  ;;  %v2897_v50 = vadd.f32 %v3538_v44, %v2801_v12  ;;  %v3546_v29 = vunpack.c.l.bf16 %v3648_v41  ;;  %v3555_v41 = vunpack.c.h.bf16 %v3650_v34 }
 0x208   : > { %v2800_v24 = vadd.f32 %v5244_v20, %v2630_v53  ;;  %v2493_v13 = vadd.f32 %v4101_v54, %v5202_v42  ;;  %v2895_v43 = vadd.f32 %v3534_v19, %v2799_v37 }
 0x209   : > { %v2898_v31 = vadd.f32 %v3539_v32, %v2802_v17  ;;  %v3551_v32 = vunpack.c.h.bf16 %v3649_v26 }
 0x20a   : > { %v2896_v55 = vadd.f32 %v3535_v46, %v2800_v24  ;;  %v4102_v47 = vpop.f32.mrb[136].mxu1  ;;  %v4180_v38 = vpop.f32.mrb[136].mxu0  ;;  %v3554_v24 = vunpack.c.l.bf16 %v3650_v34 }
 0x20b   : > { %v3614_v21 = vpack.c.bf16 %v2898_v31, %v2897_v50  ;;  %v2651_v18 = vadd.f32 %v4180_v38, %v2490_v56  ;;  %v4103_v27 = vpop.f32.mrb[137].mxu1  ;;  %v2642_v60 = vpop.f32.mrb[137].mxu0 }
 0x20c   : > { %v3609_v33 = vpack.c.bf16 %v2896_v55, %v2895_v43  ;;  %v4104_v14 = vadd.f32 %v4103_v27, %v4102_v47  ;;  %v2643_v48 = vadd.f32 %v2642_v60, %v2482_v9  ;;  %v4105_v35 = vpop.f32.mrb[138].mxu1  ;;  %v4181_v42 = vpop.f32.mrb[138].mxu0 }
 0x20d   : > { %3661 = vst [vmem:[%s5267_s27 + $0x58] sm:$0xff] %v3614_v21   ;;  %v2805_v2 = vadd.f32 %v5244_v20, %v2651_v18  ;;  %v2654_v25 = vadd.f32 %v4181_v42, %v2493_v13  ;;  %v4106_v52 = vpop.f32.mrb[139].mxu1  ;;  %v2645_v49 = vpop.f32.mrb[139].mxu0 }
 0x20e   : > { %3660 = vst [vmem:[%s5267_s27 + $0x50] sm:$0xff] %v3609_v33   ;;  %v2803_v63 = vadd.f32 %v5244_v20, %v2643_v48  ;;  %v4107_v39 = vadd.f32 %v4106_v52, %v4105_v35  ;;  %v2646_v59 = vadd.f32 %v2645_v49, %v5332_v10  ;;  %v2498_v9 = vadd.f32 %v4104_v14, %v5208_v1 }
 0x20f   : > { %v2806_v11 = vadd.f32 %v5244_v20, %v2654_v25  ;;  %v2901_v4 = vadd.f32 %v3546_v29, %v2805_v2 }
 0x210   : > { %v2804_v61 = vadd.f32 %v5244_v20, %v2646_v59  ;;  %v2501_v23 = vadd.f32 %v4107_v39, %v5214_v7  ;;  %v2899_v0 = vadd.f32 %v3542_v57, %v2803_v63  ;;  %v3550_v7 = vunpack.c.l.bf16 %v3649_v26 }
 0x211   : > { %v2902_v6 = vadd.f32 %v3547_v22, %v2806_v11 }
 0x212   : > { %v2900_v28 = vadd.f32 %v3543_v51, %v2804_v61  ;;  %v4108_v44 = vpop.f32.mrb[140].mxu1  ;;  %v4184_v30 = vpop.f32.mrb[140].mxu0 }
 0x213   : > { %v3624_v45 = vpack.c.bf16 %v2902_v6, %v2901_v4  ;;  %v4109_v10 = vpop.f32.mrb[141].mxu1  ;;  %v2658_v3 = vpop.f32.mrb[141].mxu0 }
 0x214   : > { %v3619_v1 = vpack.c.bf16 %v2900_v28, %v2899_v0  ;;  %v4110_v8 = vadd.f32 %v4109_v10, %v4108_v44  ;;  %v2659_v19 = vadd.f32 %v2658_v3, %v2498_v9  ;;  %v4111_v15 = vpop.f32.mrb[142].mxu1  ;;  %v4185_v36 = vpop.f32.mrb[142].mxu0 }
 0x215   : > { %3663 = vst [vmem:[%s5267_s27 + $0x68] sm:$0xff] %v3624_v45   ;;  %v4112_v12 = vpop.f32.mrb[143].mxu1  ;;  %v2661_v16 = vpop.f32.mrb[143].mxu0 }
 0x216   : > { %3662 = vst [vmem:[%s5267_s27 + $0x60] sm:$0xff] %v3619_v1   ;;  %v2506_v58 = vadd.f32 %v4110_v8, %v5221_v5  ;;  %v2807_v46 = vadd.f32 %v5244_v20, %v2659_v19  ;;  %v4113_v37 = vadd.f32 %v4112_v12, %v4111_v15  ;;  %v2662_v54 = vadd.f32 %v2661_v16, %v2501_v23 }
 0x218   : > { %v2667_v53 = vadd.f32 %v4184_v30, %v2506_v58  ;;  %v2509_v56 = vadd.f32 %v4113_v37, %v5234_v62  ;;  %v2808_v17 = vadd.f32 %v5244_v20, %v2662_v54  ;;  %v2903_v50 = vadd.f32 %v3550_v7, %v2807_v46 }
 0x21a   : > { %v2809_v13 = vadd.f32 %v5244_v20, %v2667_v53  ;;  %v2670_v31 = vadd.f32 %v4185_v36, %v2509_v56  ;;  %v2904_v40 = vadd.f32 %v3551_v32, %v2808_v17 }
 0x21c   : > { %v2810_v5 = vadd.f32 %v5244_v20, %v2670_v31  ;;  %v3629_v43 = vpack.c.bf16 %v2904_v40, %v2903_v50  ;;  %v2905_v55 = vadd.f32 %v3554_v24, %v2809_v13 }
 0x21e   : > { %v2906_v47 = vadd.f32 %v3555_v41, %v2810_v5  ;;  %3664 = vst [vmem:[%s5267_s27 + $0x70] sm:$0xff] %v3629_v43  }
 0x220   : > { %v3634_v38 = vpack.c.bf16 %v2906_v47, %v2905_v55 }
 0x222   : > { %3665 = vst [vmem:[%s5267_s27 + $0x78] sm:$0xff] %v3634_v38  }
 0x223 PF: > { %s14_s17 = sadd.s32 1, %s4529_s17   ;;  %s5382_s15 = smov %s4525_s16 }
 0x224   : > { %p11_p5 = scmp.ge.s32.totalorder %s14_s17, 4   ;;  %s5383_s16 = smov %s5385_s18 }
 0x226   :  { %13 = sbr.rel (!%p11_p5) target bundleno = 2 (0x2), region = 83 }

// kernel: mowe_forward.32
= control target key start
LH: loop header
LB: loop body
LE: loop exit
PB: predicated region body
PF: predicated region fallthrough
CT: control target
= control target key end

     0   :  { %vm22_vm0 = vcmask 261120   ;;  %v129_v0 = vmov 0.0   ;;  %vm130_vm1 = vmmov 0   ;;  %vm104_vm2 = vcmask 257024   ;;  %s177_s1 = inlined_call_operand.vmem [shape: bf16[32,32], index: 1, kind: input, shape index: {}]   ;;  %s178_s0 = inlined_call_operand.vmem [shape: bf16[8,32], index: 0, kind: input, shape index: {}]   ;;  %s179_s3 = inlined_call_operand.vmem [shape: bf16[8,32], index: 3, kind: input, shape index: {}]   ;;  %s180_s2 = inlined_call_operand.vmem [shape: f32[1,32], index: 2, kind: input, shape index: {}]   ;;  %s181_s4 = inlined_call_operand.vmem [shape: bf16[8,32], index: 4, kind: output, shape index: {}]  }
   0x1   :  { %117 = vmatprep.subr.bf16.mxu0 %v129_v0  ;;  %v127_v1 = vld [vmem:[%s177_s1] sm:$0xff]   ;;  %121 = vmatprep.mubr.msk.bf16.mxu0 %vm130_vm1, %v129_v0  ;;  %23 = vst.msk [vmem:[#allocation2] sm:$0xff] %vm22_vm0, %v129_v0  ;;  %v128_v2 = vld [vmem:[%s177_s1 + $0x8] sm:$0xff]  }
   0x2   :  { %118 = vmatpush3.bf16.msra.mxu0 %v127_v1  ;;  %v24_v3 = vld [vmem:[%s178_s0] sm:$0xf] }
   0x3   :  { %119 = vmatprep.subr.bf16.mxu0 %v129_v0  ;;  %v100_v10 = vld [vmem:[%s179_s3] sm:$0xf] }
   0x4   :  { %v113_v11 = vld [vmem:[%s180_s2] ss:$0 sm:$0xff]  ;;  %v101_v12 = vunpack.c.l.bf16 %v100_v10 }
   0x6   :  { %120 = vmatpush3.bf16.msra.mxu0 %v128_v2 }
   0x8   :  { %v25_v4 = vld [vmem:[#allocation2] sm:$0xff] }
   0x9   :  { %122 = vmatmul.mubr.msk.bf16.vlgmr.msra.gmra.mrb[0].mxu0 %vm22_vm0, %v24_v3 }
  0xdc   :  { %v80_v5 = vpop.f32.mrb[0].mxu0 }
  0xdd   :  { %v86_v6 = vadd.f32 %v80_v5, %v25_v4  ;;  %v123_v7 = vpop.f32.mrb[1].mxu0 }
  0xde   :  { %v83_v8 = vpop.f32.mrb[2].mxu0 }
  0xdf   :  { %87 = vst.msk [vmem:[#allocation2] sm:$0xff] %vm22_vm0, %v86_v6  ;;  %v124_v9 = vpop.f32.mrb[3].mxu0 }
  0xe6   :  { %v91_v13 = vld [vmem:[#allocation2] sm:$0xff] }
  0xe7   :  { %v99_v14 = vadd.f32 %v113_v11, %v91_v13 }
  0xe9   :  { %v102_v15 = vadd.f32 %v101_v12, %v99_v14 }
  0xeb   :  { %v103_v16 = vpack.c.bf16 %v102_v15, %v102_v15 }
  0xed   :  { %105 = vst.msk [vmem:[%s181_s4] sm:$0xf] %vm104_vm2, %v103_v16 }

// kernel: mowe_forward.40
= control target key start
LH: loop header
LB: loop body
LE: loop exit
PB: predicated region body
PF: predicated region fallthrough
CT: control target
= control target key end

     0   :  { %vm16_vm0 = vcmask 261120   ;;  %vm48_vm1 = vcmask 257024   ;;  %s90_s0 = inlined_call_operand.vmem [shape: bf16[8,32], index: 0, kind: input, shape index: {}]   ;;  %s91_s1 = inlined_call_operand.vmem [shape: f32[1,32], index: 1, kind: input, shape index: {}]   ;;  %s92_s2 = inlined_call_operand.vmem [shape: f32[1,32], index: 2, kind: input, shape index: {}]   ;;  %s93_s3 = inlined_call_operand.vmem [shape: bf16[8,32], index: 3, kind: output, shape index: {}]  }
   0x1   :  { %v14_v0 = vld [vmem:[%s90_s0] sm:$0xf] }
   0x2   :  { %v15_v1 = vunpack.c.l.bf16 %v14_v0  ;;  %v54_v12 = vld [vmem:[%s91_s1] ss:$0 sm:$0xff] }
   0x3   :  { %v55_v14 = vld [vmem:[%s92_s2] ss:$0 sm:$0xff] }
   0x4   :  { %v17_v2 = vsel %vm16_vm0, %v15_v1, 0.0 }
   0x5   :  { %18 = vadd.xlane.f32.xlu0 %v17_v2 }
  0x92   :  { %v19_v3 = vpop.xlane.xlu0 %18 }
  0x93   :  { %v21_v4 = vmul.f32 0.03125, %v19_v3 }
  0x95   :  { %v22_v5 = vsub.f32 %v15_v1, %v21_v4 }
  0x97   :  { %v23_v6 = vmul.f32 %v22_v5, %v22_v5 }
  0x99   :  { %v24_v7 = vsel %vm16_vm0, %v23_v6, 0.0 }
  0x9a   :  { %25 = vadd.xlane.f32.xlu0 %v24_v7 }
 0x127   :  { %v26_v8 = vpop.xlane.xlu0 %25 }
 0x128   :  { %v27_v9 = vmul.f32 0.03125, %v26_v8 }
 0x12a   :  { %v28_v10 = vadd.f32 1e-05, %v27_v9 }
 0x12c   :  { %56 = vrsqrt.f32 %v28_v10 }
 0x136   :  { %v57_v11 = vpop.eup %56 }
 0x137   :  { %v30_v13 = vmul.f32 %v57_v11, %v22_v5 }
 0x139   :  { %v38_v15 = vmul.f32 %v54_v12, %v30_v13 }
 0x13b   :  { %v46_v16 = vadd.f32 %v55_v14, %v38_v15 }
 0x13d   :  { %v47_v17 = vpack.c.bf16 %v46_v16, %v46_v16 }
 0x13f   :  { %49 = vst.msk [vmem:[%s93_s3] sm:$0xf] %vm48_vm1, %v47_v17 }

// kernel: mowe_forward.34
= control target key start
LH: loop header
LB: loop body
LE: loop exit
PB: predicated region body
PF: predicated region fallthrough
CT: control target
= control target key end

     0   :  { %vm22_vm0 = vcmask 261120   ;;  %v203_v0 = vmov 0.0   ;;  %vm204_vm1 = vmmov 0   ;;  %vm149_vm2 = vcmask 257024   ;;  %s268_s1 = inlined_call_operand.vmem [shape: bf16[128,32], index: 1, kind: input, shape index: {}]   ;;  %s269_s0 = inlined_call_operand.vmem [shape: bf16[8,128], index: 0, kind: input, shape index: {}]   ;;  %s270_s3 = inlined_call_operand.vmem [shape: bf16[8,32], index: 3, kind: input, shape index: {}]   ;;  %s271_s2 = inlined_call_operand.vmem [shape: f32[1,32], index: 2, kind: input, shape index: {}]   ;;  %s272_s4 = inlined_call_operand.vmem [shape: bf16[8,32], index: 4, kind: output, shape index: {}]  }
   0x1   :  { %173 = vmatprep.subr.bf16.mxu0 %v203_v0  ;;  %v195_v1 = vld [vmem:[%s268_s1] sm:$0xff]   ;;  %189 = vmatprep.mubr.msk.bf16.mxu0 %vm204_vm1, %v203_v0  ;;  %23 = vst.msk [vmem:[#allocation2] sm:$0xff] %vm22_vm0, %v203_v0  ;;  %v196_v2 = vld [vmem:[%s268_s1 + $0x8] sm:$0xff]   ;;  %v197_v3 = vld [vmem:[%s268_s1 + $0x10] sm:$0xff]  }
   0x2   :  { %174 = vmatpush3.bf16.msra.mxu0 %v195_v1  ;;  %v198_v4 = vld [vmem:[%s268_s1 + $0x18] sm:$0xff]   ;;  %v199_v5 = vld [vmem:[%s268_s1 + $0x20] sm:$0xff]   ;;  %v200_v6 = vld [vmem:[%s268_s1 + $0x28] sm:$0xff]  }
   0x3   :  { %175 = vmatprep.subr.bf16.mxu0 %v203_v0  ;;  %v201_v7 = vld [vmem:[%s268_s1 + $0x30] sm:$0xff]   ;;  %v202_v8 = vld [vmem:[%s268_s1 + $0x38] sm:$0xff]   ;;  %v24_v9 = vld [vmem:[%s269_s0] sm:$0xf] }
   0x4   :  { %v145_v16 = vld [vmem:[%s270_s3] sm:$0xf] }
   0x5   :  { %v163_v17 = vld [vmem:[%s271_s2] ss:$0 sm:$0xff]  ;;  %v146_v18 = vunpack.c.l.bf16 %v145_v16 }
   0x6   :  { %176 = vmatpush3.bf16.msra.mxu0 %v196_v2 }
   0x7   :  { %177 = vmatprep.subr.bf16.mxu0 %v203_v0 }
   0x8   :  { %v25_v10 = vld [vmem:[#allocation2] sm:$0xff] }
   0xa   :  { %178 = vmatpush3.bf16.msra.mxu0 %v197_v3 }
   0xb   :  { %179 = vmatprep.subr.bf16.mxu0 %v203_v0 }
   0xe   :  { %180 = vmatpush3.bf16.msra.mxu0 %v198_v4 }
   0xf   :  { %181 = vmatprep.subr.bf16.mxu0 %v203_v0 }
  0x12   :  { %182 = vmatpush3.bf16.msra.mxu0 %v199_v5 }
  0x13   :  { %183 = vmatprep.subr.bf16.mxu0 %v203_v0 }
  0x16   :  { %184 = vmatpush3.bf16.msra.mxu0 %v200_v6 }
  0x17   :  { %185 = vmatprep.subr.bf16.mxu0 %v203_v0 }
  0x1a   :  { %186 = vmatpush3.bf16.msra.mxu0 %v201_v7 }
  0x1b   :  { %187 = vmatprep.subr.bf16.mxu0 %v203_v0 }
  0x1e   :  { %188 = vmatpush3.bf16.msra.mxu0 %v202_v8 }
  0x21   :  { %190 = vmatmul.mubr.bf16.vlgmr.msra.gmra.mrb[0].mxu0 %v24_v9 }
  0xf4   :  { %v124_v11 = vpop.f32.mrb[0].mxu0 }
  0xf5   :  { %v130_v12 = vadd.f32 %v124_v11, %v25_v10  ;;  %v191_v13 = vpop.f32.mrb[1].mxu0 }
  0xf6   :  { %v127_v14 = vpop.f32.mrb[2].mxu0 }
  0xf7   :  { %132 = vst.msk [vmem:[#allocation2] sm:$0xff] %vm22_vm0, %v130_v12  ;;  %v192_v15 = vpop.f32.mrb[3].mxu0 }
  0xfe   :  { %v136_v19 = vld [vmem:[#allocation2] sm:$0xff] }
  0xff   :  { %v144_v20 = vadd.f32 %v163_v17, %v136_v19 }
 0x101   :  { %v147_v21 = vadd.f32 %v146_v18, %v144_v20 }
 0x103   :  { %v148_v22 = vpack.c.bf16 %v147_v21, %v147_v21 }
 0x105   :  { %150 = vst.msk [vmem:[%s272_s4] sm:$0xf] %vm149_vm2, %v148_v22 }

// kernel: mowe_forward.33
= control target key start
LH: loop header
LB: loop body
LE: loop exit
PB: predicated region body
PF: predicated region fallthrough
CT: control target
= control target key end

     0   :  { %vm28_vm0 = vcmask 261120   ;;  %v174_v9 = vmov 0.0   ;;  %vm175_vm1 = vmmov 0   ;;  %s230_s0 = inlined_call_operand.vmem [shape: bf16[8,32], index: 0, kind: input, shape index: {}]   ;;  %s231_s1 = inlined_call_operand.vmem [shape: bf16[32,128], index: 1, kind: input, shape index: {}]   ;;  %s232_s3 = inlined_call_operand.vmem [shape: f32[1,32], index: 3, kind: input, shape index: {}]   ;;  %s233_s4 = inlined_call_operand.vmem [shape: f32[1,32], index: 4, kind: input, shape index: {}]   ;;  %s234_s2 = inlined_call_operand.vmem [shape: f32[1,128], index: 2, kind: input, shape index: {}]   ;;  %s235_s5 = inlined_call_operand.vmem [shape: bf16[8,128], index: 5, kind: output, shape index: {}]  }
   0x1   :  { %v26_v0 = vld [vmem:[%s230_s0] sm:$0xf]  ;;  %158 = vmatprep.subr.bf16.mxu0 %v174_v9  ;;  %v169_v10 = vld [vmem:[%s231_s1 + $0x8] sm:$0xff]   ;;  %162 = vmatprep.mubr.msk.bf16.mxu0 %vm175_vm1, %v174_v9 }
   0x2   :  { %v27_v1 = vunpack.c.l.bf16 %v26_v0  ;;  %v168_v8 = vld [vmem:[%s231_s1] sm:$0xff]  }
   0x3   :  { %159 = vmatpush3.bf16.msra.mxu0 %v168_v8  ;;  %v149_v15 = vld [vmem:[%s232_s3] ss:$0 sm:$0xff] }
   0x4   :  { %v29_v2 = vsel %vm28_vm0, %v27_v1, 0.0  ;;  %160 = vmatprep.subr.bf16.mxu0 %v174_v9  ;;  %v150_v17 = vld [vmem:[%s233_s4] ss:$0 sm:$0xff] }
   0x5   :  { %30 = vadd.xlane.f32.xlu0 %v29_v2  ;;  %v154_v21 = vld [vmem:[%s234_s2] ss:$0 sm:$0xff] }
   0x7   :  { %161 = vmatpush3.bf16.msra.mxu0 %v169_v10 }
  0x92   :  { %v31_v3 = vpop.xlane.xlu0 %30 }
  0x93   :  { %v33_v4 = vmul.f32 0.03125, %v31_v3 }
  0x95   :  { %v34_v5 = vsub.f32 %v27_v1, %v33_v4 }
  0x97   :  { %v35_v6 = vmul.f32 %v34_v5, %v34_v5 }
  0x99   :  { %v36_v7 = vsel %vm28_vm0, %v35_v6, 0.0 }
  0x9a   :  { %37 = vadd.xlane.f32.xlu0 %v36_v7 }
 0x127   :  { %v38_v11 = vpop.xlane.xlu0 %37 }
 0x128   :  { %v39_v12 = vmul.f32 0.03125, %v38_v11 }
 0x12a   :  { %v40_v13 = vadd.f32 1e-05, %v39_v12 }
 0x12c   :  { %170 = vrsqrt.f32 %v40_v13 }
 0x136   :  { %v171_v14 = vpop.eup %170 }
 0x137   :  { %v42_v16 = vmul.f32 %v171_v14, %v34_v5 }
 0x139   :  { %v50_v18 = vmul.f32 %v149_v15, %v42_v16 }
 0x13b   :  { %v58_v19 = vadd.f32 %v150_v17, %v50_v18 }
 0x13d   :  { %v59_v20 = vpack.c.bf16 %v58_v19, %v58_v19 }
 0x13f   :  { %163 = vmatmul.mubr.msk.bf16.vlgmr.msra.gmra.mrb[0].mxu0 %vm28_vm0, %v59_v20 }
 0x212   :  { %v114_v22 = vpop.f32.mrb[0].mxu0 }
 0x213   :  { %v133_v23 = vadd.f32 %v154_v21, %v114_v22  ;;  %v164_v24 = vpop.f32.mrb[1].mxu0 }
 0x214   :  { %v117_v25 = vpop.f32.mrb[2].mxu0 }
 0x215   :  { %v134_v26 = vmul.f32 %v133_v23, %v133_v23  ;;  %v165_v27 = vpop.f32.mrb[3].mxu0 }
 0x217   :  { %v135_v28 = vmul.f32 %v134_v26, %v133_v23 }
 0x219   :  { %v136_v29 = vmul.f32 0.044715, %v135_v28 }
 0x21b   :  { %v137_v30 = vadd.f32 %v136_v29, %v133_v23 }
 0x21d   :  { %v138_v31 = vmul.f32 0.7978846, %v137_v30 }
 0x21f   :  { %172 = vtanh.f32 %v138_v31 }
 0x229   :  { %v173_v32 = vpop.eup %172 }
 0x22a   :  { %v140_v33 = vadd.f32 1.0, %v173_v32 }
 0x22c   :  { %v141_v34 = vmul.f32 0.5, %v140_v33 }
 0x22e   :  { %v142_v35 = vmul.f32 %v141_v34, %v133_v23 }
 0x230   :  { %v143_v36 = vpack.c.bf16 %v142_v35, %v142_v35 }
 0x232   :  { %144 = vst [vmem:[%s235_s5] sm:$0xf] %v143_v36 }

// kernel: mowe_forward.41
= control target key start
LH: loop header
LB: loop body
LE: loop exit
PB: predicated region body
PF: predicated region fallthrough
CT: control target
= control target key end

     0   :  { %s760_s12 = smov 0   ;;  %s762_s13 = smov 0   ;;  %s831_s0 = inlined_call_operand.vmem [shape: bf16[8,32], index: 0, kind: input, shape index: {}]   ;;  %s832_s1 = inlined_call_operand.vmem [shape: bf16[32,8192], index: 1, kind: input, shape index: {}]   ;;  %s833_s2 = inlined_call_operand.vmem [shape: f32[1,8192], index: 2, kind: input, shape index: {}]   ;;  %s834_s3 = inlined_call_operand.vmem [shape: bf16[8,8192], index: 3, kind: output, shape index: {}]  }
   0x1   :  { %s764_s14 = smov 0   ;;  %s766_s15 = smov 0  }
   0x2   :  { %s768_s16 = smov 0  }
   0x3 LB: > { %s28_s17 = sadd.s32 1, %s733_s15  ;;  %p76_p1 = scmp.ne.s32.totalorder %s725_s13, %s721_s12  ;;  %s737_s16 = sphi %s768_s16, %s13_s16   ;;  %s733_s15 = sphi %s766_s15, %s838_s15   ;;  %s729_s14 = sphi %s764_s14, %s837_s14   ;;  %s725_s13 = sphi %s762_s13, %s836_s13   ;;  %s721_s12 = sphi %s760_s12, %s835_s12  }
   0x4   : > { %p30_p0 = scmp.ge.s32.totalorder %s28_s17, 16  ;;  %p77_p2 = scmp.eq.s32.totalorder %s737_s16, 0 }
   0x5   : > { %s69_s19 = sadd.s32 1, %s725_s13  ;;  %p620_p5 = scmp.ge.s32.totalorder %s737_s16, 16 }
   0x6   : > { %s840_s17 = smov (%p30_p0, %s28_s17), 0  ;;  %p78_p3 = por %p77_p2, %p76_p1 }
   0x7   : > { %s65_s18 = ssub.s32 %s733_s15, %s840_s17  ;;  %166 = sbr.rel (%p620_p5) target bundleno = 22 (0x16), region = 20 }
   0x8   : > { %p67_p4 = scmp.eq.s32.totalorder %s65_s18, 0 }
   0xa   : > { %s795_s20 = scalar_select %p67_p4, %s725_s13, %s69_s19  }
   0xe   : > { %169 = sbr.rel (!%p78_p3) target bundleno = 22 (0x16), region = 24  ;;  %s171_s21 = sand.u32 (%p78_p3), 1, %s725_s13  }
   0xf   : > { %s643_s22 = sshll.u32 (%p78_p3), %s733_s15, 4  ;;  %s621_s23 = sshll.u32 (%p78_p3), %s171_s21, 6 }
  0x10   : > { %s179_s26 = scalar_lea.vmem (%p78_p3), %s832_s1, %s643_s22  ;;  %s173_s27 = scalar_lea.vmem (%p78_p3), [#allocation3], %s621_s23 }
  0x11   : > { %v192_v0 = vld [vmem:[%s179_s26] sm:$0xff] (%p78_p3)  ;;  %v194_v1 = vld [vmem:[%s179_s26 + $0x8] sm:$0xff] (%p78_p3) }
  0x12   : > { %v196_v2 = vld [vmem:[%s179_s26 + $0x100] sm:$0xff] (%p78_p3)  ;;  %193 = vst [vmem:[%s173_s27] sm:$0xff] (%p78_p3), %v192_v0  ;;  %195 = vst [vmem:[%s173_s27 + $0x8] sm:$0xff] (%p78_p3), %v194_v1  ;;  %v198_v3 = vld [vmem:[%s179_s26 + $0x108] sm:$0xff] (%p78_p3) }
  0x13   : > { %197 = vst [vmem:[%s173_s27 + $0x10] sm:$0xff] (%p78_p3), %v196_v2  ;;  %v200_v4 = vld [vmem:[%s179_s26 + $0x200] sm:$0xff] (%p78_p3)  ;;  %v202_v5 = vld [vmem:[%s179_s26 + $0x208] sm:$0xff] (%p78_p3)  ;;  %199 = vst [vmem:[%s173_s27 + $0x18] sm:$0xff] (%p78_p3), %v198_v3 }
  0x14   : > { %201 = vst [vmem:[%s173_s27 + $0x20] sm:$0xff] (%p78_p3), %v200_v4  ;;  %203 = vst [vmem:[%s173_s27 + $0x28] sm:$0xff] (%p78_p3), %v202_v5  ;;  %v204_v6 = vld [vmem:[%s179_s26 + $0x300] sm:$0xff] (%p78_p3)  ;;  %v206_v7 = vld [vmem:[%s179_s26 + $0x308] sm:$0xff] (%p78_p3) }
  0x15   : > { %205 = vst [vmem:[%s173_s27 + $0x30] sm:$0xff] %v204_v6  ;;  %207 = vst [vmem:[%s173_s27 + $0x38] sm:$0xff] %v206_v7 }
  0x16 PF: > { %p624_p6 = scmp.ge.s32.totalorder %s737_s16, 1  ;;  %p220_p7 = scmp.lt.s32.totalorder %s737_s16, 17 }
  0x18   : > { %p221_p8 = pnand %p624_p6, %p220_p7 }
  0x19   : > { %s227_s28 = sand.u32 (!%p221_p8), 1, %s721_s12   ;;  %v739_v8 = vmov (!%p221_p8), 0   ;;  %v298_v17 = vld [vmem:[%s831_s0] sm:$0xf] (!%p221_p8)  ;;  %vm351_vm0 = vcmask (!%p221_p8), 261120   ;;  %s626_s6 = sshll.u32 (!%p221_p8), %s729_s14, 2  ;;  %v454_v18 = vlaneseq (!%p221_p8) }
  0x1a   : > { %224 = sbr.rel (%p221_p8) target bundleno = 255 (0xff), region = 51  ;;  %s625_s29 = sshll.u32 (!%p221_p8), %s227_s28, 6  ;;  %387 = vmatprep.mubr.bf16.mxu0 (!%p221_p8), %v739_v8  ;;  %428 = vmatprep.mubr.bf16.mxu1 (!%p221_p8), %v739_v8 }
  0x1b   : > { %s229_s30 = scalar_lea.vmem (!%p221_p8), [#allocation3], %s625_s29  ;;  %p275_p9 = scmp.lt.s32.totalorder (!%p221_p8), %s626_s6, 63  ;;  %v455_v19 = vshrl.u32 (!%p221_p8), %v454_v18, 7 }
  0x1c   : > { %v687_v9 = vld [vmem:[%s229_s30 + $0x4] ss:$16 sps:$4 sm:$0xff] (!%p221_p8)   ;;  %v689_v10 = vld [vmem:[%s229_s30 + $0xc] ss:$16 sps:$4 sm:$0xff] (!%p221_p8)   ;;  %v691_v11 = vld [vmem:[%s229_s30] ss:$16 sps:$4 sm:$0xff] (!%p221_p8)  }
  0x1d   : > { %355 = vmatprep.subr.bf16.mxu0 (!%p221_p8), %v687_v9  ;;  %v692_v12 = vld [vmem:[%s229_s30 + $0x8] ss:$16 sps:$4 sm:$0xff] (!%p221_p8)   ;;  %396 = vmatprep.subr.bf16.mxu1 (!%p221_p8), %v689_v10  ;;  %v693_v13 = vld [vmem:[%s229_s30 + $0x24] ss:$16 sps:$4 sm:$0xff] (!%p221_p8)   ;;  %v695_v14 = vld [vmem:[%s229_s30 + $0x2c] ss:$16 sps:$4 sm:$0xff] (!%p221_p8)  }
  0x1e   : > { %356 = vmatpush1.bf16.msra.mxu0 (!%p221_p8), %v691_v11  ;;  %397 = vmatpush1.bf16.msra.mxu1 (!%p221_p8), %v692_v12  ;;  %v697_v15 = vld [vmem:[%s229_s30 + $0x20] ss:$16 sps:$4 sm:$0xff] (!%p221_p8)   ;;  %v698_v16 = vld [vmem:[%s229_s30 + $0x28] ss:$16 sps:$4 sm:$0xff] (!%p221_p8)   ;;  %v456_v20 = vsub.s32 (!%p221_p8), 0, %v455_v19  ;;  %v464_v21 = vsub.s32 (!%p221_p8), 2, %v455_v19 }
  0x1f   : > { %357 = vmatprep.subr.bf16.mxu0 (!%p221_p8), %v693_v13  ;;  %398 = vmatprep.subr.bf16.mxu1 (!%p221_p8), %v695_v14  ;;  %v460_v23 = vsub.s32 (!%p221_p8), 1, %v455_v19  ;;  %v468_v24 = vsub.s32 (!%p221_p8), 3, %v455_v19 }
  0x21   : > { %s842_s6 = smov (!%p275_p9, %s626_s6), 63 }
  0x22   : > { %358 = vmatpush1.bf16.msra.mxu0 %v697_v15  ;;  %399 = vmatpush1.bf16.msra.mxu1 %v698_v16  ;;  %s277_s9 = scalar_lea.vmem %s833_s2, %s842_s6  ;;  %s628_s10 = sshll.u32 %s842_s6, 2 }
  0x23   : > { %v452_v22 = vld [vmem:[%s277_s9] sm:$0xf]  ;;  %s287_s14 = scalar_lea.vmem %s834_s3, %s628_s10 }
  0x24   : > { %v457_v25 = vrot.slane %v452_v22, %v456_v20  ;;  %v465_v26 = vrot.slane %v452_v22, %v464_v21  ;;  %v461_v27 = vrot.slane %v452_v22, %v460_v23  ;;  %v469_v28 = vrot.slane %v452_v22, %v468_v24 }
  0x25   : > { %637 = vmatmul.mubr.msk.bf16.vlgmr.msra.gmra.mrb[0].mxu0 %vm351_vm0, %v298_v17  ;;  %638 = vmatmul.mubr.msk.bf16.vlgmr.msra.gmra.mrb[0].mxu1 %vm351_vm0, %v298_v17 }
  0xf8   : > { %v389_v29 = vpop.f32.mrb[0].mxu0  ;;  %v430_v30 = vpop.f32.mrb[0].mxu1 }
  0xf9   : > { %v474_v31 = vadd.f32 %v457_v25, %v389_v29  ;;  %v476_v32 = vadd.f32 %v465_v26, %v430_v30  ;;  %v391_v33 = vpop.f32.mrb[1].mxu0  ;;  %v432_v34 = vpop.f32.mrb[1].mxu1 }
  0xfa   : > { %v475_v35 = vadd.f32 %v461_v27, %v391_v33  ;;  %v477_v36 = vadd.f32 %v469_v28, %v432_v34  ;;  %v393_v37 = vpop.f32.mrb[2].mxu0  ;;  %v434_v38 = vpop.f32.mrb[2].mxu1 }
  0xfb   : > { %v394_v39 = vpop.f32.mrb[3].mxu0  ;;  %v435_v40 = vpop.f32.mrb[3].mxu1 }
  0xfc   : > { %v644_v41 = vpack.c.bf16 %v475_v35, %v474_v31  ;;  %v645_v42 = vpack.c.bf16 %v477_v36, %v476_v32 }
  0xfe   : > { %494 = vst [vmem:[%s287_s14] sm:$0xff] %v644_v41  ;;  %495 = vst [vmem:[%s287_s14 + $0x8] sm:$0xff] %v645_v42 }
  0xff PF: > { %s13_s16 = sadd.s32 1, %s737_s16   ;;  %s835_s12 = smov %s725_s13 }
 0x100   : > { %p10_p10 = scmp.ge.s32.totalorder %s13_s16, 18   ;;  %s836_s13 = smov %s795_s20 }
 0x101   : > { %s837_s14 = smov %s733_s15  ;;  %s838_s15 = smov %s840_s17 }
 0x102   :  { %12 = sbr.rel (!%p10_p10) target bundleno = 3 (0x3), region = 104 }

// kernel: mowe_forward.44
= control target key start
LH: loop header
LB: loop body
LE: loop exit
PB: predicated region body
PF: predicated region fallthrough
CT: control target
= control target key end

     0   :  { %s4299_s12 = smov 0   ;;  %s4301_s13 = smov 0   ;;  %s5086_s0 = inlined_call_operand.vmem [shape: bf16[512,1152], index: 0, kind: input, shape index: {}]   ;;  %s5087_s1 = inlined_call_operand.vmem [shape: bf16[1152,128], index: 1, kind: input, shape index: {}]   ;;  %s5088_s2 = inlined_call_operand.vmem [shape: f32[1,128], index: 2, kind: input, shape index: {}]   ;;  %s5089_s3 = inlined_call_operand.vmem [shape: bf16[512,128], index: 3, kind: output, shape index: {}]  }
   0x1   :  { %s4303_s14 = smov 0  }
   0x2 LB: > { %s32_s15 = sadd.s32 1, %s4273_s13  ;;  %p3031_p0 = scmp.ge.s32.totalorder %s4277_s14, 1  ;;  %s4277_s14 = sphi %s4303_s14, %s13_s14   ;;  %s4273_s13 = sphi %s4301_s13, %s5091_s13   ;;  %s4269_s12 = sphi %s4299_s12, %s5090_s12  }
   0x3   : > { %p34_p1 = scmp.ge.s32.totalorder %s32_s15, 2  ;;  %p191_p2 = scmp.lt.s32.totalorder %s4277_s14, 3 }
   0x5   : > { %s5093_s15 = smov (%p34_p1, %s32_s15), 0  ;;  %p192_p3 = pnand %p3031_p0, %p191_p2 }
   0x6   : > { %v3975_v0 = vld [vmem:[%s5087_s1 + $0x40] sm:$0xff] (!%p192_p3)   ;;  %s3032_s18 = sshll.u32 (!%p192_p3), %s4269_s12, 5  ;;  %v3977_v2 = vld [vmem:[%s5087_s1 + $0x48] sm:$0xff] (!%p192_p3)   ;;  %v3979_v4 = vld [vmem:[%s5087_s1 + $0x50] sm:$0xff] (!%p192_p3)  }
   0x7   : > { %195 = sbr.rel (%p192_p3) target bundleno = 545 (0x221), region = 32  ;;  %v3976_v1 = vld [vmem:[%s5087_s1] sm:$0xff] (!%p192_p3)   ;;  %3414 = vmatprep.subr.bf16.mxu0 (!%p192_p3), %v3975_v0  ;;  %3934 = vmatprep.subr.bf16.mxu1 (!%p192_p3), %v3975_v0  ;;  %p236_p4 = scmp.lt.s32.totalorder (!%p192_p3), %s3032_s18, 63  ;;  %v3978_v3 = vld [vmem:[%s5087_s1 + $0x8] sm:$0xff] (!%p192_p3)   ;;  %v3980_v5 = vld [vmem:[%s5087_s1 + $0x10] sm:$0xff] (!%p192_p3)  }
   0x8   : > { %3415 = vmatpush3.bf16.msra.mxu0 (!%p192_p3), %v3976_v1  ;;  %3942 = vmatpush3.bf16.msra.mxu1 (!%p192_p3), %v3976_v1  ;;  %v3981_v6 = vld [vmem:[%s5087_s1 + $0x58] sm:$0xff] (!%p192_p3)   ;;  %v3983_v8 = vld [vmem:[%s5087_s1 + $0x60] sm:$0xff] (!%p192_p3)   ;;  %v3985_v10 = vld [vmem:[%s5087_s1 + $0x68] sm:$0xff] (!%p192_p3)  }
   0x9   : > { %3416 = vmatprep.subr.bf16.mxu0 (!%p192_p3), %v3977_v2  ;;  %3935 = vmatprep.subr.bf16.mxu1 (!%p192_p3), %v3977_v2  ;;  %v3982_v7 = vld [vmem:[%s5087_s1 + $0x18] sm:$0xff] (!%p192_p3)   ;;  %v3984_v9 = vld [vmem:[%s5087_s1 + $0x20] sm:$0xff] (!%p192_p3)   ;;  %v3986_v13 = vld [vmem:[%s5087_s1 + $0x28] sm:$0xff] (!%p192_p3)  }
   0xa   : > { %v3987_v14 = vld [vmem:[%s5087_s1 + $0x70] sm:$0xff] (!%p192_p3)   ;;  %v3989_v16 = vld [vmem:[%s5087_s1 + $0x78] sm:$0xff] (!%p192_p3)   ;;  %v3997_v18 = vld [vmem:[%s5087_s1 + $0xc0] sm:$0xff] (!%p192_p3)  }
   0xb   : > { %v3988_v15 = vld [vmem:[%s5087_s1 + $0x30] sm:$0xff] (!%p192_p3)   ;;  %v3990_v17 = vld [vmem:[%s5087_s1 + $0x38] sm:$0xff] (!%p192_p3)   ;;  %v4000_v21 = vld [vmem:[%s5087_s1 + $0x140] sm:$0xff] (!%p192_p3)  }
   0xc   : > { %3417 = vmatpush3.bf16.msra.mxu0 (!%p192_p3), %v3978_v3  ;;  %3943 = vmatpush3.bf16.msra.mxu1 (!%p192_p3), %v3978_v3  ;;  %v3998_v22 = vld [vmem:[%s5087_s1 + $0x80] sm:$0xff] (!%p192_p3)   ;;  %v3999_v23 = vld [vmem:[%s5087_s1 + $0xc8] sm:$0xff] (!%p192_p3)   ;;  %v4009_v31 = vld [vmem:[%s5087_s1 + $0xd0] sm:$0xff] (!%p192_p3)  }
   0xd   : > { %3418 = vmatprep.subr.bf16.mxu0 (!%p192_p3), %v3979_v4  ;;  %3936 = vmatprep.subr.bf16.mxu1 (!%p192_p3), %v3979_v4  ;;  %v4002_v24 = vld [vmem:[%s5087_s1 + $0x100] sm:$0xff] (!%p192_p3)   ;;  %v4001_v27 = vld [vmem:[%s5087_s1 + $0x88] sm:$0xff] (!%p192_p3)   ;;  %v4010_v32 = vld [vmem:[%s5087_s1 + $0x90] sm:$0xff] (!%p192_p3)  }
   0xe   : > { %s5095_s18 = smov (!%p236_p4, %s3032_s18), 63  ;;  %v4020_v28 = vld [vmem:[%s5087_s1 + $0x148] sm:$0xff]   ;;  %v4011_v34 = vld [vmem:[%s5087_s1 + $0xd8] sm:$0xff]   ;;  %v4019_v40 = vld [vmem:[%s5087_s1 + $0xe0] sm:$0xff]  }
   0xf   : > { %s3950_s4 = smul.u32 36, %s5095_s18  ;;  %v4022_v33 = vld [vmem:[%s5087_s1 + $0x108] sm:$0xff]   ;;  %v4012_v37 = vld [vmem:[%s5087_s1 + $0x98] sm:$0xff]   ;;  %v4021_v41 = vld [vmem:[%s5087_s1 + $0xa0] sm:$0xff]   ;;  %s3035_s6 = sshll.u32 %s5095_s18, 2 }
  0x10   : > { %3419 = vmatpush3.bf16.msra.mxu0 %v3980_v5  ;;  %3944 = vmatpush3.bf16.msra.mxu1 %v3980_v5  ;;  %v4023_v42 = vld [vmem:[%s5087_s1 + $0xe8] sm:$0xff]   ;;  %v4034_v43 = vld [vmem:[%s5087_s1 + $0x150] sm:$0xff]   ;;  %v4033_v52 = vld [vmem:[%s5087_s1 + $0xf8] sm:$0xff]   ;;  %s4993_s18 = scalar_lea.vmem %s5089_s3, %s3035_s6 }
  0x11   : > { %3420 = vmatprep.subr.bf16.mxu0 %v3981_v6  ;;  %3937 = vmatprep.subr.bf16.mxu1 %v3981_v6  ;;  %s4350_s11 = scalar_lea.vmem %s5086_s0, %s3950_s4  ;;  %v4036_v46 = vld [vmem:[%s5087_s1 + $0x110] sm:$0xff]   ;;  %v4024_v47 = vld [vmem:[%s5087_s1 + $0xa8] sm:$0xff]   ;;  %v4051_v55 = vld [vmem:[%s5087_s1 + $0x158] sm:$0xff]  }
  0x12   : > { %v3993_v11 = vld [vmem:[%s4350_s11 + $0x4] ss:$36 sps:$4 sm:$0xff]   ;;  %v4003_v25 = vld [vmem:[%s4350_s11 + $0x4c] ss:$36 sps:$4 sm:$0xff]   ;;  %v4013_v35 = vld [vmem:[%s4350_s11 + $0x94] ss:$36 sps:$4 sm:$0xff]  }
  0x13   : > { %v3996_v12 = vld [vmem:[%s4350_s11 + $0x364] ss:$36 sps:$4 sm:$0xff]   ;;  %1840 = vmatprep.mubr.bf16.mxu0 %v3993_v11  ;;  %v4005_v26 = vld [vmem:[%s4350_s11 + $0x3ac] ss:$36 sps:$4 sm:$0xff]   ;;  %v4015_v36 = vld [vmem:[%s4350_s11 + $0x3f4] ss:$36 sps:$4 sm:$0xff]  }
  0x14   : > { %3421 = vmatpush3.bf16.msra.mxu0 %v3982_v7  ;;  %3945 = vmatpush3.bf16.msra.mxu1 %v3982_v7  ;;  %v3991_v19 = vld [vmem:[%s4350_s11] ss:$36 sps:$4 sm:$0xff]   ;;  %v4007_v29 = vld [vmem:[%s4350_s11 + $0x48] ss:$36 sps:$4 sm:$0xff]   ;;  %v4017_v38 = vld [vmem:[%s4350_s11 + $0x90] ss:$36 sps:$4 sm:$0xff]  }
  0x15   : > { %3422 = vmatprep.subr.bf16.mxu0 %v3983_v8  ;;  %3938 = vmatprep.subr.bf16.mxu1 %v3983_v8  ;;  %v3994_v20 = vld [vmem:[%s4350_s11 + $0x360] ss:$36 sps:$4 sm:$0xff]   ;;  %v4008_v30 = vld [vmem:[%s4350_s11 + $0x3a8] ss:$36 sps:$4 sm:$0xff]   ;;  %v4018_v39 = vld [vmem:[%s4350_s11 + $0x3f0] ss:$36 sps:$4 sm:$0xff]  }
  0x16   : > { %1936 = vmatprep.mubr.bf16.mxu1 %v3996_v12  ;;  %v4025_v44 = vld [vmem:[%s4350_s11 + $0xdc] ss:$36 sps:$4 sm:$0xff]   ;;  %v4031_v48 = vld [vmem:[%s5087_s1 + $0xf0] sm:$0xff]   ;;  %v4037_v53 = vld [vmem:[%s4350_s11 + $0x124] ss:$36 sps:$4 sm:$0xff]  }
  0x17   : > { %v4027_v45 = vld [vmem:[%s4350_s11 + $0x43c] ss:$36 sps:$4 sm:$0xff]   ;;  %v4032_v51 = vld [vmem:[%s5087_s1 + $0xb0] sm:$0xff]   ;;  %v4039_v58 = vld [vmem:[%s4350_s11 + $0x8] ss:$36 sps:$4 sm:$0xff]  }
  0x18   : > { %3423 = vmatpush3.bf16.msra.mxu0 %v3984_v9  ;;  %3946 = vmatpush3.bf16.msra.mxu1 %v3984_v9  ;;  %v4029_v49 = vld [vmem:[%s4350_s11 + $0xd8] ss:$36 sps:$4 sm:$0xff]   ;;  %v4041_v54 = vld [vmem:[%s4350_s11 + $0xc] ss:$36 sps:$4 sm:$0xff]   ;;  %v4042_v59 = vld [vmem:[%s4350_s11 + $0x120] ss:$36 sps:$4 sm:$0xff]  }
  0x19   : > { %3424 = vmatprep.subr.bf16.mxu0 %v3985_v10  ;;  %3939 = vmatprep.subr.bf16.mxu1 %v3985_v10  ;;  %v4030_v50 = vld [vmem:[%s4350_s11 + $0x438] ss:$36 sps:$4 sm:$0xff]   ;;  %v4043_v60 = vld [vmem:[%s5087_s1 + $0x1c0] sm:$0xff]   ;;  %v4045_v62 = vld [vmem:[%s4350_s11 + $0x16c] ss:$36 sps:$4 sm:$0xff]  }
  0x1a   : > { %v4052_v56 = vld [vmem:[%s5087_s1 + $0x118] sm:$0xff]   ;;  %v4044_v61 = vld [vmem:[%s5087_s1 + $0x180] sm:$0xff]   ;;  %v4059_v1 = vld [vmem:[%s5087_s1 + $0x1c8] sm:$0xff]  }
  0x1b   : > { %v4035_v57 = vld [vmem:[%s5087_s1 + $0xb8] sm:$0xff]   ;;  %v4061_v0 = vld [vmem:[%s5087_s1 + $0x160] sm:$0xff]   ;;  %v4060_v3 = vld [vmem:[%s5087_s1 + $0x188] sm:$0xff]  }
  0x1c   : > { %3425 = vmatpush3.bf16.msra.mxu0 %v3986_v13  ;;  %3947 = vmatpush3.bf16.msra.mxu1 %v3986_v13  ;;  %v4047_v63 = vld [vmem:[%s4350_s11 + $0x54] ss:$36 sps:$4 sm:$0xff]   ;;  %v4062_v2 = vld [vmem:[%s5087_s1 + $0x120] sm:$0xff]   ;;  %v4049_v4 = vld [vmem:[%s4350_s11 + $0x168] ss:$36 sps:$4 sm:$0xff]  }
  0x1d   : > { %3426 = vmatprep.subr.bf16.mxu0 %v3987_v14  ;;  %3940 = vmatprep.subr.bf16.mxu1 %v3987_v14  ;;  %v4050_v5 = vld [vmem:[%s4350_s11 + $0x50] ss:$36 sps:$4 sm:$0xff]   ;;  %v4055_v7 = vld [vmem:[%s4350_s11 + $0x9c] ss:$36 sps:$4 sm:$0xff]   ;;  %v4075_v8 = vld [vmem:[%s5087_s1 + $0x168] sm:$0xff]  }
  0x1e   : > { %v4053_v6 = vld [vmem:[%s4350_s11 + $0x1b4] ss:$36 sps:$4 sm:$0xff]   ;;  %v4077_v10 = vld [vmem:[%s5087_s1 + $0x128] sm:$0xff]   ;;  %v4063_v14 = vld [vmem:[%s4350_s11 + $0x1fc] ss:$36 sps:$4 sm:$0xff]  }
  0x1f   : > { %v4076_v9 = vld [vmem:[%s5087_s1 + $0x1d0] sm:$0xff]   ;;  %v4058_v13 = vld [vmem:[%s4350_s11 + $0x98] ss:$36 sps:$4 sm:$0xff]  }
  0x20   : > { %3427 = vmatpush3.bf16.msra.mxu0 %v3988_v15  ;;  %3948 = vmatpush3.bf16.msra.mxu1 %v3988_v15  ;;  %v4078_v11 = vld [vmem:[%s5087_s1 + $0x190] sm:$0xff]  }
  0x21   : > { %3428 = vmatprep.subr.bf16.mxu0 %v3989_v16  ;;  %3941 = vmatprep.subr.bf16.mxu1 %v3989_v16  ;;  %v4057_v12 = vld [vmem:[%s4350_s11 + $0x1b0] ss:$36 sps:$4 sm:$0xff]  }
  0x22   : > { %v4085_v15 = vld [vmem:[%s5087_s1 + $0x170] sm:$0xff]  }
  0x23   : > { %v4086_v16 = vld [vmem:[%s5087_s1 + $0x130] sm:$0xff]  }
  0x24   : > { %3429 = vmatpush3.bf16.msra.mxu0 %v3990_v17  ;;  %3949 = vmatpush3.bf16.msra.mxu1 %v3990_v17  ;;  %v4065_v17 = vld [vmem:[%s4350_s11 + $0xe4] ss:$36 sps:$4 sm:$0xff]  }
  0x25   : > { %3526 = vmatprep.subr.bf16.mxu1 %v3997_v18  ;;  %3638 = vmatprep.subr.bf16.mxu0 %v4000_v21  ;;  %v4093_v18 = vld [vmem:[%s5087_s1 + $0x1d8] sm:$0xff]   ;;  %v4068_v21 = vld [vmem:[%s4350_s11 + $0xe0] ss:$36 sps:$4 sm:$0xff]  }
  0x27   : > { %1841 = vmatmul.mubr.bf16.vlgmr.msra.gmra.mrb[0].mxu0 %v3991_v19  ;;  %1937 = vmatmul.mubr.bf16.vlgmr.msra.gmra.mrb[0].mxu1 %v3994_v20  ;;  %v4094_v19 = vld [vmem:[%s5087_s1 + $0x198] sm:$0xff]  }
  0x28   : > { %3527 = vmatpush3.bf16.msra.mxu1 %v3998_v22  ;;  %3639 = vmatpush3.bf16.msra.mxu0 %v4002_v24  ;;  %v4067_v20 = vld [vmem:[%s4350_s11 + $0x1f8] ss:$36 sps:$4 sm:$0xff]   ;;  %v4069_v22 = vld [vmem:[%s4350_s11 + $0x244] ss:$36 sps:$4 sm:$0xff]  }
  0x29   : > { %3528 = vmatprep.subr.bf16.mxu1 %v3999_v23  ;;  %1848 = vmatprep.mubr.bf16.mxu0 %v4003_v25  ;;  %v4071_v23 = vld [vmem:[%s4350_s11 + $0x12c] ss:$36 sps:$4 sm:$0xff]   ;;  %v4101_v24 = vld [vmem:[%s5087_s1 + $0x178] sm:$0xff]  }
  0x2a   : > { %1944 = vmatprep.mubr.bf16.mxu1 %v4005_v26  ;;  %3640 = vmatprep.subr.bf16.mxu0 %v4020_v28  ;;  %v4102_v25 = vld [vmem:[%s5087_s1 + $0x138] sm:$0xff]   ;;  %v4109_v26 = vld [vmem:[%s5087_s1 + $0x1e0] sm:$0xff]  }
  0x2b   : > { %v4110_v28 = vld [vmem:[%s5087_s1 + $0x1a0] sm:$0xff]  }
  0x2c   : > { %3529 = vmatpush3.bf16.msra.mxu1 %v4001_v27  ;;  %3641 = vmatpush3.bf16.msra.mxu0 %v4022_v33  ;;  %v4073_v27 = vld [vmem:[%s4350_s11 + $0x240] ss:$36 sps:$4 sm:$0xff]   ;;  %v4124_v33 = vld [vmem:[%s5087_s1 + $0x1e8] sm:$0xff]  }
  0x2d   : > { %3530 = vmatprep.subr.bf16.mxu1 %v4009_v31  ;;  %3642 = vmatprep.subr.bf16.mxu0 %v4034_v43  ;;  %v4079_v31 = vld [vmem:[%s4350_s11 + $0x28c] ss:$36 sps:$4 sm:$0xff]   ;;  %v4095_v43 = vld [vmem:[%s4350_s11 + $0x31c] ss:$36 sps:$4 sm:$0xff]  }
  0x2f   : > { %1849 = vmatmul.mubr.bf16.gmra.mrb[4].mxu0 %v4007_v29  ;;  %1945 = vmatmul.mubr.bf16.gmra.mrb[4].mxu1 %v4008_v30  ;;  %v4111_v29 = vld [vmem:[%s5087_s1 + $0x200] sm:$0xff]   ;;  %v4074_v30 = vld [vmem:[%s4350_s11 + $0x128] ss:$36 sps:$4 sm:$0xff]  }
  0x30   : > { %3531 = vmatpush3.bf16.msra.mxu1 %v4010_v32  ;;  %1856 = vmatprep.mubr.bf16.mxu0 %v4013_v35  ;;  %v4081_v32 = vld [vmem:[%s4350_s11 + $0x174] ss:$36 sps:$4 sm:$0xff]   ;;  %v4125_v35 = vld [vmem:[%s5087_s1 + $0x1a8] sm:$0xff]  }
  0x31   : > { %3532 = vmatprep.subr.bf16.mxu1 %v4011_v34  ;;  %1952 = vmatprep.mubr.bf16.mxu1 %v4015_v36  ;;  %v4083_v34 = vld [vmem:[%s4350_s11 + $0x288] ss:$36 sps:$4 sm:$0xff]   ;;  %v4084_v36 = vld [vmem:[%s4350_s11 + $0x170] ss:$36 sps:$4 sm:$0xff]  }
  0x32   : > { %3643 = vmatpush3.bf16.msra.mxu0 %v4036_v46  ;;  %v4100_v46 = vld [vmem:[%s4350_s11 + $0x200] ss:$36 sps:$4 sm:$0xff]  }
  0x33   : > { %3644 = vmatprep.subr.bf16.mxu0 %v4051_v55  ;;  %v4126_v55 = vld [vmem:[%s5087_s1 + $0x208] sm:$0xff]  }
  0x34   : > { %3533 = vmatpush3.bf16.msra.mxu1 %v4012_v37  ;;  %v4087_v37 = vld [vmem:[%s4350_s11 + $0x2d4] ss:$36 sps:$4 sm:$0xff]  }
  0x35   : > { %3534 = vmatprep.subr.bf16.mxu1 %v4019_v40  ;;  %v4092_v40 = vld [vmem:[%s4350_s11 + $0x1b8] ss:$36 sps:$4 sm:$0xff]  }
  0x36   : > { %3645 = vmatpush3.bf16.msra.mxu0 %v4052_v56  ;;  %v4141_v56 = vld [vmem:[%s5087_s1 + $0x210] sm:$0xff]  }
  0x37   : > { %1857 = vmatmul.mubr.bf16.gmra.mrb[8].mxu0 %v4017_v38  ;;  %1953 = vmatmul.mubr.bf16.gmra.mrb[8].mxu1 %v4018_v39  ;;  %v4089_v38 = vld [vmem:[%s4350_s11 + $0x1bc] ss:$36 sps:$4 sm:$0xff]   ;;  %v4091_v39 = vld [vmem:[%s4350_s11 + $0x2d0] ss:$36 sps:$4 sm:$0xff]  }
  0x38   : > { %3535 = vmatpush3.bf16.msra.mxu1 %v4021_v41  ;;  %1864 = vmatprep.mubr.bf16.mxu0 %v4025_v44  ;;  %v4139_v41 = vld [vmem:[%s5087_s1 + $0x1f0] sm:$0xff]   ;;  %v4097_v44 = vld [vmem:[%s4350_s11 + $0x204] ss:$36 sps:$4 sm:$0xff]  }
  0x39   : > { %3536 = vmatprep.subr.bf16.mxu1 %v4023_v42  ;;  %1960 = vmatprep.mubr.bf16.mxu1 %v4027_v45  ;;  %v4140_v42 = vld [vmem:[%s5087_s1 + $0x1b0] sm:$0xff]   ;;  %v4099_v45 = vld [vmem:[%s4350_s11 + $0x318] ss:$36 sps:$4 sm:$0xff]  }
  0x3a   : > { %3646 = vmatprep.subr.bf16.mxu0 %v4061_v0  ;;  %v4123_v0 = vld [vmem:[%s4350_s11 + $0xa0] ss:$36 sps:$4 sm:$0xff]  }
  0x3b   : > { %3647 = vmatpush3.bf16.msra.mxu0 %v4062_v2  ;;  %v4129_v2 = vld [vmem:[%s4350_s11 + $0xec] ss:$36 sps:$4 sm:$0xff]  }
  0x3c   : > { %3537 = vmatpush3.bf16.msra.mxu1 %v4024_v47  ;;  %3648 = vmatprep.subr.bf16.mxu0 %v4075_v8  ;;  %v4154_v47 = vld [vmem:[%s5087_s1 + $0x1f8] sm:$0xff]  }
  0x3d   : > { %3538 = vmatprep.subr.bf16.mxu1 %v4031_v48  ;;  %v4155_v48 = vld [vmem:[%s5087_s1 + $0x1b8] sm:$0xff]  }
  0x3e   : > { %v4135_v8 = vld [vmem:[%s4350_s11 + $0x134] ss:$36 sps:$4 sm:$0xff]  }
  0x3f   : > { %1865 = vmatmul.mubr.bf16.gmra.mrb[12].mxu0 %v4029_v49  ;;  %1961 = vmatmul.mubr.bf16.gmra.mrb[12].mxu1 %v4030_v50  ;;  %v4103_v49 = vld [vmem:[%s4350_s11 + $0x24c] ss:$36 sps:$4 sm:$0xff]   ;;  %v4107_v50 = vld [vmem:[%s4350_s11 + $0x14] ss:$36 sps:$4 sm:$0xff]  }
  0x40   : > { %3539 = vmatpush3.bf16.msra.mxu1 %v4032_v51  ;;  %1872 = vmatprep.mubr.bf16.mxu0 %v4037_v53  ;;  %v4105_v51 = vld [vmem:[%s4350_s11 + $0x10] ss:$36 sps:$4 sm:$0xff]  }
  0x41   : > { %3540 = vmatprep.subr.bf16.mxu1 %v4033_v52  ;;  %2001 = vmatprep.mubr.bf16.mxu1 %v4041_v54  ;;  %v4108_v52 = vld [vmem:[%s4350_s11 + $0x248] ss:$36 sps:$4 sm:$0xff]   ;;  %v4112_v53 = vld [vmem:[%s4350_s11 + $0x294] ss:$36 sps:$4 sm:$0xff]   ;;  %v4114_v54 = vld [vmem:[%s4350_s11 + $0x5c] ss:$36 sps:$4 sm:$0xff]  }
  0x42   : > { %3649 = vmatpush3.bf16.msra.mxu0 %v4077_v10  ;;  %v4137_v10 = vld [vmem:[%s4350_s11 + $0x368] ss:$36 sps:$4 sm:$0xff]  }
  0x43   : > { %3650 = vmatprep.subr.bf16.mxu0 %v4085_v15  ;;  %v4147_v15 = vld [vmem:[%s4350_s11 + $0x178] ss:$36 sps:$4 sm:$0xff]  }
  0x44   : > { %3541 = vmatpush3.bf16.msra.mxu1 %v4035_v57  ;;  %v4116_v57 = vld [vmem:[%s4350_s11 + $0x290] ss:$36 sps:$4 sm:$0xff]  }
  0x45   : > { %3750 = vmatprep.subr.bf16.mxu1 %v4043_v60  ;;  %v4120_v60 = vld [vmem:[%s4350_s11 + $0xa4] ss:$36 sps:$4 sm:$0xff]  }
  0x46   : > { %3651 = vmatpush3.bf16.msra.mxu0 %v4086_v16  ;;  %v4148_v16 = vld [vmem:[%s4350_s11 + $0x3fc] ss:$36 sps:$4 sm:$0xff]  }
  0x47   : > { %1873 = vmatmul.mubr.bf16.gmra.mrb[16].mxu0 %v4042_v59  ;;  %2002 = vmatmul.mubr.bf16.vlgmr.msra.gmra.mrb[16].mxu1 %v4039_v58  ;;  %v4117_v58 = vld [vmem:[%s4350_s11 + $0x58] ss:$36 sps:$4 sm:$0xff]  }
  0x48   : > { %3751 = vmatpush3.bf16.msra.mxu1 %v4044_v61  ;;  %1880 = vmatprep.mubr.bf16.mxu0 %v4045_v62  ;;  %v4118_v59 = vld [vmem:[%s4350_s11 + $0x2dc] ss:$36 sps:$4 sm:$0xff]  }
  0x49   : > { %2009 = vmatprep.mubr.bf16.mxu1 %v4047_v63  ;;  %3752 = vmatprep.subr.bf16.mxu1 %v4059_v1  ;;  %v4156_v61 = vld [vmem:[%s5087_s1 + $0x218] sm:$0xff]   ;;  %v4169_v62 = vld [vmem:[%s5087_s1 + $0x220] sm:$0xff]  }
  0x4a   : > { %3652 = vmatprep.subr.bf16.mxu0 %v4101_v24  ;;  %v4122_v63 = vld [vmem:[%s4350_s11 + $0x2d8] ss:$36 sps:$4 sm:$0xff]   ;;  %v4127_v1 = vld [vmem:[%s4350_s11 + $0x324] ss:$36 sps:$4 sm:$0xff]  }
  0x4b   : > { %3653 = vmatpush3.bf16.msra.mxu0 %v4102_v25  ;;  %v4163_v24 = vld [vmem:[%s4350_s11 + $0x254] ss:$36 sps:$4 sm:$0xff]   ;;  %v4167_v25 = vld [vmem:[%s4350_s11 + $0x1c] ss:$36 sps:$4 sm:$0xff]  }
  0x4c   : > { %3753 = vmatpush3.bf16.msra.mxu1 %v4060_v3  ;;  %3886 = vmatprep.subr.bf16.mxu0 %v4111_v29  ;;  %v4182_v3 = vld [vmem:[%s5087_s1 + $0x228] sm:$0xff]  }
  0x4d   : > { %3754 = vmatprep.subr.bf16.mxu1 %v4076_v9  ;;  %v4208_v9 = vld [vmem:[%s5087_s1 + $0x238] sm:$0xff]  }
  0x4f   : > { %1881 = vmatmul.mubr.bf16.gmra.mrb[20].mxu0 %v4049_v4  ;;  %2010 = vmatmul.mubr.bf16.gmra.mrb[20].mxu1 %v4050_v5  ;;  %v4131_v4 = vld [vmem:[%s4350_s11 + $0x320] ss:$36 sps:$4 sm:$0xff]   ;;  %v4132_v5 = vld [vmem:[%s4350_s11 + $0xe8] ss:$36 sps:$4 sm:$0xff]  }
  0x50   : > { %1888 = vmatprep.mubr.bf16.mxu0 %v4053_v6  ;;  %2017 = vmatprep.mubr.bf16.mxu1 %v4055_v7  ;;  %v4195_v6 = vld [vmem:[%s5087_s1 + $0x230] sm:$0xff]  }
  0x51   : > { %3755 = vmatpush3.bf16.msra.mxu1 %v4078_v11  ;;  %v4133_v7 = vld [vmem:[%s4350_s11 + $0x36c] ss:$36 sps:$4 sm:$0xff]  }
  0x52   : > { %3756 = vmatprep.subr.bf16.mxu1 %v4093_v18  ;;  %v4138_v11 = vld [vmem:[%s4350_s11 + $0x130] ss:$36 sps:$4 sm:$0xff]   ;;  %v4152_v18 = vld [vmem:[%s4350_s11 + $0x3f8] ss:$36 sps:$4 sm:$0xff]  }
  0x55   : > { %3757 = vmatpush3.bf16.msra.mxu1 %v4094_v19  ;;  %v4153_v19 = vld [vmem:[%s4350_s11 + $0x1c0] ss:$36 sps:$4 sm:$0xff]  }
  0x56   : > { %3758 = vmatprep.subr.bf16.mxu1 %v4109_v26  ;;  %v4165_v26 = vld [vmem:[%s4350_s11 + $0x18] ss:$36 sps:$4 sm:$0xff]  }
  0x57   : > { %1889 = vmatmul.mubr.bf16.gmra.mrb[24].mxu0 %v4057_v12  ;;  %2018 = vmatmul.mubr.bf16.gmra.mrb[24].mxu1 %v4058_v13  ;;  %v4142_v12 = vld [vmem:[%s4350_s11 + $0x3b4] ss:$36 sps:$4 sm:$0xff]   ;;  %v4144_v13 = vld [vmem:[%s4350_s11 + $0x17c] ss:$36 sps:$4 sm:$0xff]  }
  0x58   : > { %1896 = vmatprep.mubr.bf16.mxu0 %v4063_v14  ;;  %2025 = vmatprep.mubr.bf16.mxu1 %v4065_v17  ;;  %v4146_v14 = vld [vmem:[%s4350_s11 + $0x3b0] ss:$36 sps:$4 sm:$0xff]   ;;  %v4150_v17 = vld [vmem:[%s4350_s11 + $0x1c4] ss:$36 sps:$4 sm:$0xff]  }
  0x59   : > { %3759 = vmatpush3.bf16.msra.mxu1 %v4110_v28  ;;  %v4170_v28 = vld [vmem:[%s4350_s11 + $0x29c] ss:$36 sps:$4 sm:$0xff]  }
  0x5a   : > { %3760 = vmatprep.subr.bf16.mxu1 %v4124_v33  ;;  %v4178_v33 = vld [vmem:[%s4350_s11 + $0xac] ss:$36 sps:$4 sm:$0xff]  }
  0x5d   : > { %3761 = vmatpush3.bf16.msra.mxu1 %v4125_v35  ;;  %v4181_v35 = vld [vmem:[%s4350_s11 + $0xa8] ss:$36 sps:$4 sm:$0xff]  }
  0x5e   : > { %3762 = vmatprep.subr.bf16.mxu1 %v4139_v41  ;;  %v4191_v41 = vld [vmem:[%s4350_s11 + $0x13c] ss:$36 sps:$4 sm:$0xff]  }
  0x5f   : > { %1897 = vmatmul.mubr.bf16.gmra.mrb[28].mxu0 %v4067_v20  ;;  %2026 = vmatmul.mubr.bf16.gmra.mrb[28].mxu1 %v4068_v21  ;;  %v4157_v20 = vld [vmem:[%s4350_s11 + $0x444] ss:$36 sps:$4 sm:$0xff]   ;;  %v4159_v21 = vld [vmem:[%s4350_s11 + $0x20c] ss:$36 sps:$4 sm:$0xff]  }
  0x60   : > { %1904 = vmatprep.mubr.bf16.mxu0 %v4069_v22  ;;  %2033 = vmatprep.mubr.bf16.mxu1 %v4071_v23  ;;  %v4161_v22 = vld [vmem:[%s4350_s11 + $0x440] ss:$36 sps:$4 sm:$0xff]   ;;  %v4162_v23 = vld [vmem:[%s4350_s11 + $0x208] ss:$36 sps:$4 sm:$0xff]  }
  0x61   : > { %3763 = vmatpush3.bf16.msra.mxu1 %v4140_v42  ;;  %v4193_v42 = vld [vmem:[%s4350_s11 + $0x370] ss:$36 sps:$4 sm:$0xff]  }
  0x62   : > { %3764 = vmatprep.subr.bf16.mxu1 %v4154_v47  ;;  %v4201_v47 = vld [vmem:[%s4350_s11 + $0x180] ss:$36 sps:$4 sm:$0xff]  }
  0x65   : > { %3765 = vmatpush3.bf16.msra.mxu1 %v4155_v48  ;;  %v4202_v48 = vld [vmem:[%s4350_s11 + $0x404] ss:$36 sps:$4 sm:$0xff]  }
  0x67   : > { %1905 = vmatmul.mubr.bf16.gmra.mrb[32].mxu0 %v4073_v27  ;;  %2034 = vmatmul.mubr.bf16.gmra.mrb[32].mxu1 %v4074_v30  ;;  %v4168_v27 = vld [vmem:[%s4350_s11 + $0x250] ss:$36 sps:$4 sm:$0xff]   ;;  %v4174_v30 = vld [vmem:[%s4350_s11 + $0x298] ss:$36 sps:$4 sm:$0xff]  }
  0x68   : > { %1912 = vmatprep.mubr.bf16.mxu0 %v4079_v31  ;;  %2041 = vmatprep.mubr.bf16.mxu1 %v4081_v32  ;;  %v4175_v31 = vld [vmem:[%s4350_s11 + $0x60] ss:$36 sps:$4 sm:$0xff]  }
  0x69   : > { %v4176_v32 = vld [vmem:[%s4350_s11 + $0x2e4] ss:$36 sps:$4 sm:$0xff]  }
  0x6f   : > { %1913 = vmatmul.mubr.bf16.gmra.mrb[36].mxu0 %v4083_v34  ;;  %2042 = vmatmul.mubr.bf16.gmra.mrb[36].mxu1 %v4084_v36  ;;  %v4180_v34 = vld [vmem:[%s4350_s11 + $0x2e0] ss:$36 sps:$4 sm:$0xff]   ;;  %v4183_v36 = vld [vmem:[%s4350_s11 + $0x32c] ss:$36 sps:$4 sm:$0xff]  }
  0x70   : > { %1920 = vmatprep.mubr.bf16.mxu0 %v4087_v37  ;;  %2049 = vmatprep.mubr.bf16.mxu1 %v4089_v38  ;;  %v4185_v37 = vld [vmem:[%s4350_s11 + $0xf4] ss:$36 sps:$4 sm:$0xff]   ;;  %v4187_v38 = vld [vmem:[%s4350_s11 + $0x328] ss:$36 sps:$4 sm:$0xff]  }
  0x77   : > { %1921 = vmatmul.mubr.bf16.gmra.mrb[40].mxu0 %v4091_v39  ;;  %2050 = vmatmul.mubr.bf16.gmra.mrb[40].mxu1 %v4092_v40  ;;  %v4188_v39 = vld [vmem:[%s4350_s11 + $0xf0] ss:$36 sps:$4 sm:$0xff]  }
  0x78   : > { %1928 = vmatprep.mubr.bf16.mxu0 %v4095_v43  ;;  %2057 = vmatprep.mubr.bf16.mxu1 %v4097_v44  ;;  %v4189_v40 = vld [vmem:[%s4350_s11 + $0x374] ss:$36 sps:$4 sm:$0xff]   ;;  %v4196_v44 = vld [vmem:[%s4350_s11 + $0x3bc] ss:$36 sps:$4 sm:$0xff]  }
  0x79   : > { %v4194_v43 = vld [vmem:[%s4350_s11 + $0x138] ss:$36 sps:$4 sm:$0xff]  }
  0x7f   : > { %1929 = vmatmul.mubr.bf16.gmra.mrb[44].mxu0 %v4099_v45  ;;  %2058 = vmatmul.mubr.bf16.gmra.mrb[44].mxu1 %v4100_v46  ;;  %v4198_v45 = vld [vmem:[%s4350_s11 + $0x184] ss:$36 sps:$4 sm:$0xff]   ;;  %v4200_v46 = vld [vmem:[%s4350_s11 + $0x3b8] ss:$36 sps:$4 sm:$0xff]  }
  0x80   : > { %2065 = vmatprep.mubr.bf16.mxu1 %v4103_v49  ;;  %2162 = vmatprep.mubr.bf16.mxu0 %v4107_v50  ;;  %v4204_v49 = vld [vmem:[%s4350_s11 + $0x1cc] ss:$36 sps:$4 sm:$0xff]   ;;  %v4206_v50 = vld [vmem:[%s4350_s11 + $0x400] ss:$36 sps:$4 sm:$0xff]  }
  0x87   : > { %2066 = vmatmul.mubr.bf16.gmra.mrb[48].mxu1 %v4108_v52  ;;  %2163 = vmatmul.mubr.bf16.vlgmr.msra.gmra.mrb[48].mxu0 %v4105_v51  ;;  %v4207_v51 = vld [vmem:[%s4350_s11 + $0x1c8] ss:$36 sps:$4 sm:$0xff]  }
  0x88   : > { %3887 = vmatpush3.bf16.msra.mxu0 %v4111_v29  ;;  %2073 = vmatprep.mubr.bf16.mxu1 %v4112_v53  ;;  %v4172_v29 = vld [vmem:[%s4350_s11 + $0x64] ss:$36 sps:$4 sm:$0xff]   ;;  %v4209_v52 = vld [vmem:[%s4350_s11 + $0x44c] ss:$36 sps:$4 sm:$0xff]   ;;  %v4211_v53 = vld [vmem:[%s4350_s11 + $0x214] ss:$36 sps:$4 sm:$0xff]  }
  0x89   : > { %2170 = vmatprep.mubr.bf16.mxu0 %v4114_v54  ;;  %3888 = vmatprep.subr.bf16.mxu0 %v4126_v55 }
  0x8c   : > { %3889 = vmatpush3.bf16.msra.mxu0 %v4126_v55 }
  0x8d   : > { %3890 = vmatprep.subr.bf16.mxu0 %v4141_v56 }
  0x8f   : > { %2074 = vmatmul.mubr.bf16.gmra.mrb[52].mxu1 %v4116_v57  ;;  %2171 = vmatmul.mubr.bf16.gmra.mrb[52].mxu0 %v4117_v58  ;;  %v4213_v58 = vld [vmem:[%s4350_s11 + $0x448] ss:$36 sps:$4 sm:$0xff]  }
  0x90   : > { %2081 = vmatprep.mubr.bf16.mxu1 %v4118_v59  ;;  %2178 = vmatprep.mubr.bf16.mxu0 %v4120_v60  ;;  %v4214_v59 = vld [vmem:[%s4350_s11 + $0x210] ss:$36 sps:$4 sm:$0xff]  }
  0x91   : > { %3891 = vmatpush3.bf16.msra.mxu0 %v4141_v56 }
  0x92   : > { %3892 = vmatprep.subr.bf16.mxu0 %v4156_v61 }
  0x95   : > { %3893 = vmatpush3.bf16.msra.mxu0 %v4156_v61 }
  0x96   : > { %3894 = vmatprep.subr.bf16.mxu0 %v4169_v62 }
  0x97   : > { %2082 = vmatmul.mubr.bf16.gmra.mrb[56].mxu1 %v4122_v63  ;;  %2179 = vmatmul.mubr.bf16.gmra.mrb[56].mxu0 %v4123_v0  ;;  %v4215_v0 = vld [vmem:[%s4350_s11 + $0x25c] ss:$36 sps:$4 sm:$0xff]  }
  0x98   : > { %2089 = vmatprep.mubr.bf16.mxu1 %v4127_v1  ;;  %2186 = vmatprep.mubr.bf16.mxu0 %v4129_v2  ;;  %v4217_v1 = vld [vmem:[%s4350_s11 + $0x20] ss:$36 sps:$4 sm:$0xff]  }
  0x99   : > { %3895 = vmatpush3.bf16.msra.mxu0 %v4169_v62 }
  0x9a   : > { %3896 = vmatprep.subr.bf16.mxu0 %v4182_v3 }
  0x9d   : > { %3897 = vmatpush3.bf16.msra.mxu0 %v4182_v3 }
  0x9e   : > { %3898 = vmatprep.subr.bf16.mxu0 %v4195_v6 }
  0x9f   : > { %2090 = vmatmul.mubr.bf16.gmra.mrb[60].mxu1 %v4131_v4  ;;  %2187 = vmatmul.mubr.bf16.gmra.mrb[60].mxu0 %v4132_v5 }
  0xa0   : > { %2097 = vmatprep.mubr.bf16.mxu1 %v4133_v7  ;;  %2194 = vmatprep.mubr.bf16.mxu0 %v4135_v8 }
  0xa1   : > { %3899 = vmatpush3.bf16.msra.mxu0 %v4195_v6 }
  0xa2   : > { %3900 = vmatprep.subr.bf16.mxu0 %v4208_v9 }
  0xa5   : > { %3901 = vmatpush3.bf16.msra.mxu0 %v4208_v9 }
  0xa7   : > { %2098 = vmatmul.mubr.bf16.gmra.mrb[64].mxu1 %v4137_v10  ;;  %2195 = vmatmul.mubr.bf16.gmra.mrb[64].mxu0 %v4138_v11  ;;  %v4218_v10 = vld [vmem:[%s4350_s11 + $0x258] ss:$36 sps:$4 sm:$0xff]   ;;  %v4219_v11 = vld [vmem:[%s4350_s11 + $0x68] ss:$36 sps:$4 sm:$0xff]  }
  0xa8   : > { %2105 = vmatprep.mubr.bf16.mxu1 %v4142_v12  ;;  %2202 = vmatprep.mubr.bf16.mxu0 %v4144_v13 }
  0xaf   : > { %2106 = vmatmul.mubr.bf16.gmra.mrb[68].mxu1 %v4146_v14  ;;  %2203 = vmatmul.mubr.bf16.gmra.mrb[68].mxu0 %v4147_v15 }
  0xb0   : > { %2113 = vmatprep.mubr.bf16.mxu1 %v4148_v16  ;;  %2210 = vmatprep.mubr.bf16.mxu0 %v4150_v17  ;;  %v4220_v16 = vld [vmem:[%s4350_s11 + $0x2a4] ss:$36 sps:$4 sm:$0xff]   ;;  %v4222_v17 = vld [vmem:[%s4350_s11 + $0xb0] ss:$36 sps:$4 sm:$0xff]  }
  0xb7   : > { %2114 = vmatmul.mubr.bf16.gmra.mrb[72].mxu1 %v4152_v18  ;;  %2211 = vmatmul.mubr.bf16.gmra.mrb[72].mxu0 %v4153_v19 }
  0xb8   : > { %2121 = vmatprep.mubr.bf16.mxu1 %v4157_v20  ;;  %2218 = vmatprep.mubr.bf16.mxu0 %v4159_v21 }
  0xbf   : > { %2122 = vmatmul.mubr.bf16.gmra.mrb[76].mxu1 %v4161_v22  ;;  %2219 = vmatmul.mubr.bf16.gmra.mrb[76].mxu0 %v4162_v23 }
  0xc0   : > { %2226 = vmatprep.mubr.bf16.mxu0 %v4163_v24  ;;  %2323 = vmatprep.mubr.bf16.mxu1 %v4167_v25 }
  0xc7   : > { %2227 = vmatmul.mubr.bf16.gmra.mrb[80].mxu0 %v4168_v27  ;;  %2324 = vmatmul.mubr.bf16.vlgmr.msra.gmra.mrb[80].mxu1 %v4165_v26  ;;  %v4223_v26 = vld [vmem:[%s4350_s11 + $0x2a0] ss:$36 sps:$4 sm:$0xff]   ;;  %v4224_v27 = vld [vmem:[%s4350_s11 + $0xf8] ss:$36 sps:$4 sm:$0xff]  }
  0xc8   : > { %2234 = vmatprep.mubr.bf16.mxu0 %v4170_v28  ;;  %2331 = vmatprep.mubr.bf16.mxu1 %v4172_v29 }
  0xcf   : > { %2235 = vmatmul.mubr.bf16.gmra.mrb[84].mxu0 %v4174_v30  ;;  %2332 = vmatmul.mubr.bf16.gmra.mrb[84].mxu1 %v4175_v31 }
  0xd0   : > { %2242 = vmatprep.mubr.bf16.mxu0 %v4176_v32  ;;  %2339 = vmatprep.mubr.bf16.mxu1 %v4178_v33  ;;  %v4225_v32 = vld [vmem:[%s4350_s11 + $0x2ec] ss:$36 sps:$4 sm:$0xff]   ;;  %v4227_v33 = vld [vmem:[%s4350_s11 + $0x140] ss:$36 sps:$4 sm:$0xff]  }
  0xd7   : > { %2243 = vmatmul.mubr.bf16.gmra.mrb[88].mxu0 %v4180_v34  ;;  %2340 = vmatmul.mubr.bf16.gmra.mrb[88].mxu1 %v4181_v35 }
  0xd8   : > { %2250 = vmatprep.mubr.bf16.mxu0 %v4183_v36  ;;  %2347 = vmatprep.mubr.bf16.mxu1 %v4185_v37 }
  0xdf   : > { %2251 = vmatmul.mubr.bf16.gmra.mrb[92].mxu0 %v4187_v38  ;;  %2348 = vmatmul.mubr.bf16.gmra.mrb[92].mxu1 %v4188_v39 }
  0xe0   : > { %2258 = vmatprep.mubr.bf16.mxu0 %v4189_v40  ;;  %2355 = vmatprep.mubr.bf16.mxu1 %v4191_v41 }
  0xe7   : > { %2259 = vmatmul.mubr.bf16.gmra.mrb[96].mxu0 %v4193_v42  ;;  %2356 = vmatmul.mubr.bf16.gmra.mrb[96].mxu1 %v4194_v43  ;;  %v4228_v42 = vld [vmem:[%s4350_s11 + $0x2e8] ss:$36 sps:$4 sm:$0xff]  }
  0xe8   : > { %2266 = vmatprep.mubr.bf16.mxu0 %v4196_v44  ;;  %2363 = vmatprep.mubr.bf16.mxu1 %v4198_v45  ;;  %v4229_v43 = vld [vmem:[%s4350_s11 + $0x188] ss:$36 sps:$4 sm:$0xff]  }
  0xef   : > { %2267 = vmatmul.mubr.bf16.gmra.mrb[100].mxu0 %v4200_v46  ;;  %2364 = vmatmul.mubr.bf16.gmra.mrb[100].mxu1 %v4201_v47 }
  0xf0   : > { %2274 = vmatprep.mubr.bf16.mxu0 %v4202_v48  ;;  %2371 = vmatprep.mubr.bf16.mxu1 %v4204_v49  ;;  %v4230_v48 = vld [vmem:[%s4350_s11 + $0x334] ss:$36 sps:$4 sm:$0xff]  }
  0xf1   : > { %v4232_v49 = vld [vmem:[%s4350_s11 + $0x1d0] ss:$36 sps:$4 sm:$0xff]  }
  0xf7   : > { %2275 = vmatmul.mubr.bf16.gmra.mrb[104].mxu0 %v4206_v50  ;;  %2372 = vmatmul.mubr.bf16.gmra.mrb[104].mxu1 %v4207_v51 }
  0xf8   : > { %2282 = vmatprep.mubr.bf16.mxu0 %v4209_v52  ;;  %2379 = vmatprep.mubr.bf16.mxu1 %v4211_v53 }
  0xfa   : > { %v3502_v54 = vpop.f32.mrb[0].mxu1  ;;  %v3430_v55 = vpop.f32.mrb[0].mxu0 }
  0xfb   : > { %v3503_v56 = vpop.f32.mrb[1].mxu1  ;;  %v3431_v57 = vpop.f32.mrb[1].mxu0 }
  0xfc   : > { %v4653_v60 = vadd.f32 %v3503_v56, %v3502_v54  ;;  %v3505_v61 = vpop.f32.mrb[2].mxu1  ;;  %v4655_v62 = vadd.f32 %v3431_v57, %v3430_v55  ;;  %v3433_v63 = vpop.f32.mrb[2].mxu0 }
  0xfd   : > { %v3506_v2 = vpop.f32.mrb[3].mxu1  ;;  %v3434_v3 = vpop.f32.mrb[3].mxu0 }
  0xfe   : > { %v4659_v4 = vadd.f32 %v3506_v2, %v3505_v61  ;;  %v4661_v5 = vadd.f32 %v3434_v3, %v3433_v63  ;;  %v4235_v2 = vld [vmem:[%s4350_s11 + $0x37c] ss:$36 sps:$4 sm:$0xff]  }
  0xff   : > { %2283 = vmatmul.mubr.bf16.gmra.mrb[108].mxu0 %v4213_v58  ;;  %2380 = vmatmul.mubr.bf16.gmra.mrb[108].mxu1 %v4214_v59  ;;  %v4233_v58 = vld [vmem:[%s4350_s11 + $0x330] ss:$36 sps:$4 sm:$0xff]   ;;  %v4234_v59 = vld [vmem:[%s4350_s11 + $0x218] ss:$36 sps:$4 sm:$0xff]   ;;  %v4237_v3 = vld [vmem:[%s4350_s11 + $0x260] ss:$36 sps:$4 sm:$0xff]  }
 0x100   : > { %2387 = vmatprep.mubr.bf16.mxu1 %v4215_v0  ;;  %3902 = vmatprep.mubr.bf16.mxu0 %v4217_v1 }
 0x102   : > { %v3508_v6 = vpop.f32.mrb[4].mxu1  ;;  %v3436_v7 = vpop.f32.mrb[4].mxu0 }
 0x103   : > { %v3509_v8 = vpop.f32.mrb[5].mxu1  ;;  %v3437_v9 = vpop.f32.mrb[5].mxu0 }
 0x104   : > { %v4665_v12 = vadd.f32 %v3509_v8, %v3508_v6  ;;  %v3511_v13 = vpop.f32.mrb[6].mxu1  ;;  %v4667_v14 = vadd.f32 %v3437_v9, %v3436_v7  ;;  %v3439_v15 = vpop.f32.mrb[6].mxu0 }
 0x105   : > { %v3512_v18 = vpop.f32.mrb[7].mxu1  ;;  %v3440_v19 = vpop.f32.mrb[7].mxu0 }
 0x106   : > { %v4671_v20 = vadd.f32 %v3512_v18, %v3511_v13  ;;  %v4673_v21 = vadd.f32 %v3440_v19, %v3439_v15  ;;  %v4238_v18 = vld [vmem:[%s4350_s11 + $0x378] ss:$36 sps:$4 sm:$0xff]   ;;  %v4239_v19 = vld [vmem:[%s4350_s11 + $0x2a8] ss:$36 sps:$4 sm:$0xff]  }
 0x107   : > { %2388 = vmatmul.mubr.bf16.gmra.mrb[112].mxu1 %v4218_v10  ;;  %3903 = vmatmul.mubr.bf16.vlgmr.msra.gmra.mrb[112].mxu0 %v4219_v11 }
 0x108   : > { %2395 = vmatprep.mubr.bf16.mxu1 %v4220_v16  ;;  %3906 = vmatprep.mubr.bf16.mxu0 %v4222_v17 }
 0x10a   : > { %v3514_v22 = vpop.f32.mrb[8].mxu1  ;;  %v3442_v23 = vpop.f32.mrb[8].mxu0 }
 0x10b   : > { %v3515_v24 = vpop.f32.mrb[9].mxu1  ;;  %v3443_v25 = vpop.f32.mrb[9].mxu0 }
 0x10c   : > { %v4677_v28 = vadd.f32 %v3515_v24, %v3514_v22  ;;  %v3517_v29 = vpop.f32.mrb[10].mxu1  ;;  %v4679_v30 = vadd.f32 %v3443_v25, %v3442_v23  ;;  %v3445_v31 = vpop.f32.mrb[10].mxu0  ;;  %v4240_v25 = vld [vmem:[%s4350_s11 + $0x3c4] ss:$36 sps:$4 sm:$0xff]  }
 0x10d   : > { %v3518_v34 = vpop.f32.mrb[11].mxu1  ;;  %v3446_v35 = vpop.f32.mrb[11].mxu0 }
 0x10e   : > { %v4683_v36 = vadd.f32 %v3518_v34, %v3517_v29  ;;  %v4685_v37 = vadd.f32 %v3446_v35, %v3445_v31 }
 0x10f   : > { %2396 = vmatmul.mubr.bf16.gmra.mrb[116].mxu1 %v4223_v26  ;;  %3907 = vmatmul.mubr.bf16.gmra.mrb[116].mxu0 %v4224_v27  ;;  %v4242_v26 = vld [vmem:[%s4350_s11 + $0x2f0] ss:$36 sps:$4 sm:$0xff]  }
 0x110   : > { %2403 = vmatprep.mubr.bf16.mxu1 %v4225_v32  ;;  %3910 = vmatprep.mubr.bf16.mxu0 %v4227_v33 }
 0x112   : > { %v3520_v38 = vpop.f32.mrb[12].mxu1  ;;  %v3448_v39 = vpop.f32.mrb[12].mxu0 }
 0x113   : > { %v3521_v40 = vpop.f32.mrb[13].mxu1  ;;  %v3449_v41 = vpop.f32.mrb[13].mxu0 }
 0x114   : > { %v4689_v44 = vadd.f32 %v3521_v40, %v3520_v38  ;;  %v3523_v45 = vpop.f32.mrb[14].mxu1  ;;  %v4691_v46 = vadd.f32 %v3449_v41, %v3448_v39  ;;  %v3451_v47 = vpop.f32.mrb[14].mxu0  ;;  %v4243_v40 = vld [vmem:[%s4350_s11 + $0x3c0] ss:$36 sps:$4 sm:$0xff]   ;;  %v4244_v41 = vld [vmem:[%s4350_s11 + $0x338] ss:$36 sps:$4 sm:$0xff]  }
 0x115   : > { %v3524_v50 = vpop.f32.mrb[15].mxu1  ;;  %v3452_v51 = vpop.f32.mrb[15].mxu0 }
 0x116   : > { %v4695_v52 = vadd.f32 %v3524_v50, %v3523_v45  ;;  %v4697_v53 = vadd.f32 %v3452_v51, %v3451_v47  ;;  %v4245_v47 = vld [vmem:[%s4350_s11 + $0x40c] ss:$36 sps:$4 sm:$0xff]  }
 0x117   : > { %2404 = vmatmul.mubr.bf16.gmra.mrb[120].mxu1 %v4228_v42  ;;  %3911 = vmatmul.mubr.bf16.gmra.mrb[120].mxu0 %v4229_v43 }
 0x118   : > { %2411 = vmatprep.mubr.bf16.mxu1 %v4230_v48  ;;  %3914 = vmatprep.mubr.bf16.mxu0 %v4232_v49  ;;  %v4247_v48 = vld [vmem:[%s4350_s11 + $0x380] ss:$36 sps:$4 sm:$0xff]  }
 0x11a   : > { %v3542_v54 = vpop.f32.mrb[16].mxu1  ;;  %v3454_v55 = vpop.f32.mrb[16].mxu0 }
 0x11b   : > { %v3543_v56 = vpop.f32.mrb[17].mxu1  ;;  %v3455_v57 = vpop.f32.mrb[17].mxu0 }
 0x11c   : > { %v3544_v61 = vadd.f32 %v3543_v56, %v3542_v54  ;;  %v3545_v63 = vpop.f32.mrb[18].mxu1  ;;  %v4701_v0 = vadd.f32 %v3455_v57, %v3454_v55  ;;  %v3457_v1 = vpop.f32.mrb[18].mxu0 }
 0x11d   : > { %v3546_v6 = vpop.f32.mrb[19].mxu1  ;;  %v3458_v7 = vpop.f32.mrb[19].mxu0 }
 0x11e   : > { %v4706_v8 = vadd.f32 %v3544_v61, %v4655_v62  ;;  %v3547_v9 = vadd.f32 %v3546_v6, %v3545_v63  ;;  %v4708_v10 = vadd.f32 %v3458_v7, %v3457_v1  ;;  %v4248_v61 = vld [vmem:[%s4350_s11 + $0x408] ss:$36 sps:$4 sm:$0xff]   ;;  %v4250_v6 = vld [vmem:[%s4350_s11 + $0x454] ss:$36 sps:$4 sm:$0xff]  }
 0x11f   : > { %2412 = vmatmul.mubr.bf16.gmra.mrb[124].mxu1 %v4233_v58  ;;  %3915 = vmatmul.mubr.bf16.gmra.mrb[124].mxu0 %v4234_v59  ;;  %v4249_v63 = vld [vmem:[%s4350_s11 + $0x3c8] ss:$36 sps:$4 sm:$0xff]   ;;  %v4252_v7 = vld [vmem:[%s4350_s11 + $0x410] ss:$36 sps:$4 sm:$0xff]  }
 0x120   : > { %v4711_v11 = vadd.f32 %v3547_v9, %v4661_v5  ;;  %2419 = vmatprep.mubr.bf16.mxu1 %v4235_v2  ;;  %3918 = vmatprep.mubr.bf16.mxu0 %v4237_v3 }
 0x122   : > { %v3548_v13 = vpop.f32.mrb[20].mxu1  ;;  %v3460_v15 = vpop.f32.mrb[20].mxu0 }
 0x123   : > { %v3549_v16 = vpop.f32.mrb[21].mxu1  ;;  %v3461_v17 = vpop.f32.mrb[21].mxu0 }
 0x124   : > { %v3550_v62 = vadd.f32 %v3549_v16, %v3548_v13  ;;  %v3551_v22 = vpop.f32.mrb[22].mxu1  ;;  %v4715_v23 = vadd.f32 %v3461_v17, %v3460_v15  ;;  %v3463_v24 = vpop.f32.mrb[22].mxu0 }
 0x125   : > { %v3552_v27 = vpop.f32.mrb[23].mxu1  ;;  %v3464_v5 = vpop.f32.mrb[23].mxu0 }
 0x126   : > { %v4720_v29 = vadd.f32 %v3550_v62, %v4667_v14  ;;  %v3553_v31 = vadd.f32 %v3552_v27, %v3551_v22  ;;  %v4722_v32 = vadd.f32 %v3464_v5, %v3463_v24  ;;  %v4253_v24 = vld [vmem:[%s4350_s11 + $0x450] ss:$36 sps:$4 sm:$0xff]  }
 0x127   : > { %2420 = vmatmul.mubr.bf16.gmra.mrb[128].mxu1 %v4238_v18  ;;  %3919 = vmatmul.mubr.bf16.gmra.mrb[128].mxu0 %v4239_v19 }
 0x128   : > { %v4725_v33 = vadd.f32 %v3553_v31, %v4673_v21  ;;  %2427 = vmatprep.mubr.bf16.mxu1 %v4240_v25  ;;  %3922 = vmatprep.mubr.bf16.mxu0 %v4242_v26  ;;  %v4254_v25 = vld [vmem:[%s4350_s11 + $0x458] ss:$36 sps:$4 sm:$0xff]  }
 0x12a   : > { %v3554_v34 = vpop.f32.mrb[24].mxu1  ;;  %v3466_v35 = vpop.f32.mrb[24].mxu0 }
 0x12b   : > { %v3555_v38 = vpop.f32.mrb[25].mxu1  ;;  %v3467_v39 = vpop.f32.mrb[25].mxu0 }
 0x12c   : > { %v3556_v14 = vadd.f32 %v3555_v38, %v3554_v34  ;;  %v3557_v42 = vpop.f32.mrb[26].mxu1  ;;  %v4729_v43 = vadd.f32 %v3467_v39, %v3466_v35  ;;  %v3469_v45 = vpop.f32.mrb[26].mxu0 }
 0x12d   : > { %v3558_v49 = vpop.f32.mrb[27].mxu1  ;;  %v3470_v21 = vpop.f32.mrb[27].mxu0 }
 0x12e   : > { %v4734_v50 = vadd.f32 %v3556_v14, %v4679_v30  ;;  %v3559_v51 = vadd.f32 %v3558_v49, %v3557_v42  ;;  %v4736_v54 = vadd.f32 %v3470_v21, %v3469_v45 }
 0x12f   : > { %2428 = vmatmul.mubr.bf16.gmra.mrb[132].mxu1 %v4243_v40  ;;  %3923 = vmatmul.mubr.bf16.gmra.mrb[132].mxu0 %v4244_v41 }
 0x130   : > { %v4739_v55 = vadd.f32 %v3559_v51, %v4685_v37  ;;  %2435 = vmatprep.mubr.bf16.mxu1 %v4245_v47  ;;  %3926 = vmatprep.mubr.bf16.mxu0 %v4247_v48 }
 0x132   : > { %v3560_v56 = vpop.f32.mrb[28].mxu1  ;;  %v3472_v57 = vpop.f32.mrb[28].mxu0 }
 0x133   : > { %v3561_v58 = vpop.f32.mrb[29].mxu1  ;;  %v3473_v59 = vpop.f32.mrb[29].mxu0 }
 0x134   : > { %v3562_v30 = vadd.f32 %v3561_v58, %v3560_v56  ;;  %v3563_v1 = vpop.f32.mrb[30].mxu1  ;;  %v4743_v2 = vadd.f32 %v3473_v59, %v3472_v57  ;;  %v3475_v3 = vpop.f32.mrb[30].mxu0 }
 0x135   : > { %v3564_v9 = vpop.f32.mrb[31].mxu1  ;;  %v3476_v37 = vpop.f32.mrb[31].mxu0 }
 0x136   : > { %v4748_v13 = vadd.f32 %v3562_v30, %v4691_v46  ;;  %v3565_v15 = vadd.f32 %v3564_v9, %v3563_v1  ;;  %v4750_v16 = vadd.f32 %v3476_v37, %v3475_v3 }
 0x137   : > { %2436 = vmatmul.mubr.bf16.gmra.mrb[136].mxu1 %v4248_v61  ;;  %3927 = vmatmul.mubr.bf16.gmra.mrb[136].mxu0 %v4249_v63 }
 0x138   : > { %v4753_v17 = vadd.f32 %v3565_v15, %v4697_v53  ;;  %2443 = vmatprep.mubr.bf16.mxu1 %v4250_v6  ;;  %3930 = vmatprep.mubr.bf16.mxu0 %v4252_v7 }
 0x13a   : > { %v3566_v18 = vpop.f32.mrb[32].mxu1  ;;  %v3478_v19 = vpop.f32.mrb[32].mxu0 }
 0x13b   : > { %v3567_v62 = vpop.f32.mrb[33].mxu1  ;;  %v3479_v22 = vpop.f32.mrb[33].mxu0 }
 0x13c   : > { %v3568_v26 = vadd.f32 %v3567_v62, %v3566_v18  ;;  %v3569_v27 = vpop.f32.mrb[34].mxu1  ;;  %v3480_v46 = vadd.f32 %v3479_v22, %v3478_v19  ;;  %v3481_v5 = vpop.f32.mrb[34].mxu0 }
 0x13d   : > { %v3570_v31 = vpop.f32.mrb[35].mxu1  ;;  %v3482_v34 = vpop.f32.mrb[35].mxu0 }
 0x13e   : > { %v4758_v35 = vadd.f32 %v3568_v26, %v4701_v0  ;;  %v3571_v38 = vadd.f32 %v3570_v31, %v3569_v27  ;;  %v3483_v53 = vadd.f32 %v3482_v34, %v3481_v5 }
 0x13f   : > { %2444 = vmatmul.mubr.bf16.gmra.mrb[140].mxu1 %v4253_v24  ;;  %3931 = vmatmul.mubr.bf16.gmra.mrb[140].mxu0 %v4254_v25 }
 0x140   : > { %v4761_v39 = vadd.f32 %v3571_v38, %v4708_v10 }
 0x142   : > { %v3572_v40 = vpop.f32.mrb[36].mxu1  ;;  %v3484_v41 = vpop.f32.mrb[36].mxu0 }
 0x143   : > { %v3573_v14 = vpop.f32.mrb[37].mxu1  ;;  %v3485_v42 = vpop.f32.mrb[37].mxu0 }
 0x144   : > { %v3574_v45 = vadd.f32 %v3573_v14, %v3572_v40  ;;  %v3575_v47 = vpop.f32.mrb[38].mxu1  ;;  %v3486_v48 = vadd.f32 %v3485_v42, %v3484_v41  ;;  %v3487_v49 = vpop.f32.mrb[38].mxu0 }
 0x145   : > { %v3576_v21 = vpop.f32.mrb[39].mxu1  ;;  %v3488_v51 = vpop.f32.mrb[39].mxu0 }
 0x146   : > { %v4764_v0 = vadd.f32 %v3574_v45, %v4715_v23  ;;  %v3577_v56 = vadd.f32 %v3576_v21, %v3575_v47  ;;  %v3489_v57 = vadd.f32 %v3488_v51, %v3487_v49 }
 0x148   : > { %v4767_v58 = vadd.f32 %v3577_v56, %v4722_v32 }
 0x14a   : > { %v3578_v10 = vpop.f32.mrb[40].mxu1  ;;  %v3490_v59 = vpop.f32.mrb[40].mxu0 }
 0x14b   : > { %v3579_v61 = vpop.f32.mrb[41].mxu1  ;;  %v3491_v63 = vpop.f32.mrb[41].mxu0 }
 0x14c   : > { %v3580_v30 = vadd.f32 %v3579_v61, %v3578_v10  ;;  %v3581_v1 = vpop.f32.mrb[42].mxu1  ;;  %v4769_v3 = vadd.f32 %v3491_v63, %v3490_v59  ;;  %v3493_v6 = vpop.f32.mrb[42].mxu0 }
 0x14d   : > { %v3582_v7 = vpop.f32.mrb[43].mxu1  ;;  %v3494_v9 = vpop.f32.mrb[43].mxu0 }
 0x14e   : > { %v4772_v37 = vadd.f32 %v3580_v30, %v4729_v43  ;;  %v3583_v23 = vadd.f32 %v3582_v7, %v3581_v1  ;;  %v3495_v15 = vadd.f32 %v3494_v9, %v3493_v6 }
 0x150   : > { %v4775_v18 = vadd.f32 %v3583_v23, %v4736_v54 }
 0x152   : > { %v3584_v32 = vpop.f32.mrb[44].mxu1  ;;  %v3496_v19 = vpop.f32.mrb[44].mxu0 }
 0x153   : > { %v3585_v62 = vpop.f32.mrb[45].mxu1  ;;  %v3497_v22 = vpop.f32.mrb[45].mxu0 }
 0x154   : > { %v3586_v24 = vadd.f32 %v3585_v62, %v3584_v32  ;;  %v3587_v25 = vpop.f32.mrb[46].mxu1  ;;  %v4777_v26 = vadd.f32 %v3497_v22, %v3496_v19  ;;  %v3499_v27 = vpop.f32.mrb[46].mxu0 }
 0x155   : > { %v3588_v5 = vpop.f32.mrb[47].mxu1  ;;  %v3500_v31 = vpop.f32.mrb[47].mxu0 }
 0x156   : > { %v4780_v34 = vadd.f32 %v3586_v24, %v4743_v2  ;;  %v3589_v43 = vadd.f32 %v3588_v5, %v3587_v25  ;;  %v4782_v38 = vadd.f32 %v3500_v31, %v3499_v27 }
 0x158   : > { %v4785_v54 = vadd.f32 %v3589_v43, %v4750_v16 }
 0x15a   : > { %v3590_v40 = vpop.f32.mrb[48].mxu1  ;;  %v3654_v41 = vpop.f32.mrb[48].mxu0 }
 0x15b   : > { %v3591_v14 = vpop.f32.mrb[49].mxu1  ;;  %v3655_v42 = vpop.f32.mrb[49].mxu0 }
 0x15c   : > { %v3592_v45 = vadd.f32 %v3591_v14, %v3590_v40  ;;  %v3656_v47 = vadd.f32 %v3655_v42, %v3654_v41  ;;  %v3593_v49 = vpop.f32.mrb[50].mxu1  ;;  %v3657_v21 = vpop.f32.mrb[50].mxu0 }
 0x15d   : > { %v3594_v51 = vpop.f32.mrb[51].mxu1  ;;  %v3658_v56 = vpop.f32.mrb[51].mxu0 }
 0x15e   : > { %v4787_v10 = vadd.f32 %v3592_v45, %v3480_v46  ;;  %v4790_v2 = vadd.f32 %v3656_v47, %v4706_v8  ;;  %v3595_v59 = vadd.f32 %v3594_v51, %v3593_v49  ;;  %v3659_v61 = vadd.f32 %v3658_v56, %v3657_v21 }
 0x160   : > { %v4792_v63 = vadd.f32 %v3595_v59, %v3483_v53  ;;  %v4795_v16 = vadd.f32 %v3659_v61, %v4711_v11 }
 0x162   : > { %v3596_v30 = vpop.f32.mrb[52].mxu1  ;;  %v3660_v1 = vpop.f32.mrb[52].mxu0 }
 0x163   : > { %v3597_v6 = vpop.f32.mrb[53].mxu1  ;;  %v3661_v7 = vpop.f32.mrb[53].mxu0 }
 0x164   : > { %v3598_v9 = vadd.f32 %v3597_v6, %v3596_v30  ;;  %v3662_v23 = vadd.f32 %v3661_v7, %v3660_v1  ;;  %v3599_v32 = vpop.f32.mrb[54].mxu1  ;;  %v3663_v19 = vpop.f32.mrb[54].mxu0 }
 0x165   : > { %v3600_v46 = vpop.f32.mrb[55].mxu1  ;;  %v3664_v62 = vpop.f32.mrb[55].mxu0 }
 0x166   : > { %v4797_v22 = vadd.f32 %v3598_v9, %v3486_v48  ;;  %v4800_v8 = vadd.f32 %v3662_v23, %v4720_v29  ;;  %v3601_v53 = vadd.f32 %v3600_v46, %v3599_v32  ;;  %v3665_v24 = vadd.f32 %v3664_v62, %v3663_v19 }
 0x168   : > { %v4802_v25 = vadd.f32 %v3601_v53, %v3489_v57  ;;  %v4805_v11 = vadd.f32 %v3665_v24, %v4725_v33 }
 0x16a   : > { %v3602_v27 = vpop.f32.mrb[56].mxu1  ;;  %v3666_v5 = vpop.f32.mrb[56].mxu0 }
 0x16b   : > { %v3603_v31 = vpop.f32.mrb[57].mxu1  ;;  %v3667_v43 = vpop.f32.mrb[57].mxu0 }
 0x16c   : > { %v3604_v40 = vadd.f32 %v3603_v31, %v3602_v27  ;;  %v3668_v41 = vadd.f32 %v3667_v43, %v3666_v5  ;;  %v3605_v14 = vpop.f32.mrb[58].mxu1  ;;  %v3669_v42 = vpop.f32.mrb[58].mxu0 }
 0x16d   : > { %v3606_v48 = vpop.f32.mrb[59].mxu1  ;;  %v3670_v45 = vpop.f32.mrb[59].mxu0 }
 0x16e   : > { %v4808_v29 = vadd.f32 %v3604_v40, %v4769_v3  ;;  %v4811_v47 = vadd.f32 %v3668_v41, %v4734_v50  ;;  %v3607_v57 = vadd.f32 %v3606_v48, %v3605_v14  ;;  %v3671_v49 = vadd.f32 %v3670_v45, %v3669_v42 }
 0x170   : > { %v4813_v33 = vadd.f32 %v3607_v57, %v3495_v15  ;;  %v4816_v21 = vadd.f32 %v3671_v49, %v4739_v55 }
 0x172   : > { %v3608_v51 = vpop.f32.mrb[60].mxu1  ;;  %v3672_v56 = vpop.f32.mrb[60].mxu0 }
 0x173   : > { %v3609_v59 = vpop.f32.mrb[61].mxu1  ;;  %v3673_v61 = vpop.f32.mrb[61].mxu0 }
 0x174   : > { %v3610_v30 = vadd.f32 %v3609_v59, %v3608_v51  ;;  %v3674_v1 = vadd.f32 %v3673_v61, %v3672_v56  ;;  %v3611_v6 = vpop.f32.mrb[62].mxu1  ;;  %v3675_v7 = vpop.f32.mrb[62].mxu0 }
 0x175   : > { %v3612_v3 = vpop.f32.mrb[63].mxu1  ;;  %v3676_v9 = vpop.f32.mrb[63].mxu0 }
 0x176   : > { %v4819_v50 = vadd.f32 %v3610_v30, %v4777_v26  ;;  %v4822_v23 = vadd.f32 %v3674_v1, %v4748_v13  ;;  %v3613_v15 = vadd.f32 %v3612_v3, %v3611_v6  ;;  %v3677_v32 = vadd.f32 %v3676_v9, %v3675_v7 }
 0x178   : > { %v4825_v55 = vadd.f32 %v3613_v15, %v4782_v38  ;;  %v4828_v19 = vadd.f32 %v3677_v32, %v4753_v17 }
 0x17a   : > { %v3614_v46 = vpop.f32.mrb[64].mxu1  ;;  %v3678_v62 = vpop.f32.mrb[64].mxu0 }
 0x17b   : > { %v3615_v53 = vpop.f32.mrb[65].mxu1  ;;  %v3679_v24 = vpop.f32.mrb[65].mxu0 }
 0x17c   : > { %v3616_v27 = vadd.f32 %v3615_v53, %v3614_v46  ;;  %v3680_v5 = vadd.f32 %v3679_v24, %v3678_v62  ;;  %v3617_v31 = vpop.f32.mrb[66].mxu1  ;;  %v3681_v26 = vpop.f32.mrb[66].mxu0 }
 0x17d   : > { %v3618_v43 = vpop.f32.mrb[67].mxu1  ;;  %v3682_v40 = vpop.f32.mrb[67].mxu0 }
 0x17e   : > { %v4831_v13 = vadd.f32 %v3616_v27, %v4653_v60  ;;  %v4834_v41 = vadd.f32 %v3680_v5, %v4758_v35  ;;  %v3619_v38 = vadd.f32 %v3618_v43, %v3617_v31  ;;  %v3683_v14 = vadd.f32 %v3682_v40, %v3681_v26 }
 0x180   : > { %v4837_v17 = vadd.f32 %v3619_v38, %v4659_v4  ;;  %v4840_v42 = vadd.f32 %v3683_v14, %v4761_v39 }
 0x182   : > { %v3620_v48 = vpop.f32.mrb[68].mxu1  ;;  %v3684_v45 = vpop.f32.mrb[68].mxu0 }
 0x183   : > { %v3621_v57 = vpop.f32.mrb[69].mxu1  ;;  %v3685_v49 = vpop.f32.mrb[69].mxu0 }
 0x184   : > { %v3622_v51 = vadd.f32 %v3621_v57, %v3620_v48  ;;  %v3686_v56 = vadd.f32 %v3685_v49, %v3684_v45  ;;  %v3623_v59 = vpop.f32.mrb[70].mxu1  ;;  %v3687_v60 = vpop.f32.mrb[70].mxu0 }
 0x185   : > { %v3624_v61 = vpop.f32.mrb[71].mxu1  ;;  %v3688_v30 = vpop.f32.mrb[71].mxu0 }
 0x186   : > { %v4843_v35 = vadd.f32 %v3622_v51, %v4665_v12  ;;  %v4846_v1 = vadd.f32 %v3686_v56, %v4764_v0  ;;  %v3625_v4 = vadd.f32 %v3624_v61, %v3623_v59  ;;  %v3689_v6 = vadd.f32 %v3688_v30, %v3687_v60 }
 0x188   : > { %v4849_v39 = vadd.f32 %v3625_v4, %v4671_v20  ;;  %v4852_v7 = vadd.f32 %v3689_v6, %v4767_v58 }
 0x18a   : > { %v3626_v3 = vpop.f32.mrb[72].mxu1  ;;  %v3690_v9 = vpop.f32.mrb[72].mxu0 }
 0x18b   : > { %v3627_v15 = vpop.f32.mrb[73].mxu1  ;;  %v3691_v32 = vpop.f32.mrb[73].mxu0 }
 0x18c   : > { %v3628_v46 = vadd.f32 %v3627_v15, %v3626_v3  ;;  %v3692_v62 = vadd.f32 %v3691_v32, %v3690_v9  ;;  %v3629_v53 = vpop.f32.mrb[74].mxu1  ;;  %v3693_v12 = vpop.f32.mrb[74].mxu0 }
 0x18d   : > { %v3630_v24 = vpop.f32.mrb[75].mxu1  ;;  %v3694_v27 = vpop.f32.mrb[75].mxu0 }
 0x18e   : > { %v4855_v0 = vadd.f32 %v3628_v46, %v4677_v28  ;;  %v4858_v5 = vadd.f32 %v3692_v62, %v4772_v37  ;;  %v3631_v20 = vadd.f32 %v3630_v24, %v3629_v53  ;;  %v3695_v31 = vadd.f32 %v3694_v27, %v3693_v12 }
 0x190   : > { %v4861_v58 = vadd.f32 %v3631_v20, %v4683_v36  ;;  %v4864_v26 = vadd.f32 %v3695_v31, %v4775_v18 }
 0x192   : > { %v3632_v43 = vpop.f32.mrb[76].mxu1  ;;  %v3696_v40 = vpop.f32.mrb[76].mxu0 }
 0x193   : > { %v3633_v38 = vpop.f32.mrb[77].mxu1  ;;  %v3697_v14 = vpop.f32.mrb[77].mxu0 }
 0x194   : > { %v3634_v48 = vadd.f32 %v3633_v38, %v3632_v43  ;;  %v3698_v45 = vadd.f32 %v3697_v14, %v3696_v40  ;;  %v3635_v57 = vpop.f32.mrb[78].mxu1  ;;  %v3699_v28 = vpop.f32.mrb[78].mxu0 }
 0x195   : > { %v3636_v49 = vpop.f32.mrb[79].mxu1  ;;  %v3700_v51 = vpop.f32.mrb[79].mxu0 }
 0x196   : > { %v4867_v37 = vadd.f32 %v3634_v48, %v4689_v44  ;;  %v4870_v56 = vadd.f32 %v3698_v45, %v4780_v34  ;;  %v3637_v36 = vadd.f32 %v3636_v49, %v3635_v57  ;;  %v3701_v59 = vadd.f32 %v3700_v51, %v3699_v28 }
 0x198   : > { %v4873_v18 = vadd.f32 %v3637_v36, %v4695_v52  ;;  %v4876_v60 = vadd.f32 %v3701_v59, %v4785_v54 }
 0x19a   : > { %v3702_v61 = vpop.f32.mrb[80].mxu0  ;;  %v3766_v30 = vpop.f32.mrb[80].mxu1 }
 0x19b   : > { %v3703_v4 = vpop.f32.mrb[81].mxu0  ;;  %v3767_v6 = vpop.f32.mrb[81].mxu1 }
 0x19c   : > { %v3704_v3 = vadd.f32 %v3703_v4, %v3702_v61  ;;  %v3768_v9 = vadd.f32 %v3767_v6, %v3766_v30  ;;  %v3705_v15 = vpop.f32.mrb[82].mxu0  ;;  %v3769_v44 = vpop.f32.mrb[82].mxu1 }
 0x19d   : > { %v3706_v32 = vpop.f32.mrb[83].mxu0  ;;  %v3770_v46 = vpop.f32.mrb[83].mxu1 }
 0x19e   : > { %v4879_v34 = vadd.f32 %v3704_v3, %v4787_v10  ;;  %v3707_v62 = vadd.f32 %v3706_v32, %v3705_v15  ;;  %v3771_v53 = vadd.f32 %v3770_v46, %v3769_v44  ;;  %v4882_v52 = vadd.f32 %v3768_v9, %v4790_v2 }
 0x1a0   : > { %v4885_v54 = vadd.f32 %v3707_v62, %v4792_v63  ;;  %v4888_v12 = vadd.f32 %v3771_v53, %v4795_v16 }
 0x1a2   : > { %v3708_v24 = vpop.f32.mrb[84].mxu0  ;;  %v3772_v27 = vpop.f32.mrb[84].mxu1 }
 0x1a3   : > { %v3709_v20 = vpop.f32.mrb[85].mxu0  ;;  %v3773_v31 = vpop.f32.mrb[85].mxu1 }
 0x1a4   : > { %v3710_v43 = vadd.f32 %v3709_v20, %v3708_v24  ;;  %v3774_v40 = vadd.f32 %v3773_v31, %v3772_v27  ;;  %v3711_v38 = vpop.f32.mrb[86].mxu0  ;;  %v3775_v10 = vpop.f32.mrb[86].mxu1 }
 0x1a5   : > { %v3712_v14 = vpop.f32.mrb[87].mxu0  ;;  %v3776_v48 = vpop.f32.mrb[87].mxu1 }
 0x1a6   : > { %v4891_v45 = vadd.f32 %v3710_v43, %v4797_v22  ;;  %v3713_v2 = vadd.f32 %v3712_v14, %v3711_v38  ;;  %v3777_v57 = vadd.f32 %v3776_v48, %v3775_v10  ;;  %v4894_v63 = vadd.f32 %v3774_v40, %v4800_v8 }
 0x1a8   : > { %v4897_v16 = vadd.f32 %v3713_v2, %v4802_v25  ;;  %v4900_v28 = vadd.f32 %v3777_v57, %v4805_v11 }
 0x1aa   : > { %v3714_v49 = vpop.f32.mrb[88].mxu0  ;;  %v3778_v51 = vpop.f32.mrb[88].mxu1 }
 0x1ab   : > { %v3715_v36 = vpop.f32.mrb[89].mxu0  ;;  %v3779_v59 = vpop.f32.mrb[89].mxu1 }
 0x1ac   : > { %v3716_v61 = vadd.f32 %v3715_v36, %v3714_v49  ;;  %v3780_v30 = vadd.f32 %v3779_v59, %v3778_v51  ;;  %v3717_v4 = vpop.f32.mrb[90].mxu0  ;;  %v3781_v22 = vpop.f32.mrb[90].mxu1 }
 0x1ad   : > { %v3718_v6 = vpop.f32.mrb[91].mxu0  ;;  %v3782_v3 = vpop.f32.mrb[91].mxu1 }
 0x1ae   : > { %v4903_v9 = vadd.f32 %v3716_v61, %v4808_v29  ;;  %v3719_v8 = vadd.f32 %v3718_v6, %v3717_v4  ;;  %v3783_v15 = vadd.f32 %v3782_v3, %v3781_v22  ;;  %v4906_v25 = vadd.f32 %v3780_v30, %v4811_v47 }
 0x1b0   : > { %v4909_v11 = vadd.f32 %v3719_v8, %v4813_v33  ;;  %v4912_v44 = vadd.f32 %v3783_v15, %v4816_v21 }
 0x1b2   : > { %v3720_v32 = vpop.f32.mrb[92].mxu0  ;;  %v3784_v46 = vpop.f32.mrb[92].mxu1 }
 0x1b3   : > { %v3721_v62 = vpop.f32.mrb[93].mxu0  ;;  %v3785_v53 = vpop.f32.mrb[93].mxu1 }
 0x1b4   : > { %v3722_v24 = vadd.f32 %v3721_v62, %v3720_v32  ;;  %v3786_v27 = vadd.f32 %v3785_v53, %v3784_v46  ;;  %v3723_v20 = vpop.f32.mrb[94].mxu0  ;;  %v3787_v29 = vpop.f32.mrb[94].mxu1 }
 0x1b5   : > { %v3724_v31 = vpop.f32.mrb[95].mxu0  ;;  %v3788_v43 = vpop.f32.mrb[95].mxu1 }
 0x1b6   : > { %v4915_v40 = vadd.f32 %v3722_v24, %v4819_v50  ;;  %v3725_v47 = vadd.f32 %v3724_v31, %v3723_v20  ;;  %v3789_v38 = vadd.f32 %v3788_v43, %v3787_v29  ;;  %v4918_v33 = vadd.f32 %v3786_v27, %v4822_v23 }
 0x1b8   : > { %v4921_v21 = vadd.f32 %v3725_v47, %v4825_v55  ;;  %v4924_v10 = vadd.f32 %v3789_v38, %v4828_v19 }
 0x1ba   : > { %v3726_v14 = vpop.f32.mrb[96].mxu0  ;;  %v3790_v48 = vpop.f32.mrb[96].mxu1 }
 0x1bb   : > { %v3727_v2 = vpop.f32.mrb[97].mxu0  ;;  %v3791_v57 = vpop.f32.mrb[97].mxu1 }
 0x1bc   : > { %v3728_v49 = vadd.f32 %v3727_v2, %v3726_v14  ;;  %v3792_v51 = vadd.f32 %v3791_v57, %v3790_v48  ;;  %v3729_v36 = vpop.f32.mrb[98].mxu0  ;;  %v3793_v50 = vpop.f32.mrb[98].mxu1 }
 0x1bd   : > { %v3730_v59 = vpop.f32.mrb[99].mxu0  ;;  %v3794_v61 = vpop.f32.mrb[99].mxu1 }
 0x1be   : > { %v4927_v30 = vadd.f32 %v3728_v49, %v4831_v13  ;;  %v3731_v23 = vadd.f32 %v3730_v59, %v3729_v36  ;;  %v3795_v4 = vadd.f32 %v3794_v61, %v3793_v50  ;;  %v4930_v55 = vadd.f32 %v3792_v51, %v4834_v41 }
 0x1c0   : > { %v4933_v19 = vadd.f32 %v3731_v23, %v4837_v17  ;;  %v4936_v22 = vadd.f32 %v3795_v4, %v4840_v42 }
 0x1c2   : > { %v3732_v6 = vpop.f32.mrb[100].mxu0  ;;  %v3796_v3 = vpop.f32.mrb[100].mxu1 }
 0x1c3   : > { %v3733_v8 = vpop.f32.mrb[101].mxu0  ;;  %v3797_v15 = vpop.f32.mrb[101].mxu1 }
 0x1c4   : > { %v3734_v32 = vadd.f32 %v3733_v8, %v3732_v6  ;;  %v3798_v46 = vadd.f32 %v3797_v15, %v3796_v3  ;;  %v3735_v62 = vpop.f32.mrb[102].mxu0  ;;  %v3799_v13 = vpop.f32.mrb[102].mxu1 }
 0x1c5   : > { %v3736_v53 = vpop.f32.mrb[103].mxu0  ;;  %v3800_v24 = vpop.f32.mrb[103].mxu1 }
 0x1c6   : > { %v4939_v27 = vadd.f32 %v3734_v32, %v4843_v35  ;;  %v3737_v41 = vadd.f32 %v3736_v53, %v3735_v62  ;;  %v3801_v20 = vadd.f32 %v3800_v24, %v3799_v13  ;;  %v4942_v17 = vadd.f32 %v3798_v46, %v4846_v1 }
 0x1c8   : > { %v4945_v42 = vadd.f32 %v3737_v41, %v4849_v39  ;;  %v4948_v29 = vadd.f32 %v3801_v20, %v4852_v7 }
 0x1ca   : > { %v3738_v31 = vpop.f32.mrb[104].mxu0  ;;  %v3802_v43 = vpop.f32.mrb[104].mxu1 }
 0x1cb   : > { %v3739_v47 = vpop.f32.mrb[105].mxu0  ;;  %v3803_v38 = vpop.f32.mrb[105].mxu1 }
 0x1cc   : > { %v3740_v14 = vadd.f32 %v3739_v47, %v3738_v31  ;;  %v3804_v48 = vadd.f32 %v3803_v38, %v3802_v43  ;;  %v3741_v2 = vpop.f32.mrb[106].mxu0  ;;  %v3805_v35 = vpop.f32.mrb[106].mxu1 }
 0x1cd   : > { %v3742_v57 = vpop.f32.mrb[107].mxu0  ;;  %v3806_v49 = vpop.f32.mrb[107].mxu1 }
 0x1ce   : > { %v4951_v51 = vadd.f32 %v3740_v14, %v4855_v0  ;;  %v3743_v1 = vadd.f32 %v3742_v57, %v3741_v2  ;;  %v3807_v36 = vadd.f32 %v3806_v49, %v3805_v35  ;;  %v4954_v39 = vadd.f32 %v3804_v48, %v4858_v5 }
 0x1d0   : > { %v4957_v7 = vadd.f32 %v3743_v1, %v4861_v58  ;;  %v4960_v50 = vadd.f32 %v3807_v36, %v4864_v26 }
 0x1d2   : > { %v3744_v59 = vpop.f32.mrb[108].mxu0  ;;  %v3808_v61 = vpop.f32.mrb[108].mxu1 }
 0x1d3   : > { %v3745_v23 = vpop.f32.mrb[109].mxu0  ;;  %v3809_v4 = vpop.f32.mrb[109].mxu1 }
 0x1d4   : > { %v3746_v6 = vadd.f32 %v3745_v23, %v3744_v59  ;;  %v3810_v3 = vadd.f32 %v3809_v4, %v3808_v61  ;;  %v3747_v8 = vpop.f32.mrb[110].mxu0  ;;  %v3811_v0 = vpop.f32.mrb[110].mxu1 }
 0x1d5   : > { %v3748_v15 = vpop.f32.mrb[111].mxu0  ;;  %v3812_v32 = vpop.f32.mrb[111].mxu1 }
 0x1d6   : > { %v4963_v46 = vadd.f32 %v3746_v6, %v4867_v37  ;;  %v3749_v5 = vadd.f32 %v3748_v15, %v3747_v8  ;;  %v3813_v58 = vadd.f32 %v3812_v32, %v3811_v0  ;;  %v4966_v62 = vadd.f32 %v3810_v3, %v4870_v56  ;;  %v4978_v37 = vld [vmem:[%s5088_s2] ss:$0 sm:$0xff] }
 0x1d8   : > { %v4969_v26 = vadd.f32 %v3749_v5, %v4873_v18  ;;  %v4972_v13 = vadd.f32 %v3813_v58, %v4876_v60 }
 0x1da   : > { %v3814_v53 = vpop.f32.mrb[112].mxu1  ;;  %v3904_v24 = vpop.f32.mrb[112].mxu0 }
 0x1db   : > { %v2495_v41 = vadd.f32 %v3904_v24, %v4894_v63  ;;  %v3815_v20 = vpop.f32.mrb[113].mxu1  ;;  %v2486_v31 = vpop.f32.mrb[113].mxu0 }
 0x1dc   : > { %v3816_v43 = vadd.f32 %v3815_v20, %v3814_v53  ;;  %v2487_v56 = vadd.f32 %v2486_v31, %v4882_v52  ;;  %v3817_v47 = vpop.f32.mrb[114].mxu1  ;;  %v3905_v18 = vpop.f32.mrb[114].mxu0 }
 0x1dd   : > { %v2498_v60 = vadd.f32 %v3905_v18, %v4900_v28  ;;  %v3818_v38 = vpop.f32.mrb[115].mxu1  ;;  %v2489_v14 = vpop.f32.mrb[115].mxu0  ;;  %v2721_v35 = vadd.f32 %v4978_v37, %v2495_v41 }
 0x1de   : > { %v3819_v48 = vadd.f32 %v3818_v38, %v3817_v47  ;;  %v2490_v63 = vadd.f32 %v2489_v14, %v4888_v12  ;;  %v4985_v2 = vadd.f32 %v3816_v43, %v4879_v34  ;;  %v2719_v49 = vadd.f32 %v4978_v37, %v2487_v56 }
 0x1df   : > { %v2722_v57 = vadd.f32 %v4978_v37, %v2498_v60 }
 0x1e0   : > { %v2720_v52 = vadd.f32 %v4978_v37, %v2490_v63  ;;  %v4997_v12 = vadd.f32 %v3819_v48, %v4885_v54 }
 0x1e1   : > { %v3327_v34 = vpack.c.bf16 %v2722_v57, %v2721_v35 }
 0x1e2   : > { %v3322_v28 = vpack.c.bf16 %v2720_v52, %v2719_v49  ;;  %v3820_v1 = vpop.f32.mrb[116].mxu1  ;;  %v3908_v36 = vpop.f32.mrb[116].mxu0 }
 0x1e3   : > { %3399 = vst [vmem:[%s4993_s18 + $0x8] sm:$0xff] %v3327_v34   ;;  %v2511_v59 = vadd.f32 %v3908_v36, %v4918_v33  ;;  %v3821_v61 = vpop.f32.mrb[117].mxu1  ;;  %v2502_v23 = vpop.f32.mrb[117].mxu0 }
 0x1e4   : > { %3323 = vst [vmem:[%s4993_s18] sm:$0xff] %v3322_v28   ;;  %v3822_v4 = vadd.f32 %v3821_v61, %v3820_v1  ;;  %v2503_v6 = vadd.f32 %v2502_v23, %v4906_v25  ;;  %v3823_v3 = vpop.f32.mrb[118].mxu1  ;;  %v3909_v8 = vpop.f32.mrb[118].mxu0 }
 0x1e5   : > { %v2514_v0 = vadd.f32 %v3909_v8, %v4924_v10  ;;  %v3824_v54 = vpop.f32.mrb[119].mxu1  ;;  %v2505_v15 = vpop.f32.mrb[119].mxu0  ;;  %v2725_v33 = vadd.f32 %v4978_v37, %v2511_v59 }
 0x1e6   : > { %v3825_v32 = vadd.f32 %v3824_v54, %v3823_v3  ;;  %v2506_v5 = vadd.f32 %v2505_v15, %v4912_v44  ;;  %v2398_v58 = vadd.f32 %v3822_v4, %v4891_v45  ;;  %v2723_v24 = vadd.f32 %v4978_v37, %v2503_v6 }
 0x1e7   : > { %v2726_v53 = vadd.f32 %v4978_v37, %v2514_v0 }
 0x1e8   : > { %v2724_v25 = vadd.f32 %v4978_v37, %v2506_v5  ;;  %v2401_v41 = vadd.f32 %v3825_v32, %v4897_v16 }
 0x1e9   : > { %v3337_v20 = vpack.c.bf16 %v2726_v53, %v2725_v33 }
 0x1ea   : > { %v3332_v10 = vpack.c.bf16 %v2724_v25, %v2723_v24  ;;  %v3826_v31 = vpop.f32.mrb[120].mxu1  ;;  %v3912_v43 = vpop.f32.mrb[120].mxu0 }
 0x1eb   : > { %3401 = vst [vmem:[%s4993_s18 + $0x18] sm:$0xff] %v3337_v20   ;;  %v2527_v56 = vadd.f32 %v3912_v43, %v4942_v17  ;;  %v3827_v44 = vpop.f32.mrb[121].mxu1  ;;  %v2518_v47 = vpop.f32.mrb[121].mxu0 }
 0x1ec   : > { %3400 = vst [vmem:[%s4993_s18 + $0x10] sm:$0xff] %v3332_v10   ;;  %v3828_v45 = vadd.f32 %v3827_v44, %v3826_v31  ;;  %v2519_v18 = vadd.f32 %v2518_v47, %v4930_v55  ;;  %v3829_v60 = vpop.f32.mrb[122].mxu1  ;;  %v3913_v38 = vpop.f32.mrb[122].mxu0 }
 0x1ed   : > { %v2530_v14 = vadd.f32 %v3913_v38, %v4948_v29  ;;  %v3830_v48 = vpop.f32.mrb[123].mxu1  ;;  %v2521_v16 = vpop.f32.mrb[123].mxu0  ;;  %v2729_v17 = vadd.f32 %v4978_v37, %v2527_v56 }
 0x1ee   : > { %v3831_v63 = vadd.f32 %v3830_v48, %v3829_v60  ;;  %v2522_v35 = vadd.f32 %v2521_v16, %v4936_v22  ;;  %v5018_v57 = vadd.f32 %v3828_v45, %v4903_v9  ;;  %v2727_v55 = vadd.f32 %v4978_v37, %v2519_v18 }
 0x1ef   : > { %v2730_v49 = vadd.f32 %v4978_v37, %v2530_v14 }
 0x1f0   : > { %v2728_v52 = vadd.f32 %v4978_v37, %v2522_v35  ;;  %v5025_v34 = vadd.f32 %v3831_v63, %v4909_v11 }
 0x1f1   : > { %v3347_v29 = vpack.c.bf16 %v2730_v49, %v2729_v17 }
 0x1f2   : > { %v3342_v28 = vpack.c.bf16 %v2728_v52, %v2727_v55  ;;  %v3832_v1 = vpop.f32.mrb[124].mxu1  ;;  %v3916_v36 = vpop.f32.mrb[124].mxu0 }
 0x1f3   : > { %3403 = vst [vmem:[%s4993_s18 + $0x28] sm:$0xff] %v3347_v29   ;;  %v2543_v22 = vadd.f32 %v3916_v36, %v4966_v62  ;;  %v3833_v9 = vpop.f32.mrb[125].mxu1  ;;  %v2534_v59 = vpop.f32.mrb[125].mxu0 }
 0x1f4   : > { %3402 = vst [vmem:[%s4993_s18 + $0x20] sm:$0xff] %v3342_v28   ;;  %v3834_v61 = vadd.f32 %v3833_v9, %v3832_v1  ;;  %v2535_v23 = vadd.f32 %v2534_v59, %v4954_v39  ;;  %v3835_v4 = vpop.f32.mrb[126].mxu1  ;;  %v3917_v6 = vpop.f32.mrb[126].mxu0 }
 0x1f5   : > { %v2546_v3 = vadd.f32 %v3917_v6, %v4972_v13  ;;  %v3836_v11 = vpop.f32.mrb[127].mxu1  ;;  %v2537_v8 = vpop.f32.mrb[127].mxu0  ;;  %v2733_v62 = vadd.f32 %v4978_v37, %v2543_v22 }
 0x1f6   : > { %v3837_v0 = vadd.f32 %v3836_v11, %v3835_v4  ;;  %v2538_v54 = vadd.f32 %v2537_v8, %v4960_v50  ;;  %v2414_v15 = vadd.f32 %v3834_v61, %v4915_v40  ;;  %v2731_v5 = vadd.f32 %v4978_v37, %v2535_v23 }
 0x1f7   : > { %v2734_v32 = vadd.f32 %v4978_v37, %v2546_v3 }
 0x1f8   : > { %v2732_v39 = vadd.f32 %v4978_v37, %v2538_v54  ;;  %v2417_v33 = vadd.f32 %v3837_v0, %v4921_v21 }
 0x1f9   : > { %v3357_v53 = vpack.c.bf16 %v2734_v32, %v2733_v62 }
 0x1fa   : > { %v3352_v13 = vpack.c.bf16 %v2732_v39, %v2731_v5  ;;  %v3838_v24 = vpop.f32.mrb[128].mxu1  ;;  %v3920_v25 = vpop.f32.mrb[128].mxu0 }
 0x1fb   : > { %3405 = vst [vmem:[%s4993_s18 + $0x38] sm:$0xff] %v3357_v53   ;;  %v2559_v20 = vadd.f32 %v3920_v25, %v2398_v58  ;;  %v3839_v10 = vpop.f32.mrb[129].mxu1  ;;  %v2550_v50 = vpop.f32.mrb[129].mxu0 }
 0x1fc   : > { %3404 = vst [vmem:[%s4993_s18 + $0x30] sm:$0xff] %v3352_v13   ;;  %v3840_v40 = vadd.f32 %v3839_v10, %v3838_v24  ;;  %v2551_v31 = vadd.f32 %v2550_v50, %v4985_v2  ;;  %v3841_v43 = vpop.f32.mrb[130].mxu1  ;;  %v3921_v56 = vpop.f32.mrb[130].mxu0 }
 0x1fd   : > { %v2562_v44 = vadd.f32 %v3921_v56, %v2401_v41  ;;  %v3842_v47 = vpop.f32.mrb[131].mxu1  ;;  %v2553_v45 = vpop.f32.mrb[131].mxu0  ;;  %v2737_v58 = vadd.f32 %v4978_v37, %v2559_v20 }
 0x1fe   : > { %v3843_v18 = vadd.f32 %v3842_v47, %v3841_v43  ;;  %v2554_v21 = vadd.f32 %v2553_v45, %v4997_v12  ;;  %v2422_v60 = vadd.f32 %v3840_v40, %v4927_v30  ;;  %v2735_v14 = vadd.f32 %v4978_v37, %v2551_v31 }
 0x1ff   : > { %v2738_v38 = vadd.f32 %v4978_v37, %v2562_v44 }
 0x200   : > { %v2736_v2 = vadd.f32 %v4978_v37, %v2554_v21  ;;  %v2425_v48 = vadd.f32 %v3843_v18, %v4933_v19 }
 0x201   : > { %v3367_v16 = vpack.c.bf16 %v2738_v38, %v2737_v58 }
 0x202   : > { %v3362_v41 = vpack.c.bf16 %v2736_v2, %v2735_v14  ;;  %v3844_v63 = vpop.f32.mrb[132].mxu1  ;;  %v3924_v35 = vpop.f32.mrb[132].mxu0 }
 0x203   : > { %3407 = vst [vmem:[%s4993_s18 + $0x48] sm:$0xff] %v3367_v16   ;;  %v2575_v17 = vadd.f32 %v3924_v35, %v2414_v15  ;;  %v3845_v49 = vpop.f32.mrb[133].mxu1  ;;  %v2566_v12 = vpop.f32.mrb[133].mxu0 }
 0x204   : > { %3406 = vst [vmem:[%s4993_s18 + $0x40] sm:$0xff] %v3362_v41   ;;  %v3846_v30 = vadd.f32 %v3845_v49, %v3844_v63  ;;  %v2567_v55 = vadd.f32 %v2566_v12, %v5018_v57  ;;  %v3847_v52 = vpop.f32.mrb[134].mxu1  ;;  %v3925_v29 = vpop.f32.mrb[134].mxu0 }
 0x205   : > { %v2578_v28 = vadd.f32 %v3925_v29, %v2417_v33  ;;  %v3848_v1 = vpop.f32.mrb[135].mxu1  ;;  %v2569_v36 = vpop.f32.mrb[135].mxu0  ;;  %v2741_v59 = vadd.f32 %v4978_v37, %v2575_v17 }
 0x206   : > { %v3849_v22 = vadd.f32 %v3848_v1, %v3847_v52  ;;  %v2570_v19 = vadd.f32 %v2569_v36, %v5025_v34  ;;  %v2430_v9 = vadd.f32 %v3846_v30, %v4939_v27  ;;  %v2739_v23 = vadd.f32 %v4978_v37, %v2567_v55 }
 0x207   : > { %v2742_v61 = vadd.f32 %v4978_v37, %v2578_v28 }
 0x208   : > { %v2740_v57 = vadd.f32 %v4978_v37, %v2570_v19  ;;  %v2433_v4 = vadd.f32 %v3849_v22, %v4945_v42 }
 0x209   : > { %v3377_v6 = vpack.c.bf16 %v2742_v61, %v2741_v59 }
 0x20a   : > { %v3372_v3 = vpack.c.bf16 %v2740_v57, %v2739_v23  ;;  %v3850_v11 = vpop.f32.mrb[136].mxu1  ;;  %v3928_v8 = vpop.f32.mrb[136].mxu0 }
 0x20b   : > { %3409 = vst [vmem:[%s4993_s18 + $0x58] sm:$0xff] %v3377_v6   ;;  %v2591_v0 = vadd.f32 %v3928_v8, %v2430_v9  ;;  %v3851_v54 = vpop.f32.mrb[137].mxu1  ;;  %v2582_v34 = vpop.f32.mrb[137].mxu0 }
 0x20c   : > { %3408 = vst [vmem:[%s4993_s18 + $0x50] sm:$0xff] %v3372_v3   ;;  %v3852_v27 = vadd.f32 %v3851_v54, %v3850_v11  ;;  %v2583_v15 = vadd.f32 %v2582_v34, %v2422_v60  ;;  %v3853_v62 = vpop.f32.mrb[138].mxu1  ;;  %v3929_v32 = vpop.f32.mrb[138].mxu0 }
 0x20d   : > { %v2594_v5 = vadd.f32 %v3929_v32, %v2433_v4  ;;  %v3854_v39 = vpop.f32.mrb[139].mxu1  ;;  %v2585_v33 = vpop.f32.mrb[139].mxu0  ;;  %v2745_v24 = vadd.f32 %v4978_v37, %v2591_v0 }
 0x20e   : > { %v3855_v53 = vadd.f32 %v3854_v39, %v3853_v62  ;;  %v2586_v42 = vadd.f32 %v2585_v33, %v2425_v48  ;;  %v2438_v13 = vadd.f32 %v3852_v27, %v4951_v51  ;;  %v2743_v20 = vadd.f32 %v4978_v37, %v2583_v15 }
 0x20f   : > { %v2746_v25 = vadd.f32 %v4978_v37, %v2594_v5 }
 0x210   : > { %v2744_v10 = vadd.f32 %v4978_v37, %v2586_v42  ;;  %v2441_v50 = vadd.f32 %v3855_v53, %v4957_v7 }
 0x211   : > { %v3387_v40 = vpack.c.bf16 %v2746_v25, %v2745_v24 }
 0x212   : > { %v3382_v31 = vpack.c.bf16 %v2744_v10, %v2743_v20  ;;  %v3856_v43 = vpop.f32.mrb[140].mxu1  ;;  %v3932_v56 = vpop.f32.mrb[140].mxu0 }
 0x213   : > { %3411 = vst [vmem:[%s4993_s18 + $0x68] sm:$0xff] %v3387_v40   ;;  %v3857_v44 = vpop.f32.mrb[141].mxu1  ;;  %v2598_v47 = vpop.f32.mrb[141].mxu0 }
 0x214   : > { %3410 = vst [vmem:[%s4993_s18 + $0x60] sm:$0xff] %v3382_v31   ;;  %v3858_v45 = vadd.f32 %v3857_v44, %v3856_v43  ;;  %v2599_v51 = vadd.f32 %v2598_v47, %v2438_v13  ;;  %v3859_v18 = vpop.f32.mrb[142].mxu1  ;;  %v3933_v21 = vpop.f32.mrb[142].mxu0 }
 0x215   : > { %v3860_v60 = vpop.f32.mrb[143].mxu1  ;;  %v2601_v58 = vpop.f32.mrb[143].mxu0 }
 0x216   : > { %v2446_v38 = vadd.f32 %v3858_v45, %v4963_v46  ;;  %v3861_v14 = vadd.f32 %v3860_v60, %v3859_v18  ;;  %v2602_v7 = vadd.f32 %v2601_v58, %v2441_v50  ;;  %v2747_v48 = vadd.f32 %v4978_v37, %v2599_v51 }
 0x218   : > { %v2607_v2 = vadd.f32 %v3932_v56, %v2446_v38  ;;  %v2449_v16 = vadd.f32 %v3861_v14, %v4969_v26  ;;  %v2748_v41 = vadd.f32 %v4978_v37, %v2602_v7 }
 0x21a   : > { %v2610_v63 = vadd.f32 %v3933_v21, %v2449_v16  ;;  %v3392_v35 = vpack.c.bf16 %v2748_v41, %v2747_v48  ;;  %v2749_v17 = vadd.f32 %v4978_v37, %v2607_v2 }
 0x21c   : > { %v2750_v49 = vadd.f32 %v4978_v37, %v2610_v63  ;;  %3412 = vst [vmem:[%s4993_s18 + $0x70] sm:$0xff] %v3392_v35  }
 0x21e   : > { %v3397_v12 = vpack.c.bf16 %v2750_v49, %v2749_v17 }
 0x220   : > { %3413 = vst [vmem:[%s4993_s18 + $0x78] sm:$0xff] %v3397_v12  }
 0x221 PF: > { %s13_s14 = sadd.s32 1, %s4277_s14   ;;  %s5090_s12 = smov %s4273_s13 }
 0x222   : > { %p10_p5 = scmp.ge.s32.totalorder %s13_s14, 4   ;;  %s5091_s13 = smov %s5093_s15 }
 0x224   :  { %12 = sbr.rel (!%p10_p5) target bundleno = 2 (0x2), region = 76 }

// kernel: mowe_forward.47
= control target key start
LH: loop header
LB: loop body
LE: loop exit
PB: predicated region body
PF: predicated region fallthrough
CT: control target
= control target key end

     0   :  { %s4908_s15 = smov 0   ;;  %s4910_s16 = smov 0   ;;  %s5819_s0 = inlined_call_operand.vmem [shape: bf16[512,1152], index: 0, kind: input, shape index: {}]   ;;  %s5820_s1 = inlined_call_operand.vmem [shape: bf16[1152,128], index: 1, kind: input, shape index: {}]   ;;  %s5821_s2 = inlined_call_operand.vmem [shape: f32[1,128], index: 2, kind: input, shape index: {}]   ;;  %s5822_s3 = inlined_call_operand.vmem [shape: bf16[512,128], index: 3, kind: input, shape index: {}]   ;;  %s5823_s4 = inlined_call_operand.vmem [shape: bf16[512,128], index: 4, kind: output, shape index: {}]  }
   0x1   :  { %s4912_s17 = smov 0  }
   0x2 LB: > { %s33_s18 = sadd.s32 1, %s4877_s16  ;;  %p3394_p0 = scmp.ge.s32.totalorder %s4881_s17, 1  ;;  %s4881_s17 = sphi %s4912_s17, %s14_s17   ;;  %s4877_s16 = sphi %s4910_s16, %s5832_s16   ;;  %s4873_s15 = sphi %s4908_s15, %s5831_s15  }
   0x3   : > { %p35_p1 = scmp.ge.s32.totalorder %s33_s18, 2  ;;  %p232_p2 = scmp.lt.s32.totalorder %s4881_s17, 3 }
   0x5   : > { %s5834_s18 = smov (%p35_p1, %s33_s18), 0  ;;  %p233_p3 = pnand %p3394_p0, %p232_p2 }
   0x6   : > { %v4451_v0 = vld [vmem:[%s5820_s1 + $0x40] sm:$0xff] (!%p233_p3)   ;;  %s3395_s21 = sshll.u32 (!%p233_p3), %s4873_s15, 5  ;;  %v4453_v2 = vld [vmem:[%s5820_s1 + $0x48] sm:$0xff] (!%p233_p3)   ;;  %v4455_v4 = vld [vmem:[%s5820_s1 + $0x50] sm:$0xff] (!%p233_p3)  }
   0x7   : > { %236 = sbr.rel (%p233_p3) target bundleno = 576 (0x240), region = 36  ;;  %v4452_v1 = vld [vmem:[%s5820_s1] sm:$0xff] (!%p233_p3)   ;;  %3890 = vmatprep.subr.bf16.mxu0 (!%p233_p3), %v4451_v0  ;;  %4410 = vmatprep.subr.bf16.mxu1 (!%p233_p3), %v4451_v0  ;;  %p287_p4 = scmp.lt.s32.totalorder (!%p233_p3), %s3395_s21, 63  ;;  %v4454_v3 = vld [vmem:[%s5820_s1 + $0x8] sm:$0xff] (!%p233_p3)   ;;  %v4456_v5 = vld [vmem:[%s5820_s1 + $0x10] sm:$0xff] (!%p233_p3)  }
   0x8   : > { %3891 = vmatpush3.bf16.msra.mxu0 (!%p233_p3), %v4452_v1  ;;  %4418 = vmatpush3.bf16.msra.mxu1 (!%p233_p3), %v4452_v1  ;;  %v4457_v6 = vld [vmem:[%s5820_s1 + $0x58] sm:$0xff] (!%p233_p3)   ;;  %v4459_v8 = vld [vmem:[%s5820_s1 + $0x60] sm:$0xff] (!%p233_p3)   ;;  %v4461_v10 = vld [vmem:[%s5820_s1 + $0x68] sm:$0xff] (!%p233_p3)  }
   0x9   : > { %3892 = vmatprep.subr.bf16.mxu0 (!%p233_p3), %v4453_v2  ;;  %4411 = vmatprep.subr.bf16.mxu1 (!%p233_p3), %v4453_v2  ;;  %v4458_v7 = vld [vmem:[%s5820_s1 + $0x18] sm:$0xff] (!%p233_p3)   ;;  %v4460_v9 = vld [vmem:[%s5820_s1 + $0x20] sm:$0xff] (!%p233_p3)   ;;  %v4462_v13 = vld [vmem:[%s5820_s1 + $0x28] sm:$0xff] (!%p233_p3)  }
   0xa   : > { %v4463_v14 = vld [vmem:[%s5820_s1 + $0x70] sm:$0xff] (!%p233_p3)   ;;  %v4465_v16 = vld [vmem:[%s5820_s1 + $0x78] sm:$0xff] (!%p233_p3)   ;;  %v4473_v18 = vld [vmem:[%s5820_s1 + $0xc0] sm:$0xff] (!%p233_p3)  }
   0xb   : > { %v4464_v15 = vld [vmem:[%s5820_s1 + $0x30] sm:$0xff] (!%p233_p3)   ;;  %v4466_v17 = vld [vmem:[%s5820_s1 + $0x38] sm:$0xff] (!%p233_p3)   ;;  %v4476_v21 = vld [vmem:[%s5820_s1 + $0x140] sm:$0xff] (!%p233_p3)  }
   0xc   : > { %3893 = vmatpush3.bf16.msra.mxu0 (!%p233_p3), %v4454_v3  ;;  %4419 = vmatpush3.bf16.msra.mxu1 (!%p233_p3), %v4454_v3  ;;  %v4474_v22 = vld [vmem:[%s5820_s1 + $0x80] sm:$0xff] (!%p233_p3)   ;;  %v4475_v23 = vld [vmem:[%s5820_s1 + $0xc8] sm:$0xff] (!%p233_p3)   ;;  %v4485_v31 = vld [vmem:[%s5820_s1 + $0xd0] sm:$0xff] (!%p233_p3)  }
   0xd   : > { %3894 = vmatprep.subr.bf16.mxu0 (!%p233_p3), %v4455_v4  ;;  %4412 = vmatprep.subr.bf16.mxu1 (!%p233_p3), %v4455_v4  ;;  %v4478_v24 = vld [vmem:[%s5820_s1 + $0x100] sm:$0xff] (!%p233_p3)   ;;  %v4477_v27 = vld [vmem:[%s5820_s1 + $0x88] sm:$0xff] (!%p233_p3)   ;;  %v4486_v32 = vld [vmem:[%s5820_s1 + $0x90] sm:$0xff] (!%p233_p3)  }
   0xe   : > { %s5836_s21 = smov (!%p287_p4, %s3395_s21), 63  ;;  %v4496_v28 = vld [vmem:[%s5820_s1 + $0x148] sm:$0xff]   ;;  %v4487_v34 = vld [vmem:[%s5820_s1 + $0xd8] sm:$0xff]   ;;  %v4495_v40 = vld [vmem:[%s5820_s1 + $0xe0] sm:$0xff]  }
   0xf   : > { %s4426_s8 = smul.u32 36, %s5836_s21  ;;  %v4498_v33 = vld [vmem:[%s5820_s1 + $0x108] sm:$0xff]   ;;  %v4488_v37 = vld [vmem:[%s5820_s1 + $0x98] sm:$0xff]   ;;  %v4497_v41 = vld [vmem:[%s5820_s1 + $0xa0] sm:$0xff]   ;;  %s3398_s20 = sshll.u32 %s5836_s21, 2 }
  0x10   : > { %3895 = vmatpush3.bf16.msra.mxu0 %v4456_v5  ;;  %4420 = vmatpush3.bf16.msra.mxu1 %v4456_v5  ;;  %v4499_v42 = vld [vmem:[%s5820_s1 + $0xe8] sm:$0xff]   ;;  %v4510_v43 = vld [vmem:[%s5820_s1 + $0x150] sm:$0xff]   ;;  %v4509_v52 = vld [vmem:[%s5820_s1 + $0xf8] sm:$0xff]   ;;  %s5598_s24 = scalar_lea.vmem %s5822_s3, %s3398_s20  ;;  %s5713_s27 = scalar_lea.vmem %s5823_s4, %s3398_s20 }
  0x11   : > { %3896 = vmatprep.subr.bf16.mxu0 %v4457_v6  ;;  %4413 = vmatprep.subr.bf16.mxu1 %v4457_v6  ;;  %s4959_s15 = scalar_lea.vmem %s5819_s0, %s4426_s8  ;;  %v4512_v46 = vld [vmem:[%s5820_s1 + $0x110] sm:$0xff]   ;;  %v4500_v47 = vld [vmem:[%s5820_s1 + $0xa8] sm:$0xff]   ;;  %v4527_v55 = vld [vmem:[%s5820_s1 + $0x158] sm:$0xff]  }
  0x12   : > { %v4469_v11 = vld [vmem:[%s4959_s15 + $0x4] ss:$36 sps:$4 sm:$0xff]   ;;  %v4479_v25 = vld [vmem:[%s4959_s15 + $0x4c] ss:$36 sps:$4 sm:$0xff]   ;;  %v4489_v35 = vld [vmem:[%s4959_s15 + $0x94] ss:$36 sps:$4 sm:$0xff]  }
  0x13   : > { %v4472_v12 = vld [vmem:[%s4959_s15 + $0x364] ss:$36 sps:$4 sm:$0xff]   ;;  %1900 = vmatprep.mubr.bf16.mxu0 %v4469_v11  ;;  %v4481_v26 = vld [vmem:[%s4959_s15 + $0x3ac] ss:$36 sps:$4 sm:$0xff]   ;;  %v4491_v36 = vld [vmem:[%s4959_s15 + $0x3f4] ss:$36 sps:$4 sm:$0xff]  }
  0x14   : > { %3897 = vmatpush3.bf16.msra.mxu0 %v4458_v7  ;;  %4421 = vmatpush3.bf16.msra.mxu1 %v4458_v7  ;;  %v4467_v19 = vld [vmem:[%s4959_s15] ss:$36 sps:$4 sm:$0xff]   ;;  %v4483_v29 = vld [vmem:[%s4959_s15 + $0x48] ss:$36 sps:$4 sm:$0xff]   ;;  %v4493_v38 = vld [vmem:[%s4959_s15 + $0x90] ss:$36 sps:$4 sm:$0xff]  }
  0x15   : > { %3898 = vmatprep.subr.bf16.mxu0 %v4459_v8  ;;  %4414 = vmatprep.subr.bf16.mxu1 %v4459_v8  ;;  %v4470_v20 = vld [vmem:[%s4959_s15 + $0x360] ss:$36 sps:$4 sm:$0xff]   ;;  %v4484_v30 = vld [vmem:[%s4959_s15 + $0x3a8] ss:$36 sps:$4 sm:$0xff]   ;;  %v4494_v39 = vld [vmem:[%s4959_s15 + $0x3f0] ss:$36 sps:$4 sm:$0xff]  }
  0x16   : > { %1996 = vmatprep.mubr.bf16.mxu1 %v4472_v12  ;;  %v4501_v44 = vld [vmem:[%s4959_s15 + $0xdc] ss:$36 sps:$4 sm:$0xff]   ;;  %v4507_v48 = vld [vmem:[%s5820_s1 + $0xf0] sm:$0xff]   ;;  %v4513_v53 = vld [vmem:[%s4959_s15 + $0x124] ss:$36 sps:$4 sm:$0xff]  }
  0x17   : > { %v4503_v45 = vld [vmem:[%s4959_s15 + $0x43c] ss:$36 sps:$4 sm:$0xff]   ;;  %v4508_v51 = vld [vmem:[%s5820_s1 + $0xb0] sm:$0xff]   ;;  %v4515_v58 = vld [vmem:[%s4959_s15 + $0x8] ss:$36 sps:$4 sm:$0xff]  }
  0x18   : > { %3899 = vmatpush3.bf16.msra.mxu0 %v4460_v9  ;;  %4422 = vmatpush3.bf16.msra.mxu1 %v4460_v9  ;;  %v4505_v49 = vld [vmem:[%s4959_s15 + $0xd8] ss:$36 sps:$4 sm:$0xff]   ;;  %v4517_v54 = vld [vmem:[%s4959_s15 + $0xc] ss:$36 sps:$4 sm:$0xff]   ;;  %v4518_v59 = vld [vmem:[%s4959_s15 + $0x120] ss:$36 sps:$4 sm:$0xff]  }
  0x19   : > { %3900 = vmatprep.subr.bf16.mxu0 %v4461_v10  ;;  %4415 = vmatprep.subr.bf16.mxu1 %v4461_v10  ;;  %v4506_v50 = vld [vmem:[%s4959_s15 + $0x438] ss:$36 sps:$4 sm:$0xff]   ;;  %v4519_v60 = vld [vmem:[%s5820_s1 + $0x1c0] sm:$0xff]   ;;  %v4521_v62 = vld [vmem:[%s4959_s15 + $0x16c] ss:$36 sps:$4 sm:$0xff]  }
  0x1a   : > { %v4528_v56 = vld [vmem:[%s5820_s1 + $0x118] sm:$0xff]   ;;  %v4520_v61 = vld [vmem:[%s5820_s1 + $0x180] sm:$0xff]   ;;  %v4535_v1 = vld [vmem:[%s5820_s1 + $0x1c8] sm:$0xff]  }
  0x1b   : > { %v4511_v57 = vld [vmem:[%s5820_s1 + $0xb8] sm:$0xff]   ;;  %v4537_v0 = vld [vmem:[%s5820_s1 + $0x160] sm:$0xff]   ;;  %v4536_v3 = vld [vmem:[%s5820_s1 + $0x188] sm:$0xff]  }
  0x1c   : > { %3901 = vmatpush3.bf16.msra.mxu0 %v4462_v13  ;;  %4423 = vmatpush3.bf16.msra.mxu1 %v4462_v13  ;;  %v4523_v63 = vld [vmem:[%s4959_s15 + $0x54] ss:$36 sps:$4 sm:$0xff]   ;;  %v4538_v2 = vld [vmem:[%s5820_s1 + $0x120] sm:$0xff]   ;;  %v4525_v4 = vld [vmem:[%s4959_s15 + $0x168] ss:$36 sps:$4 sm:$0xff]  }
  0x1d   : > { %3902 = vmatprep.subr.bf16.mxu0 %v4463_v14  ;;  %4416 = vmatprep.subr.bf16.mxu1 %v4463_v14  ;;  %v4526_v5 = vld [vmem:[%s4959_s15 + $0x50] ss:$36 sps:$4 sm:$0xff]   ;;  %v4531_v7 = vld [vmem:[%s4959_s15 + $0x9c] ss:$36 sps:$4 sm:$0xff]   ;;  %v4551_v8 = vld [vmem:[%s5820_s1 + $0x168] sm:$0xff]  }
  0x1e   : > { %v4529_v6 = vld [vmem:[%s4959_s15 + $0x1b4] ss:$36 sps:$4 sm:$0xff]   ;;  %v4553_v10 = vld [vmem:[%s5820_s1 + $0x128] sm:$0xff]   ;;  %v4539_v14 = vld [vmem:[%s4959_s15 + $0x1fc] ss:$36 sps:$4 sm:$0xff]  }
  0x1f   : > { %v4552_v9 = vld [vmem:[%s5820_s1 + $0x1d0] sm:$0xff]   ;;  %v4534_v13 = vld [vmem:[%s4959_s15 + $0x98] ss:$36 sps:$4 sm:$0xff]  }
  0x20   : > { %3903 = vmatpush3.bf16.msra.mxu0 %v4464_v15  ;;  %4424 = vmatpush3.bf16.msra.mxu1 %v4464_v15  ;;  %v4554_v11 = vld [vmem:[%s5820_s1 + $0x190] sm:$0xff]  }
  0x21   : > { %3904 = vmatprep.subr.bf16.mxu0 %v4465_v16  ;;  %4417 = vmatprep.subr.bf16.mxu1 %v4465_v16  ;;  %v4533_v12 = vld [vmem:[%s4959_s15 + $0x1b0] ss:$36 sps:$4 sm:$0xff]  }
  0x22   : > { %v4561_v15 = vld [vmem:[%s5820_s1 + $0x170] sm:$0xff]  }
  0x23   : > { %v4562_v16 = vld [vmem:[%s5820_s1 + $0x130] sm:$0xff]  }
  0x24   : > { %3905 = vmatpush3.bf16.msra.mxu0 %v4466_v17  ;;  %4425 = vmatpush3.bf16.msra.mxu1 %v4466_v17  ;;  %v4541_v17 = vld [vmem:[%s4959_s15 + $0xe4] ss:$36 sps:$4 sm:$0xff]  }
  0x25   : > { %4002 = vmatprep.subr.bf16.mxu1 %v4473_v18  ;;  %4114 = vmatprep.subr.bf16.mxu0 %v4476_v21  ;;  %v4569_v18 = vld [vmem:[%s5820_s1 + $0x1d8] sm:$0xff]   ;;  %v4544_v21 = vld [vmem:[%s4959_s15 + $0xe0] ss:$36 sps:$4 sm:$0xff]  }
  0x27   : > { %1901 = vmatmul.mubr.bf16.vlgmr.msra.gmra.mrb[0].mxu0 %v4467_v19  ;;  %1997 = vmatmul.mubr.bf16.vlgmr.msra.gmra.mrb[0].mxu1 %v4470_v20  ;;  %v4570_v19 = vld [vmem:[%s5820_s1 + $0x198] sm:$0xff]  }
  0x28   : > { %4003 = vmatpush3.bf16.msra.mxu1 %v4474_v22  ;;  %4115 = vmatpush3.bf16.msra.mxu0 %v4478_v24  ;;  %v4543_v20 = vld [vmem:[%s4959_s15 + $0x1f8] ss:$36 sps:$4 sm:$0xff]   ;;  %v4545_v22 = vld [vmem:[%s4959_s15 + $0x244] ss:$36 sps:$4 sm:$0xff]  }
  0x29   : > { %4004 = vmatprep.subr.bf16.mxu1 %v4475_v23  ;;  %1908 = vmatprep.mubr.bf16.mxu0 %v4479_v25  ;;  %v4547_v23 = vld [vmem:[%s4959_s15 + $0x12c] ss:$36 sps:$4 sm:$0xff]   ;;  %v4577_v24 = vld [vmem:[%s5820_s1 + $0x178] sm:$0xff]  }
  0x2a   : > { %2004 = vmatprep.mubr.bf16.mxu1 %v4481_v26  ;;  %4116 = vmatprep.subr.bf16.mxu0 %v4496_v28  ;;  %v4578_v25 = vld [vmem:[%s5820_s1 + $0x138] sm:$0xff]   ;;  %v4585_v26 = vld [vmem:[%s5820_s1 + $0x1e0] sm:$0xff]  }
  0x2b   : > { %v4586_v28 = vld [vmem:[%s5820_s1 + $0x1a0] sm:$0xff]  }
  0x2c   : > { %4005 = vmatpush3.bf16.msra.mxu1 %v4477_v27  ;;  %4117 = vmatpush3.bf16.msra.mxu0 %v4498_v33  ;;  %v4549_v27 = vld [vmem:[%s4959_s15 + $0x240] ss:$36 sps:$4 sm:$0xff]   ;;  %v4600_v33 = vld [vmem:[%s5820_s1 + $0x1e8] sm:$0xff]  }
  0x2d   : > { %4006 = vmatprep.subr.bf16.mxu1 %v4485_v31  ;;  %4118 = vmatprep.subr.bf16.mxu0 %v4510_v43  ;;  %v4555_v31 = vld [vmem:[%s4959_s15 + $0x28c] ss:$36 sps:$4 sm:$0xff]   ;;  %v4571_v43 = vld [vmem:[%s4959_s15 + $0x31c] ss:$36 sps:$4 sm:$0xff]  }
  0x2f   : > { %1909 = vmatmul.mubr.bf16.gmra.mrb[4].mxu0 %v4483_v29  ;;  %2005 = vmatmul.mubr.bf16.gmra.mrb[4].mxu1 %v4484_v30  ;;  %v4587_v29 = vld [vmem:[%s5820_s1 + $0x200] sm:$0xff]   ;;  %v4550_v30 = vld [vmem:[%s4959_s15 + $0x128] ss:$36 sps:$4 sm:$0xff]  }
  0x30   : > { %4007 = vmatpush3.bf16.msra.mxu1 %v4486_v32  ;;  %1916 = vmatprep.mubr.bf16.mxu0 %v4489_v35  ;;  %v4557_v32 = vld [vmem:[%s4959_s15 + $0x174] ss:$36 sps:$4 sm:$0xff]   ;;  %v4601_v35 = vld [vmem:[%s5820_s1 + $0x1a8] sm:$0xff]  }
  0x31   : > { %4008 = vmatprep.subr.bf16.mxu1 %v4487_v34  ;;  %2012 = vmatprep.mubr.bf16.mxu1 %v4491_v36  ;;  %v4559_v34 = vld [vmem:[%s4959_s15 + $0x288] ss:$36 sps:$4 sm:$0xff]   ;;  %v4560_v36 = vld [vmem:[%s4959_s15 + $0x170] ss:$36 sps:$4 sm:$0xff]  }
  0x32   : > { %4119 = vmatpush3.bf16.msra.mxu0 %v4512_v46  ;;  %v4576_v46 = vld [vmem:[%s4959_s15 + $0x200] ss:$36 sps:$4 sm:$0xff]  }
  0x33   : > { %4120 = vmatprep.subr.bf16.mxu0 %v4527_v55  ;;  %v4602_v55 = vld [vmem:[%s5820_s1 + $0x208] sm:$0xff]  }
  0x34   : > { %4009 = vmatpush3.bf16.msra.mxu1 %v4488_v37  ;;  %v4563_v37 = vld [vmem:[%s4959_s15 + $0x2d4] ss:$36 sps:$4 sm:$0xff]  }
  0x35   : > { %4010 = vmatprep.subr.bf16.mxu1 %v4495_v40  ;;  %v4568_v40 = vld [vmem:[%s4959_s15 + $0x1b8] ss:$36 sps:$4 sm:$0xff]  }
  0x36   : > { %4121 = vmatpush3.bf16.msra.mxu0 %v4528_v56  ;;  %v4617_v56 = vld [vmem:[%s5820_s1 + $0x210] sm:$0xff]  }
  0x37   : > { %1917 = vmatmul.mubr.bf16.gmra.mrb[8].mxu0 %v4493_v38  ;;  %2013 = vmatmul.mubr.bf16.gmra.mrb[8].mxu1 %v4494_v39  ;;  %v4565_v38 = vld [vmem:[%s4959_s15 + $0x1bc] ss:$36 sps:$4 sm:$0xff]   ;;  %v4567_v39 = vld [vmem:[%s4959_s15 + $0x2d0] ss:$36 sps:$4 sm:$0xff]  }
  0x38   : > { %4011 = vmatpush3.bf16.msra.mxu1 %v4497_v41  ;;  %1924 = vmatprep.mubr.bf16.mxu0 %v4501_v44  ;;  %v4615_v41 = vld [vmem:[%s5820_s1 + $0x1f0] sm:$0xff]   ;;  %v4573_v44 = vld [vmem:[%s4959_s15 + $0x204] ss:$36 sps:$4 sm:$0xff]  }
  0x39   : > { %4012 = vmatprep.subr.bf16.mxu1 %v4499_v42  ;;  %2020 = vmatprep.mubr.bf16.mxu1 %v4503_v45  ;;  %v4616_v42 = vld [vmem:[%s5820_s1 + $0x1b0] sm:$0xff]   ;;  %v4575_v45 = vld [vmem:[%s4959_s15 + $0x318] ss:$36 sps:$4 sm:$0xff]  }
  0x3a   : > { %4122 = vmatprep.subr.bf16.mxu0 %v4537_v0  ;;  %v4599_v0 = vld [vmem:[%s4959_s15 + $0xa0] ss:$36 sps:$4 sm:$0xff]  }
  0x3b   : > { %4123 = vmatpush3.bf16.msra.mxu0 %v4538_v2  ;;  %v4605_v2 = vld [vmem:[%s4959_s15 + $0xec] ss:$36 sps:$4 sm:$0xff]  }
  0x3c   : > { %4013 = vmatpush3.bf16.msra.mxu1 %v4500_v47  ;;  %4124 = vmatprep.subr.bf16.mxu0 %v4551_v8  ;;  %v4630_v47 = vld [vmem:[%s5820_s1 + $0x1f8] sm:$0xff]  }
  0x3d   : > { %4014 = vmatprep.subr.bf16.mxu1 %v4507_v48  ;;  %v4631_v48 = vld [vmem:[%s5820_s1 + $0x1b8] sm:$0xff]  }
  0x3e   : > { %v4611_v8 = vld [vmem:[%s4959_s15 + $0x134] ss:$36 sps:$4 sm:$0xff]  }
  0x3f   : > { %1925 = vmatmul.mubr.bf16.gmra.mrb[12].mxu0 %v4505_v49  ;;  %2021 = vmatmul.mubr.bf16.gmra.mrb[12].mxu1 %v4506_v50  ;;  %v4579_v49 = vld [vmem:[%s4959_s15 + $0x24c] ss:$36 sps:$4 sm:$0xff]   ;;  %v4583_v50 = vld [vmem:[%s4959_s15 + $0x14] ss:$36 sps:$4 sm:$0xff]  }
  0x40   : > { %4015 = vmatpush3.bf16.msra.mxu1 %v4508_v51  ;;  %1932 = vmatprep.mubr.bf16.mxu0 %v4513_v53  ;;  %v4581_v51 = vld [vmem:[%s4959_s15 + $0x10] ss:$36 sps:$4 sm:$0xff]  }
  0x41   : > { %4016 = vmatprep.subr.bf16.mxu1 %v4509_v52  ;;  %2061 = vmatprep.mubr.bf16.mxu1 %v4517_v54  ;;  %v4584_v52 = vld [vmem:[%s4959_s15 + $0x248] ss:$36 sps:$4 sm:$0xff]   ;;  %v4588_v53 = vld [vmem:[%s4959_s15 + $0x294] ss:$36 sps:$4 sm:$0xff]   ;;  %v4590_v54 = vld [vmem:[%s4959_s15 + $0x5c] ss:$36 sps:$4 sm:$0xff]  }
  0x42   : > { %4125 = vmatpush3.bf16.msra.mxu0 %v4553_v10  ;;  %v4613_v10 = vld [vmem:[%s4959_s15 + $0x368] ss:$36 sps:$4 sm:$0xff]  }
  0x43   : > { %4126 = vmatprep.subr.bf16.mxu0 %v4561_v15  ;;  %v4623_v15 = vld [vmem:[%s4959_s15 + $0x178] ss:$36 sps:$4 sm:$0xff]  }
  0x44   : > { %4017 = vmatpush3.bf16.msra.mxu1 %v4511_v57  ;;  %v4592_v57 = vld [vmem:[%s4959_s15 + $0x290] ss:$36 sps:$4 sm:$0xff]  }
  0x45   : > { %4226 = vmatprep.subr.bf16.mxu1 %v4519_v60  ;;  %v4596_v60 = vld [vmem:[%s4959_s15 + $0xa4] ss:$36 sps:$4 sm:$0xff]  }
  0x46   : > { %4127 = vmatpush3.bf16.msra.mxu0 %v4562_v16  ;;  %v4624_v16 = vld [vmem:[%s4959_s15 + $0x3fc] ss:$36 sps:$4 sm:$0xff]  }
  0x47   : > { %1933 = vmatmul.mubr.bf16.gmra.mrb[16].mxu0 %v4518_v59  ;;  %2062 = vmatmul.mubr.bf16.vlgmr.msra.gmra.mrb[16].mxu1 %v4515_v58  ;;  %v4593_v58 = vld [vmem:[%s4959_s15 + $0x58] ss:$36 sps:$4 sm:$0xff]  }
  0x48   : > { %4227 = vmatpush3.bf16.msra.mxu1 %v4520_v61  ;;  %1940 = vmatprep.mubr.bf16.mxu0 %v4521_v62  ;;  %v4594_v59 = vld [vmem:[%s4959_s15 + $0x2dc] ss:$36 sps:$4 sm:$0xff]  }
  0x49   : > { %2069 = vmatprep.mubr.bf16.mxu1 %v4523_v63  ;;  %4228 = vmatprep.subr.bf16.mxu1 %v4535_v1  ;;  %v4632_v61 = vld [vmem:[%s5820_s1 + $0x218] sm:$0xff]   ;;  %v4645_v62 = vld [vmem:[%s5820_s1 + $0x220] sm:$0xff]  }
  0x4a   : > { %4128 = vmatprep.subr.bf16.mxu0 %v4577_v24  ;;  %v4598_v63 = vld [vmem:[%s4959_s15 + $0x2d8] ss:$36 sps:$4 sm:$0xff]   ;;  %v4603_v1 = vld [vmem:[%s4959_s15 + $0x324] ss:$36 sps:$4 sm:$0xff]  }
  0x4b   : > { %4129 = vmatpush3.bf16.msra.mxu0 %v4578_v25  ;;  %v4639_v24 = vld [vmem:[%s4959_s15 + $0x254] ss:$36 sps:$4 sm:$0xff]   ;;  %v4643_v25 = vld [vmem:[%s4959_s15 + $0x1c] ss:$36 sps:$4 sm:$0xff]  }
  0x4c   : > { %4229 = vmatpush3.bf16.msra.mxu1 %v4536_v3  ;;  %4362 = vmatprep.subr.bf16.mxu0 %v4587_v29  ;;  %v4658_v3 = vld [vmem:[%s5820_s1 + $0x228] sm:$0xff]  }
  0x4d   : > { %4230 = vmatprep.subr.bf16.mxu1 %v4552_v9  ;;  %v4684_v9 = vld [vmem:[%s5820_s1 + $0x238] sm:$0xff]  }
  0x4f   : > { %1941 = vmatmul.mubr.bf16.gmra.mrb[20].mxu0 %v4525_v4  ;;  %2070 = vmatmul.mubr.bf16.gmra.mrb[20].mxu1 %v4526_v5  ;;  %v4607_v4 = vld [vmem:[%s4959_s15 + $0x320] ss:$36 sps:$4 sm:$0xff]   ;;  %v4608_v5 = vld [vmem:[%s4959_s15 + $0xe8] ss:$36 sps:$4 sm:$0xff]  }
  0x50   : > { %1948 = vmatprep.mubr.bf16.mxu0 %v4529_v6  ;;  %2077 = vmatprep.mubr.bf16.mxu1 %v4531_v7  ;;  %v4671_v6 = vld [vmem:[%s5820_s1 + $0x230] sm:$0xff]  }
  0x51   : > { %4231 = vmatpush3.bf16.msra.mxu1 %v4554_v11  ;;  %v4609_v7 = vld [vmem:[%s4959_s15 + $0x36c] ss:$36 sps:$4 sm:$0xff]  }
  0x52   : > { %4232 = vmatprep.subr.bf16.mxu1 %v4569_v18  ;;  %v4614_v11 = vld [vmem:[%s4959_s15 + $0x130] ss:$36 sps:$4 sm:$0xff]   ;;  %v4628_v18 = vld [vmem:[%s4959_s15 + $0x3f8] ss:$36 sps:$4 sm:$0xff]  }
  0x55   : > { %4233 = vmatpush3.bf16.msra.mxu1 %v4570_v19  ;;  %v4629_v19 = vld [vmem:[%s4959_s15 + $0x1c0] ss:$36 sps:$4 sm:$0xff]  }
  0x56   : > { %4234 = vmatprep.subr.bf16.mxu1 %v4585_v26  ;;  %v4641_v26 = vld [vmem:[%s4959_s15 + $0x18] ss:$36 sps:$4 sm:$0xff]  }
  0x57   : > { %1949 = vmatmul.mubr.bf16.gmra.mrb[24].mxu0 %v4533_v12  ;;  %2078 = vmatmul.mubr.bf16.gmra.mrb[24].mxu1 %v4534_v13  ;;  %v4618_v12 = vld [vmem:[%s4959_s15 + $0x3b4] ss:$36 sps:$4 sm:$0xff]   ;;  %v4620_v13 = vld [vmem:[%s4959_s15 + $0x17c] ss:$36 sps:$4 sm:$0xff]  }
  0x58   : > { %1956 = vmatprep.mubr.bf16.mxu0 %v4539_v14  ;;  %2085 = vmatprep.mubr.bf16.mxu1 %v4541_v17  ;;  %v4622_v14 = vld [vmem:[%s4959_s15 + $0x3b0] ss:$36 sps:$4 sm:$0xff]   ;;  %v4626_v17 = vld [vmem:[%s4959_s15 + $0x1c4] ss:$36 sps:$4 sm:$0xff]  }
  0x59   : > { %4235 = vmatpush3.bf16.msra.mxu1 %v4586_v28  ;;  %v4646_v28 = vld [vmem:[%s4959_s15 + $0x29c] ss:$36 sps:$4 sm:$0xff]  }
  0x5a   : > { %4236 = vmatprep.subr.bf16.mxu1 %v4600_v33  ;;  %v4654_v33 = vld [vmem:[%s4959_s15 + $0xac] ss:$36 sps:$4 sm:$0xff]  }
  0x5d   : > { %4237 = vmatpush3.bf16.msra.mxu1 %v4601_v35  ;;  %v4657_v35 = vld [vmem:[%s4959_s15 + $0xa8] ss:$36 sps:$4 sm:$0xff]  }
  0x5e   : > { %4238 = vmatprep.subr.bf16.mxu1 %v4615_v41  ;;  %v4667_v41 = vld [vmem:[%s4959_s15 + $0x13c] ss:$36 sps:$4 sm:$0xff]  }
  0x5f   : > { %1957 = vmatmul.mubr.bf16.gmra.mrb[28].mxu0 %v4543_v20  ;;  %2086 = vmatmul.mubr.bf16.gmra.mrb[28].mxu1 %v4544_v21  ;;  %v4633_v20 = vld [vmem:[%s4959_s15 + $0x444] ss:$36 sps:$4 sm:$0xff]   ;;  %v4635_v21 = vld [vmem:[%s4959_s15 + $0x20c] ss:$36 sps:$4 sm:$0xff]  }
  0x60   : > { %1964 = vmatprep.mubr.bf16.mxu0 %v4545_v22  ;;  %2093 = vmatprep.mubr.bf16.mxu1 %v4547_v23  ;;  %v4637_v22 = vld [vmem:[%s4959_s15 + $0x440] ss:$36 sps:$4 sm:$0xff]   ;;  %v4638_v23 = vld [vmem:[%s4959_s15 + $0x208] ss:$36 sps:$4 sm:$0xff]  }
  0x61   : > { %4239 = vmatpush3.bf16.msra.mxu1 %v4616_v42  ;;  %v4669_v42 = vld [vmem:[%s4959_s15 + $0x370] ss:$36 sps:$4 sm:$0xff]  }
  0x62   : > { %4240 = vmatprep.subr.bf16.mxu1 %v4630_v47  ;;  %v4677_v47 = vld [vmem:[%s4959_s15 + $0x180] ss:$36 sps:$4 sm:$0xff]  }
  0x65   : > { %4241 = vmatpush3.bf16.msra.mxu1 %v4631_v48  ;;  %v4678_v48 = vld [vmem:[%s4959_s15 + $0x404] ss:$36 sps:$4 sm:$0xff]  }
  0x67   : > { %1965 = vmatmul.mubr.bf16.gmra.mrb[32].mxu0 %v4549_v27  ;;  %2094 = vmatmul.mubr.bf16.gmra.mrb[32].mxu1 %v4550_v30  ;;  %v4644_v27 = vld [vmem:[%s4959_s15 + $0x250] ss:$36 sps:$4 sm:$0xff]   ;;  %v4650_v30 = vld [vmem:[%s4959_s15 + $0x298] ss:$36 sps:$4 sm:$0xff]  }
  0x68   : > { %1972 = vmatprep.mubr.bf16.mxu0 %v4555_v31  ;;  %2101 = vmatprep.mubr.bf16.mxu1 %v4557_v32  ;;  %v4651_v31 = vld [vmem:[%s4959_s15 + $0x60] ss:$36 sps:$4 sm:$0xff]  }
  0x69   : > { %v4652_v32 = vld [vmem:[%s4959_s15 + $0x2e4] ss:$36 sps:$4 sm:$0xff]  }
  0x6f   : > { %1973 = vmatmul.mubr.bf16.gmra.mrb[36].mxu0 %v4559_v34  ;;  %2102 = vmatmul.mubr.bf16.gmra.mrb[36].mxu1 %v4560_v36  ;;  %v4656_v34 = vld [vmem:[%s4959_s15 + $0x2e0] ss:$36 sps:$4 sm:$0xff]   ;;  %v4659_v36 = vld [vmem:[%s4959_s15 + $0x32c] ss:$36 sps:$4 sm:$0xff]  }
  0x70   : > { %1980 = vmatprep.mubr.bf16.mxu0 %v4563_v37  ;;  %2109 = vmatprep.mubr.bf16.mxu1 %v4565_v38  ;;  %v4661_v37 = vld [vmem:[%s4959_s15 + $0xf4] ss:$36 sps:$4 sm:$0xff]   ;;  %v4663_v38 = vld [vmem:[%s4959_s15 + $0x328] ss:$36 sps:$4 sm:$0xff]  }
  0x77   : > { %1981 = vmatmul.mubr.bf16.gmra.mrb[40].mxu0 %v4567_v39  ;;  %2110 = vmatmul.mubr.bf16.gmra.mrb[40].mxu1 %v4568_v40  ;;  %v4664_v39 = vld [vmem:[%s4959_s15 + $0xf0] ss:$36 sps:$4 sm:$0xff]  }
  0x78   : > { %1988 = vmatprep.mubr.bf16.mxu0 %v4571_v43  ;;  %2117 = vmatprep.mubr.bf16.mxu1 %v4573_v44  ;;  %v4665_v40 = vld [vmem:[%s4959_s15 + $0x374] ss:$36 sps:$4 sm:$0xff]   ;;  %v4672_v44 = vld [vmem:[%s4959_s15 + $0x3bc] ss:$36 sps:$4 sm:$0xff]  }
  0x79   : > { %v4670_v43 = vld [vmem:[%s4959_s15 + $0x138] ss:$36 sps:$4 sm:$0xff]  }
  0x7f   : > { %1989 = vmatmul.mubr.bf16.gmra.mrb[44].mxu0 %v4575_v45  ;;  %2118 = vmatmul.mubr.bf16.gmra.mrb[44].mxu1 %v4576_v46  ;;  %v4674_v45 = vld [vmem:[%s4959_s15 + $0x184] ss:$36 sps:$4 sm:$0xff]   ;;  %v4676_v46 = vld [vmem:[%s4959_s15 + $0x3b8] ss:$36 sps:$4 sm:$0xff]  }
  0x80   : > { %2125 = vmatprep.mubr.bf16.mxu1 %v4579_v49  ;;  %2222 = vmatprep.mubr.bf16.mxu0 %v4583_v50  ;;  %v4680_v49 = vld [vmem:[%s4959_s15 + $0x1cc] ss:$36 sps:$4 sm:$0xff]   ;;  %v4682_v50 = vld [vmem:[%s4959_s15 + $0x400] ss:$36 sps:$4 sm:$0xff]  }
  0x87   : > { %2126 = vmatmul.mubr.bf16.gmra.mrb[48].mxu1 %v4584_v52  ;;  %2223 = vmatmul.mubr.bf16.vlgmr.msra.gmra.mrb[48].mxu0 %v4581_v51  ;;  %v4683_v51 = vld [vmem:[%s4959_s15 + $0x1c8] ss:$36 sps:$4 sm:$0xff]  }
  0x88   : > { %4363 = vmatpush3.bf16.msra.mxu0 %v4587_v29  ;;  %2133 = vmatprep.mubr.bf16.mxu1 %v4588_v53  ;;  %v4648_v29 = vld [vmem:[%s4959_s15 + $0x64] ss:$36 sps:$4 sm:$0xff]   ;;  %v4685_v52 = vld [vmem:[%s4959_s15 + $0x44c] ss:$36 sps:$4 sm:$0xff]   ;;  %v4687_v53 = vld [vmem:[%s4959_s15 + $0x214] ss:$36 sps:$4 sm:$0xff]  }
  0x89   : > { %2230 = vmatprep.mubr.bf16.mxu0 %v4590_v54  ;;  %4364 = vmatprep.subr.bf16.mxu0 %v4602_v55 }
  0x8c   : > { %4365 = vmatpush3.bf16.msra.mxu0 %v4602_v55 }
  0x8d   : > { %4366 = vmatprep.subr.bf16.mxu0 %v4617_v56 }
  0x8f   : > { %2134 = vmatmul.mubr.bf16.gmra.mrb[52].mxu1 %v4592_v57  ;;  %2231 = vmatmul.mubr.bf16.gmra.mrb[52].mxu0 %v4593_v58  ;;  %v4689_v58 = vld [vmem:[%s4959_s15 + $0x448] ss:$36 sps:$4 sm:$0xff]  }
  0x90   : > { %2141 = vmatprep.mubr.bf16.mxu1 %v4594_v59  ;;  %2238 = vmatprep.mubr.bf16.mxu0 %v4596_v60  ;;  %v4690_v59 = vld [vmem:[%s4959_s15 + $0x210] ss:$36 sps:$4 sm:$0xff]  }
  0x91   : > { %4367 = vmatpush3.bf16.msra.mxu0 %v4617_v56 }
  0x92   : > { %4368 = vmatprep.subr.bf16.mxu0 %v4632_v61 }
  0x95   : > { %4369 = vmatpush3.bf16.msra.mxu0 %v4632_v61 }
  0x96   : > { %4370 = vmatprep.subr.bf16.mxu0 %v4645_v62 }
  0x97   : > { %2142 = vmatmul.mubr.bf16.gmra.mrb[56].mxu1 %v4598_v63  ;;  %2239 = vmatmul.mubr.bf16.gmra.mrb[56].mxu0 %v4599_v0  ;;  %v4691_v0 = vld [vmem:[%s4959_s15 + $0x25c] ss:$36 sps:$4 sm:$0xff]  }
  0x98   : > { %2149 = vmatprep.mubr.bf16.mxu1 %v4603_v1  ;;  %2246 = vmatprep.mubr.bf16.mxu0 %v4605_v2  ;;  %v4693_v1 = vld [vmem:[%s4959_s15 + $0x20] ss:$36 sps:$4 sm:$0xff]  }
  0x99   : > { %4371 = vmatpush3.bf16.msra.mxu0 %v4645_v62 }
  0x9a   : > { %4372 = vmatprep.subr.bf16.mxu0 %v4658_v3 }
  0x9d   : > { %4373 = vmatpush3.bf16.msra.mxu0 %v4658_v3 }
  0x9e   : > { %4374 = vmatprep.subr.bf16.mxu0 %v4671_v6 }
  0x9f   : > { %2150 = vmatmul.mubr.bf16.gmra.mrb[60].mxu1 %v4607_v4  ;;  %2247 = vmatmul.mubr.bf16.gmra.mrb[60].mxu0 %v4608_v5 }
  0xa0   : > { %2157 = vmatprep.mubr.bf16.mxu1 %v4609_v7  ;;  %2254 = vmatprep.mubr.bf16.mxu0 %v4611_v8 }
  0xa1   : > { %4375 = vmatpush3.bf16.msra.mxu0 %v4671_v6 }
  0xa2   : > { %4376 = vmatprep.subr.bf16.mxu0 %v4684_v9 }
  0xa5   : > { %4377 = vmatpush3.bf16.msra.mxu0 %v4684_v9 }
  0xa7   : > { %2158 = vmatmul.mubr.bf16.gmra.mrb[64].mxu1 %v4613_v10  ;;  %2255 = vmatmul.mubr.bf16.gmra.mrb[64].mxu0 %v4614_v11  ;;  %v4694_v10 = vld [vmem:[%s4959_s15 + $0x258] ss:$36 sps:$4 sm:$0xff]   ;;  %v4695_v11 = vld [vmem:[%s4959_s15 + $0x68] ss:$36 sps:$4 sm:$0xff]  }
  0xa8   : > { %2165 = vmatprep.mubr.bf16.mxu1 %v4618_v12  ;;  %2262 = vmatprep.mubr.bf16.mxu0 %v4620_v13 }
  0xaf   : > { %2166 = vmatmul.mubr.bf16.gmra.mrb[68].mxu1 %v4622_v14  ;;  %2263 = vmatmul.mubr.bf16.gmra.mrb[68].mxu0 %v4623_v15 }
  0xb0   : > { %2173 = vmatprep.mubr.bf16.mxu1 %v4624_v16  ;;  %2270 = vmatprep.mubr.bf16.mxu0 %v4626_v17  ;;  %v4696_v16 = vld [vmem:[%s4959_s15 + $0x2a4] ss:$36 sps:$4 sm:$0xff]   ;;  %v4698_v17 = vld [vmem:[%s4959_s15 + $0xb0] ss:$36 sps:$4 sm:$0xff]  }
  0xb7   : > { %2174 = vmatmul.mubr.bf16.gmra.mrb[72].mxu1 %v4628_v18  ;;  %2271 = vmatmul.mubr.bf16.gmra.mrb[72].mxu0 %v4629_v19 }
  0xb8   : > { %2181 = vmatprep.mubr.bf16.mxu1 %v4633_v20  ;;  %2278 = vmatprep.mubr.bf16.mxu0 %v4635_v21 }
  0xbf   : > { %2182 = vmatmul.mubr.bf16.gmra.mrb[76].mxu1 %v4637_v22  ;;  %2279 = vmatmul.mubr.bf16.gmra.mrb[76].mxu0 %v4638_v23 }
  0xc0   : > { %2286 = vmatprep.mubr.bf16.mxu0 %v4639_v24  ;;  %2383 = vmatprep.mubr.bf16.mxu1 %v4643_v25 }
  0xc7   : > { %2287 = vmatmul.mubr.bf16.gmra.mrb[80].mxu0 %v4644_v27  ;;  %2384 = vmatmul.mubr.bf16.vlgmr.msra.gmra.mrb[80].mxu1 %v4641_v26  ;;  %v4699_v26 = vld [vmem:[%s4959_s15 + $0x2a0] ss:$36 sps:$4 sm:$0xff]   ;;  %v4700_v27 = vld [vmem:[%s4959_s15 + $0xf8] ss:$36 sps:$4 sm:$0xff]  }
  0xc8   : > { %2294 = vmatprep.mubr.bf16.mxu0 %v4646_v28  ;;  %2391 = vmatprep.mubr.bf16.mxu1 %v4648_v29 }
  0xcf   : > { %2295 = vmatmul.mubr.bf16.gmra.mrb[84].mxu0 %v4650_v30  ;;  %2392 = vmatmul.mubr.bf16.gmra.mrb[84].mxu1 %v4651_v31 }
  0xd0   : > { %2302 = vmatprep.mubr.bf16.mxu0 %v4652_v32  ;;  %2399 = vmatprep.mubr.bf16.mxu1 %v4654_v33  ;;  %v4701_v32 = vld [vmem:[%s4959_s15 + $0x2ec] ss:$36 sps:$4 sm:$0xff]   ;;  %v4703_v33 = vld [vmem:[%s4959_s15 + $0x140] ss:$36 sps:$4 sm:$0xff]  }
  0xd7   : > { %2303 = vmatmul.mubr.bf16.gmra.mrb[88].mxu0 %v4656_v34  ;;  %2400 = vmatmul.mubr.bf16.gmra.mrb[88].mxu1 %v4657_v35 }
  0xd8   : > { %2310 = vmatprep.mubr.bf16.mxu0 %v4659_v36  ;;  %2407 = vmatprep.mubr.bf16.mxu1 %v4661_v37 }
  0xdf   : > { %2311 = vmatmul.mubr.bf16.gmra.mrb[92].mxu0 %v4663_v38  ;;  %2408 = vmatmul.mubr.bf16.gmra.mrb[92].mxu1 %v4664_v39 }
  0xe0   : > { %2318 = vmatprep.mubr.bf16.mxu0 %v4665_v40  ;;  %2415 = vmatprep.mubr.bf16.mxu1 %v4667_v41 }
  0xe7   : > { %2319 = vmatmul.mubr.bf16.gmra.mrb[96].mxu0 %v4669_v42  ;;  %2416 = vmatmul.mubr.bf16.gmra.mrb[96].mxu1 %v4670_v43  ;;  %v4704_v42 = vld [vmem:[%s4959_s15 + $0x2e8] ss:$36 sps:$4 sm:$0xff]  }
  0xe8   : > { %2326 = vmatprep.mubr.bf16.mxu0 %v4672_v44  ;;  %2423 = vmatprep.mubr.bf16.mxu1 %v4674_v45  ;;  %v4705_v43 = vld [vmem:[%s4959_s15 + $0x188] ss:$36 sps:$4 sm:$0xff]  }
  0xef   : > { %2327 = vmatmul.mubr.bf16.gmra.mrb[100].mxu0 %v4676_v46  ;;  %2424 = vmatmul.mubr.bf16.gmra.mrb[100].mxu1 %v4677_v47 }
  0xf0   : > { %2334 = vmatprep.mubr.bf16.mxu0 %v4678_v48  ;;  %2431 = vmatprep.mubr.bf16.mxu1 %v4680_v49  ;;  %v4706_v48 = vld [vmem:[%s4959_s15 + $0x334] ss:$36 sps:$4 sm:$0xff]  }
  0xf1   : > { %v4708_v49 = vld [vmem:[%s4959_s15 + $0x1d0] ss:$36 sps:$4 sm:$0xff]  }
  0xf7   : > { %2335 = vmatmul.mubr.bf16.gmra.mrb[104].mxu0 %v4682_v50  ;;  %2432 = vmatmul.mubr.bf16.gmra.mrb[104].mxu1 %v4683_v51 }
  0xf8   : > { %2342 = vmatprep.mubr.bf16.mxu0 %v4685_v52  ;;  %2439 = vmatprep.mubr.bf16.mxu1 %v4687_v53 }
  0xfa   : > { %v3978_v54 = vpop.f32.mrb[0].mxu1  ;;  %v3906_v55 = vpop.f32.mrb[0].mxu0 }
  0xfb   : > { %v3979_v56 = vpop.f32.mrb[1].mxu1  ;;  %v3907_v57 = vpop.f32.mrb[1].mxu0 }
  0xfc   : > { %v5262_v60 = vadd.f32 %v3979_v56, %v3978_v54  ;;  %v3981_v61 = vpop.f32.mrb[2].mxu1  ;;  %v5264_v62 = vadd.f32 %v3907_v57, %v3906_v55  ;;  %v3909_v63 = vpop.f32.mrb[2].mxu0 }
  0xfd   : > { %v3982_v2 = vpop.f32.mrb[3].mxu1  ;;  %v3910_v3 = vpop.f32.mrb[3].mxu0 }
  0xfe   : > { %v5268_v4 = vadd.f32 %v3982_v2, %v3981_v61  ;;  %v5270_v5 = vadd.f32 %v3910_v3, %v3909_v63  ;;  %v4711_v2 = vld [vmem:[%s4959_s15 + $0x37c] ss:$36 sps:$4 sm:$0xff]  }
  0xff   : > { %2343 = vmatmul.mubr.bf16.gmra.mrb[108].mxu0 %v4689_v58  ;;  %2440 = vmatmul.mubr.bf16.gmra.mrb[108].mxu1 %v4690_v59  ;;  %v4709_v58 = vld [vmem:[%s4959_s15 + $0x330] ss:$36 sps:$4 sm:$0xff]   ;;  %v4710_v59 = vld [vmem:[%s4959_s15 + $0x218] ss:$36 sps:$4 sm:$0xff]   ;;  %v4713_v3 = vld [vmem:[%s4959_s15 + $0x260] ss:$36 sps:$4 sm:$0xff]  }
 0x100   : > { %2447 = vmatprep.mubr.bf16.mxu1 %v4691_v0  ;;  %4378 = vmatprep.mubr.bf16.mxu0 %v4693_v1 }
 0x102   : > { %v3984_v6 = vpop.f32.mrb[4].mxu1  ;;  %v3912_v7 = vpop.f32.mrb[4].mxu0 }
 0x103   : > { %v3985_v8 = vpop.f32.mrb[5].mxu1  ;;  %v3913_v9 = vpop.f32.mrb[5].mxu0 }
 0x104   : > { %v5274_v12 = vadd.f32 %v3985_v8, %v3984_v6  ;;  %v3987_v13 = vpop.f32.mrb[6].mxu1  ;;  %v5276_v14 = vadd.f32 %v3913_v9, %v3912_v7  ;;  %v3915_v15 = vpop.f32.mrb[6].mxu0 }
 0x105   : > { %v3988_v18 = vpop.f32.mrb[7].mxu1  ;;  %v3916_v19 = vpop.f32.mrb[7].mxu0 }
 0x106   : > { %v5280_v20 = vadd.f32 %v3988_v18, %v3987_v13  ;;  %v5282_v21 = vadd.f32 %v3916_v19, %v3915_v15  ;;  %v4714_v18 = vld [vmem:[%s4959_s15 + $0x378] ss:$36 sps:$4 sm:$0xff]   ;;  %v4715_v19 = vld [vmem:[%s4959_s15 + $0x2a8] ss:$36 sps:$4 sm:$0xff]  }
 0x107   : > { %2448 = vmatmul.mubr.bf16.gmra.mrb[112].mxu1 %v4694_v10  ;;  %4379 = vmatmul.mubr.bf16.vlgmr.msra.gmra.mrb[112].mxu0 %v4695_v11 }
 0x108   : > { %2455 = vmatprep.mubr.bf16.mxu1 %v4696_v16  ;;  %4382 = vmatprep.mubr.bf16.mxu0 %v4698_v17 }
 0x10a   : > { %v3990_v22 = vpop.f32.mrb[8].mxu1  ;;  %v3918_v23 = vpop.f32.mrb[8].mxu0 }
 0x10b   : > { %v3991_v24 = vpop.f32.mrb[9].mxu1  ;;  %v3919_v25 = vpop.f32.mrb[9].mxu0 }
 0x10c   : > { %v5286_v28 = vadd.f32 %v3991_v24, %v3990_v22  ;;  %v3993_v29 = vpop.f32.mrb[10].mxu1  ;;  %v5288_v30 = vadd.f32 %v3919_v25, %v3918_v23  ;;  %v3921_v31 = vpop.f32.mrb[10].mxu0  ;;  %v4716_v25 = vld [vmem:[%s4959_s15 + $0x3c4] ss:$36 sps:$4 sm:$0xff]  }
 0x10d   : > { %v3994_v34 = vpop.f32.mrb[11].mxu1  ;;  %v3922_v35 = vpop.f32.mrb[11].mxu0 }
 0x10e   : > { %v5292_v36 = vadd.f32 %v3994_v34, %v3993_v29  ;;  %v5294_v37 = vadd.f32 %v3922_v35, %v3921_v31 }
 0x10f   : > { %2456 = vmatmul.mubr.bf16.gmra.mrb[116].mxu1 %v4699_v26  ;;  %4383 = vmatmul.mubr.bf16.gmra.mrb[116].mxu0 %v4700_v27  ;;  %v4718_v26 = vld [vmem:[%s4959_s15 + $0x2f0] ss:$36 sps:$4 sm:$0xff]  }
 0x110   : > { %2463 = vmatprep.mubr.bf16.mxu1 %v4701_v32  ;;  %4386 = vmatprep.mubr.bf16.mxu0 %v4703_v33 }
 0x112   : > { %v3996_v38 = vpop.f32.mrb[12].mxu1  ;;  %v3924_v39 = vpop.f32.mrb[12].mxu0 }
 0x113   : > { %v3997_v40 = vpop.f32.mrb[13].mxu1  ;;  %v3925_v41 = vpop.f32.mrb[13].mxu0 }
 0x114   : > { %v5298_v44 = vadd.f32 %v3997_v40, %v3996_v38  ;;  %v3999_v45 = vpop.f32.mrb[14].mxu1  ;;  %v5300_v46 = vadd.f32 %v3925_v41, %v3924_v39  ;;  %v3927_v47 = vpop.f32.mrb[14].mxu0  ;;  %v4719_v40 = vld [vmem:[%s4959_s15 + $0x3c0] ss:$36 sps:$4 sm:$0xff]   ;;  %v4720_v41 = vld [vmem:[%s4959_s15 + $0x338] ss:$36 sps:$4 sm:$0xff]  }
 0x115   : > { %v4000_v50 = vpop.f32.mrb[15].mxu1  ;;  %v3928_v51 = vpop.f32.mrb[15].mxu0 }
 0x116   : > { %v5304_v52 = vadd.f32 %v4000_v50, %v3999_v45  ;;  %v5306_v53 = vadd.f32 %v3928_v51, %v3927_v47  ;;  %v4721_v47 = vld [vmem:[%s4959_s15 + $0x40c] ss:$36 sps:$4 sm:$0xff]  }
 0x117   : > { %2464 = vmatmul.mubr.bf16.gmra.mrb[120].mxu1 %v4704_v42  ;;  %4387 = vmatmul.mubr.bf16.gmra.mrb[120].mxu0 %v4705_v43 }
 0x118   : > { %2471 = vmatprep.mubr.bf16.mxu1 %v4706_v48  ;;  %4390 = vmatprep.mubr.bf16.mxu0 %v4708_v49  ;;  %v4723_v48 = vld [vmem:[%s4959_s15 + $0x380] ss:$36 sps:$4 sm:$0xff]  }
 0x11a   : > { %v4018_v54 = vpop.f32.mrb[16].mxu1  ;;  %v3930_v55 = vpop.f32.mrb[16].mxu0 }
 0x11b   : > { %v4019_v56 = vpop.f32.mrb[17].mxu1  ;;  %v3931_v57 = vpop.f32.mrb[17].mxu0 }
 0x11c   : > { %v4020_v61 = vadd.f32 %v4019_v56, %v4018_v54  ;;  %v4021_v63 = vpop.f32.mrb[18].mxu1  ;;  %v5310_v0 = vadd.f32 %v3931_v57, %v3930_v55  ;;  %v3933_v1 = vpop.f32.mrb[18].mxu0 }
 0x11d   : > { %v4022_v6 = vpop.f32.mrb[19].mxu1  ;;  %v3934_v7 = vpop.f32.mrb[19].mxu0 }
 0x11e   : > { %v5315_v8 = vadd.f32 %v4020_v61, %v5264_v62  ;;  %v4023_v9 = vadd.f32 %v4022_v6, %v4021_v63  ;;  %v5317_v10 = vadd.f32 %v3934_v7, %v3933_v1  ;;  %v4724_v61 = vld [vmem:[%s4959_s15 + $0x408] ss:$36 sps:$4 sm:$0xff]   ;;  %v4726_v6 = vld [vmem:[%s4959_s15 + $0x454] ss:$36 sps:$4 sm:$0xff]  }
 0x11f   : > { %2472 = vmatmul.mubr.bf16.gmra.mrb[124].mxu1 %v4709_v58  ;;  %4391 = vmatmul.mubr.bf16.gmra.mrb[124].mxu0 %v4710_v59  ;;  %v4725_v63 = vld [vmem:[%s4959_s15 + $0x3c8] ss:$36 sps:$4 sm:$0xff]   ;;  %v4728_v7 = vld [vmem:[%s4959_s15 + $0x410] ss:$36 sps:$4 sm:$0xff]  }
 0x120   : > { %v5320_v11 = vadd.f32 %v4023_v9, %v5270_v5  ;;  %2479 = vmatprep.mubr.bf16.mxu1 %v4711_v2  ;;  %4394 = vmatprep.mubr.bf16.mxu0 %v4713_v3 }
 0x122   : > { %v4024_v13 = vpop.f32.mrb[20].mxu1  ;;  %v3936_v15 = vpop.f32.mrb[20].mxu0 }
 0x123   : > { %v4025_v16 = vpop.f32.mrb[21].mxu1  ;;  %v3937_v17 = vpop.f32.mrb[21].mxu0 }
 0x124   : > { %v4026_v62 = vadd.f32 %v4025_v16, %v4024_v13  ;;  %v4027_v22 = vpop.f32.mrb[22].mxu1  ;;  %v5324_v23 = vadd.f32 %v3937_v17, %v3936_v15  ;;  %v3939_v24 = vpop.f32.mrb[22].mxu0 }
 0x125   : > { %v4028_v27 = vpop.f32.mrb[23].mxu1  ;;  %v3940_v5 = vpop.f32.mrb[23].mxu0 }
 0x126   : > { %v5329_v29 = vadd.f32 %v4026_v62, %v5276_v14  ;;  %v4029_v31 = vadd.f32 %v4028_v27, %v4027_v22  ;;  %v5331_v32 = vadd.f32 %v3940_v5, %v3939_v24  ;;  %v4729_v24 = vld [vmem:[%s4959_s15 + $0x450] ss:$36 sps:$4 sm:$0xff]  }
 0x127   : > { %2480 = vmatmul.mubr.bf16.gmra.mrb[128].mxu1 %v4714_v18  ;;  %4395 = vmatmul.mubr.bf16.gmra.mrb[128].mxu0 %v4715_v19 }
 0x128   : > { %v5334_v33 = vadd.f32 %v4029_v31, %v5282_v21  ;;  %2487 = vmatprep.mubr.bf16.mxu1 %v4716_v25  ;;  %4398 = vmatprep.mubr.bf16.mxu0 %v4718_v26  ;;  %v4730_v25 = vld [vmem:[%s4959_s15 + $0x458] ss:$36 sps:$4 sm:$0xff]  }
 0x12a   : > { %v4030_v34 = vpop.f32.mrb[24].mxu1  ;;  %v3942_v35 = vpop.f32.mrb[24].mxu0 }
 0x12b   : > { %v4031_v38 = vpop.f32.mrb[25].mxu1  ;;  %v3943_v39 = vpop.f32.mrb[25].mxu0 }
 0x12c   : > { %v4032_v14 = vadd.f32 %v4031_v38, %v4030_v34  ;;  %v4033_v42 = vpop.f32.mrb[26].mxu1  ;;  %v5338_v43 = vadd.f32 %v3943_v39, %v3942_v35  ;;  %v3945_v45 = vpop.f32.mrb[26].mxu0 }
 0x12d   : > { %v4034_v49 = vpop.f32.mrb[27].mxu1  ;;  %v3946_v21 = vpop.f32.mrb[27].mxu0 }
 0x12e   : > { %v5343_v50 = vadd.f32 %v4032_v14, %v5288_v30  ;;  %v4035_v51 = vadd.f32 %v4034_v49, %v4033_v42  ;;  %v5345_v54 = vadd.f32 %v3946_v21, %v3945_v45 }
 0x12f   : > { %2488 = vmatmul.mubr.bf16.gmra.mrb[132].mxu1 %v4719_v40  ;;  %4399 = vmatmul.mubr.bf16.gmra.mrb[132].mxu0 %v4720_v41 }
 0x130   : > { %v5348_v55 = vadd.f32 %v4035_v51, %v5294_v37  ;;  %2495 = vmatprep.mubr.bf16.mxu1 %v4721_v47  ;;  %4402 = vmatprep.mubr.bf16.mxu0 %v4723_v48 }
 0x132   : > { %v4036_v56 = vpop.f32.mrb[28].mxu1  ;;  %v3948_v57 = vpop.f32.mrb[28].mxu0 }
 0x133   : > { %v4037_v58 = vpop.f32.mrb[29].mxu1  ;;  %v3949_v59 = vpop.f32.mrb[29].mxu0 }
 0x134   : > { %v4038_v30 = vadd.f32 %v4037_v58, %v4036_v56  ;;  %v4039_v1 = vpop.f32.mrb[30].mxu1  ;;  %v5352_v2 = vadd.f32 %v3949_v59, %v3948_v57  ;;  %v3951_v3 = vpop.f32.mrb[30].mxu0 }
 0x135   : > { %v4040_v9 = vpop.f32.mrb[31].mxu1  ;;  %v3952_v37 = vpop.f32.mrb[31].mxu0 }
 0x136   : > { %v5357_v13 = vadd.f32 %v4038_v30, %v5300_v46  ;;  %v4041_v15 = vadd.f32 %v4040_v9, %v4039_v1  ;;  %v5359_v16 = vadd.f32 %v3952_v37, %v3951_v3 }
 0x137   : > { %2496 = vmatmul.mubr.bf16.gmra.mrb[136].mxu1 %v4724_v61  ;;  %4403 = vmatmul.mubr.bf16.gmra.mrb[136].mxu0 %v4725_v63 }
 0x138   : > { %v5362_v17 = vadd.f32 %v4041_v15, %v5306_v53  ;;  %2503 = vmatprep.mubr.bf16.mxu1 %v4726_v6  ;;  %4406 = vmatprep.mubr.bf16.mxu0 %v4728_v7 }
 0x13a   : > { %v4042_v18 = vpop.f32.mrb[32].mxu1  ;;  %v3954_v19 = vpop.f32.mrb[32].mxu0 }
 0x13b   : > { %v4043_v62 = vpop.f32.mrb[33].mxu1  ;;  %v3955_v22 = vpop.f32.mrb[33].mxu0 }
 0x13c   : > { %v4044_v26 = vadd.f32 %v4043_v62, %v4042_v18  ;;  %v4045_v27 = vpop.f32.mrb[34].mxu1  ;;  %v3956_v46 = vadd.f32 %v3955_v22, %v3954_v19  ;;  %v3957_v5 = vpop.f32.mrb[34].mxu0 }
 0x13d   : > { %v4046_v31 = vpop.f32.mrb[35].mxu1  ;;  %v3958_v34 = vpop.f32.mrb[35].mxu0 }
 0x13e   : > { %v5367_v35 = vadd.f32 %v4044_v26, %v5310_v0  ;;  %v4047_v38 = vadd.f32 %v4046_v31, %v4045_v27  ;;  %v3959_v53 = vadd.f32 %v3958_v34, %v3957_v5 }
 0x13f   : > { %2504 = vmatmul.mubr.bf16.gmra.mrb[140].mxu1 %v4729_v24  ;;  %4407 = vmatmul.mubr.bf16.gmra.mrb[140].mxu0 %v4730_v25 }
 0x140   : > { %v5370_v39 = vadd.f32 %v4047_v38, %v5317_v10 }
 0x142   : > { %v4048_v40 = vpop.f32.mrb[36].mxu1  ;;  %v3960_v41 = vpop.f32.mrb[36].mxu0 }
 0x143   : > { %v4049_v14 = vpop.f32.mrb[37].mxu1  ;;  %v3961_v42 = vpop.f32.mrb[37].mxu0 }
 0x144   : > { %v4050_v45 = vadd.f32 %v4049_v14, %v4048_v40  ;;  %v4051_v47 = vpop.f32.mrb[38].mxu1  ;;  %v3962_v48 = vadd.f32 %v3961_v42, %v3960_v41  ;;  %v3963_v49 = vpop.f32.mrb[38].mxu0 }
 0x145   : > { %v4052_v21 = vpop.f32.mrb[39].mxu1  ;;  %v3964_v51 = vpop.f32.mrb[39].mxu0 }
 0x146   : > { %v5373_v0 = vadd.f32 %v4050_v45, %v5324_v23  ;;  %v4053_v56 = vadd.f32 %v4052_v21, %v4051_v47  ;;  %v3965_v57 = vadd.f32 %v3964_v51, %v3963_v49 }
 0x148   : > { %v5376_v58 = vadd.f32 %v4053_v56, %v5331_v32 }
 0x14a   : > { %v4054_v10 = vpop.f32.mrb[40].mxu1  ;;  %v3966_v59 = vpop.f32.mrb[40].mxu0 }
 0x14b   : > { %v4055_v61 = vpop.f32.mrb[41].mxu1  ;;  %v3967_v63 = vpop.f32.mrb[41].mxu0 }
 0x14c   : > { %v4056_v30 = vadd.f32 %v4055_v61, %v4054_v10  ;;  %v4057_v1 = vpop.f32.mrb[42].mxu1  ;;  %v5378_v3 = vadd.f32 %v3967_v63, %v3966_v59  ;;  %v3969_v6 = vpop.f32.mrb[42].mxu0 }
 0x14d   : > { %v4058_v7 = vpop.f32.mrb[43].mxu1  ;;  %v3970_v9 = vpop.f32.mrb[43].mxu0 }
 0x14e   : > { %v5381_v37 = vadd.f32 %v4056_v30, %v5338_v43  ;;  %v4059_v23 = vadd.f32 %v4058_v7, %v4057_v1  ;;  %v3971_v15 = vadd.f32 %v3970_v9, %v3969_v6 }
 0x150   : > { %v5384_v18 = vadd.f32 %v4059_v23, %v5345_v54 }
 0x152   : > { %v4060_v32 = vpop.f32.mrb[44].mxu1  ;;  %v3972_v19 = vpop.f32.mrb[44].mxu0 }
 0x153   : > { %v4061_v62 = vpop.f32.mrb[45].mxu1  ;;  %v3973_v22 = vpop.f32.mrb[45].mxu0 }
 0x154   : > { %v4062_v24 = vadd.f32 %v4061_v62, %v4060_v32  ;;  %v4063_v25 = vpop.f32.mrb[46].mxu1  ;;  %v5386_v26 = vadd.f32 %v3973_v22, %v3972_v19  ;;  %v3975_v27 = vpop.f32.mrb[46].mxu0 }
 0x155   : > { %v4064_v5 = vpop.f32.mrb[47].mxu1  ;;  %v3976_v31 = vpop.f32.mrb[47].mxu0 }
 0x156   : > { %v5389_v34 = vadd.f32 %v4062_v24, %v5352_v2  ;;  %v4065_v43 = vadd.f32 %v4064_v5, %v4063_v25  ;;  %v5391_v38 = vadd.f32 %v3976_v31, %v3975_v27 }
 0x158   : > { %v5394_v54 = vadd.f32 %v4065_v43, %v5359_v16 }
 0x15a   : > { %v4066_v40 = vpop.f32.mrb[48].mxu1  ;;  %v4130_v41 = vpop.f32.mrb[48].mxu0 }
 0x15b   : > { %v4067_v14 = vpop.f32.mrb[49].mxu1  ;;  %v4131_v42 = vpop.f32.mrb[49].mxu0 }
 0x15c   : > { %v4068_v45 = vadd.f32 %v4067_v14, %v4066_v40  ;;  %v4132_v47 = vadd.f32 %v4131_v42, %v4130_v41  ;;  %v4069_v49 = vpop.f32.mrb[50].mxu1  ;;  %v4133_v21 = vpop.f32.mrb[50].mxu0 }
 0x15d   : > { %v4070_v51 = vpop.f32.mrb[51].mxu1  ;;  %v4134_v56 = vpop.f32.mrb[51].mxu0 }
 0x15e   : > { %v5396_v10 = vadd.f32 %v4068_v45, %v3956_v46  ;;  %v5399_v2 = vadd.f32 %v4132_v47, %v5315_v8  ;;  %v4071_v59 = vadd.f32 %v4070_v51, %v4069_v49  ;;  %v4135_v61 = vadd.f32 %v4134_v56, %v4133_v21 }
 0x160   : > { %v5401_v63 = vadd.f32 %v4071_v59, %v3959_v53  ;;  %v5404_v16 = vadd.f32 %v4135_v61, %v5320_v11 }
 0x162   : > { %v4072_v30 = vpop.f32.mrb[52].mxu1  ;;  %v4136_v1 = vpop.f32.mrb[52].mxu0 }
 0x163   : > { %v4073_v6 = vpop.f32.mrb[53].mxu1  ;;  %v4137_v7 = vpop.f32.mrb[53].mxu0 }
 0x164   : > { %v4074_v9 = vadd.f32 %v4073_v6, %v4072_v30  ;;  %v4138_v23 = vadd.f32 %v4137_v7, %v4136_v1  ;;  %v4075_v32 = vpop.f32.mrb[54].mxu1  ;;  %v4139_v19 = vpop.f32.mrb[54].mxu0 }
 0x165   : > { %v4076_v46 = vpop.f32.mrb[55].mxu1  ;;  %v4140_v62 = vpop.f32.mrb[55].mxu0 }
 0x166   : > { %v5406_v22 = vadd.f32 %v4074_v9, %v3962_v48  ;;  %v5409_v8 = vadd.f32 %v4138_v23, %v5329_v29  ;;  %v4077_v53 = vadd.f32 %v4076_v46, %v4075_v32  ;;  %v4141_v24 = vadd.f32 %v4140_v62, %v4139_v19 }
 0x168   : > { %v5411_v25 = vadd.f32 %v4077_v53, %v3965_v57  ;;  %v5414_v11 = vadd.f32 %v4141_v24, %v5334_v33 }
 0x16a   : > { %v4078_v27 = vpop.f32.mrb[56].mxu1  ;;  %v4142_v5 = vpop.f32.mrb[56].mxu0 }
 0x16b   : > { %v4079_v31 = vpop.f32.mrb[57].mxu1  ;;  %v4143_v43 = vpop.f32.mrb[57].mxu0 }
 0x16c   : > { %v4080_v40 = vadd.f32 %v4079_v31, %v4078_v27  ;;  %v4144_v41 = vadd.f32 %v4143_v43, %v4142_v5  ;;  %v4081_v14 = vpop.f32.mrb[58].mxu1  ;;  %v4145_v42 = vpop.f32.mrb[58].mxu0 }
 0x16d   : > { %v4082_v48 = vpop.f32.mrb[59].mxu1  ;;  %v4146_v45 = vpop.f32.mrb[59].mxu0 }
 0x16e   : > { %v5417_v29 = vadd.f32 %v4080_v40, %v5378_v3  ;;  %v5420_v47 = vadd.f32 %v4144_v41, %v5343_v50  ;;  %v4083_v57 = vadd.f32 %v4082_v48, %v4081_v14  ;;  %v4147_v49 = vadd.f32 %v4146_v45, %v4145_v42 }
 0x170   : > { %v5422_v33 = vadd.f32 %v4083_v57, %v3971_v15  ;;  %v5425_v21 = vadd.f32 %v4147_v49, %v5348_v55 }
 0x172   : > { %v4084_v51 = vpop.f32.mrb[60].mxu1  ;;  %v4148_v56 = vpop.f32.mrb[60].mxu0 }
 0x173   : > { %v4085_v59 = vpop.f32.mrb[61].mxu1  ;;  %v4149_v61 = vpop.f32.mrb[61].mxu0 }
 0x174   : > { %v4086_v30 = vadd.f32 %v4085_v59, %v4084_v51  ;;  %v4150_v1 = vadd.f32 %v4149_v61, %v4148_v56  ;;  %v4087_v6 = vpop.f32.mrb[62].mxu1  ;;  %v4151_v7 = vpop.f32.mrb[62].mxu0 }
 0x175   : > { %v4088_v3 = vpop.f32.mrb[63].mxu1  ;;  %v4152_v9 = vpop.f32.mrb[63].mxu0 }
 0x176   : > { %v5428_v50 = vadd.f32 %v4086_v30, %v5386_v26  ;;  %v5431_v23 = vadd.f32 %v4150_v1, %v5357_v13  ;;  %v4089_v15 = vadd.f32 %v4088_v3, %v4087_v6  ;;  %v4153_v32 = vadd.f32 %v4152_v9, %v4151_v7 }
 0x178   : > { %v5434_v55 = vadd.f32 %v4089_v15, %v5391_v38  ;;  %v5437_v19 = vadd.f32 %v4153_v32, %v5362_v17 }
 0x17a   : > { %v4090_v46 = vpop.f32.mrb[64].mxu1  ;;  %v4154_v62 = vpop.f32.mrb[64].mxu0 }
 0x17b   : > { %v4091_v53 = vpop.f32.mrb[65].mxu1  ;;  %v4155_v24 = vpop.f32.mrb[65].mxu0 }
 0x17c   : > { %v4092_v27 = vadd.f32 %v4091_v53, %v4090_v46  ;;  %v4156_v5 = vadd.f32 %v4155_v24, %v4154_v62  ;;  %v4093_v31 = vpop.f32.mrb[66].mxu1  ;;  %v4157_v26 = vpop.f32.mrb[66].mxu0 }
 0x17d   : > { %v4094_v43 = vpop.f32.mrb[67].mxu1  ;;  %v4158_v40 = vpop.f32.mrb[67].mxu0 }
 0x17e   : > { %v5440_v13 = vadd.f32 %v4092_v27, %v5262_v60  ;;  %v5443_v41 = vadd.f32 %v4156_v5, %v5367_v35  ;;  %v4095_v38 = vadd.f32 %v4094_v43, %v4093_v31  ;;  %v4159_v14 = vadd.f32 %v4158_v40, %v4157_v26 }
 0x180   : > { %v5446_v17 = vadd.f32 %v4095_v38, %v5268_v4  ;;  %v5449_v42 = vadd.f32 %v4159_v14, %v5370_v39 }
 0x182   : > { %v4096_v48 = vpop.f32.mrb[68].mxu1  ;;  %v4160_v45 = vpop.f32.mrb[68].mxu0 }
 0x183   : > { %v4097_v57 = vpop.f32.mrb[69].mxu1  ;;  %v4161_v49 = vpop.f32.mrb[69].mxu0 }
 0x184   : > { %v4098_v51 = vadd.f32 %v4097_v57, %v4096_v48  ;;  %v4162_v56 = vadd.f32 %v4161_v49, %v4160_v45  ;;  %v4099_v59 = vpop.f32.mrb[70].mxu1  ;;  %v4163_v60 = vpop.f32.mrb[70].mxu0 }
 0x185   : > { %v4100_v61 = vpop.f32.mrb[71].mxu1  ;;  %v4164_v30 = vpop.f32.mrb[71].mxu0 }
 0x186   : > { %v5452_v35 = vadd.f32 %v4098_v51, %v5274_v12  ;;  %v5455_v1 = vadd.f32 %v4162_v56, %v5373_v0  ;;  %v4101_v4 = vadd.f32 %v4100_v61, %v4099_v59  ;;  %v4165_v6 = vadd.f32 %v4164_v30, %v4163_v60 }
 0x188   : > { %v5458_v39 = vadd.f32 %v4101_v4, %v5280_v20  ;;  %v5461_v7 = vadd.f32 %v4165_v6, %v5376_v58 }
 0x18a   : > { %v4102_v3 = vpop.f32.mrb[72].mxu1  ;;  %v4166_v9 = vpop.f32.mrb[72].mxu0 }
 0x18b   : > { %v4103_v15 = vpop.f32.mrb[73].mxu1  ;;  %v4167_v32 = vpop.f32.mrb[73].mxu0 }
 0x18c   : > { %v4104_v46 = vadd.f32 %v4103_v15, %v4102_v3  ;;  %v4168_v62 = vadd.f32 %v4167_v32, %v4166_v9  ;;  %v4105_v53 = vpop.f32.mrb[74].mxu1  ;;  %v4169_v12 = vpop.f32.mrb[74].mxu0 }
 0x18d   : > { %v4106_v24 = vpop.f32.mrb[75].mxu1  ;;  %v4170_v27 = vpop.f32.mrb[75].mxu0 }
 0x18e   : > { %v5464_v0 = vadd.f32 %v4104_v46, %v5286_v28  ;;  %v5467_v5 = vadd.f32 %v4168_v62, %v5381_v37  ;;  %v4107_v20 = vadd.f32 %v4106_v24, %v4105_v53  ;;  %v4171_v31 = vadd.f32 %v4170_v27, %v4169_v12 }
 0x190   : > { %v5470_v58 = vadd.f32 %v4107_v20, %v5292_v36  ;;  %v5473_v26 = vadd.f32 %v4171_v31, %v5384_v18 }
 0x192   : > { %v4108_v43 = vpop.f32.mrb[76].mxu1  ;;  %v4172_v40 = vpop.f32.mrb[76].mxu0 }
 0x193   : > { %v4109_v38 = vpop.f32.mrb[77].mxu1  ;;  %v4173_v14 = vpop.f32.mrb[77].mxu0 }
 0x194   : > { %v4110_v48 = vadd.f32 %v4109_v38, %v4108_v43  ;;  %v4174_v45 = vadd.f32 %v4173_v14, %v4172_v40  ;;  %v4111_v57 = vpop.f32.mrb[78].mxu1  ;;  %v4175_v28 = vpop.f32.mrb[78].mxu0 }
 0x195   : > { %v4112_v49 = vpop.f32.mrb[79].mxu1  ;;  %v4176_v51 = vpop.f32.mrb[79].mxu0 }
 0x196   : > { %v5476_v37 = vadd.f32 %v4110_v48, %v5298_v44  ;;  %v5479_v56 = vadd.f32 %v4174_v45, %v5389_v34  ;;  %v4113_v36 = vadd.f32 %v4112_v49, %v4111_v57  ;;  %v4177_v59 = vadd.f32 %v4176_v51, %v4175_v28 }
 0x198   : > { %v5482_v18 = vadd.f32 %v4113_v36, %v5304_v52  ;;  %v5485_v60 = vadd.f32 %v4177_v59, %v5394_v54 }
 0x19a   : > { %v4178_v61 = vpop.f32.mrb[80].mxu0  ;;  %v4242_v30 = vpop.f32.mrb[80].mxu1 }
 0x19b   : > { %v4179_v4 = vpop.f32.mrb[81].mxu0  ;;  %v4243_v6 = vpop.f32.mrb[81].mxu1 }
 0x19c   : > { %v4180_v3 = vadd.f32 %v4179_v4, %v4178_v61  ;;  %v4244_v9 = vadd.f32 %v4243_v6, %v4242_v30  ;;  %v4181_v15 = vpop.f32.mrb[82].mxu0  ;;  %v4245_v44 = vpop.f32.mrb[82].mxu1 }
 0x19d   : > { %v4182_v32 = vpop.f32.mrb[83].mxu0  ;;  %v4246_v46 = vpop.f32.mrb[83].mxu1 }
 0x19e   : > { %v5488_v34 = vadd.f32 %v4180_v3, %v5396_v10  ;;  %v4183_v62 = vadd.f32 %v4182_v32, %v4181_v15  ;;  %v4247_v53 = vadd.f32 %v4246_v46, %v4245_v44  ;;  %v5491_v52 = vadd.f32 %v4244_v9, %v5399_v2 }
 0x1a0   : > { %v5494_v54 = vadd.f32 %v4183_v62, %v5401_v63  ;;  %v5497_v12 = vadd.f32 %v4247_v53, %v5404_v16 }
 0x1a2   : > { %v4184_v24 = vpop.f32.mrb[84].mxu0  ;;  %v4248_v27 = vpop.f32.mrb[84].mxu1 }
 0x1a3   : > { %v4185_v20 = vpop.f32.mrb[85].mxu0  ;;  %v4249_v31 = vpop.f32.mrb[85].mxu1 }
 0x1a4   : > { %v4186_v43 = vadd.f32 %v4185_v20, %v4184_v24  ;;  %v4250_v40 = vadd.f32 %v4249_v31, %v4248_v27  ;;  %v4187_v38 = vpop.f32.mrb[86].mxu0  ;;  %v4251_v10 = vpop.f32.mrb[86].mxu1 }
 0x1a5   : > { %v4188_v14 = vpop.f32.mrb[87].mxu0  ;;  %v4252_v48 = vpop.f32.mrb[87].mxu1 }
 0x1a6   : > { %v5500_v45 = vadd.f32 %v4186_v43, %v5406_v22  ;;  %v4189_v2 = vadd.f32 %v4188_v14, %v4187_v38  ;;  %v4253_v57 = vadd.f32 %v4252_v48, %v4251_v10  ;;  %v5503_v63 = vadd.f32 %v4250_v40, %v5409_v8 }
 0x1a8   : > { %v5506_v16 = vadd.f32 %v4189_v2, %v5411_v25  ;;  %v5509_v28 = vadd.f32 %v4253_v57, %v5414_v11 }
 0x1aa   : > { %v4190_v49 = vpop.f32.mrb[88].mxu0  ;;  %v4254_v51 = vpop.f32.mrb[88].mxu1 }
 0x1ab   : > { %v4191_v36 = vpop.f32.mrb[89].mxu0  ;;  %v4255_v59 = vpop.f32.mrb[89].mxu1 }
 0x1ac   : > { %v4192_v61 = vadd.f32 %v4191_v36, %v4190_v49  ;;  %v4256_v30 = vadd.f32 %v4255_v59, %v4254_v51  ;;  %v4193_v4 = vpop.f32.mrb[90].mxu0  ;;  %v4257_v22 = vpop.f32.mrb[90].mxu1 }
 0x1ad   : > { %v4194_v6 = vpop.f32.mrb[91].mxu0  ;;  %v4258_v3 = vpop.f32.mrb[91].mxu1 }
 0x1ae   : > { %v5512_v9 = vadd.f32 %v4192_v61, %v5417_v29  ;;  %v4195_v8 = vadd.f32 %v4194_v6, %v4193_v4  ;;  %v4259_v15 = vadd.f32 %v4258_v3, %v4257_v22  ;;  %v5515_v25 = vadd.f32 %v4256_v30, %v5420_v47 }
 0x1b0   : > { %v5518_v11 = vadd.f32 %v4195_v8, %v5422_v33  ;;  %v5521_v44 = vadd.f32 %v4259_v15, %v5425_v21 }
 0x1b2   : > { %v4196_v32 = vpop.f32.mrb[92].mxu0  ;;  %v4260_v46 = vpop.f32.mrb[92].mxu1 }
 0x1b3   : > { %v4197_v62 = vpop.f32.mrb[93].mxu0  ;;  %v4261_v53 = vpop.f32.mrb[93].mxu1 }
 0x1b4   : > { %v4198_v24 = vadd.f32 %v4197_v62, %v4196_v32  ;;  %v4262_v27 = vadd.f32 %v4261_v53, %v4260_v46  ;;  %v4199_v20 = vpop.f32.mrb[94].mxu0  ;;  %v4263_v29 = vpop.f32.mrb[94].mxu1 }
 0x1b5   : > { %v4200_v31 = vpop.f32.mrb[95].mxu0  ;;  %v4264_v43 = vpop.f32.mrb[95].mxu1 }
 0x1b6   : > { %v5524_v40 = vadd.f32 %v4198_v24, %v5428_v50  ;;  %v4201_v47 = vadd.f32 %v4200_v31, %v4199_v20  ;;  %v4265_v38 = vadd.f32 %v4264_v43, %v4263_v29  ;;  %v5527_v33 = vadd.f32 %v4262_v27, %v5431_v23 }
 0x1b8   : > { %v5530_v21 = vadd.f32 %v4201_v47, %v5434_v55  ;;  %v5533_v10 = vadd.f32 %v4265_v38, %v5437_v19 }
 0x1ba   : > { %v4202_v14 = vpop.f32.mrb[96].mxu0  ;;  %v4266_v48 = vpop.f32.mrb[96].mxu1 }
 0x1bb   : > { %v4203_v2 = vpop.f32.mrb[97].mxu0  ;;  %v4267_v57 = vpop.f32.mrb[97].mxu1 }
 0x1bc   : > { %v4204_v49 = vadd.f32 %v4203_v2, %v4202_v14  ;;  %v4268_v51 = vadd.f32 %v4267_v57, %v4266_v48  ;;  %v4205_v36 = vpop.f32.mrb[98].mxu0  ;;  %v4269_v50 = vpop.f32.mrb[98].mxu1 }
 0x1bd   : > { %v4206_v59 = vpop.f32.mrb[99].mxu0  ;;  %v4270_v61 = vpop.f32.mrb[99].mxu1 }
 0x1be   : > { %v5536_v30 = vadd.f32 %v4204_v49, %v5440_v13  ;;  %v4207_v23 = vadd.f32 %v4206_v59, %v4205_v36  ;;  %v4271_v4 = vadd.f32 %v4270_v61, %v4269_v50  ;;  %v5539_v55 = vadd.f32 %v4268_v51, %v5443_v41 }
 0x1c0   : > { %v5542_v19 = vadd.f32 %v4207_v23, %v5446_v17  ;;  %v5545_v22 = vadd.f32 %v4271_v4, %v5449_v42 }
 0x1c2   : > { %v4208_v6 = vpop.f32.mrb[100].mxu0  ;;  %v4272_v3 = vpop.f32.mrb[100].mxu1 }
 0x1c3   : > { %v4209_v8 = vpop.f32.mrb[101].mxu0  ;;  %v4273_v15 = vpop.f32.mrb[101].mxu1 }
 0x1c4   : > { %v4210_v32 = vadd.f32 %v4209_v8, %v4208_v6  ;;  %v4274_v46 = vadd.f32 %v4273_v15, %v4272_v3  ;;  %v4211_v62 = vpop.f32.mrb[102].mxu0  ;;  %v4275_v13 = vpop.f32.mrb[102].mxu1 }
 0x1c5   : > { %v4212_v53 = vpop.f32.mrb[103].mxu0  ;;  %v4276_v24 = vpop.f32.mrb[103].mxu1 }
 0x1c6   : > { %v5548_v27 = vadd.f32 %v4210_v32, %v5452_v35  ;;  %v4213_v41 = vadd.f32 %v4212_v53, %v4211_v62  ;;  %v4277_v20 = vadd.f32 %v4276_v24, %v4275_v13  ;;  %v5551_v17 = vadd.f32 %v4274_v46, %v5455_v1 }
 0x1c8   : > { %v5554_v42 = vadd.f32 %v4213_v41, %v5458_v39  ;;  %v5557_v29 = vadd.f32 %v4277_v20, %v5461_v7  ;;  %v5586_v41 = vld [vmem:[%s5821_s2] ss:$0 sm:$0xff] }
 0x1ca   : > { %v4214_v31 = vpop.f32.mrb[104].mxu0  ;;  %v4278_v43 = vpop.f32.mrb[104].mxu1 }
 0x1cb   : > { %v4215_v47 = vpop.f32.mrb[105].mxu0  ;;  %v4279_v38 = vpop.f32.mrb[105].mxu1 }
 0x1cc   : > { %v4216_v14 = vadd.f32 %v4215_v47, %v4214_v31  ;;  %v4280_v48 = vadd.f32 %v4279_v38, %v4278_v43  ;;  %v4217_v2 = vpop.f32.mrb[106].mxu0  ;;  %v4281_v35 = vpop.f32.mrb[106].mxu1 }
 0x1cd   : > { %v4218_v57 = vpop.f32.mrb[107].mxu0  ;;  %v4282_v49 = vpop.f32.mrb[107].mxu1 }
 0x1ce   : > { %v5560_v51 = vadd.f32 %v4216_v14, %v5464_v0  ;;  %v4219_v1 = vadd.f32 %v4218_v57, %v4217_v2  ;;  %v4283_v36 = vadd.f32 %v4282_v49, %v4281_v35  ;;  %v5563_v39 = vadd.f32 %v4280_v48, %v5467_v5 }
 0x1d0   : > { %v5566_v7 = vadd.f32 %v4219_v1, %v5470_v58  ;;  %v5569_v50 = vadd.f32 %v4283_v36, %v5473_v26 }
 0x1d2   : > { %v4220_v59 = vpop.f32.mrb[108].mxu0  ;;  %v4284_v61 = vpop.f32.mrb[108].mxu1 }
 0x1d3   : > { %v4221_v23 = vpop.f32.mrb[109].mxu0  ;;  %v4285_v4 = vpop.f32.mrb[109].mxu1 }
 0x1d4   : > { %v4222_v6 = vadd.f32 %v4221_v23, %v4220_v59  ;;  %v4286_v3 = vadd.f32 %v4285_v4, %v4284_v61  ;;  %v4223_v0 = vpop.f32.mrb[110].mxu0  ;;  %v4287_v8 = vpop.f32.mrb[110].mxu1  ;;  %v5611_v59 = vld [vmem:[%s5598_s24 + $0x8] sm:$0xff]   ;;  %v5614_v23 = vld [vmem:[%s5598_s24] sm:$0xff]  }
 0x1d5   : > { %v4224_v15 = vpop.f32.mrb[111].mxu0  ;;  %v4288_v32 = vpop.f32.mrb[111].mxu1 }
 0x1d6   : > { %v5572_v5 = vadd.f32 %v4222_v6, %v5476_v37  ;;  %v4225_v46 = vadd.f32 %v4224_v15, %v4223_v0  ;;  %v4289_v58 = vadd.f32 %v4288_v32, %v4287_v8  ;;  %v5575_v62 = vadd.f32 %v4286_v3, %v5479_v56 }
 0x1d7   : > { %v3722_v8 = vunpack.c.l.bf16 %v5611_v59 }
 0x1d8   : > { %v5578_v26 = vadd.f32 %v4225_v46, %v5482_v18  ;;  %v5581_v13 = vadd.f32 %v4289_v58, %v5485_v60 }
 0x1da   : > { %v4290_v53 = vpop.f32.mrb[112].mxu1  ;;  %v4380_v24 = vpop.f32.mrb[112].mxu0 }
 0x1db   : > { %v2555_v37 = vadd.f32 %v4380_v24, %v5503_v63  ;;  %v4291_v20 = vpop.f32.mrb[113].mxu1  ;;  %v2546_v56 = vpop.f32.mrb[113].mxu0  ;;  %v3723_v24 = vunpack.c.h.bf16 %v5611_v59 }
 0x1dc   : > { %v4292_v31 = vadd.f32 %v4291_v20, %v4290_v53  ;;  %v2547_v18 = vadd.f32 %v2546_v56, %v5491_v52  ;;  %v4293_v43 = vpop.f32.mrb[114].mxu1  ;;  %v4381_v47 = vpop.f32.mrb[114].mxu0  ;;  %v3718_v53 = vunpack.c.l.bf16 %v5614_v23 }
 0x1dd   : > { %v2781_v60 = vadd.f32 %v5586_v41, %v2555_v37  ;;  %v2558_v38 = vadd.f32 %v4381_v47, %v5509_v28  ;;  %v4294_v14 = vpop.f32.mrb[115].mxu1  ;;  %v2549_v48 = vpop.f32.mrb[115].mxu0  ;;  %v5626_v37 = vld [vmem:[%s5598_s24 + $0x10] sm:$0xff]  }
 0x1de   : > { %v2779_v63 = vadd.f32 %v5586_v41, %v2547_v18  ;;  %v4295_v2 = vadd.f32 %v4294_v14, %v4293_v43  ;;  %v2550_v52 = vadd.f32 %v2549_v48, %v5497_v12  ;;  %v5603_v35 = vadd.f32 %v4292_v31, %v5488_v34 }
 0x1df   : > { %v3620_v57 = vmul.f32 -1.442695, %v2781_v60  ;;  %v2782_v28 = vadd.f32 %v5586_v41, %v2558_v38  ;;  %v3719_v60 = vunpack.c.h.bf16 %v5614_v23 }
 0x1e0   : > { %v3618_v49 = vmul.f32 -1.442695, %v2779_v63  ;;  %v2780_v1 = vadd.f32 %v5586_v41, %v2550_v52  ;;  %v5608_v36 = vadd.f32 %v4295_v2, %v5494_v54  ;;  %v5619_v54 = vld [vmem:[%s5598_s24 + $0x18] sm:$0xff]   ;;  %v5638_v63 = vld [vmem:[%s5598_s24 + $0x28] sm:$0xff]   ;;  %v3726_v52 = vunpack.c.l.bf16 %v5626_v37 }
 0x1e1   : > { %4731 = vpow2.f32 %v3620_v57  ;;  %v3621_v61 = vmul.f32 -1.442695, %v2782_v28  ;;  %v3730_v14 = vunpack.c.l.bf16 %v5619_v54  ;;  %v3731_v28 = vunpack.c.h.bf16 %v5619_v54 }
 0x1e2   : > { %4733 = vpow2.f32 %v3618_v49  ;;  %v3619_v12 = vmul.f32 -1.442695, %v2780_v1  ;;  %v4296_v34 = vpop.f32.mrb[116].mxu1  ;;  %v4384_v4 = vpop.f32.mrb[116].mxu0  ;;  %v3727_v49 = vunpack.c.h.bf16 %v5626_v37 }
 0x1e3   : > { %4735 = vpow2.f32 %v3621_v61  ;;  %v2571_v6 = vadd.f32 %v4384_v4, %v5527_v33  ;;  %v4297_v3 = vpop.f32.mrb[117].mxu1  ;;  %v2562_v0 = vpop.f32.mrb[117].mxu0 }
 0x1e4   : > { %4737 = vpow2.f32 %v3619_v12  ;;  %v4298_v15 = vadd.f32 %v4297_v3, %v4296_v34  ;;  %v2563_v32 = vadd.f32 %v2562_v0, %v5515_v25  ;;  %v4299_v46 = vpop.f32.mrb[118].mxu1  ;;  %v4385_v58 = vpop.f32.mrb[118].mxu0  ;;  %v3738_v34 = vunpack.c.l.bf16 %v5638_v63 }
 0x1e5   : > { %v2785_v33 = vadd.f32 %v5586_v41, %v2571_v6  ;;  %v2574_v20 = vadd.f32 %v4385_v58, %v5533_v10  ;;  %v4300_v56 = vpop.f32.mrb[119].mxu1  ;;  %v2565_v31 = vpop.f32.mrb[119].mxu0  ;;  %v5641_v10 = vld [vmem:[%s5598_s24 + $0x20] sm:$0xff]   ;;  %v5653_v6 = vld [vmem:[%s5598_s24 + $0x38] sm:$0xff]  }
 0x1e6   : > { %v2783_v18 = vadd.f32 %v5586_v41, %v2563_v32  ;;  %v4301_v43 = vadd.f32 %v4300_v56, %v4299_v46  ;;  %v2566_v25 = vadd.f32 %v2565_v31, %v5521_v44  ;;  %v5632_v47 = vadd.f32 %v4298_v15, %v5500_v45 }
 0x1e7   : > { %v3624_v38 = vmul.f32 -1.442695, %v2785_v33  ;;  %v2786_v48 = vadd.f32 %v5586_v41, %v2574_v20  ;;  %v3734_v4 = vunpack.c.l.bf16 %v5641_v10  ;;  %v3739_v32 = vunpack.c.h.bf16 %v5638_v63 }
 0x1e8   : > { %v3622_v2 = vmul.f32 -1.442695, %v2783_v18  ;;  %v2784_v44 = vadd.f32 %v5586_v41, %v2566_v25  ;;  %v5646_v45 = vadd.f32 %v4301_v43, %v5506_v16 }
 0x1e9   : > { %4739 = vpow2.f32 %v3624_v38  ;;  %v3625_v57 = vmul.f32 -1.442695, %v2786_v48 }
 0x1ea   : > { %4741 = vpow2.f32 %v3622_v2  ;;  %v3623_v1 = vmul.f32 -1.442695, %v2784_v44  ;;  %v4302_v61 = vpop.f32.mrb[120].mxu1  ;;  %v4388_v12 = vpop.f32.mrb[120].mxu0 }
 0x1eb   : > { %v4732_v3 = vpop.eup %4731  ;;  %4743 = vpow2.f32 %v3625_v57  ;;  %v2587_v16 = vadd.f32 %v4388_v12, %v5551_v17  ;;  %v4303_v0 = vpop.f32.mrb[121].mxu1  ;;  %v5664_v12 = vld [vmem:[%s5598_s24 + $0x30] sm:$0xff]  }
 0x1ec   : > { %v2578_v15 = vpop.f32.mrb[121].mxu0  ;;  %v4734_v58 = vpop.eup %4733  ;;  %v2909_v33 = vadd.f32 1.0, %v4732_v3  ;;  %4745 = vpow2.f32 %v3623_v1  ;;  %v4304_v20 = vadd.f32 %v4303_v0, %v4302_v61 }
 0x1ed   : > { %v2579_v56 = vadd.f32 %v2578_v15, %v5539_v55  ;;  %v4305_v31 = vpop.f32.mrb[122].mxu1  ;;  %v4389_v18 = vpop.f32.mrb[122].mxu0  ;;  %v2907_v25 = vadd.f32 1.0, %v4734_v58  ;;  %v2789_v38 = vadd.f32 %v5586_v41, %v2587_v16  ;;  %v5669_v58 = vld [vmem:[%s5598_s24 + $0x48] sm:$0xff]  }
 0x1ee   : > { %v4736_v43 = vpop.eup %4735  ;;  %v2590_v17 = vadd.f32 %v4389_v18, %v5557_v29  ;;  %v4306_v48 = vpop.f32.mrb[123].mxu1  ;;  %4747 = vrcp.f32 %v2909_v33  ;;  %v5672_v18 = vld [vmem:[%s5598_s24 + $0x40] sm:$0xff]   ;;  %v5675_v33 = vadd.f32 %v4304_v20, %v5512_v9 }
 0x1ef   : > { %v2581_v2 = vpop.f32.mrb[123].mxu0  ;;  %v4738_v57 = vpop.eup %4737  ;;  %v2910_v1 = vadd.f32 1.0, %v4736_v43  ;;  %v2787_v61 = vadd.f32 %v5586_v41, %v2579_v56  ;;  %v4307_v55 = vadd.f32 %v4306_v48, %v4305_v31  ;;  %4749 = vrcp.f32 %v2907_v25 }
 0x1f0   : > { %v2908_v3 = vadd.f32 1.0, %v4738_v57  ;;  %v3628_v0 = vmul.f32 -1.442695, %v2789_v38  ;;  %v2790_v16 = vadd.f32 %v5586_v41, %v2590_v17  ;;  %v2582_v15 = vadd.f32 %v2581_v2, %v5545_v22 }
 0x1f1   : > { %4751 = vrcp.f32 %v2910_v1  ;;  %v3626_v29 = vmul.f32 -1.442695, %v2787_v61  ;;  %v5679_v43 = vadd.f32 %v4307_v55, %v5518_v11 }
 0x1f2   : > { %4753 = vrcp.f32 %v2908_v3  ;;  %v3629_v56 = vmul.f32 -1.442695, %v2790_v16  ;;  %v2788_v25 = vadd.f32 %v5586_v41, %v2582_v15  ;;  %v4308_v38 = vpop.f32.mrb[124].mxu1  ;;  %v4392_v17 = vpop.f32.mrb[124].mxu0 }
 0x1f3   : > { %4755 = vpow2.f32 %v3628_v0  ;;  %v4740_v2 = vpop.eup %4739  ;;  %v2603_v9 = vadd.f32 %v4392_v17, %v5575_v62  ;;  %v4309_v20 = vpop.f32.mrb[125].mxu1 }
 0x1f4   : > { %4757 = vpow2.f32 %v3626_v29  ;;  %v2594_v57 = vpop.f32.mrb[125].mxu0  ;;  %v4742_v61 = vpop.eup %4741  ;;  %v2913_v55 = vadd.f32 1.0, %v4740_v2  ;;  %v3627_v3 = vmul.f32 -1.442695, %v2788_v25  ;;  %v4310_v0 = vadd.f32 %v4309_v20, %v4308_v38 }
 0x1f5   : > { %4759 = vpow2.f32 %v3629_v56  ;;  %v4311_v16 = vpop.f32.mrb[126].mxu1  ;;  %v4393_v15 = vpop.f32.mrb[126].mxu0  ;;  %v2911_v31 = vadd.f32 1.0, %v4742_v61  ;;  %v2793_v48 = vadd.f32 %v5586_v41, %v2603_v9  ;;  %v2595_v29 = vadd.f32 %v2594_v57, %v5563_v39 }
 0x1f6   : > { %v4744_v22 = vpop.eup %4743  ;;  %v2606_v62 = vadd.f32 %v4393_v15, %v5581_v13  ;;  %v4312_v17 = vpop.f32.mrb[127].mxu1  ;;  %4761 = vrcp.f32 %v2913_v55  ;;  %v5695_v13 = vadd.f32 %v4310_v0, %v5524_v40  ;;  %v3755_v61 = vunpack.c.h.bf16 %v5669_v58 }
 0x1f7   : > { %v2597_v44 = vpop.f32.mrb[127].mxu0  ;;  %v4746_v1 = vpop.eup %4745  ;;  %v2914_v11 = vadd.f32 1.0, %v4744_v22  ;;  %v4313_v46 = vadd.f32 %v4312_v17, %v4311_v16  ;;  %4763 = vrcp.f32 %v2911_v31  ;;  %v3632_v38 = vmul.f32 -1.442695, %v2793_v48 }
 0x1f8   : > { %v2598_v56 = vadd.f32 %v2597_v44, %v5569_v50  ;;  %v2912_v25 = vadd.f32 1.0, %v4746_v1  ;;  %v2791_v2 = vadd.f32 %v5586_v41, %v2595_v29  ;;  %v4748_v20 = vpop.eup %4747  ;;  %v2794_v9 = vadd.f32 %v5586_v41, %v2606_v62 }
 0x1f9   : > { %4765 = vrcp.f32 %v2914_v11  ;;  %v4750_v57 = vpop.eup %4749  ;;  %v5699_v50 = vadd.f32 %v4313_v46, %v5530_v21  ;;  %v3069_v31 = vadd.f32 %v4748_v20, %v3722_v8 }
 0x1fa   : > { %v2792_v39 = vadd.f32 %v5586_v41, %v2598_v56  ;;  %4767 = vrcp.f32 %v2912_v25  ;;  %v3630_v22 = vmul.f32 -1.442695, %v2791_v2  ;;  %v3633_v48 = vmul.f32 -1.442695, %v2794_v9  ;;  %v4314_v11 = vpop.f32.mrb[128].mxu1  ;;  %v4396_v55 = vpop.f32.mrb[128].mxu0 }
 0x1fb   : > { %v4752_v44 = vpop.eup %4751  ;;  %4769 = vpow2.f32 %v3627_v3  ;;  %v3067_v0 = vadd.f32 %v4750_v57, %v3718_v53  ;;  %v2619_v21 = vadd.f32 %v4396_v55, %v5632_v47  ;;  %v4315_v46 = vpop.f32.mrb[129].mxu1 }
 0x1fc   : > { %v3631_v1 = vmul.f32 -1.442695, %v2792_v39  ;;  %v4754_v40 = vpop.eup %4753  ;;  %v3070_v16 = vadd.f32 %v4752_v44, %v3723_v24  ;;  %4771 = vpow2.f32 %v3632_v38  ;;  %v2610_v15 = vpop.f32.mrb[129].mxu0  ;;  %v4316_v53 = vadd.f32 %v4315_v46, %v4314_v11 }
 0x1fd   : > { %v4756_v29 = vpop.eup %4755  ;;  %v3068_v8 = vadd.f32 %v4754_v40, %v3719_v60  ;;  %4773 = vpow2.f32 %v3630_v22  ;;  %v2611_v59 = vadd.f32 %v2610_v15, %v5603_v35  ;;  %v4317_v24 = vpop.f32.mrb[130].mxu1  ;;  %v2797_v56 = vadd.f32 %v5586_v41, %v2619_v21 }
 0x1fe   : > { %v4397_v3 = vpop.f32.mrb[130].mxu0  ;;  %v4758_v47 = vpop.eup %4757  ;;  %v3788_v62 = vpack.c.bf16 %v3070_v16, %v3069_v31  ;;  %v2917_v17 = vadd.f32 1.0, %v4756_v29  ;;  %4775 = vpow2.f32 %v3633_v48  ;;  %v5728_v55 = vadd.f32 %v4316_v53, %v5536_v30 }
 0x1ff   : > { %v4318_v25 = vpop.f32.mrb[131].mxu1  ;;  %v2613_v38 = vpop.f32.mrb[131].mxu0  ;;  %v3783_v20 = vpack.c.bf16 %v3068_v8, %v3067_v0  ;;  %v2915_v23 = vadd.f32 1.0, %v4758_v47  ;;  %4777 = vpow2.f32 %v3631_v1  ;;  %v2795_v60 = vadd.f32 %v5586_v41, %v2611_v59 }
 0x200   : > { %v4760_v2 = vpop.eup %4759  ;;  %3875 = vst [vmem:[%s5713_s27 + $0x8] sm:$0xff] %v3788_v62   ;;  %4779 = vrcp.f32 %v2917_v17  ;;  %v3636_v9 = vmul.f32 -1.442695, %v2797_v56  ;;  %v2622_v39 = vadd.f32 %v4397_v3, %v5646_v45  ;;  %v4319_v44 = vadd.f32 %v4318_v25, %v4317_v24 }
 0x201   : > { %v2918_v35 = vadd.f32 1.0, %v4760_v2  ;;  %v4762_v57 = vpop.eup %4761  ;;  %3784 = vst [vmem:[%s5713_s27] sm:$0xff] %v3783_v20   ;;  %4781 = vrcp.f32 %v2915_v23  ;;  %v3634_v22 = vmul.f32 -1.442695, %v2795_v60  ;;  %v2614_v31 = vadd.f32 %v2613_v38, %v5608_v36 }
 0x202   : > { %v4764_v48 = vpop.eup %4763  ;;  %v3073_v11 = vadd.f32 %v4762_v57, %v3730_v14  ;;  %v2798_v1 = vadd.f32 %v5586_v41, %v2622_v39  ;;  %v4320_v16 = vpop.f32.mrb[132].mxu1  ;;  %v5734_v36 = vadd.f32 %v4319_v44, %v5542_v19 }
 0x203   : > { %4783 = vrcp.f32 %v2918_v35  ;;  %v4766_v40 = vpop.eup %4765  ;;  %v3071_v45 = vadd.f32 %v4764_v48, %v3726_v52  ;;  %v2796_v0 = vadd.f32 %v5586_v41, %v2614_v31  ;;  %v4400_v21 = vpop.f32.mrb[132].mxu0 }
 0x204   : > { %4785 = vpow2.f32 %v3636_v9  ;;  %v4768_v46 = vpop.eup %4767  ;;  %v3074_v14 = vadd.f32 %v4766_v40, %v3731_v28  ;;  %v3637_v15 = vmul.f32 -1.442695, %v2798_v1  ;;  %v2635_v30 = vadd.f32 %v4400_v21, %v5695_v13  ;;  %v4321_v29 = vpop.f32.mrb[133].mxu1 }
 0x205   : > { %4787 = vpow2.f32 %v3634_v22  ;;  %v2626_v8 = vpop.f32.mrb[133].mxu0  ;;  %v4770_v53 = vpop.eup %4769  ;;  %v3072_v52 = vadd.f32 %v4768_v46, %v3727_v49  ;;  %v3635_v59 = vmul.f32 -1.442695, %v2796_v0  ;;  %v4322_v24 = vadd.f32 %v4321_v29, %v4320_v16 }
 0x206   : > { %v2627_v3 = vadd.f32 %v2626_v8, %v5675_v33  ;;  %v4323_v19 = vpop.f32.mrb[134].mxu1  ;;  %v4401_v47 = vpop.f32.mrb[134].mxu0  ;;  %v3798_v54 = vpack.c.bf16 %v3074_v14, %v3073_v11  ;;  %v2916_v28 = vadd.f32 1.0, %v4770_v53  ;;  %4789 = vpow2.f32 %v3637_v15 }
 0x207   : > { %v4772_v62 = vpop.eup %4771  ;;  %v2801_v13 = vadd.f32 %v5586_v41, %v2635_v30  ;;  %v4324_v17 = vpop.f32.mrb[135].mxu1  ;;  %v3793_v38 = vpack.c.bf16 %v3072_v52, %v3071_v45  ;;  %4791 = vpow2.f32 %v3635_v59  ;;  %v2638_v23 = vadd.f32 %v4401_v47, %v5699_v50 }
 0x208   : > { %v2629_v56 = vpop.f32.mrb[135].mxu0  ;;  %v4774_v25 = vpop.eup %4773  ;;  %v2921_v37 = vadd.f32 1.0, %v4772_v62  ;;  %v2799_v49 = vadd.f32 %v5586_v41, %v2627_v3  ;;  %3877 = vst [vmem:[%s5713_s27 + $0x18] sm:$0xff] %v3798_v54   ;;  %4793 = vrcp.f32 %v2916_v28  ;;  %v4325_v39 = vadd.f32 %v4324_v17, %v4323_v19 }
 0x209   : > { %v4776_v2 = vpop.eup %4775  ;;  %v2919_v33 = vadd.f32 1.0, %v4774_v25  ;;  %v3640_v20 = vmul.f32 -1.442695, %v2801_v13  ;;  %3876 = vst [vmem:[%s5713_s27 + $0x10] sm:$0xff] %v3793_v38   ;;  %v2802_v44 = vadd.f32 %v5586_v41, %v2638_v23  ;;  %v2630_v31 = vadd.f32 %v2629_v56, %v5679_v43 }
 0x20a   : > { %v4778_v60 = vpop.eup %4777  ;;  %4795 = vrcp.f32 %v2921_v37  ;;  %v2922_v35 = vadd.f32 1.0, %v4776_v2  ;;  %v3638_v9 = vmul.f32 -1.442695, %v2799_v49  ;;  %v4326_v1 = vpop.f32.mrb[136].mxu1  ;;  %v2490_v50 = vadd.f32 %v4322_v24, %v5548_v27 }
 0x20b   : > { %v4780_v57 = vpop.eup %4779  ;;  %4797 = vrcp.f32 %v2919_v33  ;;  %v2920_v22 = vadd.f32 1.0, %v4778_v60  ;;  %v4404_v40 = vpop.f32.mrb[136].mxu0  ;;  %v2493_v45 = vadd.f32 %v4325_v39, %v5554_v42  ;;  %v3641_v21 = vmul.f32 -1.442695, %v2802_v44 }
 0x20c   : > { %v4782_v48 = vpop.eup %4781  ;;  %v3077_v11 = vadd.f32 %v4780_v57, %v3738_v34  ;;  %4799 = vrcp.f32 %v2922_v35  ;;  %v2800_v43 = vadd.f32 %v5586_v41, %v2630_v31  ;;  %v4327_v46 = vpop.f32.mrb[137].mxu1  ;;  %v2651_v27 = vadd.f32 %v4404_v40, %v2490_v50 }
 0x20d   : > { %v4784_v0 = vpop.eup %4783  ;;  %v5755_v16 = vadd.f32 %v4782_v48, %v3734_v4  ;;  %4801 = vrcp.f32 %v2920_v22  ;;  %v2642_v14 = vpop.f32.mrb[137].mxu0  ;;  %v4328_v30 = vadd.f32 %v4327_v46, %v4326_v1  ;;  %v5824_v2 = vunpack.c.h.bf16 %v5641_v10 }
 0x20e   : > { %v4786_v15 = vpop.eup %4785  ;;  %v3078_v34 = vadd.f32 %v4784_v0, %v3739_v32  ;;  %4803 = vpow2.f32 %v3640_v20  ;;  %v4329_v29 = vpop.f32.mrb[138].mxu1  ;;  %v3639_v4 = vmul.f32 -1.442695, %v2800_v43  ;;  %v2643_v52 = vadd.f32 %v2642_v14, %v5728_v55 }
 0x20f   : > { %v4405_v42 = vpop.f32.mrb[138].mxu0  ;;  %v4788_v8 = vpop.eup %4787  ;;  %v2925_v53 = vadd.f32 1.0, %v4786_v15  ;;  %4805 = vpow2.f32 %v3638_v9  ;;  %v2805_v63 = vadd.f32 %v5586_v41, %v2651_v27  ;;  %v2498_v35 = vadd.f32 %v4328_v30, %v5560_v51 }
 0x210   : > { %v4330_v59 = vpop.f32.mrb[139].mxu1  ;;  %v2645_v24 = vpop.f32.mrb[139].mxu0  ;;  %v3808_v3 = vpack.c.bf16 %v3078_v34, %v3077_v11  ;;  %v2923_v19 = vadd.f32 1.0, %v4788_v8  ;;  %4807 = vpow2.f32 %v3641_v21  ;;  %v2803_v47 = vadd.f32 %v5586_v41, %v2643_v52 }
 0x211   : > { %v4790_v32 = vpop.eup %4789  ;;  %4809 = vrcp.f32 %v2925_v53  ;;  %v2654_v62 = vadd.f32 %v4405_v42, %v2493_v45  ;;  %v4331_v54 = vadd.f32 %v4330_v59, %v4329_v29  ;;  %v3644_v17 = vmul.f32 -1.442695, %v2805_v63 }
 0x212   : > { %v4792_v28 = vpop.eup %4791  ;;  %3879 = vst [vmem:[%s5713_s27 + $0x28] sm:$0xff] %v3808_v3   ;;  %4811 = vrcp.f32 %v2923_v19  ;;  %v2926_v13 = vadd.f32 1.0, %v4790_v32  ;;  %v2646_v55 = vadd.f32 %v2645_v24, %v5734_v36  ;;  %v3642_v38 = vmul.f32 -1.442695, %v2803_v47  ;;  %v4332_v23 = vpop.f32.mrb[140].mxu1 }
 0x213   : > { %v4794_v56 = vpop.eup %4793  ;;  %v2924_v25 = vadd.f32 1.0, %v4792_v28  ;;  %4813 = vpow2.f32 %v3639_v4  ;;  %v2806_v37 = vadd.f32 %v5586_v41, %v2654_v62  ;;  %v4408_v60 = vpop.f32.mrb[140].mxu0  ;;  %v5825_v36 = vunpack.c.l.bf16 %v5653_v6 }
 0x214   : > { %v4796_v49 = vpop.eup %4795  ;;  %v3076_v33 = vadd.f32 %v4794_v56, %v5824_v2  ;;  %4815 = vrcp.f32 %v2926_v13  ;;  %v2804_v20 = vadd.f32 %v5586_v41, %v2646_v55  ;;  %v4333_v22 = vpop.f32.mrb[141].mxu1  ;;  %v2501_v31 = vadd.f32 %v4331_v54, %v5566_v7 }
 0x215   : > { %v4798_v9 = vpop.eup %4797  ;;  %v3081_v39 = vadd.f32 %v4796_v49, %v5825_v36  ;;  %4817 = vrcp.f32 %v2924_v25  ;;  %v3645_v57 = vmul.f32 -1.442695, %v2806_v37  ;;  %v2658_v44 = vpop.f32.mrb[141].mxu0  ;;  %v5826_v11 = vunpack.c.l.bf16 %v5664_v12 }
 0x216   : > { %v4800_v10 = vpop.eup %4799  ;;  %v3803_v48 = vpack.c.bf16 %v3076_v33, %v5755_v16  ;;  %4819 = vpow2.f32 %v3644_v17  ;;  %v3643_v50 = vmul.f32 -1.442695, %v2804_v20  ;;  %v4335_v51 = vpop.f32.mrb[142].mxu1  ;;  %v5827_v0 = vunpack.c.h.bf16 %v5653_v6 }
 0x217   : > { %v3079_v1 = vadd.f32 %v4798_v9, %v5826_v11  ;;  %v4409_v40 = vpop.f32.mrb[142].mxu0  ;;  %v4802_v45 = vpop.eup %4801  ;;  %4821 = vpow2.f32 %v3642_v38  ;;  %v4334_v43 = vadd.f32 %v4333_v22, %v4332_v23  ;;  %v2659_v46 = vadd.f32 %v2658_v44, %v2498_v35  ;;  %v3870_v9 = vld [vmem:[%s5598_s24 + $0x58] sm:$0xff]   ;;  %v3869_v44 = vld [vmem:[%s5598_s24 + $0x50] sm:$0xff]  }
 0x218   : > { %v3082_v21 = vadd.f32 %v4800_v10, %v5827_v0  ;;  %v4336_v14 = vpop.f32.mrb[143].mxu1  ;;  %v2661_v7 = vpop.f32.mrb[143].mxu0  ;;  %3878 = vst [vmem:[%s5713_s27 + $0x20] sm:$0xff] %v3803_v48   ;;  %v5828_v16 = vunpack.c.h.bf16 %v5664_v12  ;;  %4823 = vpow2.f32 %v3645_v57  ;;  %v3751_v47 = vunpack.c.h.bf16 %v5672_v18 }
 0x219   : > { %v4804_v15 = vpop.eup %4803  ;;  %v4337_v27 = vadd.f32 %v4336_v14, %v4335_v51  ;;  %v2662_v30 = vadd.f32 %v2661_v7, %v2501_v31  ;;  %4825 = vpow2.f32 %v3643_v50  ;;  %v2506_v6 = vadd.f32 %v4334_v43, %v5572_v5  ;;  %v3872_v43 = vld [vmem:[%s5598_s24 + $0x68] sm:$0xff]  }
 0x21a   : > { %v3080_v34 = vadd.f32 %v4802_v45, %v5828_v16  ;;  %v4806_v29 = vpop.eup %4805  ;;  %v3818_v42 = vpack.c.bf16 %v3082_v21, %v3081_v39  ;;  %v2929_v8 = vadd.f32 1.0, %v4804_v15  ;;  %v2807_v59 = vadd.f32 %v5586_v41, %v2659_v46  ;;  %v3871_v15 = vld [vmem:[%s5598_s24 + $0x60] sm:$0xff]  }
 0x21b   : > { %v4808_v53 = vpop.eup %4807  ;;  %v2927_v52 = vadd.f32 1.0, %v4806_v29  ;;  %v2509_v24 = vadd.f32 %v4337_v27, %v5578_v26  ;;  %v2667_v19 = vadd.f32 %v4408_v60, %v2506_v6  ;;  %v2808_v63 = vadd.f32 %v5586_v41, %v2662_v30 }
 0x21c   : > { %v3813_v4 = vpack.c.bf16 %v3080_v34, %v3079_v1  ;;  %v4810_v12 = vpop.eup %4809  ;;  %3881 = vst [vmem:[%s5713_s27 + $0x38] sm:$0xff] %v3818_v42   ;;  %4827 = vrcp.f32 %v2929_v8  ;;  %v2930_v3 = vadd.f32 1.0, %v4808_v53  ;;  %v3646_v5 = vmul.f32 -1.442695, %v2807_v59 }
 0x21d   : > { %v4812_v32 = vpop.eup %4811  ;;  %4829 = vrcp.f32 %v2927_v52  ;;  %v2670_v62 = vadd.f32 %v4409_v40, %v2509_v24  ;;  %v2809_v28 = vadd.f32 %v5586_v41, %v2667_v19  ;;  %v3647_v13 = vmul.f32 -1.442695, %v2808_v63 }
 0x21e   : > { %3880 = vst [vmem:[%s5713_s27 + $0x30] sm:$0xff] %v3813_v4   ;;  %v4814_v54 = vpop.eup %4813  ;;  %4831 = vrcp.f32 %v2930_v3  ;;  %v5829_v25 = vunpack.c.l.bf16 %v5669_v58  ;;  %v5830_v33 = vunpack.c.l.bf16 %v5672_v18  ;;  %v3762_v18 = vunpack.c.l.bf16 %v3870_v9 }
 0x21f   : > { %v4816_v26 = vpop.eup %4815  ;;  %v2928_v17 = vadd.f32 1.0, %v4814_v54  ;;  %4833 = vpow2.f32 %v3646_v5  ;;  %v2810_v55 = vadd.f32 %v5586_v41, %v2670_v62  ;;  %v3648_v49 = vmul.f32 -1.442695, %v2809_v28 }
 0x220   : > { %v4818_v56 = vpop.eup %4817  ;;  %v3085_v38 = vadd.f32 %v4810_v12, %v5829_v25  ;;  %v3086_v37 = vadd.f32 %v4816_v26, %v3755_v61  ;;  %4835 = vpow2.f32 %v3647_v13  ;;  %v3083_v20 = vadd.f32 %v4812_v32, %v5830_v33  ;;  %v3874_v13 = vld [vmem:[%s5598_s24 + $0x78] sm:$0xff]  }
 0x221   : > { %v4820_v2 = vpop.eup %4819  ;;  %v3084_v23 = vadd.f32 %v4818_v56, %v3751_v47  ;;  %4837 = vrcp.f32 %v2928_v17  ;;  %v3649_v60 = vmul.f32 -1.442695, %v2810_v55  ;;  %v3763_v31 = vunpack.c.h.bf16 %v3870_v9  ;;  %v3873_v47 = vld [vmem:[%s5598_s24 + $0x70] sm:$0xff]  }
 0x222   : > { %v4822_v41 = vpop.eup %4821  ;;  %v3828_v35 = vpack.c.bf16 %v3086_v37, %v3085_v38  ;;  %v2933_v36 = vadd.f32 1.0, %v4820_v2  ;;  %4839 = vpow2.f32 %v3648_v49  ;;  %v3758_v50 = vunpack.c.l.bf16 %v3869_v44 }
 0x223   : > { %v4824_v39 = vpop.eup %4823  ;;  %v3823_v58 = vpack.c.bf16 %v3084_v23, %v3083_v20  ;;  %v2931_v61 = vadd.f32 1.0, %v4822_v41  ;;  %4841 = vpow2.f32 %v3649_v60  ;;  %v3759_v51 = vunpack.c.h.bf16 %v3869_v44 }
 0x224   : > { %v4826_v57 = vpop.eup %4825  ;;  %3883 = vst [vmem:[%s5713_s27 + $0x48] sm:$0xff] %v3828_v35   ;;  %4843 = vrcp.f32 %v2933_v36  ;;  %v2934_v22 = vadd.f32 1.0, %v4824_v39  ;;  %v3770_v42 = vunpack.c.l.bf16 %v3872_v43  ;;  %v3771_v8 = vunpack.c.h.bf16 %v3872_v43 }
 0x225   : > { %3882 = vst [vmem:[%s5713_s27 + $0x40] sm:$0xff] %v3823_v58   ;;  %4845 = vrcp.f32 %v2931_v61  ;;  %v2932_v10 = vadd.f32 1.0, %v4826_v57  ;;  %v3766_v52 = vunpack.c.l.bf16 %v3871_v15  ;;  %v3767_v59 = vunpack.c.h.bf16 %v3871_v15 }
 0x226   : > { %v4828_v48 = vpop.eup %4827  ;;  %4847 = vrcp.f32 %v2934_v22  ;;  %v3774_v26 = vunpack.c.l.bf16 %v3873_v47  ;;  %v3775_v17 = vunpack.c.h.bf16 %v3873_v47  ;;  %v3778_v25 = vunpack.c.l.bf16 %v3874_v13 }
 0x227   : > { %v4830_v11 = vpop.eup %4829  ;;  %4849 = vrcp.f32 %v2932_v10  ;;  %v3089_v45 = vadd.f32 %v4828_v48, %v3762_v18  ;;  %v3779_v38 = vunpack.c.h.bf16 %v3874_v13 }
 0x228   : > { %v4832_v1 = vpop.eup %4831  ;;  %v3087_v27 = vadd.f32 %v4830_v11, %v3758_v50 }
 0x229   : > { %v4834_v40 = vpop.eup %4833  ;;  %v3090_v0 = vadd.f32 %v4832_v1, %v3763_v31 }
 0x22a   : > { %v4836_v21 = vpop.eup %4835  ;;  %v2935_v46 = vadd.f32 1.0, %v4834_v40 }
 0x22b   : > { %v4838_v14 = vpop.eup %4837  ;;  %v3838_v7 = vpack.c.bf16 %v3090_v0, %v3089_v45  ;;  %v2936_v16 = vadd.f32 1.0, %v4836_v21 }
 0x22c   : > { %v4840_v34 = vpop.eup %4839  ;;  %v3088_v30 = vadd.f32 %v4838_v14, %v3759_v51  ;;  %4851 = vrcp.f32 %v2935_v46 }
 0x22d   : > { %v4842_v29 = vpop.eup %4841  ;;  %3885 = vst [vmem:[%s5713_s27 + $0x58] sm:$0xff] %v3838_v7   ;;  %v2937_v6 = vadd.f32 1.0, %v4840_v34  ;;  %4853 = vrcp.f32 %v2936_v16 }
 0x22e   : > { %v4844_v53 = vpop.eup %4843  ;;  %v3833_v4 = vpack.c.bf16 %v3088_v30, %v3087_v27  ;;  %v2938_v24 = vadd.f32 1.0, %v4842_v29 }
 0x22f   : > { %v4846_v12 = vpop.eup %4845  ;;  %4855 = vrcp.f32 %v2937_v6  ;;  %v3093_v63 = vadd.f32 %v4844_v53, %v3770_v42 }
 0x230   : > { %v4848_v3 = vpop.eup %4847  ;;  %3884 = vst [vmem:[%s5713_s27 + $0x50] sm:$0xff] %v3833_v4   ;;  %4857 = vrcp.f32 %v2938_v24  ;;  %v3091_v5 = vadd.f32 %v4846_v12, %v3766_v52 }
 0x231   : > { %v4850_v19 = vpop.eup %4849  ;;  %v3094_v32 = vadd.f32 %v4848_v3, %v3771_v8 }
 0x232   : > { %v3092_v62 = vadd.f32 %v4850_v19, %v3767_v59 }
 0x233   : > { %v3848_v54 = vpack.c.bf16 %v3094_v32, %v3093_v63 }
 0x234   : > { %v3843_v28 = vpack.c.bf16 %v3092_v62, %v3091_v5 }
 0x235   : > { %3887 = vst [vmem:[%s5713_s27 + $0x68] sm:$0xff] %v3848_v54  }
 0x236   : > { %v4852_v55 = vpop.eup %4851  ;;  %3886 = vst [vmem:[%s5713_s27 + $0x60] sm:$0xff] %v3843_v28  }
 0x237   : > { %v4854_v56 = vpop.eup %4853  ;;  %v3095_v37 = vadd.f32 %v4852_v55, %v3774_v26 }
 0x238   : > { %v3096_v49 = vadd.f32 %v4854_v56, %v3775_v17 }
 0x239   : > { %v4856_v2 = vpop.eup %4855 }
 0x23a   : > { %v4858_v33 = vpop.eup %4857  ;;  %v3853_v20 = vpack.c.bf16 %v3096_v49, %v3095_v37  ;;  %v3097_v23 = vadd.f32 %v4856_v2, %v3778_v25 }
 0x23b   : > { %v3098_v60 = vadd.f32 %v4858_v33, %v3779_v38 }
 0x23c   : > { %3888 = vst [vmem:[%s5713_s27 + $0x70] sm:$0xff] %v3853_v20  }
 0x23d   : > { %v3858_v41 = vpack.c.bf16 %v3098_v60, %v3097_v23 }
 0x23f   : > { %3889 = vst [vmem:[%s5713_s27 + $0x78] sm:$0xff] %v3858_v41  }
 0x240 PF: > { %s14_s17 = sadd.s32 1, %s4881_s17   ;;  %s5831_s15 = smov %s4877_s16 }
 0x241   : > { %p11_p5 = scmp.ge.s32.totalorder %s14_s17, 4   ;;  %s5832_s16 = smov %s5834_s18 }
 0x243   :  { %13 = sbr.rel (!%p11_p5) target bundleno = 2 (0x2), region = 83 }

</bundles_post_ra>
